<compile_context>
chip_gen: v5e
topology: v5e:2x2
jax: 0.10.0
libtpu: 0.0.40
codegen_flags: <defaults>
</compile_context>

<pallas_src>
import functools

import jax
import jax.numpy as jnp
from jax.experimental import pallas as pl
from jax.experimental.pallas import tpu as pltpu


# --------------------- fused CLIP encoder (layer-stack) kernel --------------------- #

def _clip_stack_kernel(
    x0_ref, bias_ref,
    ln1_g_ref, ln1_b_ref, qkv_w_ref, qkv_b_ref, o_w_ref, o_b_ref,
    ln2_g_ref, ln2_b_ref, fc1_w_ref, fc1_b_ref, fc2_w_ref, fc2_b_ref,
    lnf_g_ref, lnf_b_ref,
    penult_ref, last_ref,
    x_scr,
    *, n_heads, n_layers, eps,
):
  """One grid step == one CLIP encoder layer; activation resident in x_scr (VMEM)."""
  l = pl.program_id(0)

  @pl.when(l == 0)
  def _init():
    x_scr[...] = x0_ref[...].astype(jnp.float32)

  x = x_scr[...]                      # (R, D) f32, R = 2 * S_pad (pos + neg stacked)
  R, D = x.shape
  Dh = D // n_heads
  scale = Dh ** -0.5

  def layernorm(v, g_ref, b_ref):
    mu = jnp.mean(v, axis=-1, keepdims=True)
    var = jnp.mean(jnp.square(v - mu), axis=-1, keepdims=True)
    return (v - mu) * jax.lax.rsqrt(var + eps) * g_ref[...] + b_ref[...]

  # ---------------- self-attention block (pre-LN, causal, block-diag over pos/neg) ----
  h = layernorm(x, ln1_g_ref, ln1_b_ref).astype(jnp.bfloat16)
  qkv = jnp.dot(h, qkv_w_ref[...], preferred_element_type=jnp.float32) + qkv_b_ref[...]
  bias = bias_ref[...]                # (R, R) additive mask, precomputed in glue

  heads = []
  for hh in range(n_heads):           # heads = lane slices; activation stays [R, D]-dense
    q_h = qkv[:, hh * Dh:(hh + 1) * Dh].astype(jnp.bfloat16)
    k_h = qkv[:, D + hh * Dh:D + (hh + 1) * Dh].astype(jnp.bfloat16)
    v_h = qkv[:, 2 * D + hh * Dh:2 * D + (hh + 1) * Dh].astype(jnp.bfloat16)
    s = jax.lax.dot_general(q_h, k_h, (((1,), (1,)), ((), ())),
                            preferred_element_type=jnp.float32)
    s = s * scale + bias
    s = s - jnp.max(s, axis=-1, keepdims=True)
    p = jnp.exp(s)
    p = p * pl.reciprocal(jnp.sum(p, axis=-1, keepdims=True), approx=True)
    heads.append(jnp.dot(p.astype(jnp.bfloat16), v_h,
                         preferred_element_type=jnp.float32))
  attn = jnp.concatenate(heads, axis=-1).astype(jnp.bfloat16)
  attn = jnp.dot(attn, o_w_ref[...], preferred_element_type=jnp.float32) + o_b_ref[...]
  x = x + attn

  # ---------------- MLP block (pre-LN, quick_gelu) ------------------------------------
  h2 = layernorm(x, ln2_g_ref, ln2_b_ref).astype(jnp.bfloat16)
  f = jnp.dot(h2, fc1_w_ref[...], preferred_element_type=jnp.float32) + fc1_b_ref[...]
  f = f * jax.nn.sigmoid(1.702 * f)   # quick_gelu, kept in f32 (v5e has no bf16 VPU)
  m = jnp.dot(f.astype(jnp.bfloat16), fc2_w_ref[...],
              preferred_element_type=jnp.float32) + fc2_b_ref[...]
  x = x + m

  x_scr[...] = x

  @pl.when(l == n_layers - 2)         # hidden_states[-2] (input of the last layer)
  def _write_penultimate():
    penult_ref[...] = x

  @pl.when(l == n_layers - 1)         # last_hidden_state = final_layer_norm(output)
  def _write_last():
    last_ref[...] = layernorm(x, lnf_g_ref, lnf_b_ref)


def clip_encoder_stack(x0, attn_bias, params, cfg):
  """x0: (2*S_pad, D) embedded [pos; neg] rows.  Returns (penultimate, last_hidden)."""
  n_layers = cfg["n_layers"]
  n_heads = cfg["n_heads"]
  assert n_layers >= 2, "fused encoder expects >= 2 layers"
  R, D = x0.shape

  kernel = functools.partial(_clip_stack_kernel, n_heads=n_heads,
                             n_layers=n_layers, eps=1e-5)

  def stacked(a):   # (L, ...) per-layer stacked tensor, selected by the layer grid index
    return pl.BlockSpec((None,) + a.shape[1:],
                        lambda l, _nd=a.ndim: (l,) + (0,) * (_nd - 1))

  def whole(a):     # constant across layers (stays VMEM-resident)
    return pl.BlockSpec(a.shape, lambda l, _nd=a.ndim: (0,) * _nd)

  in_arrays = (x0, attn_bias,
               params["ln1_g"], params["ln1_b"],
               params["qkv_w"], params["qkv_b"],
               params["o_w"], params["o_b"],
               params["ln2_g"], params["ln2_b"],
               params["fc1_w"], params["fc1_b"],
               params["fc2_w"], params["fc2_b"],
               params["lnf_g"], params["lnf_b"])
  in_specs = ([whole(x0), whole(attn_bias)]
              + [stacked(a) for a in in_arrays[2:14]]
              + [whole(params["lnf_g"]), whole(params["lnf_b"])])

  penult, last = pl.pallas_call(
      kernel,
      grid=(n_layers,),
      in_specs=in_specs,
      out_specs=[pl.BlockSpec((R, D), lambda l: (0, 0)),
                 pl.BlockSpec((R, D), lambda l: (0, 0))],
      out_shape=[jax.ShapeDtypeStruct((R, D), jnp.float32),
                 jax.ShapeDtypeStruct((R, D), jnp.float32)],
      scratch_shapes=[pltpu.VMEM((R, D), jnp.float32)],
      compiler_params=pltpu.CompilerParams(
          dimension_semantics=("arbitrary",),
          vmem_limit_bytes=64 * 1024 * 1024,
      ),
  )(*in_arrays)
  return penult, last


# --------------------------- pooled text projection kernel ------------------------- #

def _proj_kernel(x_ref, w_ref, o_ref):
  o_ref[...] = jnp.dot(x_ref[...].astype(jnp.bfloat16), w_ref[...],
                       preferred_element_type=jnp.float32)


def text_projection(x, w):
  M, _ = x.shape
  N = w.shape[1]
  vmem = pl.BlockSpec(memory_space=pltpu.MemorySpace.VMEM)
  return pl.pallas_call(
      _proj_kernel,
      out_shape=jax.ShapeDtypeStruct((M, N), jnp.float32),
      in_specs=[vmem, vmem],
      out_specs=vmem,
  )(x, w)


# ------------------------- synthetic CLIP parameter construction ------------------- #

def init_clip_params(key, *, vocab, max_pos, d, n_layers, n_heads, proj_dim=None):
  inter = 4 * d
  ks = jax.random.split(key, 8)

  def w(k, shape, dtype=jnp.bfloat16):
    return (0.02 * jax.random.normal(k, shape, jnp.float32)).astype(dtype)

  L = n_layers
  params = {
      "token_emb": w(ks[0], (vocab, d), jnp.float32),
      "pos_emb": w(ks[1], (max_pos, d), jnp.float32),
      "ln1_g": jnp.ones((L, 1, d), jnp.float32),
      "ln1_b": jnp.zeros((L, 1, d), jnp.float32),
      "ln2_g": jnp.ones((L, 1, d), jnp.float32),
      "ln2_b": jnp.zeros((L, 1, d), jnp.float32),
      "qkv_w": w(ks[2], (L, d, 3 * d)),               # fused Q|K|V projection (bf16)
      "qkv_b": jnp.zeros((L, 1, 3 * d), jnp.float32),
      "o_w": w(ks[3], (L, d, d)),
      "o_b": jnp.zeros((L, 1, d), jnp.float32),
      "fc1_w": w(ks[4], (L, d, inter)),
      "fc1_b": jnp.zeros((L, 1, inter), jnp.float32),
      "fc2_w": w(ks[5], (L, inter, d)),
      "fc2_b": jnp.zeros((L, 1, d), jnp.float32),
      "lnf_g": jnp.ones((1, d), jnp.float32),
      "lnf_b": jnp.zeros((1, d), jnp.float32),
  }
  if proj_dim is not None:
    params["proj_w"] = w(ks[6], (d, proj_dim))
  cfg = {"n_layers": n_layers, "n_heads": n_heads, "d": d}   # STATIC (not traced)
  return params, cfg


# ----------------------------- PromptEncoderModel.forward -------------------------- #

def prompt_encoder_forward(params1, params2, ti1, ti2, ui1, ui2,
                           *, cfg1, cfg2, batch_size, out_dtype=jnp.float16):
  # do_classifier_free_guidance=True, batch_input=False, bs_embed=1.
  S = ti1.shape[1]
  S_pad = ((S + 7) // 8) * 8
  R = 2 * S_pad

  # Hoisted attention bias: causal within each sequence, block-diagonal across the
  # stacked positive/negative sequences (shared by both encoders, all layers).
  ri = jnp.arange(R, dtype=jnp.int32)[:, None]
  ci = jnp.arange(R, dtype=jnp.int32)[None, :]
  allowed = ((ri // S_pad) == (ci // S_pad)) & ((ci % S_pad) <= (ri % S_pad))
  attn_bias = jnp.where(allowed, 0.0, -1e30).astype(jnp.float32)

  def embed_stack(pos_ids, neg_ids, params):
    pos_emb = params["pos_emb"][:S]
    def one(ids):
      e = params["token_emb"][ids[0]] + pos_emb
      return jnp.pad(e, ((0, S_pad - S), (0, 0)))
    return jnp.concatenate([one(pos_ids), one(neg_ids)], axis=0)   # (2*S_pad, D)

  # Each encoder runs ONCE on [positive; negative] stacked rows.
  x1 = embed_stack(ti1, ui1, params1)
  pen1, _ = clip_encoder_stack(x1, attn_bias, params1, cfg1)
  x2 = embed_stack(ti2, ui2, params2)
  pen2, last2 = clip_encoder_stack(x2, attn_bias, params2, cfg2)

  pe1, ne1 = pen1[:S], pen1[S_pad:S_pad + S]
  pe2, ne2 = pen2[:S], pen2[S_pad:S_pad + S]

  # EOS pooling for encoder 2 (classic CLIP: argmax over ids) + text projection.
  pos_eos = jnp.argmax(ti2[0])
  neg_eos = S_pad + jnp.argmax(ui2[0])
  pooled_rows = jnp.concatenate([
      jax.lax.dynamic_slice_in_dim(last2, pos_eos, 1, axis=0),
      jax.lax.dynamic_slice_in_dim(last2, neg_eos, 1, axis=0)], axis=0)    # (2, D2)
  pooled_rows = jnp.pad(pooled_rows, ((0, 6), (0, 0)))                     # pad rows -> 8
  proj = text_projection(pooled_rows, params2["proj_w"])                   # (8, proj)
  pooled, neg_pooled = proj[0:1], proj[1:2]

  # CFG / repeat / concat glue (matches the torch module).
  prompt_embeds = jnp.concatenate([pe1, pe2], axis=-1)[None]               # (1, S, D1+D2)
  neg_prompt_embeds = jnp.concatenate([ne1, ne2], axis=-1)[None]
  prompt_embeds = jnp.tile(prompt_embeds, (batch_size, 1, 1))
  neg_prompt_embeds = jnp.tile(neg_prompt_embeds, (batch_size, 1, 1))
  prompt_embeds = jnp.concatenate([neg_prompt_embeds, prompt_embeds], axis=0)

  add_text_embeds = jnp.tile(pooled, (batch_size, 1))
  neg_pooled = jnp.tile(neg_pooled, (batch_size, 1))
  add_text_embeds = jnp.concatenate([neg_pooled, add_text_embeds], axis=0)

  return prompt_embeds.astype(out_dtype), add_text_embeds.astype(out_dtype)


# ----------------------------------------- main ------------------------------------ #

if __name__ == "__main__":
  # Small synthetic config (SDXL: 768/1280 hidden, 12/32 layers, seq 77).
  SEQ = 8
  VOCAB = 1000
  MAX_POS = 32
  BATCH_SIZE = 2   # PromptEncoderModel(batch_size=2, batch_input=False)

  key = jax.random.PRNGKey(0)
  k1, k2, k3 = jax.random.split(key, 3)

  params1, cfg1 = init_clip_params(k1, vocab=VOCAB, max_pos=MAX_POS, d=128,
                                   n_layers=2, n_heads=4)                  # text_encoder
  params2, cfg2 = init_clip_params(k2, vocab=VOCAB, max_pos=MAX_POS, d=256,
                                   n_layers=2, n_heads=8, proj_dim=256)    # text_encoder_2

  ik = jax.random.split(k3, 4)
  def make_ids(k):
    ids = jax.random.randint(k, (1, SEQ), 1, VOCAB - 1, dtype=jnp.int32)
    return ids.at[0, SEQ - 1].set(VOCAB - 1)   # EOS = max id (argmax pooling)

  text_input_ids_1 = make_ids(ik[0])
  text_input_ids_2 = make_ids(ik[1])
  uncond_input_ids_1 = make_ids(ik[2])
  uncond_input_ids_2 = make_ids(ik[3])

  fwd = jax.jit(functools.partial(prompt_encoder_forward,
                                  cfg1=cfg1, cfg2=cfg2, batch_size=BATCH_SIZE))
  prompt_embeds, add_text_embeds = fwd(
      params1, params2,
      text_input_ids_1, text_input_ids_2,
      uncond_input_ids_1, uncond_input_ids_2,
  )
  jax.block_until_ready((prompt_embeds, add_text_embeds))

  assert prompt_embeds.shape == (2 * BATCH_SIZE, SEQ, 128 + 256)
  assert prompt_embeds.dtype == jnp.float16
  assert add_text_embeds.shape == (2 * BATCH_SIZE, 256)
  assert add_text_embeds.dtype == jnp.float16
  assert bool(jnp.all(jnp.isfinite(prompt_embeds.astype(jnp.float32))))
  assert bool(jnp.all(jnp.isfinite(add_text_embeds.astype(jnp.float32))))
  print("KERNEL_OK")
</pallas_src>

<mosaic_0001>
module attributes {stable_mosaic.version = 11 : i64} {
  func.func @_proj_kernel(%arg0: memref<8x256xf32, #tpu.memory_space<vmem>>, %arg1: memref<256x256xbf16, #tpu.memory_space<vmem>>, %arg2: memref<8x256xf32, #tpu.memory_space<vmem>>) attributes {dimension_semantics = [], scalar_prefetch = 0 : i64, scratch_operands = 0 : i64, tpu.core_type = #tpu.core_type<tc>} {
    %c0 = arith.constant 0 : index
    %c0_0 = arith.constant 0 : index
    %0 = vector.load %arg0[%c0, %c0_0] : memref<8x256xf32, #tpu.memory_space<vmem>>, vector<8x256xf32>
    %1 = arith.truncf %0 : vector<8x256xf32> to vector<8x256xbf16>
    %c0_1 = arith.constant 0 : index
    %c0_2 = arith.constant 0 : index
    %2 = vector.load %arg1[%c0_1, %c0_2] : memref<256x256xbf16, #tpu.memory_space<vmem>>, vector<256x256xbf16>
    %cst = arith.constant dense<0.000000e+00> : vector<8x256xf32>
    %3 = tpu.matmul %1, %2, %cst {dimension_numbers = #tpu.dot_dimension_numbers<[1], [0], [0], [1], [0, 0, 1, 1], [], []>} : vector<8x256xbf16>, vector<256x256xbf16>, vector<8x256xf32> -> vector<8x256xf32>
    %c0_3 = arith.constant 0 : index
    %c0_4 = arith.constant 0 : index
    %4 = vector.load %arg2[%c0_3, %c0_4] : memref<8x256xf32, #tpu.memory_space<vmem>>, vector<8x256xf32>
    tpu.vector_store %arg2[%c0_3, %c0_4], %3 {strides = array<i32>} : memref<8x256xf32, #tpu.memory_space<vmem>>, vector<8x256xf32>,
    return
  }
}

module attributes {stable_mosaic.version = 11 : i64} {
  func.func @_clip_stack_kernel(%arg0: i32, %arg1: memref<16x256xf32, #tpu.memory_space<vmem>>, %arg2: memref<16x16xf32, #tpu.memory_space<vmem>>, %arg3: memref<1x1x256xf32, #tpu.memory_space<vmem>>, %arg4: memref<1x1x256xf32, #tpu.memory_space<vmem>>, %arg5: memref<1x256x768xbf16, #tpu.memory_space<vmem>>, %arg6: memref<1x1x768xf32, #tpu.memory_space<vmem>>, %arg7: memref<1x256x256xbf16, #tpu.memory_space<vmem>>, %arg8: memref<1x1x256xf32, #tpu.memory_space<vmem>>, %arg9: memref<1x1x256xf32, #tpu.memory_space<vmem>>, %arg10: memref<1x1x256xf32, #tpu.memory_space<vmem>>, %arg11: memref<1x256x1024xbf16, #tpu.memory_space<vmem>>, %arg12: memref<1x1x1024xf32, #tpu.memory_space<vmem>>, %arg13: memref<1x1024x256xbf16, #tpu.memory_space<vmem>>, %arg14: memref<1x1x256xf32, #tpu.memory_space<vmem>>, %arg15: memref<1x256xf32, #tpu.memory_space<vmem>>, %arg16: memref<1x256xf32, #tpu.memory_space<vmem>>, %arg17: memref<16x256xf32, #tpu.memory_space<vmem>>, %arg18: memref<16x256xf32, #tpu.memory_space<vmem>>, %arg19: memref<16x256xf32, #tpu.memory_space<vmem>>) attributes {dimension_semantics = [#tpu.dimension_semantics<arbitrary>], iteration_bounds = array<i64: 2>, scalar_prefetch = 0 : i64, scratch_operands = 1 : i64, tpu.core_type = #tpu.core_type<tc>, window_params = [{pipeline_mode = #tpu.pipeline_mode<synchronous>, transform_indices = @transform_0, window_bounds = array<i64: 16, 256>}, {pipeline_mode = #tpu.pipeline_mode<synchronous>, transform_indices = @transform_1, window_bounds = array<i64: 16, 16>}, {transform_indices = @transform_2, window_bounds = array<i64: 1, 1, 256>}, {transform_indices = @transform_3, window_bounds = array<i64: 1, 1, 256>}, {transform_indices = @transform_4, window_bounds = array<i64: 1, 256, 768>}, {transform_indices = @transform_5, window_bounds = array<i64: 1, 1, 768>}, {transform_indices = @transform_6, window_bounds = array<i64: 1, 256, 256>}, {transform_indices = @transform_7, window_bounds = array<i64: 1, 1, 256>}, {transform_indices = @transform_8, window_bounds = array<i64: 1, 1, 256>}, {transform_indices = @transform_9, window_bounds = array<i64: 1, 1, 256>}, {transform_indices = @transform_10, window_bounds = array<i64: 1, 256, 1024>}, {transform_indices = @transform_11, window_bounds = array<i64: 1, 1, 1024>}, {transform_indices = @transform_12, window_bounds = array<i64: 1, 1024, 256>}, {transform_indices = @transform_13, window_bounds = array<i64: 1, 1, 256>}, {pipeline_mode = #tpu.pipeline_mode<synchronous>, transform_indices = @transform_14, window_bounds = array<i64: 1, 256>}, {pipeline_mode = #tpu.pipeline_mode<synchronous>, transform_indices = @transform_15, window_bounds = array<i64: 1, 256>}, {pipeline_mode = #tpu.pipeline_mode<synchronous>, transform_indices = @transform_16, window_bounds = array<i64: 16, 256>}, {pipeline_mode = #tpu.pipeline_mode<synchronous>, transform_indices = @transform_17, window_bounds = array<i64: 16, 256>}]} {
    %c0_i32 = arith.constant 0 : i32
    %0 = arith.cmpi eq, %arg0, %c0_i32 : i32
    %1 = arith.extui %0 : i1 to i32
    %c0_i32_0 = arith.constant 0 : i32
    %2 = arith.cmpi ne, %1, %c0_i32_0 : i32
    scf.if %2 {
      %c0_100 = arith.constant 0 : index
      %c0_101 = arith.constant 0 : index
      %283 = vector.load %arg1[%c0_100, %c0_101] : memref<16x256xf32, #tpu.memory_space<vmem>>, vector<16x256xf32>
      %c0_102 = arith.constant 0 : index
      %c0_103 = arith.constant 0 : index
      %284 = vector.load %arg19[%c0_102, %c0_103] : memref<16x256xf32, #tpu.memory_space<vmem>>, vector<16x256xf32>
      tpu.vector_store %arg19[%c0_102, %c0_103], %283 {strides = array<i32>} : memref<16x256xf32, #tpu.memory_space<vmem>>, vector<16x256xf32>,
    } else {
    }
    %c0 = arith.constant 0 : index
    %c0_1 = arith.constant 0 : index
    %3 = vector.load %arg19[%c0, %c0_1] : memref<16x256xf32, #tpu.memory_space<vmem>>, vector<16x256xf32>
    %cst = arith.constant dense<0.000000e+00> : vector<16xf32>
    %4 = vector.multi_reduction <add>, %3, %cst [1] : vector<16x256xf32> to vector<16xf32>
    %5 = vector.shape_cast %4 : vector<16xf32> to vector<16x1xf32>
    %cst_2 = arith.constant 2.560000e+02 : f32
    %6 = vector.broadcast %cst_2 : f32 to vector<16x1xf32>
    %7 = arith.divf %5, %6 : vector<16x1xf32>
    %8 = vector.broadcast %7 : vector<16x1xf32> to vector<16x256xf32>
    %9 = arith.subf %3, %8 : vector<16x256xf32>
    %10 = arith.mulf %9, %9 : vector<16x256xf32>
    %cst_3 = arith.constant dense<0.000000e+00> : vector<16xf32>
    %11 = vector.multi_reduction <add>, %10, %cst_3 [1] : vector<16x256xf32> to vector<16xf32>
    %12 = vector.shape_cast %11 : vector<16xf32> to vector<16x1xf32>
    %cst_4 = arith.constant 2.560000e+02 : f32
    %13 = vector.broadcast %cst_4 : f32 to vector<16x1xf32>
    %14 = arith.divf %12, %13 : vector<16x1xf32>
    %15 = vector.broadcast %7 : vector<16x1xf32> to vector<16x256xf32>
    %16 = arith.subf %3, %15 : vector<16x256xf32>
    %cst_5 = arith.constant 9.99999974E-6 : f32
    %17 = vector.broadcast %cst_5 : f32 to vector<16x1xf32>
    %18 = arith.addf %14, %17 : vector<16x1xf32>
    %19 = math.rsqrt %18 : vector<16x1xf32>
    %20 = vector.broadcast %19 : vector<16x1xf32> to vector<16x256xf32>
    %21 = arith.mulf %16, %20 : vector<16x256xf32>
    %c0_6 = arith.constant 0 : index
    %c0_7 = arith.constant 0 : index
    %c0_8 = arith.constant 0 : index
    %22 = vector.load %arg3[%c0_6, %c0_7, %c0_8] : memref<1x1x256xf32, #tpu.memory_space<vmem>>, vector<1x1x256xf32>
    %23 = vector.shape_cast %22 : vector<1x1x256xf32> to vector<1x256xf32>
    %24 = vector.broadcast %23 : vector<1x256xf32> to vector<16x256xf32>
    %25 = arith.mulf %21, %24 : vector<16x256xf32>
    %c0_9 = arith.constant 0 : index
    %c0_10 = arith.constant 0 : index
    %c0_11 = arith.constant 0 : index
    %26 = vector.load %arg4[%c0_9, %c0_10, %c0_11] : memref<1x1x256xf32, #tpu.memory_space<vmem>>, vector<1x1x256xf32>
    %27 = vector.shape_cast %26 : vector<1x1x256xf32> to vector<1x256xf32>
    %28 = vector.broadcast %27 : vector<1x256xf32> to vector<16x256xf32>
    %29 = arith.addf %25, %28 : vector<16x256xf32>
    %30 = arith.truncf %29 : vector<16x256xf32> to vector<16x256xbf16>
    %c0_12 = arith.constant 0 : index
    %c0_13 = arith.constant 0 : index
    %c0_14 = arith.constant 0 : index
    %31 = vector.load %arg5[%c0_12, %c0_13, %c0_14] : memref<1x256x768xbf16, #tpu.memory_space<vmem>>, vector<1x256x768xbf16>
    %32 = vector.shape_cast %31 : vector<1x256x768xbf16> to vector<256x768xbf16>
    %cst_15 = arith.constant dense<0.000000e+00> : vector<16x768xf32>
    %33 = tpu.matmul %30, %32, %cst_15 {dimension_numbers = #tpu.dot_dimension_numbers<[1], [0], [0], [1], [0, 0, 1, 1], [], []>} : vector<16x256xbf16>, vector<256x768xbf16>, vector<16x768xf32> -> vector<16x768xf32>
    %c0_16 = arith.constant 0 : index
    %c0_17 = arith.constant 0 : index
    %c0_18 = arith.constant 0 : index
    %34 = vector.load %arg6[%c0_16, %c0_17, %c0_18] : memref<1x1x768xf32, #tpu.memory_space<vmem>>, vector<1x1x768xf32>
    %35 = vector.shape_cast %34 : vector<1x1x768xf32> to vector<1x768xf32>
    %36 = vector.broadcast %35 : vector<1x768xf32> to vector<16x768xf32>
    %37 = arith.addf %33, %36 : vector<16x768xf32>
    %c0_19 = arith.constant 0 : index
    %c0_20 = arith.constant 0 : index
    %38 = vector.load %arg2[%c0_19, %c0_20] : memref<16x16xf32, #tpu.memory_space<vmem>>, vector<16x16xf32>
    %39 = vector.extract_strided_slice %37 {offsets = [0, 0], sizes = [16, 32], strides = [1, 1]} : vector<16x768xf32> to vector<16x32xf32>
    %40 = arith.truncf %39 : vector<16x32xf32> to vector<16x32xbf16>
    %41 = vector.extract_strided_slice %37 {offsets = [0, 256], sizes = [16, 32], strides = [1, 1]} : vector<16x768xf32> to vector<16x32xf32>
    %42 = arith.truncf %41 : vector<16x32xf32> to vector<16x32xbf16>
    %43 = vector.extract_strided_slice %37 {offsets = [0, 512], sizes = [16, 32], strides = [1, 1]} : vector<16x768xf32> to vector<16x32xf32>
    %44 = arith.truncf %43 : vector<16x32xf32> to vector<16x32xbf16>
    %cst_21 = arith.constant dense<0.000000e+00> : vector<16x16xf32>
    %45 = tpu.matmul %40, %42, %cst_21 {dimension_numbers = #tpu.dot_dimension_numbers<[1], [1], [0], [0], [0, 0, 1, 0], [], []>} : vector<16x32xbf16>, vector<16x32xbf16>, vector<16x16xf32> -> vector<16x16xf32>
    %cst_22 = arith.constant 0.176776692 : f32
    %46 = vector.broadcast %cst_22 : f32 to vector<16x16xf32>
    %47 = arith.mulf %45, %46 : vector<16x16xf32>
    %48 = arith.addf %47, %38 : vector<16x16xf32>
    %cst_23 = arith.constant dense<0xFF800000> : vector<16xf32>
    %49 = vector.multi_reduction <maximumf>, %48, %cst_23 [1] : vector<16x16xf32> to vector<16xf32>
    %50 = vector.shape_cast %49 : vector<16xf32> to vector<16x1xf32>
    %51 = vector.broadcast %50 : vector<16x1xf32> to vector<16x16xf32>
    %52 = arith.subf %48, %51 : vector<16x16xf32>
    %53 = math.exp %52 : vector<16x16xf32>
    %cst_24 = arith.constant dense<0.000000e+00> : vector<16xf32>
    %54 = vector.multi_reduction <add>, %53, %cst_24 [1] : vector<16x16xf32> to vector<16xf32>
    %55 = vector.shape_cast %54 : vector<16xf32> to vector<16x1xf32>
    %56 = tpu.reciprocal %55 {approx = true} : vector<16x1xf32> -> vector<16x1xf32>
    %57 = vector.broadcast %56 : vector<16x1xf32> to vector<16x16xf32>
    %58 = arith.mulf %53, %57 : vector<16x16xf32>
    %59 = arith.truncf %58 : vector<16x16xf32> to vector<16x16xbf16>
    %cst_25 = arith.constant dense<0.000000e+00> : vector<16x32xf32>
    %60 = tpu.matmul %59, %44, %cst_25 {dimension_numbers = #tpu.dot_dimension_numbers<[1], [0], [0], [1], [0, 0, 1, 1], [], []>} : vector<16x16xbf16>, vector<16x32xbf16>, vector<16x32xf32> -> vector<16x32xf32>
    %61 = vector.extract_strided_slice %37 {offsets = [0, 32], sizes = [16, 32], strides = [1, 1]} : vector<16x768xf32> to vector<16x32xf32>
    %62 = arith.truncf %61 : vector<16x32xf32> to vector<16x32xbf16>
    %63 = vector.extract_strided_slice %37 {offsets = [0, 288], sizes = [16, 32], strides = [1, 1]} : vector<16x768xf32> to vector<16x32xf32>
    %64 = arith.truncf %63 : vector<16x32xf32> to vector<16x32xbf16>
    %65 = vector.extract_strided_slice %37 {offsets = [0, 544], sizes = [16, 32], strides = [1, 1]} : vector<16x768xf32> to vector<16x32xf32>
    %66 = arith.truncf %65 : vector<16x32xf32> to vector<16x32xbf16>
    %cst_26 = arith.constant dense<0.000000e+00> : vector<16x16xf32>
    %67 = tpu.matmul %62, %64, %cst_26 {dimension_numbers = #tpu.dot_dimension_numbers<[1], [1], [0], [0], [0, 0, 1, 0], [], []>} : vector<16x32xbf16>, vector<16x32xbf16>, vector<16x16xf32> -> vector<16x16xf32>
    %cst_27 = arith.constant 0.176776692 : f32
    %68 = vector.broadcast %cst_27 : f32 to vector<16x16xf32>
    %69 = arith.mulf %67, %68 : vector<16x16xf32>
    %70 = arith.addf %69, %38 : vector<16x16xf32>
    %cst_28 = arith.constant dense<0xFF800000> : vector<16xf32>
    %71 = vector.multi_reduction <maximumf>, %70, %cst_28 [1] : vector<16x16xf32> to vector<16xf32>
    %72 = vector.shape_cast %71 : vector<16xf32> to vector<16x1xf32>
    %73 = vector.broadcast %72 : vector<16x1xf32> to vector<16x16xf32>
    %74 = arith.subf %70, %73 : vector<16x16xf32>
    %75 = math.exp %74 : vector<16x16xf32>
    %cst_29 = arith.constant dense<0.000000e+00> : vector<16xf32>
    %76 = vector.multi_reduction <add>, %75, %cst_29 [1] : vector<16x16xf32> to vector<16xf32>
    %77 = vector.shape_cast %76 : vector<16xf32> to vector<16x1xf32>
    %78 = tpu.reciprocal %77 {approx = true} : vector<16x1xf32> -> vector<16x1xf32>
    %79 = vector.broadcast %78 : vector<16x1xf32> to vector<16x16xf32>
    %80 = arith.mulf %75, %79 : vector<16x16xf32>
    %81 = arith.truncf %80 : vector<16x16xf32> to vector<16x16xbf16>
    %cst_30 = arith.constant dense<0.000000e+00> : vector<16x32xf32>
    %82 = tpu.matmul %81, %66, %cst_30 {dimension_numbers = #tpu.dot_dimension_numbers<[1], [0], [0], [1], [0, 0, 1, 1], [], []>} : vector<16x16xbf16>, vector<16x32xbf16>, vector<16x32xf32> -> vector<16x32xf32>
    %83 = vector.extract_strided_slice %37 {offsets = [0, 64], sizes = [16, 32], strides = [1, 1]} : vector<16x768xf32> to vector<16x32xf32>
    %84 = arith.truncf %83 : vector<16x32xf32> to vector<16x32xbf16>
    %85 = vector.extract_strided_slice %37 {offsets = [0, 320], sizes = [16, 32], strides = [1, 1]} : vector<16x768xf32> to vector<16x32xf32>
    %86 = arith.truncf %85 : vector<16x32xf32> to vector<16x32xbf16>
    %87 = vector.extract_strided_slice %37 {offsets = [0, 576], sizes = [16, 32], strides = [1, 1]} : vector<16x768xf32> to vector<16x32xf32>
    %88 = arith.truncf %87 : vector<16x32xf32> to vector<16x32xbf16>
    %cst_31 = arith.constant dense<0.000000e+00> : vector<16x16xf32>
    %89 = tpu.matmul %84, %86, %cst_31 {dimension_numbers = #tpu.dot_dimension_numbers<[1], [1], [0], [0], [0, 0, 1, 0], [], []>} : vector<16x32xbf16>, vector<16x32xbf16>, vector<16x16xf32> -> vector<16x16xf32>
    %cst_32 = arith.constant 0.176776692 : f32
    %90 = vector.broadcast %cst_32 : f32 to vector<16x16xf32>
    %91 = arith.mulf %89, %90 : vector<16x16xf32>
    %92 = arith.addf %91, %38 : vector<16x16xf32>
    %cst_33 = arith.constant dense<0xFF800000> : vector<16xf32>
    %93 = vector.multi_reduction <maximumf>, %92, %cst_33 [1] : vector<16x16xf32> to vector<16xf32>
    %94 = vector.shape_cast %93 : vector<16xf32> to vector<16x1xf32>
    %95 = vector.broadcast %94 : vector<16x1xf32> to vector<16x16xf32>
    %96 = arith.subf %92, %95 : vector<16x16xf32>
    %97 = math.exp %96 : vector<16x16xf32>
    %cst_34 = arith.constant dense<0.000000e+00> : vector<16xf32>
    %98 = vector.multi_reduction <add>, %97, %cst_34 [1] : vector<16x16xf32> to vector<16xf32>
    %99 = vector.shape_cast %98 : vector<16xf32> to vector<16x1xf32>
    %100 = tpu.reciprocal %99 {approx = true} : vector<16x1xf32> -> vector<16x1xf32>
    %101 = vector.broadcast %100 : vector<16x1xf32> to vector<16x16xf32>
    %102 = arith.mulf %97, %101 : vector<16x16xf32>
    %103 = arith.truncf %102 : vector<16x16xf32> to vector<16x16xbf16>
    %cst_35 = arith.constant dense<0.000000e+00> : vector<16x32xf32>
    %104 = tpu.matmul %103, %88, %cst_35 {dimension_numbers = #tpu.dot_dimension_numbers<[1], [0], [0], [1], [0, 0, 1, 1], [], []>} : vector<16x16xbf16>, vector<16x32xbf16>, vector<16x32xf32> -> vector<16x32xf32>
    %105 = vector.extract_strided_slice %37 {offsets = [0, 96], sizes = [16, 32], strides = [1, 1]} : vector<16x768xf32> to vector<16x32xf32>
    %106 = arith.truncf %105 : vector<16x32xf32> to vector<16x32xbf16>
    %107 = vector.extract_strided_slice %37 {offsets = [0, 352], sizes = [16, 32], strides = [1, 1]} : vector<16x768xf32> to vector<16x32xf32>
    %108 = arith.truncf %107 : vector<16x32xf32> to vector<16x32xbf16>
    %109 = vector.extract_strided_slice %37 {offsets = [0, 608], sizes = [16, 32], strides = [1, 1]} : vector<16x768xf32> to vector<16x32xf32>
    %110 = arith.truncf %109 : vector<16x32xf32> to vector<16x32xbf16>
    %cst_36 = arith.constant dense<0.000000e+00> : vector<16x16xf32>
    %111 = tpu.matmul %106, %108, %cst_36 {dimension_numbers = #tpu.dot_dimension_numbers<[1], [1], [0], [0], [0, 0, 1, 0], [], []>} : vector<16x32xbf16>, vector<16x32xbf16>, vector<16x16xf32> -> vector<16x16xf32>
    %cst_37 = arith.constant 0.176776692 : f32
    %112 = vector.broadcast %cst_37 : f32 to vector<16x16xf32>
    %113 = arith.mulf %111, %112 : vector<16x16xf32>
    %114 = arith.addf %113, %38 : vector<16x16xf32>
    %cst_38 = arith.constant dense<0xFF800000> : vector<16xf32>
    %115 = vector.multi_reduction <maximumf>, %114, %cst_38 [1] : vector<16x16xf32> to vector<16xf32>
    %116 = vector.shape_cast %115 : vector<16xf32> to vector<16x1xf32>
    %117 = vector.broadcast %116 : vector<16x1xf32> to vector<16x16xf32>
    %118 = arith.subf %114, %117 : vector<16x16xf32>
    %119 = math.exp %118 : vector<16x16xf32>
    %cst_39 = arith.constant dense<0.000000e+00> : vector<16xf32>
    %120 = vector.multi_reduction <add>, %119, %cst_39 [1] : vector<16x16xf32> to vector<16xf32>
    %121 = vector.shape_cast %120 : vector<16xf32> to vector<16x1xf32>
    %122 = tpu.reciprocal %121 {approx = true} : vector<16x1xf32> -> vector<16x1xf32>
    %123 = vector.broadcast %122 : vector<16x1xf32> to vector<16x16xf32>
    %124 = arith.mulf %119, %123 : vector<16x16xf32>
    %125 = arith.truncf %124 : vector<16x16xf32> to vector<16x16xbf16>
    %cst_40 = arith.constant dense<0.000000e+00> : vector<16x32xf32>
    %126 = tpu.matmul %125, %110, %cst_40 {dimension_numbers = #tpu.dot_dimension_numbers<[1], [0], [0], [1], [0, 0, 1, 1], [], []>} : vector<16x16xbf16>, vector<16x32xbf16>, vector<16x32xf32> -> vector<16x32xf32>
    %127 = vector.extract_strided_slice %37 {offsets = [0, 128], sizes = [16, 32], strides = [1, 1]} : vector<16x768xf32> to vector<16x32xf32>
    %128 = arith.truncf %127 : vector<16x32xf32> to vector<16x32xbf16>
    %129 = vector.extract_strided_slice %37 {offsets = [0, 384], sizes = [16, 32], strides = [1, 1]} : vector<16x768xf32> to vector<16x32xf32>
    %130 = arith.truncf %129 : vector<16x32xf32> to vector<16x32xbf16>
    %131 = vector.extract_strided_slice %37 {offsets = [0, 640], sizes = [16, 32], strides = [1, 1]} : vector<16x768xf32> to vector<16x32xf32>
    %132 = arith.truncf %131 : vector<16x32xf32> to vector<16x32xbf16>
    %cst_41 = arith.constant dense<0.000000e+00> : vector<16x16xf32>
    %133 = tpu.matmul %128, %130, %cst_41 {dimension_numbers = #tpu.dot_dimension_numbers<[1], [1], [0], [0], [0, 0, 1, 0], [], []>} : vector<16x32xbf16>, vector<16x32xbf16>, vector<16x16xf32> -> vector<16x16xf32>
    %cst_42 = arith.constant 0.176776692 : f32
    %134 = vector.broadcast %cst_42 : f32 to vector<16x16xf32>
    %135 = arith.mulf %133, %134 : vector<16x16xf32>
    %136 = arith.addf %135, %38 : vector<16x16xf32>
    %cst_43 = arith.constant dense<0xFF800000> : vector<16xf32>
    %137 = vector.multi_reduction <maximumf>, %136, %cst_43 [1] : vector<16x16xf32> to vector<16xf32>
    %138 = vector.shape_cast %137 : vector<16xf32> to vector<16x1xf32>
    %139 = vector.broadcast %138 : vector<16x1xf32> to vector<16x16xf32>
    %140 = arith.subf %136, %139 : vector<16x16xf32>
    %141 = math.exp %140 : vector<16x16xf32>
    %cst_44 = arith.constant dense<0.000000e+00> : vector<16xf32>
    %142 = vector.multi_reduction <add>, %141, %cst_44 [1] : vector<16x16xf32> to vector<16xf32>
    %143 = vector.shape_cast %142 : vector<16xf32> to vector<16x1xf32>
    %144 = tpu.reciprocal %143 {approx = true} : vector<16x1xf32> -> vector<16x1xf32>
    %145 = vector.broadcast %144 : vector<16x1xf32> to vector<16x16xf32>
    %146 = arith.mulf %141, %145 : vector<16x16xf32>
    %147 = arith.truncf %146 : vector<16x16xf32> to vector<16x16xbf16>
    %cst_45 = arith.constant dense<0.000000e+00> : vector<16x32xf32>
    %148 = tpu.matmul %147, %132, %cst_45 {dimension_numbers = #tpu.dot_dimension_numbers<[1], [0], [0], [1], [0, 0, 1, 1], [], []>} : vector<16x16xbf16>, vector<16x32xbf16>, vector<16x32xf32> -> vector<16x32xf32>
    %149 = vector.extract_strided_slice %37 {offsets = [0, 160], sizes = [16, 32], strides = [1, 1]} : vector<16x768xf32> to vector<16x32xf32>
    %150 = arith.truncf %149 : vector<16x32xf32> to vector<16x32xbf16>
    %151 = vector.extract_strided_slice %37 {offsets = [0, 416], sizes = [16, 32], strides = [1, 1]} : vector<16x768xf32> to vector<16x32xf32>
    %152 = arith.truncf %151 : vector<16x32xf32> to vector<16x32xbf16>
    %153 = vector.extract_strided_slice %37 {offsets = [0, 672], sizes = [16, 32], strides = [1, 1]} : vector<16x768xf32> to vector<16x32xf32>
    %154 = arith.truncf %153 : vector<16x32xf32> to vector<16x32xbf16>
    %cst_46 = arith.constant dense<0.000000e+00> : vector<16x16xf32>
    %155 = tpu.matmul %150, %152, %cst_46 {dimension_numbers = #tpu.dot_dimension_numbers<[1], [1], [0], [0], [0, 0, 1, 0], [], []>} : vector<16x32xbf16>, vector<16x32xbf16>, vector<16x16xf32> -> vector<16x16xf32>
    %cst_47 = arith.constant 0.176776692 : f32
    %156 = vector.broadcast %cst_47 : f32 to vector<16x16xf32>
    %157 = arith.mulf %155, %156 : vector<16x16xf32>
    %158 = arith.addf %157, %38 : vector<16x16xf32>
    %cst_48 = arith.constant dense<0xFF800000> : vector<16xf32>
    %159 = vector.multi_reduction <maximumf>, %158, %cst_48 [1] : vector<16x16xf32> to vector<16xf32>
    %160 = vector.shape_cast %159 : vector<16xf32> to vector<16x1xf32>
    %161 = vector.broadcast %160 : vector<16x1xf32> to vector<16x16xf32>
    %162 = arith.subf %158, %161 : vector<16x16xf32>
    %163 = math.exp %162 : vector<16x16xf32>
    %cst_49 = arith.constant dense<0.000000e+00> : vector<16xf32>
    %164 = vector.multi_reduction <add>, %163, %cst_49 [1] : vector<16x16xf32> to vector<16xf32>
    %165 = vector.shape_cast %164 : vector<16xf32> to vector<16x1xf32>
    %166 = tpu.reciprocal %165 {approx = true} : vector<16x1xf32> -> vector<16x1xf32>
    %167 = vector.broadcast %166 : vector<16x1xf32> to vector<16x16xf32>
    %168 = arith.mulf %163, %167 : vector<16x16xf32>
    %169 = arith.truncf %168 : vector<16x16xf32> to vector<16x16xbf16>
    %cst_50 = arith.constant dense<0.000000e+00> : vector<16x32xf32>
    %170 = tpu.matmul %169, %154, %cst_50 {dimension_numbers = #tpu.dot_dimension_numbers<[1], [0], [0], [1], [0, 0, 1, 1], [], []>} : vector<16x16xbf16>, vector<16x32xbf16>, vector<16x32xf32> -> vector<16x32xf32>
    %171 = vector.extract_strided_slice %37 {offsets = [0, 192], sizes = [16, 32], strides = [1, 1]} : vector<16x768xf32> to vector<16x32xf32>
    %172 = arith.truncf %171 : vector<16x32xf32> to vector<16x32xbf16>
    %173 = vector.extract_strided_slice %37 {offsets = [0, 448], sizes = [16, 32], strides = [1, 1]} : vector<16x768xf32> to vector<16x32xf32>
    %174 = arith.truncf %173 : vector<16x32xf32> to vector<16x32xbf16>
    %175 = vector.extract_strided_slice %37 {offsets = [0, 704], sizes = [16, 32], strides = [1, 1]} : vector<16x768xf32> to vector<16x32xf32>
    %176 = arith.truncf %175 : vector<16x32xf32> to vector<16x32xbf16>
    %cst_51 = arith.constant dense<0.000000e+00> : vector<16x16xf32>
    %177 = tpu.matmul %172, %174, %cst_51 {dimension_numbers = #tpu.dot_dimension_numbers<[1], [1], [0], [0], [0, 0, 1, 0], [], []>} : vector<16x32xbf16>, vector<16x32xbf16>, vector<16x16xf32> -> vector<16x16xf32>
    %cst_52 = arith.constant 0.176776692 : f32
    %178 = vector.broadcast %cst_52 : f32 to vector<16x16xf32>
    %179 = arith.mulf %177, %178 : vector<16x16xf32>
    %180 = arith.addf %179, %38 : vector<16x16xf32>
    %cst_53 = arith.constant dense<0xFF800000> : vector<16xf32>
    %181 = vector.multi_reduction <maximumf>, %180, %cst_53 [1] : vector<16x16xf32> to vector<16xf32>
    %182 = vector.shape_cast %181 : vector<16xf32> to vector<16x1xf32>
    %183 = vector.broadcast %182 : vector<16x1xf32> to vector<16x16xf32>
    %184 = arith.subf %180, %183 : vector<16x16xf32>
    %185 = math.exp %184 : vector<16x16xf32>
    %cst_54 = arith.constant dense<0.000000e+00> : vector<16xf32>
    %186 = vector.multi_reduction <add>, %185, %cst_54 [1] : vector<16x16xf32> to vector<16xf32>
    %187 = vector.shape_cast %186 : vector<16xf32> to vector<16x1xf32>
    %188 = tpu.reciprocal %187 {approx = true} : vector<16x1xf32> -> vector<16x1xf32>
    %189 = vector.broadcast %188 : vector<16x1xf32> to vector<16x16xf32>
    %190 = arith.mulf %185, %189 : vector<16x16xf32>
    %191 = arith.truncf %190 : vector<16x16xf32> to vector<16x16xbf16>
    %cst_55 = arith.constant dense<0.000000e+00> : vector<16x32xf32>
    %192 = tpu.matmul %191, %176, %cst_55 {dimension_numbers = #tpu.dot_dimension_numbers<[1], [0], [0], [1], [0, 0, 1, 1], [], []>} : vector<16x16xbf16>, vector<16x32xbf16>, vector<16x32xf32> -> vector<16x32xf32>
    %193 = vector.extract_strided_slice %37 {offsets = [0, 224], sizes = [16, 32], strides = [1, 1]} : vector<16x768xf32> to vector<16x32xf32>
    %194 = arith.truncf %193 : vector<16x32xf32> to vector<16x32xbf16>
    %195 = vector.extract_strided_slice %37 {offsets = [0, 480], sizes = [16, 32], strides = [1, 1]} : vector<16x768xf32> to vector<16x32xf32>
    %196 = arith.truncf %195 : vector<16x32xf32> to vector<16x32xbf16>
    %197 = vector.extract_strided_slice %37 {offsets = [0, 736], sizes = [16, 32], strides = [1, 1]} : vector<16x768xf32> to vector<16x32xf32>
    %198 = arith.truncf %197 : vector<16x32xf32> to vector<16x32xbf16>
    %cst_56 = arith.constant dense<0.000000e+00> : vector<16x16xf32>
    %199 = tpu.matmul %194, %196, %cst_56 {dimension_numbers = #tpu.dot_dimension_numbers<[1], [1], [0], [0], [0, 0, 1, 0], [], []>} : vector<16x32xbf16>, vector<16x32xbf16>, vector<16x16xf32> -> vector<16x16xf32>
    %cst_57 = arith.constant 0.176776692 : f32
    %200 = vector.broadcast %cst_57 : f32 to vector<16x16xf32>
    %201 = arith.mulf %199, %200 : vector<16x16xf32>
    %202 = arith.addf %201, %38 : vector<16x16xf32>
    %cst_58 = arith.constant dense<0xFF800000> : vector<16xf32>
    %203 = vector.multi_reduction <maximumf>, %202, %cst_58 [1] : vector<16x16xf32> to vector<16xf32>
    %204 = vector.shape_cast %203 : vector<16xf32> to vector<16x1xf32>
    %205 = vector.broadcast %204 : vector<16x1xf32> to vector<16x16xf32>
    %206 = arith.subf %202, %205 : vector<16x16xf32>
    %207 = math.exp %206 : vector<16x16xf32>
    %cst_59 = arith.constant dense<0.000000e+00> : vector<16xf32>
    %208 = vector.multi_reduction <add>, %207, %cst_59 [1] : vector<16x16xf32> to vector<16xf32>
    %209 = vector.shape_cast %208 : vector<16xf32> to vector<16x1xf32>
    %210 = tpu.reciprocal %209 {approx = true} : vector<16x1xf32> -> vector<16x1xf32>
    %211 = vector.broadcast %210 : vector<16x1xf32> to vector<16x16xf32>
    %212 = arith.mulf %207, %211 : vector<16x16xf32>
    %213 = arith.truncf %212 : vector<16x16xf32> to vector<16x16xbf16>
    %cst_60 = arith.constant dense<0.000000e+00> : vector<16x32xf32>
    %214 = tpu.matmul %213, %198, %cst_60 {dimension_numbers = #tpu.dot_dimension_numbers<[1], [0], [0], [1], [0, 0, 1, 1], [], []>} : vector<16x16xbf16>, vector<16x32xbf16>, vector<16x32xf32> -> vector<16x32xf32>
    %215 = tpu.concatenate %60, %82, %104, %126, %148, %170, %192, %214 in 1 : vector<16x32xf32>, vector<16x32xf32>, vector<16x32xf32>, vector<16x32xf32>, vector<16x32xf32>, vector<16x32xf32>, vector<16x32xf32>, vector<16x32xf32> -> vector<16x256xf32>
    %216 = arith.truncf %215 : vector<16x256xf32> to vector<16x256xbf16>
    %c0_61 = arith.constant 0 : index
    %c0_62 = arith.constant 0 : index
    %c0_63 = arith.constant 0 : index
    %217 = vector.load %arg7[%c0_61, %c0_62, %c0_63] : memref<1x256x256xbf16, #tpu.memory_space<vmem>>, vector<1x256x256xbf16>
    %218 = vector.shape_cast %217 : vector<1x256x256xbf16> to vector<256x256xbf16>
    %cst_64 = arith.constant dense<0.000000e+00> : vector<16x256xf32>
    %219 = tpu.matmul %216, %218, %cst_64 {dimension_numbers = #tpu.dot_dimension_numbers<[1], [0], [0], [1], [0, 0, 1, 1], [], []>} : vector<16x256xbf16>, vector<256x256xbf16>, vector<16x256xf32> -> vector<16x256xf32>
    %c0_65 = arith.constant 0 : index
    %c0_66 = arith.constant 0 : index
    %c0_67 = arith.constant 0 : index
    %220 = vector.load %arg8[%c0_65, %c0_66, %c0_67] : memref<1x1x256xf32, #tpu.memory_space<vmem>>, vector<1x1x256xf32>
    %221 = vector.shape_cast %220 : vector<1x1x256xf32> to vector<1x256xf32>
    %222 = vector.broadcast %221 : vector<1x256xf32> to vector<16x256xf32>
    %223 = arith.addf %219, %222 : vector<16x256xf32>
    %224 = arith.addf %3, %223 : vector<16x256xf32>
    %cst_68 = arith.constant dense<0.000000e+00> : vector<16xf32>
    %225 = vector.multi_reduction <add>, %224, %cst_68 [1] : vector<16x256xf32> to vector<16xf32>
    %226 = vector.shape_cast %225 : vector<16xf32> to vector<16x1xf32>
    %cst_69 = arith.constant 2.560000e+02 : f32
    %227 = vector.broadcast %cst_69 : f32 to vector<16x1xf32>
    %228 = arith.divf %226, %227 : vector<16x1xf32>
    %229 = vector.broadcast %228 : vector<16x1xf32> to vector<16x256xf32>
    %230 = arith.subf %224, %229 : vector<16x256xf32>
    %231 = arith.mulf %230, %230 : vector<16x256xf32>
    %cst_70 = arith.constant dense<0.000000e+00> : vector<16xf32>
    %232 = vector.multi_reduction <add>, %231, %cst_70 [1] : vector<16x256xf32> to vector<16xf32>
    %233 = vector.shape_cast %232 : vector<16xf32> to vector<16x1xf32>
    %cst_71 = arith.constant 2.560000e+02 : f32
    %234 = vector.broadcast %cst_71 : f32 to vector<16x1xf32>
    %235 = arith.divf %233, %234 : vector<16x1xf32>
    %236 = vector.broadcast %228 : vector<16x1xf32> to vector<16x256xf32>
    %237 = arith.subf %224, %236 : vector<16x256xf32>
    %cst_72 = arith.constant 9.99999974E-6 : f32
    %238 = vector.broadcast %cst_72 : f32 to vector<16x1xf32>
    %239 = arith.addf %235, %238 : vector<16x1xf32>
    %240 = math.rsqrt %239 : vector<16x1xf32>
    %241 = vector.broadcast %240 : vector<16x1xf32> to vector<16x256xf32>
    %242 = arith.mulf %237, %241 : vector<16x256xf32>
    %c0_73 = arith.constant 0 : index
    %c0_74 = arith.constant 0 : index
    %c0_75 = arith.constant 0 : index
    %243 = vector.load %arg9[%c0_73, %c0_74, %c0_75] : memref<1x1x256xf32, #tpu.memory_space<vmem>>, vector<1x1x256xf32>
    %244 = vector.shape_cast %243 : vector<1x1x256xf32> to vector<1x256xf32>
    %245 = vector.broadcast %244 : vector<1x256xf32> to vector<16x256xf32>
    %246 = arith.mulf %242, %245 : vector<16x256xf32>
    %c0_76 = arith.constant 0 : index
    %c0_77 = arith.constant 0 : index
    %c0_78 = arith.constant 0 : index
    %247 = vector.load %arg10[%c0_76, %c0_77, %c0_78] : memref<1x1x256xf32, #tpu.memory_space<vmem>>, vector<1x1x256xf32>
    %248 = vector.shape_cast %247 : vector<1x1x256xf32> to vector<1x256xf32>
    %249 = vector.broadcast %248 : vector<1x256xf32> to vector<16x256xf32>
    %250 = arith.addf %246, %249 : vector<16x256xf32>
    %251 = arith.truncf %250 : vector<16x256xf32> to vector<16x256xbf16>
    %c0_79 = arith.constant 0 : index
    %c0_80 = arith.constant 0 : index
    %c0_81 = arith.constant 0 : index
    %252 = vector.load %arg11[%c0_79, %c0_80, %c0_81] : memref<1x256x1024xbf16, #tpu.memory_space<vmem>>, vector<1x256x1024xbf16>
    %253 = vector.shape_cast %252 : vector<1x256x1024xbf16> to vector<256x1024xbf16>
    %cst_82 = arith.constant dense<0.000000e+00> : vector<16x1024xf32>
    %254 = tpu.matmul %251, %253, %cst_82 {dimension_numbers = #tpu.dot_dimension_numbers<[1], [0], [0], [1], [0, 0, 1, 1], [], []>} : vector<16x256xbf16>, vector<256x1024xbf16>, vector<16x1024xf32> -> vector<16x1024xf32>
    %c0_83 = arith.constant 0 : index
    %c0_84 = arith.constant 0 : index
    %c0_85 = arith.constant 0 : index
    %255 = vector.load %arg12[%c0_83, %c0_84, %c0_85] : memref<1x1x1024xf32, #tpu.memory_space<vmem>>, vector<1x1x1024xf32>
    %256 = vector.shape_cast %255 : vector<1x1x1024xf32> to vector<1x1024xf32>
    %257 = vector.broadcast %256 : vector<1x1024xf32> to vector<16x1024xf32>
    %258 = arith.addf %254, %257 : vector<16x1024xf32>
    %cst_86 = arith.constant 1.702000e+00 : f32
    %259 = vector.broadcast %cst_86 : f32 to vector<16x1024xf32>
    %260 = arith.mulf %259, %258 : vector<16x1024xf32>
    %261 = arith.negf %260 : vector<16x1024xf32>
    %262 = math.exp %261 : vector<16x1024xf32>
    %cst_87 = arith.constant 1.000000e+00 : f32
    %263 = vector.broadcast %cst_87 : f32 to vector<16x1024xf32>
    %264 = arith.addf %263, %262 : vector<16x1024xf32>
    %265 = arith.divf %263, %264 : vector<16x1024xf32>
    %266 = arith.mulf %258, %265 : vector<16x1024xf32>
    %267 = arith.truncf %266 : vector<16x1024xf32> to vector<16x1024xbf16>
    %c0_88 = arith.constant 0 : index
    %c0_89 = arith.constant 0 : index
    %c0_90 = arith.constant 0 : index
    %268 = vector.load %arg13[%c0_88, %c0_89, %c0_90] : memref<1x1024x256xbf16, #tpu.memory_space<vmem>>, vector<1x1024x256xbf16>
    %269 = vector.shape_cast %268 : vector<1x1024x256xbf16> to vector<1024x256xbf16>
    %cst_91 = arith.constant dense<0.000000e+00> : vector<16x256xf32>
    %270 = tpu.matmul %267, %269, %cst_91 {dimension_numbers = #tpu.dot_dimension_numbers<[1], [0], [0], [1], [0, 0, 1, 1], [], []>} : vector<16x1024xbf16>, vector<1024x256xbf16>, vector<16x256xf32> -> vector<16x256xf32>
    %c0_92 = arith.constant 0 : index
    %c0_93 = arith.constant 0 : index
    %c0_94 = arith.constant 0 : index
    %271 = vector.load %arg14[%c0_92, %c0_93, %c0_94] : memref<1x1x256xf32, #tpu.memory_space<vmem>>, vector<1x1x256xf32>
    %272 = vector.shape_cast %271 : vector<1x1x256xf32> to vector<1x256xf32>
    %273 = vector.broadcast %272 : vector<1x256xf32> to vector<16x256xf32>
    %274 = arith.addf %270, %273 : vector<16x256xf32>
    %275 = arith.addf %224, %274 : vector<16x256xf32>
    %c0_95 = arith.constant 0 : index
    %c0_96 = arith.constant 0 : index
    %276 = vector.load %arg19[%c0_95, %c0_96] : memref<16x256xf32, #tpu.memory_space<vmem>>, vector<16x256xf32>
    tpu.vector_store %arg19[%c0_95, %c0_96], %275 {strides = array<i32>} : memref<16x256xf32, #tpu.memory_space<vmem>>, vector<16x256xf32>,
    %c0_i32_97 = arith.constant 0 : i32
    %277 = arith.cmpi eq, %arg0, %c0_i32_97 : i32
    %278 = arith.extui %277 : i1 to i32
    %c0_i32_98 = arith.constant 0 : i32
    %279 = arith.cmpi ne, %278, %c0_i32_98 : i32
    scf.if %279 {
      %c0_100 = arith.constant 0 : index
      %c0_101 = arith.constant 0 : index
      %283 = vector.load %arg17[%c0_100, %c0_101] : memref<16x256xf32, #tpu.memory_space<vmem>>, vector<16x256xf32>
      tpu.vector_store %arg17[%c0_100, %c0_101], %275 {strides = array<i32>} : memref<16x256xf32, #tpu.memory_space<vmem>>, vector<16x256xf32>,
    } else {
    }
    %c1_i32 = arith.constant 1 : i32
    %280 = arith.cmpi eq, %arg0, %c1_i32 : i32
    %281 = arith.extui %280 : i1 to i32
    %c0_i32_99 = arith.constant 0 : i32
    %282 = arith.cmpi ne, %281, %c0_i32_99 : i32
    scf.if %282 {
      %cst_100 = arith.constant dense<0.000000e+00> : vector<16xf32>
      %283 = vector.multi_reduction <add>, %275, %cst_100 [1] : vector<16x256xf32> to vector<16xf32>
      %284 = vector.shape_cast %283 : vector<16xf32> to vector<16x1xf32>
      %cst_101 = arith.constant 2.560000e+02 : f32
      %285 = vector.broadcast %cst_101 : f32 to vector<16x1xf32>
      %286 = arith.divf %284, %285 : vector<16x1xf32>
      %287 = vector.broadcast %286 : vector<16x1xf32> to vector<16x256xf32>
      %288 = arith.subf %275, %287 : vector<16x256xf32>
      %289 = arith.mulf %288, %288 : vector<16x256xf32>
      %cst_102 = arith.constant dense<0.000000e+00> : vector<16xf32>
      %290 = vector.multi_reduction <add>, %289, %cst_102 [1] : vector<16x256xf32> to vector<16xf32>
      %291 = vector.shape_cast %290 : vector<16xf32> to vector<16x1xf32>
      %cst_103 = arith.constant 2.560000e+02 : f32
      %292 = vector.broadcast %cst_103 : f32 to vector<16x1xf32>
      %293 = arith.divf %291, %292 : vector<16x1xf32>
      %294 = vector.broadcast %286 : vector<16x1xf32> to vector<16x256xf32>
      %295 = arith.subf %275, %294 : vector<16x256xf32>
      %cst_104 = arith.constant 9.99999974E-6 : f32
      %296 = vector.broadcast %cst_104 : f32 to vector<16x1xf32>
      %297 = arith.addf %293, %296 : vector<16x1xf32>
      %298 = math.rsqrt %297 : vector<16x1xf32>
      %299 = vector.broadcast %298 : vector<16x1xf32> to vector<16x256xf32>
      %300 = arith.mulf %295, %299 : vector<16x256xf32>
      %c0_105 = arith.constant 0 : index
      %c0_106 = arith.constant 0 : index
      %301 = vector.load %arg15[%c0_105, %c0_106] : memref<1x256xf32, #tpu.memory_space<vmem>>, vector<1x256xf32>
      %302 = vector.broadcast %301 : vector<1x256xf32> to vector<16x256xf32>
      %303 = arith.mulf %300, %302 : vector<16x256xf32>
      %c0_107 = arith.constant 0 : index
      %c0_108 = arith.constant 0 : index
      %304 = vector.load %arg16[%c0_107, %c0_108] : memref<1x256xf32, #tpu.memory_space<vmem>>, vector<1x256xf32>
      %305 = vector.broadcast %304 : vector<1x256xf32> to vector<16x256xf32>
      %306 = arith.addf %303, %305 : vector<16x256xf32>
      %c0_109 = arith.constant 0 : index
      %c0_110 = arith.constant 0 : index
      %307 = vector.load %arg18[%c0_109, %c0_110] : memref<16x256xf32, #tpu.memory_space<vmem>>, vector<16x256xf32>
      tpu.vector_store %arg18[%c0_109, %c0_110], %306 {strides = array<i32>} : memref<16x256xf32, #tpu.memory_space<vmem>>, vector<16x256xf32>,
    } else {
    }
    return
  }
  func.func @transform_0(%arg0: i32) -> (i32, i32) {
    %c0_i32 = arith.constant 0 : i32
    %c0_i32_0 = arith.constant 0 : i32
    %c0_i32_1 = arith.constant 0 : i32
    return %c0_i32, %c0_i32_0 : i32, i32
  }
  func.func @transform_1(%arg0: i32) -> (i32, i32) {
    %c0_i32 = arith.constant 0 : i32
    %c0_i32_0 = arith.constant 0 : i32
    %c0_i32_1 = arith.constant 0 : i32
    return %c0_i32, %c0_i32_0 : i32, i32
  }
  func.func @transform_2(%arg0: i32) -> (i32, i32, i32) {
    %c0_i32 = arith.constant 0 : i32
    %c0_i32_0 = arith.constant 0 : i32
    %c0_i32_1 = arith.constant 0 : i32
    return %arg0, %c0_i32, %c0_i32_0 : i32, i32, i32
  }
  func.func @transform_3(%arg0: i32) -> (i32, i32, i32) {
    %c0_i32 = arith.constant 0 : i32
    %c0_i32_0 = arith.constant 0 : i32
    %c0_i32_1 = arith.constant 0 : i32
    return %arg0, %c0_i32, %c0_i32_0 : i32, i32, i32
  }
  func.func @transform_4(%arg0: i32) -> (i32, i32, i32) {
    %c0_i32 = arith.constant 0 : i32
    %c0_i32_0 = arith.constant 0 : i32
    %c0_i32_1 = arith.constant 0 : i32
    return %arg0, %c0_i32, %c0_i32_0 : i32, i32, i32
  }
  func.func @transform_5(%arg0: i32) -> (i32, i32, i32) {
    %c0_i32 = arith.constant 0 : i32
    %c0_i32_0 = arith.constant 0 : i32
    %c0_i32_1 = arith.constant 0 : i32
    return %arg0, %c0_i32, %c0_i32_0 : i32, i32, i32
  }
  func.func @transform_6(%arg0: i32) -> (i32, i32, i32) {
    %c0_i32 = arith.constant 0 : i32
    %c0_i32_0 = arith.constant 0 : i32
    %c0_i32_1 = arith.constant 0 : i32
    return %arg0, %c0_i32, %c0_i32_0 : i32, i32, i32
  }
  func.func @transform_7(%arg0: i32) -> (i32, i32, i32) {
    %c0_i32 = arith.constant 0 : i32
    %c0_i32_0 = arith.constant 0 : i32
    %c0_i32_1 = arith.constant 0 : i32
    return %arg0, %c0_i32, %c0_i32_0 : i32, i32, i32
  }
  func.func @transform_8(%arg0: i32) -> (i32, i32, i32) {
    %c0_i32 = arith.constant 0 : i32
    %c0_i32_0 = arith.constant 0 : i32
    %c0_i32_1 = arith.constant 0 : i32
    return %arg0, %c0_i32, %c0_i32_0 : i32, i32, i32
  }
  func.func @transform_9(%arg0: i32) -> (i32, i32, i32) {
    %c0_i32 = arith.constant 0 : i32
    %c0_i32_0 = arith.constant 0 : i32
    %c0_i32_1 = arith.constant 0 : i32
    return %arg0, %c0_i32, %c0_i32_0 : i32, i32, i32
  }
  func.func @transform_10(%arg0: i32) -> (i32, i32, i32) {
    %c0_i32 = arith.constant 0 : i32
    %c0_i32_0 = arith.constant 0 : i32
    %c0_i32_1 = arith.constant 0 : i32
    return %arg0, %c0_i32, %c0_i32_0 : i32, i32, i32
  }
  func.func @transform_11(%arg0: i32) -> (i32, i32, i32) {
    %c0_i32 = arith.constant 0 : i32
    %c0_i32_0 = arith.constant 0 : i32
    %c0_i32_1 = arith.constant 0 : i32
    return %arg0, %c0_i32, %c0_i32_0 : i32, i32, i32
  }
  func.func @transform_12(%arg0: i32) -> (i32, i32, i32) {
    %c0_i32 = arith.constant 0 : i32
    %c0_i32_0 = arith.constant 0 : i32
    %c0_i32_1 = arith.constant 0 : i32
    return %arg0, %c0_i32, %c0_i32_0 : i32, i32, i32
  }
  func.func @transform_13(%arg0: i32) -> (i32, i32, i32) {
    %c0_i32 = arith.constant 0 : i32
    %c0_i32_0 = arith.constant 0 : i32
    %c0_i32_1 = arith.constant 0 : i32
    return %arg0, %c0_i32, %c0_i32_0 : i32, i32, i32
  }
  func.func @transform_14(%arg0: i32) -> (i32, i32) {
    %c0_i32 = arith.constant 0 : i32
    %c0_i32_0 = arith.constant 0 : i32
    %c0_i32_1 = arith.constant 0 : i32
    return %c0_i32, %c0_i32_0 : i32, i32
  }
  func.func @transform_15(%arg0: i32) -> (i32, i32) {
    %c0_i32 = arith.constant 0 : i32
    %c0_i32_0 = arith.constant 0 : i32
    %c0_i32_1 = arith.constant 0 : i32
    return %c0_i32, %c0_i32_0 : i32, i32
  }
  func.func @transform_16(%arg0: i32) -> (i32, i32) {
    %c0_i32 = arith.constant 0 : i32
    %c0_i32_0 = arith.constant 0 : i32
    %c0_i32_1 = arith.constant 0 : i32
    return %c0_i32, %c0_i32_0 : i32, i32
  }
  func.func @transform_17(%arg0: i32) -> (i32, i32) {
    %c0_i32 = arith.constant 0 : i32
    %c0_i32_0 = arith.constant 0 : i32
    %c0_i32_1 = arith.constant 0 : i32
    return %c0_i32, %c0_i32_0 : i32, i32
  }
}

module attributes {stable_mosaic.version = 11 : i64} {
  func.func @_clip_stack_kernel(%arg0: i32, %arg1: memref<16x128xf32, #tpu.memory_space<vmem>>, %arg2: memref<16x16xf32, #tpu.memory_space<vmem>>, %arg3: memref<1x1x128xf32, #tpu.memory_space<vmem>>, %arg4: memref<1x1x128xf32, #tpu.memory_space<vmem>>, %arg5: memref<1x128x384xbf16, #tpu.memory_space<vmem>>, %arg6: memref<1x1x384xf32, #tpu.memory_space<vmem>>, %arg7: memref<1x128x128xbf16, #tpu.memory_space<vmem>>, %arg8: memref<1x1x128xf32, #tpu.memory_space<vmem>>, %arg9: memref<1x1x128xf32, #tpu.memory_space<vmem>>, %arg10: memref<1x1x128xf32, #tpu.memory_space<vmem>>, %arg11: memref<1x128x512xbf16, #tpu.memory_space<vmem>>, %arg12: memref<1x1x512xf32, #tpu.memory_space<vmem>>, %arg13: memref<1x512x128xbf16, #tpu.memory_space<vmem>>, %arg14: memref<1x1x128xf32, #tpu.memory_space<vmem>>, %arg15: memref<1x128xf32, #tpu.memory_space<vmem>>, %arg16: memref<1x128xf32, #tpu.memory_space<vmem>>, %arg17: memref<16x128xf32, #tpu.memory_space<vmem>>, %arg18: memref<16x128xf32, #tpu.memory_space<vmem>>, %arg19: memref<16x128xf32, #tpu.memory_space<vmem>>) attributes {dimension_semantics = [#tpu.dimension_semantics<arbitrary>], iteration_bounds = array<i64: 2>, scalar_prefetch = 0 : i64, scratch_operands = 1 : i64, tpu.core_type = #tpu.core_type<tc>, window_params = [{pipeline_mode = #tpu.pipeline_mode<synchronous>, transform_indices = @transform_0, window_bounds = array<i64: 16, 128>}, {pipeline_mode = #tpu.pipeline_mode<synchronous>, transform_indices = @transform_1, window_bounds = array<i64: 16, 16>}, {transform_indices = @transform_2, window_bounds = array<i64: 1, 1, 128>}, {transform_indices = @transform_3, window_bounds = array<i64: 1, 1, 128>}, {transform_indices = @transform_4, window_bounds = array<i64: 1, 128, 384>}, {transform_indices = @transform_5, window_bounds = array<i64: 1, 1, 384>}, {transform_indices = @transform_6, window_bounds = array<i64: 1, 128, 128>}, {transform_indices = @transform_7, window_bounds = array<i64: 1, 1, 128>}, {transform_indices = @transform_8, window_bounds = array<i64: 1, 1, 128>}, {transform_indices = @transform_9, window_bounds = array<i64: 1, 1, 128>}, {transform_indices = @transform_10, window_bounds = array<i64: 1, 128, 512>}, {transform_indices = @transform_11, window_bounds = array<i64: 1, 1, 512>}, {transform_indices = @transform_12, window_bounds = array<i64: 1, 512, 128>}, {transform_indices = @transform_13, window_bounds = array<i64: 1, 1, 128>}, {pipeline_mode = #tpu.pipeline_mode<synchronous>, transform_indices = @transform_14, window_bounds = array<i64: 1, 128>}, {pipeline_mode = #tpu.pipeline_mode<synchronous>, transform_indices = @transform_15, window_bounds = array<i64: 1, 128>}, {pipeline_mode = #tpu.pipeline_mode<synchronous>, transform_indices = @transform_16, window_bounds = array<i64: 16, 128>}, {pipeline_mode = #tpu.pipeline_mode<synchronous>, transform_indices = @transform_17, window_bounds = array<i64: 16, 128>}]} {
    %c0_i32 = arith.constant 0 : i32
    %0 = arith.cmpi eq, %arg0, %c0_i32 : i32
    %1 = arith.extui %0 : i1 to i32
    %c0_i32_0 = arith.constant 0 : i32
    %2 = arith.cmpi ne, %1, %c0_i32_0 : i32
    scf.if %2 {
      %c0_80 = arith.constant 0 : index
      %c0_81 = arith.constant 0 : index
      %195 = vector.load %arg1[%c0_80, %c0_81] : memref<16x128xf32, #tpu.memory_space<vmem>>, vector<16x128xf32>
      %c0_82 = arith.constant 0 : index
      %c0_83 = arith.constant 0 : index
      %196 = vector.load %arg19[%c0_82, %c0_83] : memref<16x128xf32, #tpu.memory_space<vmem>>, vector<16x128xf32>
      tpu.vector_store %arg19[%c0_82, %c0_83], %195 {strides = array<i32>} : memref<16x128xf32, #tpu.memory_space<vmem>>, vector<16x128xf32>,
    } else {
    }
    %c0 = arith.constant 0 : index
    %c0_1 = arith.constant 0 : index
    %3 = vector.load %arg19[%c0, %c0_1] : memref<16x128xf32, #tpu.memory_space<vmem>>, vector<16x128xf32>
    %cst = arith.constant dense<0.000000e+00> : vector<16xf32>
    %4 = vector.multi_reduction <add>, %3, %cst [1] : vector<16x128xf32> to vector<16xf32>
    %5 = vector.shape_cast %4 : vector<16xf32> to vector<16x1xf32>
    %cst_2 = arith.constant 1.280000e+02 : f32
    %6 = vector.broadcast %cst_2 : f32 to vector<16x1xf32>
    %7 = arith.divf %5, %6 : vector<16x1xf32>
    %8 = vector.broadcast %7 : vector<16x1xf32> to vector<16x128xf32>
    %9 = arith.subf %3, %8 : vector<16x128xf32>
    %10 = arith.mulf %9, %9 : vector<16x128xf32>
    %cst_3 = arith.constant dense<0.000000e+00> : vector<16xf32>
    %11 = vector.multi_reduction <add>, %10, %cst_3 [1] : vector<16x128xf32> to vector<16xf32>
    %12 = vector.shape_cast %11 : vector<16xf32> to vector<16x1xf32>
    %cst_4 = arith.constant 1.280000e+02 : f32
    %13 = vector.broadcast %cst_4 : f32 to vector<16x1xf32>
    %14 = arith.divf %12, %13 : vector<16x1xf32>
    %15 = vector.broadcast %7 : vector<16x1xf32> to vector<16x128xf32>
    %16 = arith.subf %3, %15 : vector<16x128xf32>
    %cst_5 = arith.constant 9.99999974E-6 : f32
    %17 = vector.broadcast %cst_5 : f32 to vector<16x1xf32>
    %18 = arith.addf %14, %17 : vector<16x1xf32>
    %19 = math.rsqrt %18 : vector<16x1xf32>
    %20 = vector.broadcast %19 : vector<16x1xf32> to vector<16x128xf32>
    %21 = arith.mulf %16, %20 : vector<16x128xf32>
    %c0_6 = arith.constant 0 : index
    %c0_7 = arith.constant 0 : index
    %c0_8 = arith.constant 0 : index
    %22 = vector.load %arg3[%c0_6, %c0_7, %c0_8] : memref<1x1x128xf32, #tpu.memory_space<vmem>>, vector<1x1x128xf32>
    %23 = vector.shape_cast %22 : vector<1x1x128xf32> to vector<1x128xf32>
    %24 = vector.broadcast %23 : vector<1x128xf32> to vector<16x128xf32>
    %25 = arith.mulf %21, %24 : vector<16x128xf32>
    %c0_9 = arith.constant 0 : index
    %c0_10 = arith.constant 0 : index
    %c0_11 = arith.constant 0 : index
    %26 = vector.load %arg4[%c0_9, %c0_10, %c0_11] : memref<1x1x128xf32, #tpu.memory_space<vmem>>, vector<1x1x128xf32>
    %27 = vector.shape_cast %26 : vector<1x1x128xf32> to vector<1x128xf32>
    %28 = vector.broadcast %27 : vector<1x128xf32> to vector<16x128xf32>
    %29 = arith.addf %25, %28 : vector<16x128xf32>
    %30 = arith.truncf %29 : vector<16x128xf32> to vector<16x128xbf16>
    %c0_12 = arith.constant 0 : index
    %c0_13 = arith.constant 0 : index
    %c0_14 = arith.constant 0 : index
    %31 = vector.load %arg5[%c0_12, %c0_13, %c0_14] : memref<1x128x384xbf16, #tpu.memory_space<vmem>>, vector<1x128x384xbf16>
    %32 = vector.shape_cast %31 : vector<1x128x384xbf16> to vector<128x384xbf16>
    %cst_15 = arith.constant dense<0.000000e+00> : vector<16x384xf32>
    %33 = tpu.matmul %30, %32, %cst_15 {dimension_numbers = #tpu.dot_dimension_numbers<[1], [0], [0], [1], [0, 0, 1, 1], [], []>} : vector<16x128xbf16>, vector<128x384xbf16>, vector<16x384xf32> -> vector<16x384xf32>
    %c0_16 = arith.constant 0 : index
    %c0_17 = arith.constant 0 : index
    %c0_18 = arith.constant 0 : index
    %34 = vector.load %arg6[%c0_16, %c0_17, %c0_18] : memref<1x1x384xf32, #tpu.memory_space<vmem>>, vector<1x1x384xf32>
    %35 = vector.shape_cast %34 : vector<1x1x384xf32> to vector<1x384xf32>
    %36 = vector.broadcast %35 : vector<1x384xf32> to vector<16x384xf32>
    %37 = arith.addf %33, %36 : vector<16x384xf32>
    %c0_19 = arith.constant 0 : index
    %c0_20 = arith.constant 0 : index
    %38 = vector.load %arg2[%c0_19, %c0_20] : memref<16x16xf32, #tpu.memory_space<vmem>>, vector<16x16xf32>
    %39 = vector.extract_strided_slice %37 {offsets = [0, 0], sizes = [16, 32], strides = [1, 1]} : vector<16x384xf32> to vector<16x32xf32>
    %40 = arith.truncf %39 : vector<16x32xf32> to vector<16x32xbf16>
    %41 = vector.extract_strided_slice %37 {offsets = [0, 128], sizes = [16, 32], strides = [1, 1]} : vector<16x384xf32> to vector<16x32xf32>
    %42 = arith.truncf %41 : vector<16x32xf32> to vector<16x32xbf16>
    %43 = vector.extract_strided_slice %37 {offsets = [0, 256], sizes = [16, 32], strides = [1, 1]} : vector<16x384xf32> to vector<16x32xf32>
    %44 = arith.truncf %43 : vector<16x32xf32> to vector<16x32xbf16>
    %cst_21 = arith.constant dense<0.000000e+00> : vector<16x16xf32>
    %45 = tpu.matmul %40, %42, %cst_21 {dimension_numbers = #tpu.dot_dimension_numbers<[1], [1], [0], [0], [0, 0, 1, 0], [], []>} : vector<16x32xbf16>, vector<16x32xbf16>, vector<16x16xf32> -> vector<16x16xf32>
    %cst_22 = arith.constant 0.176776692 : f32
    %46 = vector.broadcast %cst_22 : f32 to vector<16x16xf32>
    %47 = arith.mulf %45, %46 : vector<16x16xf32>
    %48 = arith.addf %47, %38 : vector<16x16xf32>
    %cst_23 = arith.constant dense<0xFF800000> : vector<16xf32>
    %49 = vector.multi_reduction <maximumf>, %48, %cst_23 [1] : vector<16x16xf32> to vector<16xf32>
    %50 = vector.shape_cast %49 : vector<16xf32> to vector<16x1xf32>
    %51 = vector.broadcast %50 : vector<16x1xf32> to vector<16x16xf32>
    %52 = arith.subf %48, %51 : vector<16x16xf32>
    %53 = math.exp %52 : vector<16x16xf32>
    %cst_24 = arith.constant dense<0.000000e+00> : vector<16xf32>
    %54 = vector.multi_reduction <add>, %53, %cst_24 [1] : vector<16x16xf32> to vector<16xf32>
    %55 = vector.shape_cast %54 : vector<16xf32> to vector<16x1xf32>
    %56 = tpu.reciprocal %55 {approx = true} : vector<16x1xf32> -> vector<16x1xf32>
    %57 = vector.broadcast %56 : vector<16x1xf32> to vector<16x16xf32>
    %58 = arith.mulf %53, %57 : vector<16x16xf32>
    %59 = arith.truncf %58 : vector<16x16xf32> to vector<16x16xbf16>
    %cst_25 = arith.constant dense<0.000000e+00> : vector<16x32xf32>
    %60 = tpu.matmul %59, %44, %cst_25 {dimension_numbers = #tpu.dot_dimension_numbers<[1], [0], [0], [1], [0, 0, 1, 1], [], []>} : vector<16x16xbf16>, vector<16x32xbf16>, vector<16x32xf32> -> vector<16x32xf32>
    %61 = vector.extract_strided_slice %37 {offsets = [0, 32], sizes = [16, 32], strides = [1, 1]} : vector<16x384xf32> to vector<16x32xf32>
    %62 = arith.truncf %61 : vector<16x32xf32> to vector<16x32xbf16>
    %63 = vector.extract_strided_slice %37 {offsets = [0, 160], sizes = [16, 32], strides = [1, 1]} : vector<16x384xf32> to vector<16x32xf32>
    %64 = arith.truncf %63 : vector<16x32xf32> to vector<16x32xbf16>
    %65 = vector.extract_strided_slice %37 {offsets = [0, 288], sizes = [16, 32], strides = [1, 1]} : vector<16x384xf32> to vector<16x32xf32>
    %66 = arith.truncf %65 : vector<16x32xf32> to vector<16x32xbf16>
    %cst_26 = arith.constant dense<0.000000e+00> : vector<16x16xf32>
    %67 = tpu.matmul %62, %64, %cst_26 {dimension_numbers = #tpu.dot_dimension_numbers<[1], [1], [0], [0], [0, 0, 1, 0], [], []>} : vector<16x32xbf16>, vector<16x32xbf16>, vector<16x16xf32> -> vector<16x16xf32>
    %cst_27 = arith.constant 0.176776692 : f32
    %68 = vector.broadcast %cst_27 : f32 to vector<16x16xf32>
    %69 = arith.mulf %67, %68 : vector<16x16xf32>
    %70 = arith.addf %69, %38 : vector<16x16xf32>
    %cst_28 = arith.constant dense<0xFF800000> : vector<16xf32>
    %71 = vector.multi_reduction <maximumf>, %70, %cst_28 [1] : vector<16x16xf32> to vector<16xf32>
    %72 = vector.shape_cast %71 : vector<16xf32> to vector<16x1xf32>
    %73 = vector.broadcast %72 : vector<16x1xf32> to vector<16x16xf32>
    %74 = arith.subf %70, %73 : vector<16x16xf32>
    %75 = math.exp %74 : vector<16x16xf32>
    %cst_29 = arith.constant dense<0.000000e+00> : vector<16xf32>
    %76 = vector.multi_reduction <add>, %75, %cst_29 [1] : vector<16x16xf32> to vector<16xf32>
    %77 = vector.shape_cast %76 : vector<16xf32> to vector<16x1xf32>
    %78 = tpu.reciprocal %77 {approx = true} : vector<16x1xf32> -> vector<16x1xf32>
    %79 = vector.broadcast %78 : vector<16x1xf32> to vector<16x16xf32>
    %80 = arith.mulf %75, %79 : vector<16x16xf32>
    %81 = arith.truncf %80 : vector<16x16xf32> to vector<16x16xbf16>
    %cst_30 = arith.constant dense<0.000000e+00> : vector<16x32xf32>
    %82 = tpu.matmul %81, %66, %cst_30 {dimension_numbers = #tpu.dot_dimension_numbers<[1], [0], [0], [1], [0, 0, 1, 1], [], []>} : vector<16x16xbf16>, vector<16x32xbf16>, vector<16x32xf32> -> vector<16x32xf32>
    %83 = vector.extract_strided_slice %37 {offsets = [0, 64], sizes = [16, 32], strides = [1, 1]} : vector<16x384xf32> to vector<16x32xf32>
    %84 = arith.truncf %83 : vector<16x32xf32> to vector<16x32xbf16>
    %85 = vector.extract_strided_slice %37 {offsets = [0, 192], sizes = [16, 32], strides = [1, 1]} : vector<16x384xf32> to vector<16x32xf32>
    %86 = arith.truncf %85 : vector<16x32xf32> to vector<16x32xbf16>
    %87 = vector.extract_strided_slice %37 {offsets = [0, 320], sizes = [16, 32], strides = [1, 1]} : vector<16x384xf32> to vector<16x32xf32>
    %88 = arith.truncf %87 : vector<16x32xf32> to vector<16x32xbf16>
    %cst_31 = arith.constant dense<0.000000e+00> : vector<16x16xf32>
    %89 = tpu.matmul %84, %86, %cst_31 {dimension_numbers = #tpu.dot_dimension_numbers<[1], [1], [0], [0], [0, 0, 1, 0], [], []>} : vector<16x32xbf16>, vector<16x32xbf16>, vector<16x16xf32> -> vector<16x16xf32>
    %cst_32 = arith.constant 0.176776692 : f32
    %90 = vector.broadcast %cst_32 : f32 to vector<16x16xf32>
    %91 = arith.mulf %89, %90 : vector<16x16xf32>
    %92 = arith.addf %91, %38 : vector<16x16xf32>
    %cst_33 = arith.constant dense<0xFF800000> : vector<16xf32>
    %93 = vector.multi_reduction <maximumf>, %92, %cst_33 [1] : vector<16x16xf32> to vector<16xf32>
    %94 = vector.shape_cast %93 : vector<16xf32> to vector<16x1xf32>
    %95 = vector.broadcast %94 : vector<16x1xf32> to vector<16x16xf32>
    %96 = arith.subf %92, %95 : vector<16x16xf32>
    %97 = math.exp %96 : vector<16x16xf32>
    %cst_34 = arith.constant dense<0.000000e+00> : vector<16xf32>
    %98 = vector.multi_reduction <add>, %97, %cst_34 [1] : vector<16x16xf32> to vector<16xf32>
    %99 = vector.shape_cast %98 : vector<16xf32> to vector<16x1xf32>
    %100 = tpu.reciprocal %99 {approx = true} : vector<16x1xf32> -> vector<16x1xf32>
    %101 = vector.broadcast %100 : vector<16x1xf32> to vector<16x16xf32>
    %102 = arith.mulf %97, %101 : vector<16x16xf32>
    %103 = arith.truncf %102 : vector<16x16xf32> to vector<16x16xbf16>
    %cst_35 = arith.constant dense<0.000000e+00> : vector<16x32xf32>
    %104 = tpu.matmul %103, %88, %cst_35 {dimension_numbers = #tpu.dot_dimension_numbers<[1], [0], [0], [1], [0, 0, 1, 1], [], []>} : vector<16x16xbf16>, vector<16x32xbf16>, vector<16x32xf32> -> vector<16x32xf32>
    %105 = vector.extract_strided_slice %37 {offsets = [0, 96], sizes = [16, 32], strides = [1, 1]} : vector<16x384xf32> to vector<16x32xf32>
    %106 = arith.truncf %105 : vector<16x32xf32> to vector<16x32xbf16>
    %107 = vector.extract_strided_slice %37 {offsets = [0, 224], sizes = [16, 32], strides = [1, 1]} : vector<16x384xf32> to vector<16x32xf32>
    %108 = arith.truncf %107 : vector<16x32xf32> to vector<16x32xbf16>
    %109 = vector.extract_strided_slice %37 {offsets = [0, 352], sizes = [16, 32], strides = [1, 1]} : vector<16x384xf32> to vector<16x32xf32>
    %110 = arith.truncf %109 : vector<16x32xf32> to vector<16x32xbf16>
    %cst_36 = arith.constant dense<0.000000e+00> : vector<16x16xf32>
    %111 = tpu.matmul %106, %108, %cst_36 {dimension_numbers = #tpu.dot_dimension_numbers<[1], [1], [0], [0], [0, 0, 1, 0], [], []>} : vector<16x32xbf16>, vector<16x32xbf16>, vector<16x16xf32> -> vector<16x16xf32>
    %cst_37 = arith.constant 0.176776692 : f32
    %112 = vector.broadcast %cst_37 : f32 to vector<16x16xf32>
    %113 = arith.mulf %111, %112 : vector<16x16xf32>
    %114 = arith.addf %113, %38 : vector<16x16xf32>
    %cst_38 = arith.constant dense<0xFF800000> : vector<16xf32>
    %115 = vector.multi_reduction <maximumf>, %114, %cst_38 [1] : vector<16x16xf32> to vector<16xf32>
    %116 = vector.shape_cast %115 : vector<16xf32> to vector<16x1xf32>
    %117 = vector.broadcast %116 : vector<16x1xf32> to vector<16x16xf32>
    %118 = arith.subf %114, %117 : vector<16x16xf32>
    %119 = math.exp %118 : vector<16x16xf32>
    %cst_39 = arith.constant dense<0.000000e+00> : vector<16xf32>
    %120 = vector.multi_reduction <add>, %119, %cst_39 [1] : vector<16x16xf32> to vector<16xf32>
    %121 = vector.shape_cast %120 : vector<16xf32> to vector<16x1xf32>
    %122 = tpu.reciprocal %121 {approx = true} : vector<16x1xf32> -> vector<16x1xf32>
    %123 = vector.broadcast %122 : vector<16x1xf32> to vector<16x16xf32>
    %124 = arith.mulf %119, %123 : vector<16x16xf32>
    %125 = arith.truncf %124 : vector<16x16xf32> to vector<16x16xbf16>
    %cst_40 = arith.constant dense<0.000000e+00> : vector<16x32xf32>
    %126 = tpu.matmul %125, %110, %cst_40 {dimension_numbers = #tpu.dot_dimension_numbers<[1], [0], [0], [1], [0, 0, 1, 1], [], []>} : vector<16x16xbf16>, vector<16x32xbf16>, vector<16x32xf32> -> vector<16x32xf32>
    %127 = tpu.concatenate %60, %82, %104, %126 in 1 : vector<16x32xf32>, vector<16x32xf32>, vector<16x32xf32>, vector<16x32xf32> -> vector<16x128xf32>
    %128 = arith.truncf %127 : vector<16x128xf32> to vector<16x128xbf16>
    %c0_41 = arith.constant 0 : index
    %c0_42 = arith.constant 0 : index
    %c0_43 = arith.constant 0 : index
    %129 = vector.load %arg7[%c0_41, %c0_42, %c0_43] : memref<1x128x128xbf16, #tpu.memory_space<vmem>>, vector<1x128x128xbf16>
    %130 = vector.shape_cast %129 : vector<1x128x128xbf16> to vector<128x128xbf16>
    %cst_44 = arith.constant dense<0.000000e+00> : vector<16x128xf32>
    %131 = tpu.matmul %128, %130, %cst_44 {dimension_numbers = #tpu.dot_dimension_numbers<[1], [0], [0], [1], [0, 0, 1, 1], [], []>} : vector<16x128xbf16>, vector<128x128xbf16>, vector<16x128xf32> -> vector<16x128xf32>
    %c0_45 = arith.constant 0 : index
    %c0_46 = arith.constant 0 : index
    %c0_47 = arith.constant 0 : index
    %132 = vector.load %arg8[%c0_45, %c0_46, %c0_47] : memref<1x1x128xf32, #tpu.memory_space<vmem>>, vector<1x1x128xf32>
    %133 = vector.shape_cast %132 : vector<1x1x128xf32> to vector<1x128xf32>
    %134 = vector.broadcast %133 : vector<1x128xf32> to vector<16x128xf32>
    %135 = arith.addf %131, %134 : vector<16x128xf32>
    %136 = arith.addf %3, %135 : vector<16x128xf32>
    %cst_48 = arith.constant dense<0.000000e+00> : vector<16xf32>
    %137 = vector.multi_reduction <add>, %136, %cst_48 [1] : vector<16x128xf32> to vector<16xf32>
    %138 = vector.shape_cast %137 : vector<16xf32> to vector<16x1xf32>
    %cst_49 = arith.constant 1.280000e+02 : f32
    %139 = vector.broadcast %cst_49 : f32 to vector<16x1xf32>
    %140 = arith.divf %138, %139 : vector<16x1xf32>
    %141 = vector.broadcast %140 : vector<16x1xf32> to vector<16x128xf32>
    %142 = arith.subf %136, %141 : vector<16x128xf32>
    %143 = arith.mulf %142, %142 : vector<16x128xf32>
    %cst_50 = arith.constant dense<0.000000e+00> : vector<16xf32>
    %144 = vector.multi_reduction <add>, %143, %cst_50 [1] : vector<16x128xf32> to vector<16xf32>
    %145 = vector.shape_cast %144 : vector<16xf32> to vector<16x1xf32>
    %cst_51 = arith.constant 1.280000e+02 : f32
    %146 = vector.broadcast %cst_51 : f32 to vector<16x1xf32>
    %147 = arith.divf %145, %146 : vector<16x1xf32>
    %148 = vector.broadcast %140 : vector<16x1xf32> to vector<16x128xf32>
    %149 = arith.subf %136, %148 : vector<16x128xf32>
    %cst_52 = arith.constant 9.99999974E-6 : f32
    %150 = vector.broadcast %cst_52 : f32 to vector<16x1xf32>
    %151 = arith.addf %147, %150 : vector<16x1xf32>
    %152 = math.rsqrt %151 : vector<16x1xf32>
    %153 = vector.broadcast %152 : vector<16x1xf32> to vector<16x128xf32>
    %154 = arith.mulf %149, %153 : vector<16x128xf32>
    %c0_53 = arith.constant 0 : index
    %c0_54 = arith.constant 0 : index
    %c0_55 = arith.constant 0 : index
    %155 = vector.load %arg9[%c0_53, %c0_54, %c0_55] : memref<1x1x128xf32, #tpu.memory_space<vmem>>, vector<1x1x128xf32>
    %156 = vector.shape_cast %155 : vector<1x1x128xf32> to vector<1x128xf32>
    %157 = vector.broadcast %156 : vector<1x128xf32> to vector<16x128xf32>
    %158 = arith.mulf %154, %157 : vector<16x128xf32>
    %c0_56 = arith.constant 0 : index
    %c0_57 = arith.constant 0 : index
    %c0_58 = arith.constant 0 : index
    %159 = vector.load %arg10[%c0_56, %c0_57, %c0_58] : memref<1x1x128xf32, #tpu.memory_space<vmem>>, vector<1x1x128xf32>
    %160 = vector.shape_cast %159 : vector<1x1x128xf32> to vector<1x128xf32>
    %161 = vector.broadcast %160 : vector<1x128xf32> to vector<16x128xf32>
    %162 = arith.addf %158, %161 : vector<16x128xf32>
    %163 = arith.truncf %162 : vector<16x128xf32> to vector<16x128xbf16>
    %c0_59 = arith.constant 0 : index
    %c0_60 = arith.constant 0 : index
    %c0_61 = arith.constant 0 : index
    %164 = vector.load %arg11[%c0_59, %c0_60, %c0_61] : memref<1x128x512xbf16, #tpu.memory_space<vmem>>, vector<1x128x512xbf16>
    %165 = vector.shape_cast %164 : vector<1x128x512xbf16> to vector<128x512xbf16>
    %cst_62 = arith.constant dense<0.000000e+00> : vector<16x512xf32>
    %166 = tpu.matmul %163, %165, %cst_62 {dimension_numbers = #tpu.dot_dimension_numbers<[1], [0], [0], [1], [0, 0, 1, 1], [], []>} : vector<16x128xbf16>, vector<128x512xbf16>, vector<16x512xf32> -> vector<16x512xf32>
    %c0_63 = arith.constant 0 : index
    %c0_64 = arith.constant 0 : index
    %c0_65 = arith.constant 0 : index
    %167 = vector.load %arg12[%c0_63, %c0_64, %c0_65] : memref<1x1x512xf32, #tpu.memory_space<vmem>>, vector<1x1x512xf32>
    %168 = vector.shape_cast %167 : vector<1x1x512xf32> to vector<1x512xf32>
    %169 = vector.broadcast %168 : vector<1x512xf32> to vector<16x512xf32>
    %170 = arith.addf %166, %169 : vector<16x512xf32>
    %cst_66 = arith.constant 1.702000e+00 : f32
    %171 = vector.broadcast %cst_66 : f32 to vector<16x512xf32>
    %172 = arith.mulf %171, %170 : vector<16x512xf32>
    %173 = arith.negf %172 : vector<16x512xf32>
    %174 = math.exp %173 : vector<16x512xf32>
    %cst_67 = arith.constant 1.000000e+00 : f32
    %175 = vector.broadcast %cst_67 : f32 to vector<16x512xf32>
    %176 = arith.addf %175, %174 : vector<16x512xf32>
    %177 = arith.divf %175, %176 : vector<16x512xf32>
    %178 = arith.mulf %170, %177 : vector<16x512xf32>
    %179 = arith.truncf %178 : vector<16x512xf32> to vector<16x512xbf16>
    %c0_68 = arith.constant 0 : index
    %c0_69 = arith.constant 0 : index
    %c0_70 = arith.constant 0 : index
    %180 = vector.load %arg13[%c0_68, %c0_69, %c0_70] : memref<1x512x128xbf16, #tpu.memory_space<vmem>>, vector<1x512x128xbf16>
    %181 = vector.shape_cast %180 : vector<1x512x128xbf16> to vector<512x128xbf16>
    %cst_71 = arith.constant dense<0.000000e+00> : vector<16x128xf32>
    %182 = tpu.matmul %179, %181, %cst_71 {dimension_numbers = #tpu.dot_dimension_numbers<[1], [0], [0], [1], [0, 0, 1, 1], [], []>} : vector<16x512xbf16>, vector<512x128xbf16>, vector<16x128xf32> -> vector<16x128xf32>
    %c0_72 = arith.constant 0 : index
    %c0_73 = arith.constant 0 : index
    %c0_74 = arith.constant 0 : index
    %183 = vector.load %arg14[%c0_72, %c0_73, %c0_74] : memref<1x1x128xf32, #tpu.memory_space<vmem>>, vector<1x1x128xf32>
    %184 = vector.shape_cast %183 : vector<1x1x128xf32> to vector<1x128xf32>
    %185 = vector.broadcast %184 : vector<1x128xf32> to vector<16x128xf32>
    %186 = arith.addf %182, %185 : vector<16x128xf32>
    %187 = arith.addf %136, %186 : vector<16x128xf32>
    %c0_75 = arith.constant 0 : index
    %c0_76 = arith.constant 0 : index
    %188 = vector.load %arg19[%c0_75, %c0_76] : memref<16x128xf32, #tpu.memory_space<vmem>>, vector<16x128xf32>
    tpu.vector_store %arg19[%c0_75, %c0_76], %187 {strides = array<i32>} : memref<16x128xf32, #tpu.memory_space<vmem>>, vector<16x128xf32>,
    %c0_i32_77 = arith.constant 0 : i32
    %189 = arith.cmpi eq, %arg0, %c0_i32_77 : i32
    %190 = arith.extui %189 : i1 to i32
    %c0_i32_78 = arith.constant 0 : i32
    %191 = arith.cmpi ne, %190, %c0_i32_78 : i32
    scf.if %191 {
      %c0_80 = arith.constant 0 : index
      %c0_81 = arith.constant 0 : index
      %195 = vector.load %arg17[%c0_80, %c0_81] : memref<16x128xf32, #tpu.memory_space<vmem>>, vector<16x128xf32>
      tpu.vector_store %arg17[%c0_80, %c0_81], %187 {strides = array<i32>} : memref<16x128xf32, #tpu.memory_space<vmem>>, vector<16x128xf32>,
    } else {
    }
    %c1_i32 = arith.constant 1 : i32
    %192 = arith.cmpi eq, %arg0, %c1_i32 : i32
    %193 = arith.extui %192 : i1 to i32
    %c0_i32_79 = arith.constant 0 : i32
    %194 = arith.cmpi ne, %193, %c0_i32_79 : i32
    scf.if %194 {
      %cst_80 = arith.constant dense<0.000000e+00> : vector<16xf32>
      %195 = vector.multi_reduction <add>, %187, %cst_80 [1] : vector<16x128xf32> to vector<16xf32>
      %196 = vector.shape_cast %195 : vector<16xf32> to vector<16x1xf32>
      %cst_81 = arith.constant 1.280000e+02 : f32
      %197 = vector.broadcast %cst_81 : f32 to vector<16x1xf32>
      %198 = arith.divf %196, %197 : vector<16x1xf32>
      %199 = vector.broadcast %198 : vector<16x1xf32> to vector<16x128xf32>
      %200 = arith.subf %187, %199 : vector<16x128xf32>
      %201 = arith.mulf %200, %200 : vector<16x128xf32>
      %cst_82 = arith.constant dense<0.000000e+00> : vector<16xf32>
      %202 = vector.multi_reduction <add>, %201, %cst_82 [1] : vector<16x128xf32> to vector<16xf32>
      %203 = vector.shape_cast %202 : vector<16xf32> to vector<16x1xf32>
      %cst_83 = arith.constant 1.280000e+02 : f32
      %204 = vector.broadcast %cst_83 : f32 to vector<16x1xf32>
      %205 = arith.divf %203, %204 : vector<16x1xf32>
      %206 = vector.broadcast %198 : vector<16x1xf32> to vector<16x128xf32>
      %207 = arith.subf %187, %206 : vector<16x128xf32>
      %cst_84 = arith.constant 9.99999974E-6 : f32
      %208 = vector.broadcast %cst_84 : f32 to vector<16x1xf32>
      %209 = arith.addf %205, %208 : vector<16x1xf32>
      %210 = math.rsqrt %209 : vector<16x1xf32>
      %211 = vector.broadcast %210 : vector<16x1xf32> to vector<16x128xf32>
      %212 = arith.mulf %207, %211 : vector<16x128xf32>
      %c0_85 = arith.constant 0 : index
      %c0_86 = arith.constant 0 : index
      %213 = vector.load %arg15[%c0_85, %c0_86] : memref<1x128xf32, #tpu.memory_space<vmem>>, vector<1x128xf32>
      %214 = vector.broadcast %213 : vector<1x128xf32> to vector<16x128xf32>
      %215 = arith.mulf %212, %214 : vector<16x128xf32>
      %c0_87 = arith.constant 0 : index
      %c0_88 = arith.constant 0 : index
      %216 = vector.load %arg16[%c0_87, %c0_88] : memref<1x128xf32, #tpu.memory_space<vmem>>, vector<1x128xf32>
      %217 = vector.broadcast %216 : vector<1x128xf32> to vector<16x128xf32>
      %218 = arith.addf %215, %217 : vector<16x128xf32>
      %c0_89 = arith.constant 0 : index
      %c0_90 = arith.constant 0 : index
      %219 = vector.load %arg18[%c0_89, %c0_90] : memref<16x128xf32, #tpu.memory_space<vmem>>, vector<16x128xf32>
      tpu.vector_store %arg18[%c0_89, %c0_90], %218 {strides = array<i32>} : memref<16x128xf32, #tpu.memory_space<vmem>>, vector<16x128xf32>,
    } else {
    }
    return
  }
  func.func @transform_0(%arg0: i32) -> (i32, i32) {
    %c0_i32 = arith.constant 0 : i32
    %c0_i32_0 = arith.constant 0 : i32
    %c0_i32_1 = arith.constant 0 : i32
    return %c0_i32, %c0_i32_0 : i32, i32
  }
  func.func @transform_1(%arg0: i32) -> (i32, i32) {
    %c0_i32 = arith.constant 0 : i32
    %c0_i32_0 = arith.constant 0 : i32
    %c0_i32_1 = arith.constant 0 : i32
    return %c0_i32, %c0_i32_0 : i32, i32
  }
  func.func @transform_2(%arg0: i32) -> (i32, i32, i32) {
    %c0_i32 = arith.constant 0 : i32
    %c0_i32_0 = arith.constant 0 : i32
    %c0_i32_1 = arith.constant 0 : i32
    return %arg0, %c0_i32, %c0_i32_0 : i32, i32, i32
  }
  func.func @transform_3(%arg0: i32) -> (i32, i32, i32) {
    %c0_i32 = arith.constant 0 : i32
    %c0_i32_0 = arith.constant 0 : i32
    %c0_i32_1 = arith.constant 0 : i32
    return %arg0, %c0_i32, %c0_i32_0 : i32, i32, i32
  }
  func.func @transform_4(%arg0: i32) -> (i32, i32, i32) {
    %c0_i32 = arith.constant 0 : i32
    %c0_i32_0 = arith.constant 0 : i32
    %c0_i32_1 = arith.constant 0 : i32
    return %arg0, %c0_i32, %c0_i32_0 : i32, i32, i32
  }
  func.func @transform_5(%arg0: i32) -> (i32, i32, i32) {
    %c0_i32 = arith.constant 0 : i32
    %c0_i32_0 = arith.constant 0 : i32
    %c0_i32_1 = arith.constant 0 : i32
    return %arg0, %c0_i32, %c0_i32_0 : i32, i32, i32
  }
  func.func @transform_6(%arg0: i32) -> (i32, i32, i32) {
    %c0_i32 = arith.constant 0 : i32
    %c0_i32_0 = arith.constant 0 : i32
    %c0_i32_1 = arith.constant 0 : i32
    return %arg0, %c0_i32, %c0_i32_0 : i32, i32, i32
  }
  func.func @transform_7(%arg0: i32) -> (i32, i32, i32) {
    %c0_i32 = arith.constant 0 : i32
    %c0_i32_0 = arith.constant 0 : i32
    %c0_i32_1 = arith.constant 0 : i32
    return %arg0, %c0_i32, %c0_i32_0 : i32, i32, i32
  }
  func.func @transform_8(%arg0: i32) -> (i32, i32, i32) {
    %c0_i32 = arith.constant 0 : i32
    %c0_i32_0 = arith.constant 0 : i32
    %c0_i32_1 = arith.constant 0 : i32
    return %arg0, %c0_i32, %c0_i32_0 : i32, i32, i32
  }
  func.func @transform_9(%arg0: i32) -> (i32, i32, i32) {
    %c0_i32 = arith.constant 0 : i32
    %c0_i32_0 = arith.constant 0 : i32
    %c0_i32_1 = arith.constant 0 : i32
    return %arg0, %c0_i32, %c0_i32_0 : i32, i32, i32
  }
  func.func @transform_10(%arg0: i32) -> (i32, i32, i32) {
    %c0_i32 = arith.constant 0 : i32
    %c0_i32_0 = arith.constant 0 : i32
    %c0_i32_1 = arith.constant 0 : i32
    return %arg0, %c0_i32, %c0_i32_0 : i32, i32, i32
  }
  func.func @transform_11(%arg0: i32) -> (i32, i32, i32) {
    %c0_i32 = arith.constant 0 : i32
    %c0_i32_0 = arith.constant 0 : i32
    %c0_i32_1 = arith.constant 0 : i32
    return %arg0, %c0_i32, %c0_i32_0 : i32, i32, i32
  }
  func.func @transform_12(%arg0: i32) -> (i32, i32, i32) {
    %c0_i32 = arith.constant 0 : i32
    %c0_i32_0 = arith.constant 0 : i32
    %c0_i32_1 = arith.constant 0 : i32
    return %arg0, %c0_i32, %c0_i32_0 : i32, i32, i32
  }
  func.func @transform_13(%arg0: i32) -> (i32, i32, i32) {
    %c0_i32 = arith.constant 0 : i32
    %c0_i32_0 = arith.constant 0 : i32
    %c0_i32_1 = arith.constant 0 : i32
    return %arg0, %c0_i32, %c0_i32_0 : i32, i32, i32
  }
  func.func @transform_14(%arg0: i32) -> (i32, i32) {
    %c0_i32 = arith.constant 0 : i32
    %c0_i32_0 = arith.constant 0 : i32
    %c0_i32_1 = arith.constant 0 : i32
    return %c0_i32, %c0_i32_0 : i32, i32
  }
  func.func @transform_15(%arg0: i32) -> (i32, i32) {
    %c0_i32 = arith.constant 0 : i32
    %c0_i32_0 = arith.constant 0 : i32
    %c0_i32_1 = arith.constant 0 : i32
    return %c0_i32, %c0_i32_0 : i32, i32
  }
  func.func @transform_16(%arg0: i32) -> (i32, i32) {
    %c0_i32 = arith.constant 0 : i32
    %c0_i32_0 = arith.constant 0 : i32
    %c0_i32_1 = arith.constant 0 : i32
    return %c0_i32, %c0_i32_0 : i32, i32
  }
  func.func @transform_17(%arg0: i32) -> (i32, i32) {
    %c0_i32 = arith.constant 0 : i32
    %c0_i32_0 = arith.constant 0 : i32
    %c0_i32_1 = arith.constant 0 : i32
    return %c0_i32, %c0_i32_0 : i32, i32
  }
}

</mosaic_0001>

<bundles_post_ra>
// kernel: prompt_encoder_forward.5
= control target key start
LH: loop header
LB: loop body
LE: loop exit
PB: predicated region body
PF: predicated region fallthrough
CT: control target
= control target key end

     0   :  { %7 = vsyncpa [#allocation3], 0  ;;  %s471_s12 = smov [#allocation2]   ;;  %s472_s14 = smov 128   ;;  %s504_s0 = inlined_call_operand.vmem [shape: f32[8,256], index: 0, kind: input, shape index: {}]   ;;  %s505_s1 = inlined_call_operand.hbm [shape: bf16[256,256], index: 1, kind: input, shape index: {}]   ;;  %s506_s2 = inlined_call_operand.vmem [shape: f32[8,256], index: 2, kind: output, shape index: {}]  }
   0x1   :  { %s14_s11 = sshll.u32 %s505_s1, 4  ;;  %s16_s13 = sshll.u32 %s471_s12, 4  ;;  %s15_s11 = int_to_ptr.hbm [resolvable:$true] %s14_s11  ;;  %s17_s13 = int_to_ptr.vmem [resolvable:$true] %s16_s13 }
   0x2   :  { %s473_s15 = smov 8  }
   0x3   :  { %22 = dma.hbm_to_vmem [thread:$0]  %s15_s11, 4096, %s17_s13, [#allocation3], %s472_s14, %s472_s14, %s473_s15  }
   0x4   :  { %469 = dma.done.wait [#allocation3], 4096  }
   0x5   :  { %470 = vsyncadd [#allocation3], 4294963200  ;;  %v340_v0 = vld [vmem:[#allocation2 + $0x70] sm:$0xf]  ;;  %v425_v1 = vld [vmem:[#allocation2 + $0x74] sm:$0xf0] }
   0x6   :  { %v404_v2 = vld [vmem:[#allocation2 + $0xf0] sm:$0xf]  ;;  %v341_v3 = vor.u32 %v425_v1, %v340_v0  ;;  %v441_v4 = vld [vmem:[#allocation2 + $0xf4] sm:$0xf0]  ;;  %v424_v5 = vld [vmem:[#allocation2 + $0x74] sm:$0xf] }
   0x7   :  { %v342_v6 = vld [vmem:[#allocation2 + $0x78] sm:$0xf0]  ;;  %v405_v7 = vor.u32 %v441_v4, %v404_v2  ;;  %v440_v9 = vld [vmem:[#allocation2 + $0xf4] sm:$0xf]  ;;  %v332_v11 = vld [vmem:[#allocation2 + $0x60] sm:$0xf] }
   0x8   :  { %v345_v8 = vor.u32 %v424_v5, %v342_v6  ;;  %v406_v10 = vld [vmem:[#allocation2 + $0xf8] sm:$0xf0]  ;;  %223 = vmatpush.bf16.msra.mxu0 %v341_v3  ;;  %v423_v13 = vld [vmem:[#allocation2 + $0x64] sm:$0xf0]  ;;  %v396_v14 = vld [vmem:[#allocation2 + $0xe0] sm:$0xf] }
   0x9   :  { %v409_v12 = vor.u32 %v440_v9, %v406_v10  ;;  %v439_v15 = vld [vmem:[#allocation2 + $0xe4] sm:$0xf0]  ;;  %236 = vmatpush.bf16.msra.mxu1 %v405_v7  ;;  %v333_v16 = vor.u32 %v423_v13, %v332_v11  ;;  %v422_v18 = vld [vmem:[#allocation2 + $0x64] sm:$0xf]  ;;  %v334_v19 = vld [vmem:[#allocation2 + $0x68] sm:$0xf0] }
   0xa   :  { %249 = vmatpush.bf16.msra.mxu2 %v345_v8  ;;  %v397_v17 = vor.u32 %v439_v15, %v396_v14  ;;  %v438_v20 = vld [vmem:[#allocation2 + $0xe4] sm:$0xf]  ;;  %v337_v21 = vor.u32 %v422_v18, %v334_v19  ;;  %v398_v22 = vld [vmem:[#allocation2 + $0xe8] sm:$0xf0]  ;;  %v324_v23 = vld [vmem:[#allocation2 + $0x50] sm:$0xf] }
   0xb   :  { %262 = vmatpush.bf16.msra.mxu3 %v409_v12  ;;  %v421_v24 = vld [vmem:[#allocation2 + $0x54] sm:$0xf0]  ;;  %v401_v25 = vor.u32 %v438_v20, %v398_v22  ;;  %v388_v26 = vld [vmem:[#allocation2 + $0xd0] sm:$0xf]  ;;  %v420_v28 = vld [vmem:[#allocation2 + $0x54] sm:$0xf] }
   0xc   :  { %v437_v27 = vld [vmem:[#allocation2 + $0xd4] sm:$0xf0]  ;;  %224 = vmatpush.bf16.msra.mxu0 %v333_v16  ;;  %v325_v29 = vor.u32 %v421_v24, %v324_v23  ;;  %v326_v30 = vld [vmem:[#allocation2 + $0x58] sm:$0xf0]  ;;  %v436_v31 = vld [vmem:[#allocation2 + $0xd4] sm:$0xf] }
   0xd   :  { %v390_v32 = vld [vmem:[#allocation2 + $0xd8] sm:$0xf0]  ;;  %237 = vmatpush.bf16.msra.mxu1 %v397_v17  ;;  %v389_v33 = vor.u32 %v437_v27, %v388_v26  ;;  %v329_v34 = vor.u32 %v420_v28, %v326_v30  ;;  %v316_v35 = vld [vmem:[#allocation2 + $0x40] sm:$0xf]  ;;  %v419_v36 = vld [vmem:[#allocation2 + $0x44] sm:$0xf0] }
   0xe   :  { %250 = vmatpush.bf16.msra.mxu2 %v337_v21  ;;  %v380_v37 = vld [vmem:[#allocation2 + $0xc0] sm:$0xf]  ;;  %v393_v38 = vor.u32 %v436_v31, %v390_v32  ;;  %v435_v39 = vld [vmem:[#allocation2 + $0xc4] sm:$0xf0]  ;;  %v418_v40 = vld [vmem:[#allocation2 + $0x44] sm:$0xf]  ;;  %v317_v44 = vor.u32 %v419_v36, %v316_v35 }
   0xf   :  { %263 = vmatpush.bf16.msra.mxu3 %v401_v25  ;;  %v318_v41 = vld [vmem:[#allocation2 + $0x48] sm:$0xf0]  ;;  %v434_v42 = vld [vmem:[#allocation2 + $0xc4] sm:$0xf]  ;;  %v381_v45 = vor.u32 %v435_v39, %v380_v37  ;;  %v308_v47 = vld [vmem:[#allocation2 + $0x30] sm:$0xf] }
  0x10   :  { %v382_v43 = vld [vmem:[#allocation2 + $0xc8] sm:$0xf0]  ;;  %225 = vmatpush.bf16.msra.mxu0 %v325_v29  ;;  %v321_v46 = vor.u32 %v418_v40, %v318_v41  ;;  %v417_v48 = vld [vmem:[#allocation2 + $0x34] sm:$0xf0]  ;;  %v372_v49 = vld [vmem:[#allocation2 + $0xb0] sm:$0xf] }
  0x11   :  { %238 = vmatpush.bf16.msra.mxu1 %v389_v33  ;;  %v385_v50 = vor.u32 %v434_v42, %v382_v43  ;;  %v433_v51 = vld [vmem:[#allocation2 + $0xb4] sm:$0xf0]  ;;  %v416_v52 = vld [vmem:[#allocation2 + $0x34] sm:$0xf]  ;;  %v310_v53 = vld [vmem:[#allocation2 + $0x38] sm:$0xf0]  ;;  %v309_v56 = vor.u32 %v417_v48, %v308_v47 }
  0x12   :  { %251 = vmatpush.bf16.msra.mxu2 %v329_v34  ;;  %v432_v54 = vld [vmem:[#allocation2 + $0xb4] sm:$0xf]  ;;  %v374_v55 = vld [vmem:[#allocation2 + $0xb8] sm:$0xf0]  ;;  %v373_v57 = vor.u32 %v433_v51, %v372_v49  ;;  %v313_v58 = vor.u32 %v416_v52, %v310_v53  ;;  %v300_v59 = vld [vmem:[#allocation2 + $0x20] sm:$0xf] }
  0x13   :  { %264 = vmatpush.bf16.msra.mxu3 %v393_v38  ;;  %v415_v60 = vld [vmem:[#allocation2 + $0x24] sm:$0xf0]  ;;  %v364_v61 = vld [vmem:[#allocation2 + $0xa0] sm:$0xf]  ;;  %v377_v62 = vor.u32 %v432_v54, %v374_v55  ;;  %v414_v0 = vld [vmem:[#allocation2 + $0x24] sm:$0xf] }
  0x14   :  { %226 = vmatpush.bf16.msra.mxu0 %v317_v44  ;;  %v431_v63 = vld [vmem:[#allocation2 + $0xa4] sm:$0xf0]  ;;  %v302_v1 = vld [vmem:[#allocation2 + $0x28] sm:$0xf0]  ;;  %v430_v2 = vld [vmem:[#allocation2 + $0xa4] sm:$0xf]  ;;  %v301_v4 = vor.u32 %v415_v60, %v300_v59 }
  0x15   :  { %239 = vmatpush.bf16.msra.mxu1 %v381_v45  ;;  %v366_v3 = vld [vmem:[#allocation2 + $0xa8] sm:$0xf0]  ;;  %v365_v5 = vor.u32 %v431_v63, %v364_v61  ;;  %v305_v6 = vor.u32 %v414_v0, %v302_v1  ;;  %v292_v7 = vld [vmem:[#allocation2 + $0x10] sm:$0xf]  ;;  %v413_v8 = vld [vmem:[#allocation2 + $0x14] sm:$0xf0] }
  0x16   :  { %252 = vmatpush.bf16.msra.mxu2 %v321_v46  ;;  %v356_v9 = vld [vmem:[#allocation2 + $0x90] sm:$0xf]  ;;  %v369_v10 = vor.u32 %v430_v2, %v366_v3  ;;  %v429_v11 = vld [vmem:[#allocation2 + $0x94] sm:$0xf0]  ;;  %v412_v12 = vld [vmem:[#allocation2 + $0x14] sm:$0xf]  ;;  %v293_v16 = vor.u32 %v413_v8, %v292_v7 }
  0x17   :  { %265 = vmatpush.bf16.msra.mxu3 %v385_v50  ;;  %v294_v13 = vld [vmem:[#allocation2 + $0x18] sm:$0xf0]  ;;  %v428_v14 = vld [vmem:[#allocation2 + $0x94] sm:$0xf]  ;;  %v357_v17 = vor.u32 %v429_v11, %v356_v9  ;;  %v284_v19 = vld [vmem:[#allocation2] sm:$0xf] }
  0x18   :  { %227 = vmatpush.bf16.msra.mxu0 %v309_v56  ;;  %v358_v15 = vld [vmem:[#allocation2 + $0x98] sm:$0xf0]  ;;  %v297_v18 = vor.u32 %v412_v12, %v294_v13  ;;  %v411_v20 = vld [vmem:[#allocation2 + $0x4] sm:$0xf0]  ;;  %v348_v21 = vld [vmem:[#allocation2 + $0x80] sm:$0xf] }
  0x19   :  { %240 = vmatpush.bf16.msra.mxu1 %v373_v57  ;;  %v361_v22 = vor.u32 %v428_v14, %v358_v15  ;;  %v427_v23 = vld [vmem:[#allocation2 + $0x84] sm:$0xf0]  ;;  %v410_v24 = vld [vmem:[#allocation2 + $0x4] sm:$0xf]  ;;  %v286_v25 = vld [vmem:[#allocation2 + $0x8] sm:$0xf0]  ;;  %v285_v28 = vor.u32 %v411_v20, %v284_v19 }
  0x1a   :  { %253 = vmatpush.bf16.msra.mxu2 %v313_v58  ;;  %v426_v26 = vld [vmem:[#allocation2 + $0x84] sm:$0xf]  ;;  %v350_v27 = vld [vmem:[#allocation2 + $0x88] sm:$0xf0]  ;;  %v349_v30 = vor.u32 %v427_v23, %v348_v21  ;;  %v289_v31 = vor.u32 %v410_v24, %v286_v25 }
  0x1b   :  { %266 = vmatpush.bf16.msra.mxu3 %v377_v62  ;;  %v27_v29 = vld [vmem:[%s504_s0] sm:$0xff]  ;;  %v28_v32 = vld [vmem:[%s504_s0 + $0x8] sm:$0xff]  ;;  %v353_v33 = vor.u32 %v426_v26, %v350_v27 }
  0x1c   :  { %228 = vmatpush.bf16.msra.mxu0 %v301_v4  ;;  %v29_v34 = vpack.c.bf16 %v27_v29, %v27_v29  ;;  %v30_v35 = vpack.c.bf16 %v28_v32, %v28_v32 }
  0x1d   :  { %241 = vmatpush.bf16.msra.mxu1 %v365_v5 }
  0x1e   :  { %254 = vmatpush.bf16.msra.mxu2 %v305_v6 }
  0x1f   :  { %267 = vmatpush.bf16.msra.mxu3 %v369_v10 }
  0x20   :  { %229 = vmatpush.bf16.msra.mxu0 %v293_v16 }
  0x21   :  { %242 = vmatpush.bf16.msra.mxu1 %v357_v17 }
  0x22   :  { %255 = vmatpush.bf16.msra.mxu2 %v297_v18 }
  0x23   :  { %268 = vmatpush.bf16.msra.mxu3 %v361_v22 }
  0x24   :  { %230 = vmatpush.bf16.msra.mxu0 %v285_v28 }
  0x25   :  { %243 = vmatpush.bf16.msra.mxu1 %v349_v30 }
  0x26   :  { %256 = vmatpush.bf16.msra.mxu2 %v289_v31 }
  0x27   :  { %269 = vmatpush.bf16.msra.mxu3 %v353_v33  ;;  %231 = vmatmul.bf16.vlgmr.msra.gmra.mxu0 %v29_v34 }
  0x28   :  { %244 = vmatmul.bf16.vlgmr.msra.gmra.mxu1 %v30_v35 }
  0x29   :  { %257 = vmatmul.bf16.vlgmr.msra.gmra.mxu2 %v29_v34 }
  0x2a   :  { %270 = vmatmul.bf16.vlgmr.msra.gmra.mxu3 %v30_v35 }
  0xa4   :  { %v232_v36 = vpop.f32.mrf.mxu0 }
  0xa5   :  { %v245_v37 = vpop.f32.mrf.mxu1 }
  0xa6   :  { %v246_v38 = vadd.f32 %v245_v37, %v232_v36 }
  0xa8   :  { %275 = vst [vmem:[%s506_s2] sm:$0xff] %v246_v38 }
  0xac   :  { %v258_v39 = vpop.f32.mrf.mxu2  ;;  %v234_v41 = vpop.f32.mrf.mxu0 }
  0xad   :  { %v271_v40 = vpop.f32.mrf.mxu3  ;;  %v247_v43 = vpop.f32.mrf.mxu1 }
  0xae   :  { %v272_v42 = vadd.f32 %v271_v40, %v258_v39 }
  0xb0   :  { %276 = vst [vmem:[%s506_s2 + $0x8] sm:$0xff] %v272_v42 }
  0xb4   :  { %v260_v44 = vpop.f32.mrf.mxu2 }
  0xb5   :  { %v273_v45 = vpop.f32.mrf.mxu3 }
  0xb6   :  { %281 = vsyncpa [#allocation3], 1 }

// kernel: prompt_encoder_forward.3
= control target key start
LH: loop header
LB: loop body
LE: loop exit
PB: predicated region body
PF: predicated region fallthrough
CT: control target
= control target key end

     0   :  { %s4102_s0 = inlined_call_operand.vmem [shape: f32[16,128], index: 0, kind: input, shape index: {}]   ;;  %s4103_s1 = inlined_call_operand.vmem [shape: f32[16,16], index: 1, kind: input, shape index: {}]   ;;  %s4104_s2 = inlined_call_operand.vmem [shape: f32[2,1,128], index: 2, kind: input, shape index: {}]   ;;  %s4105_s3 = inlined_call_operand.vmem [shape: f32[2,1,128], index: 3, kind: input, shape index: {}]   ;;  %s4106_s4 = inlined_call_operand.hbm [shape: bf16[2,128,384], index: 4, kind: input, shape index: {}]   ;;  %s4107_s5 = inlined_call_operand.vmem [shape: f32[2,1,384], index: 5, kind: input, shape index: {}]   ;;  %s4108_s6 = inlined_call_operand.vmem [shape: bf16[2,128,128], index: 6, kind: input, shape index: {}]   ;;  %s4109_s7 = inlined_call_operand.vmem [shape: f32[2,1,128], index: 7, kind: input, shape index: {}]   ;;  %s4110_s8 = inlined_call_operand.vmem [shape: f32[2,1,128], index: 8, kind: input, shape index: {}]   ;;  %s4111_s9 = inlined_call_operand.vmem [shape: f32[2,1,128], index: 9, kind: input, shape index: {}]   ;;  %s4112_s10 = inlined_call_operand.vmem [shape: bf16[2,128,512], index: 10, kind: input, shape index: {}]   ;;  %s4113_s11 = inlined_call_operand.vmem [shape: f32[2,1,512], index: 11, kind: input, shape index: {}]   ;;  %s4114_s12 = inlined_call_operand.hbm [shape: bf16[2,512,128], index: 12, kind: input, shape index: {}]   ;;  %s4115_s13 = inlined_call_operand.vmem [shape: f32[2,1,128], index: 13, kind: input, shape index: {}]   ;;  %s4116_s14 = inlined_call_operand.vmem [shape: f32[1,128], index: 14, kind: input, shape index: {}]   ;;  %s4117_s15 = inlined_call_operand.vmem [shape: f32[1,128], index: 15, kind: input, shape index: {}]   ;;  %s4118_s16 = inlined_call_operand.vmem [shape: f32[16,128], index: 16, kind: output, shape index: {0}]   ;;  %s4119_s17 = inlined_call_operand.hbm [shape: f32[16,128], index: 17, kind: output, shape index: {1}]  }
   0x1   :  { %4126 = sst [smem:[#allocation15_spill]] %s4102_s0 }
   0x2   :  { %4127 = sst [smem:[#allocation16_spill]] %s4103_s1 }
   0x3   :  { %4128 = sst [smem:[#allocation17_spill]] %s4106_s4 }
   0x4   :  { %4129 = sst [smem:[#allocation18_spill]] %s4108_s6 }
   0x5   :  { %4130 = sst [smem:[#allocation19_spill]] %s4114_s12 }
   0x6   :  { %4131 = sst [smem:[#allocation20_spill]] %s4115_s13 }
   0x7   :  { %4132 = sst [smem:[#allocation21_spill]] %s4116_s14 }
   0x8   :  { %4133 = sst [smem:[#allocation22_spill]] %s4117_s15 }
   0x9   :  { %4134 = sst [smem:[#allocation23_spill]] %s4118_s16 }
   0xa   :  { %4135 = sst [smem:[#allocation24_spill]] %s4119_s17 }
   0xb   :  { %23 = vsyncpa [#allocation4], 0 }
   0xc   :  { %25 = vsyncpa [#allocation4 + $0x1], 0 }
   0xd   :  { %26 = vsyncpa [#allocation7], 0 }
   0xe   :  { %28 = vsyncpa [#allocation7 + $0x1], 0 }
   0xf   :  { %29 = vsyncpa [#allocation5], 0  ;;  %s3417_s24 = smov 0   ;;  %s3419_s25 = smov 0  }
  0x10   :  { %s3421_s26 = smov 0   ;;  %s3423_s27 = smov 0  }
  0x11 LB: > { %4136 = sst [smem:[#allocation12_spill]] %s3310_s26  ;;  %s3436_s28 = sadd.s32 4294967295, %s3314_s27   ;;  %s3314_s27 = sphi %s3423_s27, %s4171_s27   ;;  %s3310_s26 = sphi %s3421_s26, %s4173_s26   ;;  %s3306_s25 = sphi %s3419_s25, %s4175_s25   ;;  %s3302_s24 = sphi %s3417_s24, %s4174_s24  }
  0x12   : > { %s3439_s29 = sadd.s32 1, %s3314_s27   ;;  %s136_s30 = sadd.s32 1, %s3310_s26 }
  0x13   : > { %4137 = sst [smem:[#allocation13_spill]] %s3439_s29  ;;  %s133_s0 = ssub.s32 %s3314_s27, %s3439_s29 }
  0x14   : > { %p134_p0 = scmp.eq.s32.totalorder %s133_s0, 0  ;;  %p143_p1 = scmp.ne.s32.totalorder %s3310_s26, %s3306_s25 }
  0x15   : > { %p144_p2 = scmp.eq.s32.totalorder %s3314_s27, 0  ;;  %p149_p3 = scmp.ne.s32.totalorder %s3306_s25, %s3302_s24 }
  0x16   : > { %s3449_s18 = scalar_select %p134_p0, %s3310_s26, %s136_s30  }
  0x17   : > { %p145_p4 = por %p144_p2, %p143_p1  ;;  %p150_p5 = scmp.eq.s32.totalorder %s3436_s28, 0 }
  0x18   : > { %4138 = sst [smem:[#allocation14_spill]] %s3449_s18  ;;  %p3037_p6 = scmp.lt.s32.totalorder %s3314_s27, 2 }
  0x19   : > { %p3453_p7 = por %p150_p5, %p149_p3  ;;  %s3458_s1 = sand.u32 1, %s3310_s26  }
  0x1a   : > { %s3018_s20 = smul.u32 192, %s3458_s1  ;;  %p3462_p8 = pnand %p3037_p6, %p145_p4 }
  0x1b   : > { %s3019_s21 = smul.u32 192, %s3314_s27  ;;  %s4141_s4 = sld [smem:[#allocation17_spill]] }
  0x1c   : > { %s519_s30 = scalar_lea.vmem [#allocation3], %s3018_s20  ;;  %p2505_p9 = scmp.ge.s32.totalorder %s3314_s27, 1 }
  0x1d   : > { %s527_s18 = sshll.u32 %s519_s30, 4  ;;  %s516_s26 = scalar_lea.sflag [#allocation4], %s3458_s1  ;;  %s528_s18 = int_to_ptr.vmem [resolvable:$true] %s527_s18 }
  0x1e   : > { %p3188_p11 = pneg %p3462_p8 }
  0x21   : > { %s524_s0 = scalar_lea.hbm %s4141_s4, %s3019_s21  ;;  %s3191_s20 = scalar_lea.hbm %s4141_s4, 384 }
  0x22   : > { %s525_s29 = sshll.u32 %s524_s0, 4  ;;  %s526_s29 = int_to_ptr.hbm [resolvable:$true] %s525_s29 }
  0x23   : > { %s3184_s17 = sshra.s32 %s526_s29, 4  ;;  %s3185_s17 = int_to_ptr.hbm [resolvable:$true] %s3184_s17 }
  0x24   : > { %s3186_s15 = scalar_lea.hbm %s3185_s17, 192  ;;  %p3192_p0 = scmp.lt.s32.totalorder %s3185_s17, %s4141_s4 }
  0x25   : > { %p3187_p10 = scmp.ne.s32.totalorder %s3185_s17, %s3186_s15  ;;  %p3193_p1 = scmp.lt.s32.totalorder %s3191_s20, %s3186_s15 }
  0x27   : > { %p3189_p12 = pnand %p3188_p11, %p3187_p10  ;;  %p3194_p2 = por %p3193_p1, %p3192_p0 }
  0x29   : > { %p3190_p13 = pneg %p3189_p12 }
  0x2b   : > { %p3195_p3 = pnand %p3194_p2, %p3190_p13 }
  0x2d   : > { %3198 = shalt.err (!%p3195_p3)
}
  0x2e   : > { %s3316_s30 = smov 192   ;;  %s3317_s14 = smov 12  }
  0x2f   : > { %3033 = dma.hbm_to_vmem [thread:$0]  (!%p3462_p8), %s526_s29, 3072, %s528_s18, %s516_s26, %s3316_s30, %s3316_s30, %s3317_s14  }
  0x30   : > { %p611_p4 = scmp.lt.s32.totalorder %s3314_s27, 3  ;;  %s2502_s23 = sshll.u32 %s3458_s1, 8 }
  0x31   : > { %s2919_s24 = sshll.u32 %s3314_s27, 8  ;;  %s4143_s12 = sld [smem:[#allocation19_spill]] }
  0x32   : > { %p3489_p5 = pnand %p2505_p9, %p611_p4  ;;  %s589_s0 = scalar_lea.vmem [#allocation6], %s2502_s23 }
  0x33   : > { %s597_s4 = sshll.u32 %s589_s0, 4  ;;  %s586_s13 = scalar_lea.sflag [#allocation7], %s3458_s1  ;;  %s598_s4 = int_to_ptr.vmem [resolvable:$true] %s597_s4 }
  0x37   : > { %s594_s21 = scalar_lea.hbm %s4143_s12, %s2919_s24  ;;  %s3221_s18 = scalar_lea.hbm %s4143_s12, 512 }
  0x38   : > { %s595_s16 = sshll.u32 %s594_s21, 4  ;;  %s596_s16 = int_to_ptr.hbm [resolvable:$true] %s595_s16 }
  0x39   : > { %s3214_s14 = sshra.s32 %s596_s16, 4  ;;  %s3215_s14 = int_to_ptr.hbm [resolvable:$true] %s3214_s14 }
  0x3a   : > { %s3216_s26 = scalar_lea.hbm %s3215_s14, 256  ;;  %p3222_p12 = scmp.lt.s32.totalorder %s3215_s14, %s4143_s12 }
  0x3b   : > { %p3217_p6 = scmp.ne.s32.totalorder %s3215_s14, %s3216_s26  ;;  %p3223_p13 = scmp.lt.s32.totalorder %s3221_s18, %s3216_s26 }
  0x3d   : > { %p3219_p9 = pnand %p3217_p6, %p3188_p11  ;;  %p3224_p0 = por %p3223_p13, %p3222_p12 }
  0x3f   : > { %p3220_p10 = pneg %p3219_p9 }
  0x41   : > { %p3225_p1 = pnand %p3224_p0, %p3220_p10 }
  0x43   : > { %3228 = shalt.err (!%p3225_p1)
}
  0x44   : > { %s3318_s1 = smov 64   ;;  %s3319_s23 = smov 4  }
  0x45   : > { %3036 = dma.hbm_to_vmem [thread:$0]  (!%p3462_p8), %s596_s16, 4096, %s598_s4, %s586_s13, %s3318_s1, %s3318_s1, %s3319_s23  }
  0x46   : > { %615 = sbr.rel (%p3489_p5) target bundleno = 2659 (0xa63), region = 84  ;;  %s617_s17 = sand.u32 (!%p3489_p5), 1, %s3306_s25  }
  0x47   : > { %s3020_s20 = smul.u32 (!%p3489_p5), 192, %s617_s17  ;;  %s618_s21 = scalar_lea.sflag (!%p3489_p5), [#allocation4], %s617_s17 }
  0x49   : > { %s3511_s0 = scalar_lea.vmem (!%p3489_p5), [#allocation3], %s3020_s20 }
  0x4b   : > { %3289 = dma.done.wait (%p3453_p7), %s618_s21, 3072  }
  0x4c   : > { %3291 = vsyncadd (%p3453_p7), %s618_s21, 4294964224  ;;  %s2506_s14 = sshll.u32 %s617_s17, 8  ;;  %s628_s26 = scalar_lea.sflag [#allocation7], %s617_s17 }
  0x4d   : > { %s3517_s22 = scalar_lea.vmem [#allocation6], %s2506_s14 }
  0x4e   : > { %3293 = dma.done.wait (%p3453_p7), %s628_s26, 4096  }
  0x4f   : > { %3295 = vsyncadd (%p3453_p7), %s628_s26, 4294963200  ;;  %p719_p8 = scmp.lt.s32.totalorder %s3436_s28, 1  ;;  %s4144_s6 = sld [smem:[#allocation18_spill]] }
  0x50   : > { %s4145_s19 = sld [smem:[#allocation20_spill]]  ;;  %p2512_p7 = scmp.ne.s32.totalorder %s3436_s28, 0 }
  0x51   : > { %s3525_s4 = scalar_select %p719_p8, %s3436_s28, 1 }
  0x53   : > { %s3021_s18 = smul.u32 3, %s3525_s4  ;;  %s2920_s30 = sshll.u32 %s3525_s4, 6 }
  0x54   : > { %s739_s15 = scalar_lea.vmem %s4110_s8, %s3525_s4  ;;  %s742_s12 = scalar_lea.vmem %s4111_s9, %s3525_s4 }
  0x55   : > { %s3540_s23 = scalar_lea.vmem %s4144_s6, %s2920_s30  ;;  %s3549_s13 = scalar_lea.vmem %s4107_s5, %s3021_s18 }
  0x56   : > { %s2921_s24 = sshll.u32 %s3525_s4, 8  ;;  %s2511_s17 = sshll.u32 %s3525_s4, 2 }
  0x57   : > { %s3563_s6 = scalar_lea.vmem %s4112_s10, %s2921_s24  ;;  %s3569_s18 = scalar_lea.vmem %s4113_s11, %s2511_s17 }
  0x58   : > { %s754_s16 = scalar_lea.vmem %s4145_s19, %s3525_s4  ;;  %759 = sbr.rel (%p2512_p7) target bundleno = 98 (0x62), region = 96 }
  0x59   : > { %s4146_s30 = sld [smem:[#allocation15_spill]] (!%p2512_p7) }
  0x5f   : > { %v760_v0 = vld [vmem:[%s4146_s30] sm:$0xff]  ;;  %v761_v1 = vld [vmem:[%s4146_s30 + $0x8] sm:$0xff] }
  0x60   : > { %762 = vst [vmem:[#allocation2] sm:$0xff] %v760_v0 }
  0x61   : > { %763 = vst [vmem:[#allocation2 + $0x8] sm:$0xff] %v761_v1 }
  0x62 PF: > { %v3320_v4 = vmov 128.0   ;;  %v2599_v19 = vld [vmem:[%s3511_s0 + $0xa8] sm:$0xf]  ;;  %v2944_v20 = vld [vmem:[%s3511_s0 + $0xb0] sm:$0xf0]  ;;  %s4147_s17 = scalar_lea.vmem %s4104_s2, %s3525_s4  ;;  %s4148_s26 = scalar_lea.vmem %s4105_s3, %s3525_s4  ;;  %vm1041_vm7 = vcmask 261120  }
  0x63   : > { %3104 = vrcp.f32 %v3320_v4  ;;  %v2943_v21 = vld [vmem:[%s3511_s0 + $0xac] sm:$0xf]  ;;  %v2600_v22 = vor.u32 %v2944_v20, %v2599_v19  ;;  %v2601_v23 = vld [vmem:[%s3511_s0 + $0xb4] sm:$0xf0]  ;;  %v2607_v24 = vld [vmem:[%s3511_s0 + $0xb0] sm:$0xf]  ;;  %s4151_s14 = scalar_lea.vmem %s4109_s7, %s3525_s4 }
  0x64   : > { %v2945_v25 = vld [vmem:[%s3511_s0 + $0xb8] sm:$0xf0]  ;;  %v2604_v26 = vor.u32 %v2943_v21, %v2601_v23  ;;  %v2587_v28 = vld [vmem:[%s3511_s0 + $0x90] sm:$0xf]  ;;  %v2940_v30 = vld [vmem:[%s3511_s0 + $0x94] sm:$0xf] }
  0x65   : > { %v2608_v27 = vor.u32 %v2945_v25, %v2607_v24  ;;  %994 = vmatpush.bf16.msra.mxu0 %v2600_v22  ;;  %v2941_v29 = vld [vmem:[%s3511_s0 + $0x98] sm:$0xf0]  ;;  %v2589_v32 = vld [vmem:[%s3511_s0 + $0x9c] sm:$0xf0]  ;;  %v2595_v33 = vld [vmem:[%s3511_s0 + $0x98] sm:$0xf] }
  0x66   : > { %1008 = vmatpush.bf16.msra.mxu1 %v2604_v26  ;;  %v2588_v31 = vor.u32 %v2941_v29, %v2587_v28  ;;  %v2942_v34 = vld [vmem:[%s3511_s0 + $0xa0] sm:$0xf0]  ;;  %v2592_v35 = vor.u32 %v2940_v30, %v2589_v32  ;;  %v2575_v37 = vld [vmem:[%s3511_s0 + $0x78] sm:$0xf]  ;;  %v2937_v39 = vld [vmem:[%s3511_s0 + $0x7c] sm:$0xf] }
  0x67   : > { %v3584_v2 = vld [vmem:[#allocation2] sm:$0xff]  ;;  %1022 = vmatpush.bf16.msra.mxu2 %v2608_v27  ;;  %v2596_v36 = vor.u32 %v2942_v34, %v2595_v33  ;;  %v2938_v38 = vld [vmem:[%s3511_s0 + $0x80] sm:$0xf0]  ;;  %v2577_v41 = vld [vmem:[%s3511_s0 + $0x84] sm:$0xf0]  ;;  %s3321_s19 = smov 96  }
  0x68   : > { %766 = vadd.xlane.f32.xlu0 %v3584_v2  ;;  %v3587_v3 = vld [vmem:[#allocation2 + $0x8] sm:$0xff]  ;;  %v2576_v40 = vor.u32 %v2938_v38, %v2575_v37  ;;  %v2583_v42 = vld [vmem:[%s3511_s0 + $0x80] sm:$0xf]  ;;  %v2939_v43 = vld [vmem:[%s3511_s0 + $0x88] sm:$0xf0]  ;;  %v2580_v44 = vor.u32 %v2937_v39, %v2577_v41  ;;  %s4149_s27 = sld [smem:[#allocation16_spill]] }
  0x69   : > { %v3105_v5 = vpop.eup %3104  ;;  %995 = vmatpush.bf16.msra.mxu0 %v2588_v31  ;;  %v2584_v45 = vor.u32 %v2939_v43, %v2583_v42  ;;  %v2563_v46 = vld [vmem:[%s3511_s0 + $0x60] sm:$0xf]  ;;  %v2935_v47 = vld [vmem:[%s3511_s0 + $0x68] sm:$0xf0]  ;;  %v2934_v48 = vld [vmem:[%s3511_s0 + $0x64] sm:$0xf] }
  0x6a   : > { %v771_v6 = vmul.f32 128.0, %v3105_v5  ;;  %vm775_vm0 = vweird.f32 %v3105_v5  ;;  %1009 = vmatpush.bf16.msra.mxu1 %v2592_v35  ;;  %v2564_v49 = vor.u32 %v2935_v47, %v2563_v46  ;;  %v2565_v50 = vld [vmem:[%s3511_s0 + $0x6c] sm:$0xf0]  ;;  %v2571_v51 = vld [vmem:[%s3511_s0 + $0x68] sm:$0xf]  ;;  %vm1066_vm8 = vcmask 130048  }
  0x6b   : > { %1023 = vmatpush.bf16.msra.mxu2 %v2596_v36  ;;  %v2936_v52 = vld [vmem:[%s3511_s0 + $0x70] sm:$0xf0]  ;;  %v2568_v53 = vor.u32 %v2934_v48, %v2565_v50  ;;  %v2551_v55 = vld [vmem:[%s3511_s0 + $0x48] sm:$0xf]  ;;  %v2931_v57 = vld [vmem:[%s3511_s0 + $0x4c] sm:$0xf] }
  0x6c   : > { %v772_v7 = vsub.f32 1.0, %v771_v6  ;;  %v2572_v54 = vor.u32 %v2936_v52, %v2571_v51  ;;  %v2932_v56 = vld [vmem:[%s3511_s0 + $0x50] sm:$0xf0]  ;;  %v2553_v59 = vld [vmem:[%s3511_s0 + $0x54] sm:$0xf0]  ;;  %s3322_s21 = smov 32  }
  0x6d   : > { %996 = vmatpush.bf16.msra.mxu0 %v2576_v40  ;;  %v2552_v58 = vor.u32 %v2932_v56, %v2551_v55  ;;  %v2559_v60 = vld [vmem:[%s3511_s0 + $0x50] sm:$0xf]  ;;  %v2933_v61 = vld [vmem:[%s3511_s0 + $0x58] sm:$0xf0]  ;;  %v2556_v62 = vor.u32 %v2931_v57, %v2553_v59  ;;  %v2928_v4 = vld [vmem:[%s3511_s0 + $0x34] sm:$0xf] }
  0x6e   : > { %v773_v8 = vmul.f32 %v3105_v5, %v772_v7  ;;  %1010 = vmatpush.bf16.msra.mxu1 %v2580_v44  ;;  %v2560_v63 = vor.u32 %v2933_v61, %v2559_v60  ;;  %v2539_v0 = vld [vmem:[%s3511_s0 + $0x30] sm:$0xf]  ;;  %v2929_v1 = vld [vmem:[%s3511_s0 + $0x38] sm:$0xf0]  ;;  %v2541_v6 = vld [vmem:[%s3511_s0 + $0x3c] sm:$0xf0]  ;;  %s4150_s1 = smov %s4149_s27 }
  0x6f   : > { %1024 = vmatpush.bf16.msra.mxu2 %v2584_v45  ;;  %v2547_v7 = vld [vmem:[%s3511_s0 + $0x38] sm:$0xf]  ;;  %v2535_v19 = vld [vmem:[%s3511_s0 + $0x20] sm:$0xf]  ;;  %v2927_v20 = vld [vmem:[%s3511_s0 + $0x28] sm:$0xf0] }
  0x70   : > { %768 = vadd.xlane.f32.xlu0 %v3587_v3  ;;  %v774_v9 = vadd.f32 %v3105_v5, %v773_v8  ;;  %v2930_v8 = vld [vmem:[%s3511_s0 + $0x40] sm:$0xf0]  ;;  %v2536_v22 = vor.u32 %v2927_v20, %v2535_v19  ;;  %v2515_v23 = vld [vmem:[%s3511_s0] sm:$0xf]  ;;  %v2923_v24 = vld [vmem:[%s3511_s0 + $0x8] sm:$0xf0] }
  0x71   : > { %997 = vmatpush.bf16.msra.mxu0 %v2564_v49  ;;  %v2922_v25 = vld [vmem:[%s3511_s0 + $0x4] sm:$0xf]  ;;  %v2516_v27 = vor.u32 %v2923_v24, %v2515_v23  ;;  %v2517_v28 = vld [vmem:[%s3511_s0 + $0xc] sm:$0xf0]  ;;  %v2523_v29 = vld [vmem:[%s3511_s0 + $0x8] sm:$0xf] }
  0x72   : > { %v3590_v10 = vsel %vm775_vm0, %v3105_v5, %v774_v9  ;;  %1011 = vmatpush.bf16.msra.mxu1 %v2568_v53  ;;  %v2540_v5 = vor.u32 %v2929_v1, %v2539_v0  ;;  %v2544_v9 = vor.u32 %v2928_v4, %v2541_v6  ;;  %v2924_v30 = vld [vmem:[%s3511_s0 + $0x10] sm:$0xf0]  ;;  %v2520_v32 = vor.u32 %v2922_v25, %v2517_v28  ;;  %v3098_v51 = vld [vmem:[%s4147_s17] ss:$0 sm:$0xff]  ;;  %s3323_s17 = smov 64  }
  0x73   : > { %1025 = vmatpush.bf16.msra.mxu2 %v2572_v54  ;;  %v2524_v33 = vor.u32 %v2924_v30, %v2523_v29  ;;  %v3099_v56 = vld [vmem:[%s4148_s26] ss:$0 sm:$0xff]  ;;  %vm1349_vm9 = vcmask 523264   ;;  %vm1352_vm10 = vcmask 785408  }
  0x75   : > { %998 = vmatpush.bf16.msra.mxu0 %v2552_v58 }
  0x76   : > { %1012 = vmatpush.bf16.msra.mxu1 %v2556_v62  ;;  %v858_v62 = vld [vmem:[%s3549_s13] sm:$0x7] }
  0x77   : > { %1026 = vmatpush.bf16.msra.mxu2 %v2560_v63  ;;  %v860_v63 = vperm.slane %v858_v62, 0  ;;  %v861_v0 = vperm.slane %v858_v62, 1 }
  0x79   : > { %999 = vmatpush.bf16.msra.mxu0 %v2540_v5 }
  0x7a   : > { %1013 = vmatpush.bf16.msra.mxu1 %v2544_v9 }
  0xdb   : > { %v767_v11 = vpop.xlane.xlu0 %766 }
  0xdc   : > { %v777_v12 = vmul.f32 %v3590_v10, %v767_v11  ;;  %v2548_v11 = vor.u32 %v2930_v8, %v2547_v7 }
  0xde   : > { %v3594_v13 = vsub.f32 %v3584_v2, %v777_v12  ;;  %1027 = vmatpush.bf16.msra.mxu2 %v2548_v11  ;;  %v2527_v12 = vld [vmem:[%s3511_s0 + $0x18] sm:$0xf] }
  0xe0   : > { %v781_v14 = vmul.f32 %v3594_v13, %v3594_v13 }
  0xe2   : > { %783 = vadd.xlane.f32.xlu1 %v781_v14  ;;  %v2926_v14 = vld [vmem:[%s3511_s0 + $0x20] sm:$0xf0]  ;;  %1028 = vmatpush.bf16.msra.mxu2 %v2536_v22 }
  0xe3   : > { %v769_v15 = vpop.xlane.xlu0 %768 }
  0xe4   : > { %v778_v16 = vmul.f32 %v3590_v10, %v769_v15  ;;  %v2925_v15 = vld [vmem:[%s3511_s0 + $0x1c] sm:$0xf] }
  0xe6   : > { %v3600_v17 = vsub.f32 %v3587_v3, %v778_v16  ;;  %v2528_v16 = vor.u32 %v2926_v14, %v2527_v12  ;;  %1029 = vmatpush.bf16.msra.mxu2 %v2524_v33  ;;  %v862_v12 = vperm.slane %v858_v62, 2 }
  0xe8   : > { %v782_v18 = vmul.f32 %v3600_v17, %v3600_v17  ;;  %1000 = vmatpush.bf16.msra.mxu0 %v2528_v16 }
  0xea   : > { %785 = vadd.xlane.f32.xlu1 %v782_v18  ;;  %v2529_v18 = vld [vmem:[%s3511_s0 + $0x24] sm:$0xf0] }
  0xeb   : > { %v2532_v21 = vor.u32 %v2925_v15, %v2529_v18 }
  0xec   : > { %1001 = vmatpush.bf16.msra.mxu0 %v2516_v27 }
  0xed   : > { %1014 = vmatpush.bf16.msra.mxu1 %v2532_v21  ;;  %v3676_v21 = vld [vmem:[%s4149_s27] sm:$0xff] }
  0xf1   : > { %1015 = vmatpush.bf16.msra.mxu1 %v2520_v32 }
 0x155   : > { %v784_v26 = vpop.xlane.xlu1 %783 }
 0x156   : > { %v787_v31 = vmul.f32 %v784_v26, %v3590_v10  ;;  %v3683_v26 = vld [vmem:[%s4150_s1 + $0x8] sm:$0xff] }
 0x158   : > { %v789_v34 = vadd.f32 1e-05, %v787_v31 }
 0x15a   : > { %3106 = vrsqrt.f32 %v789_v34  ;;  %vm797_vm2 = vweird.f32 %v789_v34 }
 0x15d   : > { %v786_v35 = vpop.xlane.xlu1 %785 }
 0x15e   : > { %v788_v36 = vmul.f32 %v786_v35, %v3590_v10 }
 0x160   : > { %v3107_v37 = vpop.eup %3106  ;;  %v790_v38 = vadd.f32 1e-05, %v788_v36 }
 0x161   : > { %v792_v39 = vmul.f32 %v3107_v37, %v789_v34  ;;  %vm798_vm1 = vweird.f32 %v3107_v37 }
 0x162   : > { %3108 = vrsqrt.f32 %v790_v38  ;;  %vm799_vm3 = vmor %vm797_vm2, %vm798_vm1  ;;  %vm807_vm5 = vweird.f32 %v790_v38 }
 0x163   : > { %v793_v40 = vmul.f32 %v3107_v37, %v792_v39 }
 0x165   : > { %v794_v41 = vmul.f32 0.5, %v793_v40 }
 0x167   : > { %v795_v42 = vsub.f32 1.5, %v794_v41 }
 0x168   : > { %v3109_v43 = vpop.eup %3108 }
 0x169   : > { %v796_v44 = vmul.f32 %v3107_v37, %v795_v42  ;;  %v802_v45 = vmul.f32 %v3109_v43, %v790_v38  ;;  %vm808_vm4 = vweird.f32 %v3109_v43 }
 0x16a   : > { %vm809_vm6 = vmor %vm807_vm5, %vm808_vm4 }
 0x16b   : > { %v803_v46 = vmul.f32 %v3109_v43, %v802_v45  ;;  %v800_v47 = vsel %vm799_vm3, %v3107_v37, %v796_v44 }
 0x16c   : > { %v811_v50 = vmul.f32 %v800_v47, %v3594_v13 }
 0x16d   : > { %v804_v48 = vmul.f32 0.5, %v803_v46 }
 0x16e   : > { %v817_v55 = vmul.f32 %v3098_v51, %v811_v50 }
 0x16f   : > { %v805_v49 = vsub.f32 1.5, %v804_v48 }
 0x170   : > { %v823_v13 = vadd.f32 %v3099_v56, %v817_v55 }
 0x171   : > { %v806_v52 = vmul.f32 %v3109_v43, %v805_v49 }
 0x173   : > { %v810_v53 = vsel %vm809_vm6, %v3109_v43, %v806_v52 }
 0x174   : > { %v812_v54 = vmul.f32 %v810_v53, %v3600_v17 }
 0x176   : > { %v818_v57 = vmul.f32 %v3098_v51, %v812_v54 }
 0x178   : > { %v824_v58 = vadd.f32 %v3099_v56, %v818_v57 }
 0x17a   : > { %v825_v59 = vpack.c.bf16 %v824_v58, %v823_v13 }
 0x17c   : > { %1002 = vmatmul.bf16.vlgmr.msra.gmra.mxu0 %v825_v59  ;;  %1016 = vmatmul.bf16.vlgmr.msra.gmra.mxu1 %v825_v59 }
 0x17d   : > { %1030 = vmatmul.bf16.vlgmr.msra.gmra.mxu2 %v825_v59 }
 0x1f9   : > { %v1003_v60 = vpop.f32.mrf.mxu0  ;;  %v1017_v61 = vpop.f32.mrf.mxu1 }
 0x1fa   : > { %v1004_v5 = vadd.f32 %v1003_v60, %v860_v63  ;;  %v1018_v6 = vadd.f32 %v1017_v61, %v861_v0 }
 0x200   : > { %v1031_v1 = vpop.f32.mrf.mxu2 }
 0x201   : > { %v1005_v17 = vpop.f32.mrf.mxu0  ;;  %v1019_v4 = vpop.f32.mrf.mxu1  ;;  %v1032_v16 = vadd.f32 %v1031_v1, %v862_v12 }
 0x202   : > { %v1006_v7 = vadd.f32 %v1005_v17, %v860_v63  ;;  %v1020_v8 = vadd.f32 %v1019_v4, %v861_v0 }
 0x204   : > { %v1038_v9 = vpack.c.bf16 %v1006_v7, %v1004_v5  ;;  %v1039_v11 = vpack.c.bf16 %v1020_v8, %v1018_v6 }
 0x206   : > { %1108 = vrot.lane.b32.xlu0 %v1038_v9, %s3321_s19  ;;  %v1046_v14 = vsel %vm1041_vm7, %v1039_v11, 0 }
 0x207   : > { %1055 = vmatpush.bf16.xpose.msra.mxu3 %v1046_v14 }
 0x208   : > { %v1033_v15 = vpop.f32.mrf.mxu2 }
 0x209   : > { %v1034_v18 = vadd.f32 %v1033_v15, %v862_v12 }
 0x20b   : > { %v3669_v19 = vpack.c.bf16 %v1034_v18, %v1032_v16 }
 0x20e   : > { %2609 = vmatmul.msk.bf16.vlgmr.msra.gmra.mxu3 %vm1041_vm7, %v1038_v9 }
 0x20f   : > { %1100 = vmatpush.bf16.msrb.mxu3 %v3669_v19 }
 0x278   : > { %v1109_v42 = vpop.permute.xlu0 %1108 }
 0x291   : > { %v1057_v20 = vpop.f32.mrf.mxu3 }
 0x292   : > { %v1062_v22 = vmul.f32 0.17677669, %v1057_v20 }
 0x294   : > { %v1064_v23 = vadd.f32 %v1062_v22, %v3676_v21 }
 0x296   : > { %v1067_v24 = vsel %vm1066_vm8, %v1064_v23, -inf }
 0x297   : > { %1068 = vmax.xlane.f32.xlu2 %v1067_v24 }
 0x299   : > { %v1059_v25 = vpop.f32.mrf.mxu3 }
 0x29a   : > { %v1063_v27 = vmul.f32 0.17677669, %v1059_v25 }
 0x29c   : > { %v1065_v28 = vadd.f32 %v1063_v27, %v3683_v26 }
 0x29e   : > { %v1070_v29 = vsel %vm1066_vm8, %v1065_v28, -inf }
 0x29f   : > { %1071 = vmax.xlane.f32.xlu2 %v1070_v29 }
 0x2b7   : > { %1111 = vrot.lane.b32.xlu2 %v1039_v11, %s3321_s19 }
 0x2bf   : > { %1254 = vrot.lane.b32.xlu2 %v1039_v11, %s3322_s21 }
 0x2c7   : > { %1252 = vrot.lane.b32.xlu2 %v1038_v9, %s3322_s21 }
 0x30a   : > { %v1069_v30 = vpop.xlane.xlu2 %1068 }
 0x30b   : > { %v1073_v31 = vsub.f32 %v1064_v23, %v1069_v30 }
 0x30d   : > { %v1075_v32 = vmul.f32 1.442695, %v1073_v31 }
 0x30f   : > { %3110 = vpow2.f32 %v1075_v32 }
 0x312   : > { %v1072_v33 = vpop.xlane.xlu2 %1071 }
 0x313   : > { %v1074_v34 = vsub.f32 %v1065_v28, %v1072_v33 }
 0x315   : > { %v3111_v35 = vpop.eup %3110  ;;  %v1077_v36 = vmul.f32 1.442695, %v1074_v34 }
 0x316   : > { %v1079_v37 = vsel %vm1066_vm8, %v3111_v35, 0.0 }
 0x317   : > { %3112 = vpow2.f32 %v1077_v36  ;;  %1080 = vadd.xlane.f32.xlu0 %v1079_v37 }
 0x31a   : > { %v1112_v38 = vpop.permute.xlu2 %1111 }
 0x31b   : > { %v1117_v39 = vsel %vm1041_vm7, %v1112_v38, 0 }
 0x31c   : > { %1126 = vmatpush.bf16.xpose.msra.mxu3 %v1117_v39 }
 0x31d   : > { %v3113_v40 = vpop.eup %3112 }
 0x31e   : > { %v1082_v41 = vsel %vm1066_vm8, %v3113_v40, 0.0 }
 0x31f   : > { %1083 = vadd.xlane.f32.xlu1 %v1082_v41 }
 0x322   : > { %v1255_v49 = vpop.permute.xlu2 %1254 }
 0x323   : > { %v1260_v51 = vsel %vm1041_vm7, %v1255_v49, 0 }
 0x32a   : > { %v1253_v55 = vpop.permute.xlu2 %1252 }
 0x32b   : > { %1181 = vrot.lane.b32.xlu0 %v1038_v9, %s3323_s17 }
 0x338   : > { %1183 = vrot.lane.b32.xlu1 %v1039_v11, %s3323_s17 }
 0x38a   : > { %v1081_v43 = vpop.xlane.xlu0 %1080 }
 0x38b   : > { %3114 = vrcp.f32 %v1081_v43 }
 0x391   : > { %v3115_v45 = vpop.eup %3114 }
 0x392   : > { %v1084_v44 = vpop.xlane.xlu1 %1083  ;;  %v1087_v47 = vmul.f32 %v3115_v45, %v3111_v35 }
 0x393   : > { %3116 = vrcp.f32 %v1084_v44 }
 0x399   : > { %v3117_v46 = vpop.eup %3116 }
 0x39a   : > { %v1088_v48 = vmul.f32 %v3117_v46, %v3113_v40 }
 0x39c   : > { %v1089_v50 = vpack.c.bf16 %v1088_v48, %v1087_v47 }
 0x39d   : > { %v1182_v54 = vpop.permute.xlu0 %1181 }
 0x39e   : > { %2610 = vmatmul.msk.bf16.vlgmr.msrb.gmra.mxu3 %vm1066_vm8, %v1089_v50 }
 0x39f   : > { %1269 = vmatpush.bf16.xpose.msrb.mxu3 %v1260_v51 }
 0x3aa   : > { %v1184_v52 = vpop.permute.xlu1 %1183 }
 0x3ab   : > { %v1189_v53 = vsel %vm1041_vm7, %v1184_v52, 0 }
 0x3ac   : > { %1198 = vmatpush.bf16.xpose.msrb.mxu2 %v1189_v53 }
 0x3ae   : > { %2611 = vmatmul.msk.bf16.vlgmr.msra.gmra.mxu3 %vm1041_vm7, %v1109_v42 }
 0x3b3   : > { %2613 = vmatmul.msk.bf16.vlgmr.msrb.gmra.mxu2 %vm1041_vm7, %v1182_v54 }
 0x3be   : > { %2615 = vmatmul.msk.bf16.vlgmr.msrb.gmra.mxu3 %vm1041_vm7, %v1253_v55 }
 0x421   : > { %v3701_v56 = vpop.f32.mrf.mxu3 }
 0x429   : > { %v3703_v57 = vpop.f32.mrf.mxu3 }
 0x431   : > { %v1128_v13 = vpop.f32.mrf.mxu3 }
 0x432   : > { %v1133_v58 = vmul.f32 0.17677669, %v1128_v13 }
 0x434   : > { %v1135_v59 = vadd.f32 %v1133_v58, %v3676_v21 }
 0x436   : > { %v1200_v60 = vpop.f32.mrf.mxu2  ;;  %v1137_v61 = vsel %vm1066_vm8, %v1135_v59, -inf }
 0x437   : > { %v1205_v62 = vmul.f32 0.17677669, %v1200_v60  ;;  %1138 = vmax.xlane.f32.xlu1 %v1137_v61 }
 0x439   : > { %v1130_v63 = vpop.f32.mrf.mxu3  ;;  %v1207_v0 = vadd.f32 %v1205_v62, %v3676_v21 }
 0x43a   : > { %v1134_v1 = vmul.f32 0.17677669, %v1130_v63 }
 0x43b   : > { %v1209_v17 = vsel %vm1066_vm8, %v1207_v0, -inf }
 0x43c   : > { %1210 = vmax.xlane.f32.xlu2 %v1209_v17  ;;  %v1136_v4 = vadd.f32 %v1134_v1, %v3683_v26 }
 0x43e   : > { %v1202_v5 = vpop.f32.mrf.mxu2  ;;  %v1140_v6 = vsel %vm1066_vm8, %v1136_v4, -inf }
 0x43f   : > { %v1206_v7 = vmul.f32 0.17677669, %v1202_v5  ;;  %1141 = vmax.xlane.f32.xlu0 %v1140_v6 }
 0x441   : > { %v1271_v8 = vpop.f32.mrf.mxu3  ;;  %v1208_v9 = vadd.f32 %v1206_v7, %v3683_v26 }
 0x442   : > { %v1276_v11 = vmul.f32 0.17677669, %v1271_v8 }
 0x443   : > { %v1212_v12 = vsel %vm1066_vm8, %v1208_v9, -inf }
 0x444   : > { %1213 = vmax.xlane.f32.xlu1 %v1212_v12  ;;  %v1278_v14 = vadd.f32 %v1276_v11, %v3676_v21 }
 0x446   : > { %v1280_v15 = vsel %vm1066_vm8, %v1278_v14, -inf }
 0x447   : > { %1281 = vmax.xlane.f32.xlu0 %v1280_v15 }
 0x449   : > { %v1273_v16 = vpop.f32.mrf.mxu3 }
 0x44a   : > { %v1277_v18 = vmul.f32 0.17677669, %v1273_v16  ;;  %v2953_v16 = vld [vmem:[%s3540_s23 + $0x38] sm:$0xff] }
 0x44b   : > { %1424 = vmatpush.bf16.msrb.mxu1 %v2953_v16  ;;  %v2749_v16 = vld [vmem:[%s3563_s6 + $0xd0] sm:$0xf0] }
 0x44c   : > { %v1279_v20 = vadd.f32 %v1277_v18, %v3683_v26  ;;  %v2952_v18 = vld [vmem:[%s3540_s23 + $0x30] sm:$0xff] }
 0x44e   : > { %v1283_v22 = vsel %vm1066_vm8, %v1279_v20, -inf }
 0x44f   : > { %1284 = vmax.xlane.f32.xlu2 %v1283_v22  ;;  %1425 = vmatpush.bf16.msrb.mxu1 %v2952_v18  ;;  %v2951_v22 = vld [vmem:[%s3540_s23 + $0x28] sm:$0xff] }
 0x450   : > { %v2755_v18 = vld [vmem:[%s3563_s6 + $0xc8] sm:$0xf] }
 0x453   : > { %1426 = vmatpush.bf16.msrb.mxu1 %v2951_v22 }
 0x467   : > { %1161 = vrot.lane.b32.xlu2 %v3669_v19, %s3321_s19 }
 0x4aa   : > { %v1139_v23 = vpop.xlane.xlu1 %1138 }
 0x4ab   : > { %v1143_v27 = vsub.f32 %v1135_v59, %v1139_v23 }
 0x4ad   : > { %v1145_v21 = vmul.f32 1.442695, %v1143_v27 }
 0x4af   : > { %v1211_v24 = vpop.xlane.xlu2 %1210 }
 0x4b0   : > { %v1215_v25 = vsub.f32 %v1207_v0, %v1211_v24 }
 0x4b2   : > { %v1217_v28 = vmul.f32 1.442695, %v1215_v25  ;;  %v1142_v29 = vpop.xlane.xlu0 %1141 }
 0x4b3   : > { %v1144_v32 = vsub.f32 %v1136_v4, %v1142_v29 }
 0x4b4   : > { %3118 = vpow2.f32 %v1217_v28 }
 0x4b5   : > { %3120 = vpow2.f32 %v1145_v21  ;;  %v1147_v37 = vmul.f32 1.442695, %v1144_v32  ;;  %v2948_v32 = vld [vmem:[%s3540_s23 + $0x10] sm:$0xff] }
 0x4b7   : > { %v1214_v30 = vpop.xlane.xlu1 %1213 }
 0x4b8   : > { %v1216_v31 = vsub.f32 %v1208_v9, %v1214_v30  ;;  %v2950_v30 = vld [vmem:[%s3540_s23 + $0x20] sm:$0xff] }
 0x4b9   : > { %1427 = vmatpush.bf16.msrb.mxu1 %v2950_v30 }
 0x4ba   : > { %v3119_v33 = vpop.eup %3118  ;;  %v1219_v26 = vmul.f32 1.442695, %v1216_v31  ;;  %v1282_v34 = vpop.xlane.xlu0 %1281  ;;  %v2949_v31 = vld [vmem:[%s3540_s23 + $0x18] sm:$0xff] }
 0x4bb   : > { %v1286_v35 = vsub.f32 %v1278_v14, %v1282_v34  ;;  %v1221_v36 = vsel %vm1066_vm8, %v3119_v33, 0.0  ;;  %v3121_v39 = vpop.eup %3120 }
 0x4bc   : > { %3122 = vpow2.f32 %v1219_v26  ;;  %1222 = vadd.xlane.f32.xlu1 %v1221_v36  ;;  %v1149_v44 = vsel %vm1066_vm8, %v3121_v39, 0.0  ;;  %v2946_v26 = vld [vmem:[%s3540_s23] sm:$0xff] }
 0x4bd   : > { %v1288_v38 = vmul.f32 1.442695, %v1286_v35  ;;  %3124 = vpow2.f32 %v1147_v37  ;;  %1428 = vmatpush.bf16.msrb.mxu1 %v2949_v31  ;;  %v2733_v31 = vld [vmem:[%s3563_s6 + $0xb0] sm:$0xf0] }
 0x4bf   : > { %3126 = vpow2.f32 %v1288_v38 }
 0x4c1   : > { %1429 = vmatpush.bf16.msrb.mxu1 %v2948_v32  ;;  %v2739_v32 = vld [vmem:[%s3563_s6 + $0xa8] sm:$0xf] }
 0x4c2   : > { %v3123_v40 = vpop.eup %3122  ;;  %v1285_v41 = vpop.xlane.xlu2 %1284 }
 0x4c3   : > { %v1287_v42 = vsub.f32 %v1279_v20, %v1285_v41  ;;  %v1224_v43 = vsel %vm1066_vm8, %v3123_v40, 0.0  ;;  %v3125_v46 = vpop.eup %3124 }
 0x4c4   : > { %1225 = vadd.xlane.f32.xlu0 %v1224_v43  ;;  %1150 = vadd.xlane.f32.xlu1 %v1149_v44  ;;  %v1152_v49 = vsel %vm1066_vm8, %v3125_v46, 0.0 }
 0x4c5   : > { %v1290_v45 = vmul.f32 1.442695, %v1287_v42  ;;  %v3127_v47 = vpop.eup %3126 }
 0x4c6   : > { %v1292_v50 = vsel %vm1066_vm8, %v3127_v47, 0.0 }
 0x4c7   : > { %3128 = vpow2.f32 %v1290_v45 }
 0x4ca   : > { %v1162_v48 = vpop.permute.xlu2 %1161 }
 0x4cb   : > { %1174 = vmatpush.bf16.msrb.mxu0 %v1162_v48 }
 0x4cc   : > { %1153 = vadd.xlane.f32.xlu0 %v1152_v49  ;;  %1293 = vadd.xlane.f32.xlu1 %v1292_v50 }
 0x4cd   : > { %v3129_v51 = vpop.eup %3128 }
 0x4ce   : > { %v1295_v52 = vsel %vm1066_vm8, %v3129_v51, 0.0 }
 0x4d4   : > { %1296 = vadd.xlane.f32.xlu0 %v1295_v52 }
 0x4e5   : > { %1232 = vrot.lane.b32.xlu1 %v3669_v19, %s3323_s17 }
 0x4e8   : > { %1303 = vrot.lane.b32.xlu0 %v3669_v19, %s3322_s21 }
 0x52f   : > { %v1223_v53 = vpop.xlane.xlu1 %1222 }
 0x537   : > { %v1226_v54 = vpop.xlane.xlu0 %1225  ;;  %v1151_v55 = vpop.xlane.xlu1 %1150 }
 0x538   : > { %3130 = vrcp.f32 %v1151_v55 }
 0x53e   : > { %v3131_v58 = vpop.eup %3130 }
 0x53f   : > { %v1154_v13 = vpop.xlane.xlu0 %1153  ;;  %v1157_v60 = vmul.f32 %v3131_v58, %v3121_v39  ;;  %v1294_v0 = vpop.xlane.xlu1 %1293 }
 0x540   : > { %3132 = vrcp.f32 %v1154_v13 }
 0x541   : > { %3134 = vrcp.f32 %v1226_v54 }
 0x542   : > { %3136 = vrcp.f32 %v1223_v53 }
 0x546   : > { %v3133_v59 = vpop.eup %3132 }
 0x547   : > { %v1158_v61 = vmul.f32 %v3133_v59, %v3125_v46  ;;  %v1297_v63 = vpop.xlane.xlu0 %1296  ;;  %v3135_v19 = vpop.eup %3134 }
 0x548   : > { %3138 = vrcp.f32 %v1297_v63  ;;  %v3137_v1 = vpop.eup %3136  ;;  %v1230_v4 = vmul.f32 %v3135_v19, %v3123_v40  ;;  %v2984_v63 = vld [vmem:[%s3563_s6 + $0xec] sm:$0xf0] }
 0x549   : > { %v1159_v62 = vpack.c.bf16 %v1158_v61, %v1157_v60  ;;  %3140 = vrcp.f32 %v1294_v0  ;;  %v1229_v6 = vmul.f32 %v3137_v1, %v3119_v33  ;;  %v2947_v33 = vld [vmem:[%s3540_s23 + $0x8] sm:$0xff]  ;;  %v2982_v0 = vld [vmem:[%s3563_s6 + $0xe4] sm:$0xf]  ;;  %v2765_v1 = vld [vmem:[%s3563_s6 + $0xf0] sm:$0xf0] }
 0x54a   : > { %1430 = vmatpush.bf16.msrb.mxu1 %v2947_v33  ;;  %v2977_v33 = vld [vmem:[%s3563_s6 + $0xb4] sm:$0xf0] }
 0x54b   : > { %2612 = vmatmul.msk.bf16.vlgmr.msrb.gmra.mxu0 %vm1066_vm8, %v1159_v62  ;;  %v1231_v9 = vpack.c.bf16 %v1230_v4, %v1229_v6  ;;  %v2763_v62 = vld [vmem:[%s3563_s6 + $0xe0] sm:$0xf]  ;;  %v2985_v4 = vld [vmem:[%s3563_s6 + $0xf4] sm:$0xf0] }
 0x54c   : > { %v2764_v19 = vor.u32 %v2984_v63, %v2763_v62  ;;  %v2683_v63 = vld [vmem:[%s3563_s6 + $0x40] sm:$0xf] }
 0x54e   : > { %v3139_v17 = vpop.eup %3138  ;;  %1431 = vmatpush.bf16.msrb.mxu1 %v2946_v26 }
 0x54f   : > { %v3141_v5 = vpop.eup %3140  ;;  %v1301_v8 = vmul.f32 %v3139_v17, %v3129_v51  ;;  %v2771_v17 = vld [vmem:[%s3563_s6 + $0xe8] sm:$0xf] }
 0x550   : > { %v1300_v11 = vmul.f32 %v3141_v5, %v3127_v47  ;;  %v2768_v5 = vor.u32 %v2982_v0, %v2765_v1  ;;  %v2772_v6 = vor.u32 %v2985_v4, %v2771_v17  ;;  %v2964_v0 = vld [vmem:[%s3563_s6 + $0x4c] sm:$0xf0]  ;;  %v2685_v17 = vld [vmem:[%s3563_s6 + $0x50] sm:$0xf0]  ;;  %v2691_v4 = vld [vmem:[%s3563_s6 + $0x48] sm:$0xf] }
 0x551   : > { %v2684_v1 = vor.u32 %v2964_v0, %v2683_v63 }
 0x552   : > { %v1302_v14 = vpack.c.bf16 %v1301_v8, %v1300_v11  ;;  %v2773_v8 = vld [vmem:[%s3563_s6 + $0xf8] sm:$0xf0]  ;;  %1709 = vmatpush.bf16.msra.mxu3 %v2768_v5  ;;  %v2747_v11 = vld [vmem:[%s3563_s6 + $0xc0] sm:$0xf]  ;;  %v2965_v5 = vld [vmem:[%s3563_s6 + $0x54] sm:$0xf0] }
 0x557   : > { %v1233_v7 = vpop.permute.xlu1 %1232 }
 0x558   : > { %1245 = vmatpush.bf16.msra.mxu2 %v1233_v7  ;;  %v2983_v7 = vld [vmem:[%s3563_s6 + $0xec] sm:$0xf] }
 0x55a   : > { %v1304_v12 = vpop.permute.xlu0 %1303 }
 0x55b   : > { %2614 = vmatmul.msk.bf16.vlgmr.msra.gmra.mxu2 %vm1066_vm8, %v1231_v9  ;;  %1316 = vmatpush.bf16.msra.mxu0 %v1304_v12  ;;  %v2776_v9 = vor.u32 %v2983_v7, %v2773_v8  ;;  %v2980_v12 = vld [vmem:[%s3563_s6 + $0xcc] sm:$0xf0]  ;;  %v2692_v7 = vor.u32 %v2965_v5, %v2691_v4  ;;  %v2963_v8 = vld [vmem:[%s3563_s6 + $0x4c] sm:$0xf]  ;;  %v3851_v4 = vld [vmem:[%s3569_s18] sm:$0xf] }
 0x55c   : > { %1695 = vmatpush.bf16.msrb.mxu2 %v2764_v19  ;;  %v2962_v19 = vld [vmem:[%s3563_s6 + $0x44] sm:$0xf]  ;;  %v3017_v5 = vld [vmem:[%s3517_s22 + $0xf8] sm:$0xff] }
 0x55d   : > { %1737 = vmatpush.bf16.msra.mxu1 %v2776_v9  ;;  %v2693_v9 = vld [vmem:[%s3563_s6 + $0x58] sm:$0xf0] }
 0x55e   : > { %2616 = vmatmul.msk.bf16.vlgmr.msra.gmra.mxu0 %vm1066_vm8, %v1302_v14  ;;  %v2978_v14 = vld [vmem:[%s3563_s6 + $0xc4] sm:$0xf] }
 0x55f   : > { %1723 = vmatpush.bf16.msrb.mxu0 %v2772_v6  ;;  %v2752_v22 = vor.u32 %v2978_v14, %v2749_v16  ;;  %v2688_v6 = vor.u32 %v2962_v19, %v2685_v17  ;;  %v2960_v14 = vld [vmem:[%s3563_s6 + $0x2c] sm:$0xf0] }
 0x561   : > { %1710 = vmatpush.bf16.msra.mxu3 %v2752_v22  ;;  %v2961_v22 = vld [vmem:[%s3563_s6 + $0x34] sm:$0xf0] }
 0x5c8   : > { %v1176_v15 = vpop.f32.mrf.mxu0 }
 0x5d0   : > { %v1178_v23 = vpop.f32.mrf.mxu0 }
 0x5d1   : > { %v3088_v28 = vpack.i.bf16 %v1178_v23, %v1176_v15  ;;  %v2748_v15 = vor.u32 %v2980_v12, %v2747_v11  ;;  %v2696_v11 = vor.u32 %v2963_v8, %v2693_v9  ;;  %v2667_v12 = vld [vmem:[%s3563_s6 + $0x20] sm:$0xf] }
 0x5d2   : > { %v2668_v16 = vor.u32 %v2960_v14, %v2667_v12  ;;  %v3008_v8 = vld [vmem:[%s3517_s22 + $0xb0] sm:$0xff] }
 0x5d3   : > { %1696 = vmatpush.bf16.msrb.mxu2 %v2748_v15  ;;  %v2958_v15 = vld [vmem:[%s3563_s6 + $0x24] sm:$0xf] }
 0x5d4   : > { %v3016_v9 = vld [vmem:[%s3517_s22 + $0xf0] sm:$0xff] }
 0x5db   : > { %v1318_v27 = vpop.f32.mrf.mxu0 }
 0x5de   : > { %v1247_v20 = vpop.f32.mrf.mxu2 }
 0x5e3   : > { %v1320_v29 = vpop.f32.mrf.mxu0 }
 0x5e4   : > { %v3093_v21 = vpack.i.bf16 %v1320_v29, %v1318_v27  ;;  %v2976_v29 = vld [vmem:[%s3563_s6 + $0xac] sm:$0xf0] }
 0x5e6   : > { %v1249_v24 = vpop.f32.mrf.mxu2 }
 0x5e7   : > { %v3083_v25 = vpack.i.bf16 %v1249_v24, %v1247_v20  ;;  %v2981_v20 = vld [vmem:[%s3563_s6 + $0xd4] sm:$0xf0]  ;;  %v2979_v24 = vld [vmem:[%s3563_s6 + $0xcc] sm:$0xf] }
 0x5e8   : > { %v2756_v23 = vor.u32 %v2981_v20, %v2755_v18  ;;  %v2669_v18 = vld [vmem:[%s3563_s6 + $0x30] sm:$0xf0]  ;;  %v2675_v20 = vld [vmem:[%s3563_s6 + $0x28] sm:$0xf] }
 0x5e9   : > { %3084 = vrot.lane.b32.xlu2 %v3083_v25, %s3323_s17  ;;  %v2757_v25 = vld [vmem:[%s3563_s6 + $0xd8] sm:$0xf0] }
 0x5ea   : > { %v2760_v27 = vor.u32 %v2979_v24, %v2757_v25  ;;  %1724 = vmatpush.bf16.msrb.mxu0 %v2756_v23  ;;  %v2672_v24 = vor.u32 %v2958_v15, %v2669_v18  ;;  %v2676_v25 = vor.u32 %v2961_v22, %v2675_v20  ;;  %v3001_v18 = vld [vmem:[%s3517_s22 + $0x78] sm:$0xff]  ;;  %v1527_v20 = vperm.slane %v3851_v4, 0 }
 0x5eb   : > { %v1528_v22 = vperm.slane %v3851_v4, 1 }
 0x5ec   : > { %1738 = vmatpush.bf16.msra.mxu1 %v2760_v27  ;;  %v2959_v27 = vld [vmem:[%s3563_s6 + $0x2c] sm:$0xf] }
 0x5f1   : > { %3089 = vrot.lane.b32.xlu2 %v3088_v28, %s3322_s21  ;;  %v2731_v28 = vld [vmem:[%s3563_s6 + $0xa0] sm:$0xf] }
 0x5f2   : > { %v2732_v30 = vor.u32 %v2976_v29, %v2731_v28  ;;  %v2677_v28 = vld [vmem:[%s3563_s6 + $0x38] sm:$0xf0]  ;;  %v2651_v29 = vld [vmem:[%s3563_s6] sm:$0xf] }
 0x5f4   : > { %1697 = vmatpush.bf16.msrb.mxu2 %v2732_v30  ;;  %v2680_v30 = vor.u32 %v2959_v27, %v2677_v28  ;;  %v3015_v27 = vld [vmem:[%s3517_s22 + $0xe8] sm:$0xff] }
 0x5f9   : > { %3094 = vrot.lane.b32.xlu2 %v3093_v21, %s3321_s19  ;;  %v2974_v21 = vld [vmem:[%s3563_s6 + $0xa4] sm:$0xf] }
 0x5fa   : > { %v2736_v26 = vor.u32 %v2974_v21, %v2733_v31  ;;  %v2956_v31 = vld [vmem:[%s3563_s6 + $0xc] sm:$0xf0] }
 0x5fc   : > { %1711 = vmatpush.bf16.msra.mxu3 %v2736_v26  ;;  %v2652_v26 = vor.u32 %v2956_v31, %v2651_v29  ;;  %v2992_v31 = vld [vmem:[%s3517_s22 + $0x30] sm:$0xff] }
 0x643   : > { %v3085_v34 = vpop.permute.xlu2 %3084 }
 0x644   : > { %v3087_v40 = vunpack.i.h.bf16 %v3085_v34  ;;  %v3086_v41 = vunpack.i.l.bf16 %v3085_v34  ;;  %v2740_v34 = vor.u32 %v2977_v33, %v2739_v32  ;;  %v2954_v32 = vld [vmem:[%s3563_s6 + $0x4] sm:$0xf]  ;;  %v2653_v33 = vld [vmem:[%s3563_s6 + $0x10] sm:$0xf0] }
 0x646   : > { %1725 = vmatpush.bf16.msrb.mxu0 %v2740_v34  ;;  %v2656_v34 = vor.u32 %v2954_v32, %v2653_v33  ;;  %v3000_v32 = vld [vmem:[%s3517_s22 + $0x70] sm:$0xff] }
 0x64b   : > { %v3090_v35 = vpop.permute.xlu2 %3089 }
 0x64c   : > { %v3092_v36 = vunpack.i.h.bf16 %v3090_v35  ;;  %v3091_v37 = vunpack.i.l.bf16 %v3090_v35  ;;  %v2975_v35 = vld [vmem:[%s3563_s6 + $0xac] sm:$0xf] }
 0x64e   : > { %v1348_v38 = vsel %vm1041_vm7, %v3703_v57, %v3092_v36  ;;  %v1347_v39 = vsel %vm1041_vm7, %v3701_v56, %v3091_v37  ;;  %v3100_v57 = vld [vmem:[%s4151_s14] ss:$0 sm:$0xff]  ;;  %v2741_v36 = vld [vmem:[%s3563_s6 + $0xb8] sm:$0xf0] }
 0x64f   : > { %v1350_v45 = vsel %vm1349_vm9, %v1347_v39, %v3086_v41  ;;  %v1351_v46 = vsel %vm1349_vm9, %v1348_v38, %v3087_v40  ;;  %v2744_v37 = vor.u32 %v2975_v35, %v2741_v36  ;;  %v2715_v38 = vld [vmem:[%s3563_s6 + $0x80] sm:$0xf]  ;;  %v2972_v39 = vld [vmem:[%s3563_s6 + $0x8c] sm:$0xf0]  ;;  %v2970_v40 = vld [vmem:[%s3563_s6 + $0x84] sm:$0xf] }
 0x650   : > { %v2716_v41 = vor.u32 %v2972_v39, %v2715_v38  ;;  %v2659_v35 = vld [vmem:[%s3563_s6 + $0x8] sm:$0xf]  ;;  %v2957_v36 = vld [vmem:[%s3563_s6 + $0x14] sm:$0xf0] }
 0x651   : > { %1739 = vmatpush.bf16.msra.mxu1 %v2744_v37  ;;  %v2955_v37 = vld [vmem:[%s3563_s6 + $0xc] sm:$0xf]  ;;  %v2660_v39 = vor.u32 %v2957_v36, %v2659_v35  ;;  %v3014_v35 = vld [vmem:[%s3517_s22 + $0xe0] sm:$0xff] }
 0x652   : > { %1698 = vmatpush.bf16.msrb.mxu2 %v2716_v41 }
 0x653   : > { %v3095_v42 = vpop.permute.xlu2 %3094 }
 0x654   : > { %v3097_v43 = vunpack.i.h.bf16 %v3095_v42  ;;  %v3096_v44 = vunpack.i.l.bf16 %v3095_v42  ;;  %v2717_v42 = vld [vmem:[%s3563_s6 + $0x90] sm:$0xf0] }
 0x656   : > { %v1353_v47 = vsel %vm1352_vm10, %v1350_v45, %v3096_v44  ;;  %v1354_v48 = vsel %vm1352_vm10, %v1351_v46, %v3097_v43  ;;  %v2723_v43 = vld [vmem:[%s3563_s6 + $0x88] sm:$0xf]  ;;  %v2973_v44 = vld [vmem:[%s3563_s6 + $0x94] sm:$0xf0]  ;;  %v2720_v45 = vor.u32 %v2970_v40, %v2717_v42  ;;  %v2661_v40 = vld [vmem:[%s3563_s6 + $0x18] sm:$0xf0] }
 0x657   : > { %v1355_v49 = vpack.c.bf16 %v1354_v48, %v1353_v47  ;;  %v2724_v46 = vor.u32 %v2973_v44, %v2723_v43  ;;  %v2971_v47 = vld [vmem:[%s3563_s6 + $0x8c] sm:$0xf]  ;;  %v2725_v48 = vld [vmem:[%s3563_s6 + $0x98] sm:$0xf0]  ;;  %v2664_v41 = vor.u32 %v2955_v37, %v2661_v40 }
 0x658   : > { %1712 = vmatpush.bf16.msra.mxu3 %v2720_v45 }
 0x659   : > { %1432 = vmatmul.bf16.vlgmr.msrb.gmra.mxu1 %v1355_v49  ;;  %v2728_v49 = vor.u32 %v2971_v47, %v2725_v48  ;;  %1726 = vmatpush.bf16.msrb.mxu0 %v2724_v46 }
 0x65b   : > { %1740 = vmatpush.bf16.msra.mxu1 %v2728_v49 }
 0x6d6   : > { %v1433_v50 = vpop.f32.mrf.mxu1 }
 0x6d7   : > { %v1434_v56 = vadd.f32 %v3100_v57, %v1433_v50  ;;  %v2968_v50 = vld [vmem:[%s3563_s6 + $0x6c] sm:$0xf0] }
 0x6d9   : > { %v3753_v51 = vadd.f32 %v1434_v56, %v3584_v2  ;;  %v2966_v56 = vld [vmem:[%s3563_s6 + $0x64] sm:$0xf] }
 0x6db   : > { %1440 = vadd.xlane.f32.xlu0 %v3753_v51 }
 0x6de   : > { %v1435_v52 = vpop.f32.mrf.mxu1 }
 0x6df   : > { %v1436_v53 = vadd.f32 %v3100_v57, %v1435_v52  ;;  %v2699_v57 = vld [vmem:[%s3563_s6 + $0x60] sm:$0xf] }
 0x6e0   : > { %v2700_v52 = vor.u32 %v2968_v50, %v2699_v57 }
 0x6e1   : > { %v3757_v54 = vadd.f32 %v1436_v53, %v3587_v3  ;;  %v2701_v53 = vld [vmem:[%s3563_s6 + $0x70] sm:$0xf0] }
 0x6e2   : > { %1699 = vmatpush.bf16.msrb.mxu2 %v2700_v52 }
 0x6e3   : > { %1442 = vadd.xlane.f32.xlu1 %v3757_v54 }
 0x6e6   : > { %1700 = vmatpush.bf16.msrb.mxu2 %v2684_v1 }
 0x6ea   : > { %1701 = vmatpush.bf16.msrb.mxu2 %v2668_v16  ;;  %v2993_v16 = vld [vmem:[%s3517_s22 + $0x38] sm:$0xff] }
 0x6ee   : > { %1702 = vmatpush.bf16.msrb.mxu2 %v2652_v26 }
 0x6f2   : > { %2183 = vmatpush.bf16.msra.mxu2 %v2993_v16 }
 0x6f6   : > { %2184 = vmatpush.bf16.msra.mxu2 %v2992_v31 }
 0x74e   : > { %v1441_v55 = vpop.xlane.xlu0 %1440 }
 0x74f   : > { %v1444_v13 = vmul.f32 %v1441_v55, %v3590_v10  ;;  %v2707_v55 = vld [vmem:[%s3563_s6 + $0x68] sm:$0xf] }
 0x751   : > { %v3762_v2 = vsub.f32 %v3753_v51, %v1444_v13  ;;  %v2969_v13 = vld [vmem:[%s3563_s6 + $0x74] sm:$0xf0] }
 0x753   : > { %v1448_v58 = vmul.f32 %v3762_v2, %v3762_v2 }
 0x755   : > { %1450 = vadd.xlane.f32.xlu2 %v1448_v58  ;;  %v2704_v58 = vor.u32 %v2966_v56, %v2701_v53 }
 0x756   : > { %v1443_v59 = vpop.xlane.xlu1 %1442 }
 0x757   : > { %v1445_v3 = vmul.f32 %v1443_v59, %v3590_v10  ;;  %v2708_v59 = vor.u32 %v2969_v13, %v2707_v55  ;;  %1713 = vmatpush.bf16.msra.mxu3 %v2704_v58 }
 0x759   : > { %v3768_v60 = vsub.f32 %v3757_v54, %v1445_v3  ;;  %v2967_v3 = vld [vmem:[%s3563_s6 + $0x6c] sm:$0xf]  ;;  %1727 = vmatpush.bf16.msrb.mxu0 %v2708_v59  ;;  %v3101_v59 = vld [vmem:[%s739_s15] ss:$0 sm:$0xff] }
 0x75b   : > { %v1449_v61 = vmul.f32 %v3768_v60, %v3768_v60  ;;  %1714 = vmatpush.bf16.msra.mxu3 %v2688_v6  ;;  %v1529_v6 = vperm.slane %v3851_v4, 2 }
 0x75d   : > { %1452 = vadd.xlane.f32.xlu0 %v1449_v61  ;;  %v2709_v61 = vld [vmem:[%s3563_s6 + $0x78] sm:$0xf0]  ;;  %1728 = vmatpush.bf16.msrb.mxu0 %v2692_v7  ;;  %v1530_v7 = vperm.slane %v3851_v4, 3 }
 0x75e   : > { %v2712_v62 = vor.u32 %v2967_v3, %v2709_v61  ;;  %v2995_v4 = vld [vmem:[%s3517_s22 + $0x48] sm:$0xff] }
 0x75f   : > { %1715 = vmatpush.bf16.msra.mxu3 %v2672_v24 }
 0x760   : > { %1741 = vmatpush.bf16.msra.mxu1 %v2712_v62 }
 0x761   : > { %1729 = vmatpush.bf16.msrb.mxu0 %v2676_v25  ;;  %v3007_v25 = vld [vmem:[%s3517_s22 + $0xa8] sm:$0xff] }
 0x763   : > { %1716 = vmatpush.bf16.msra.mxu3 %v2656_v34  ;;  %v3006_v34 = vld [vmem:[%s3517_s22 + $0xa0] sm:$0xff] }
 0x764   : > { %1742 = vmatpush.bf16.msra.mxu1 %v2696_v11 }
 0x765   : > { %1730 = vmatpush.bf16.msrb.mxu0 %v2660_v39 }
 0x767   : > { %2197 = vmatpush.bf16.msrb.mxu3 %v3001_v18 }
 0x768   : > { %1743 = vmatpush.bf16.msra.mxu1 %v2680_v30 }
 0x76b   : > { %2198 = vmatpush.bf16.msrb.mxu3 %v3000_v32 }
 0x76c   : > { %1744 = vmatpush.bf16.msra.mxu1 %v2664_v41 }
 0x770   : > { %2225 = vmatpush.bf16.msrb.mxu1 %v3017_v5 }
 0x774   : > { %2226 = vmatpush.bf16.msrb.mxu1 %v3016_v9  ;;  %v2996_v9 = vld [vmem:[%s3517_s22 + $0x50] sm:$0xff] }
 0x778   : > { %2227 = vmatpush.bf16.msrb.mxu1 %v3015_v27 }
 0x77c   : > { %2228 = vmatpush.bf16.msrb.mxu1 %v3014_v35 }
 0x7c8   : > { %v1451_v23 = vpop.xlane.xlu2 %1450 }
 0x7c9   : > { %v1454_v21 = vmul.f32 %v1451_v23, %v3590_v10 }
 0x7cb   : > { %v1456_v38 = vadd.f32 1e-05, %v1454_v21 }
 0x7cd   : > { %3142 = vrsqrt.f32 %v1456_v38  ;;  %vm1464_vm12 = vweird.f32 %v1456_v38 }
 0x7d0   : > { %v1453_v42 = vpop.xlane.xlu0 %1452 }
 0x7d1   : > { %v1455_v43 = vmul.f32 %v1453_v42, %v3590_v10  ;;  %v2991_v42 = vld [vmem:[%s3517_s22 + $0x28] sm:$0xff] }
 0x7d2   : > { %2185 = vmatpush.bf16.msra.mxu2 %v2991_v42 }
 0x7d3   : > { %v3143_v44 = vpop.eup %3142  ;;  %v1457_v45 = vadd.f32 1e-05, %v1455_v43  ;;  %v2999_v43 = vld [vmem:[%s3517_s22 + $0x68] sm:$0xff] }
 0x7d4   : > { %v1459_v46 = vmul.f32 %v3143_v44, %v1456_v38  ;;  %vm1465_vm11 = vweird.f32 %v3143_v44  ;;  %2199 = vmatpush.bf16.msrb.mxu3 %v2999_v43 }
 0x7d5   : > { %3144 = vrsqrt.f32 %v1457_v45  ;;  %vm1466_vm13 = vmor %vm1464_vm12, %vm1465_vm11  ;;  %vm1474_vm15 = vweird.f32 %v1457_v45 }
 0x7d6   : > { %v1460_v47 = vmul.f32 %v3143_v44, %v1459_v46 }
 0x7d8   : > { %v1461_v48 = vmul.f32 0.5, %v1460_v47 }
 0x7da   : > { %v1462_v49 = vsub.f32 1.5, %v1461_v48  ;;  %v3005_v48 = vld [vmem:[%s3517_s22 + $0x98] sm:$0xff] }
 0x7db   : > { %v3145_v57 = vpop.eup %3144 }
 0x7dc   : > { %v1463_v50 = vmul.f32 %v3143_v44, %v1462_v49  ;;  %v1469_v56 = vmul.f32 %v3145_v57, %v1457_v45  ;;  %vm1475_vm14 = vweird.f32 %v3145_v57  ;;  %v3013_v49 = vld [vmem:[%s3517_s22 + $0xd8] sm:$0xff] }
 0x7dd   : > { %vm1476_vm0 = vmor %vm1474_vm15, %vm1475_vm14  ;;  %2229 = vmatpush.bf16.msrb.mxu1 %v3013_v49 }
 0x7de   : > { %v1470_v52 = vmul.f32 %v3145_v57, %v1469_v56  ;;  %v1467_v53 = vsel %vm1466_vm13, %v3143_v44, %v1463_v50 }
 0x7df   : > { %v1478_v58 = vmul.f32 %v1467_v53, %v3762_v2  ;;  %v3102_v2 = vld [vmem:[%s742_s12] ss:$0 sm:$0xff]  ;;  %v2998_v53 = vld [vmem:[%s3517_s22 + $0x60] sm:$0xff] }
 0x7e0   : > { %v1471_v55 = vmul.f32 0.5, %v1470_v52  ;;  %v2990_v52 = vld [vmem:[%s3517_s22 + $0x20] sm:$0xff]  ;;  %2200 = vmatpush.bf16.msrb.mxu3 %v2998_v53 }
 0x7e1   : > { %v1484_v63 = vmul.f32 %v3101_v59, %v1478_v58  ;;  %2186 = vmatpush.bf16.msra.mxu2 %v2990_v52 }
 0x7e2   : > { %v1472_v13 = vsub.f32 1.5, %v1471_v55 }
 0x7e3   : > { %v1490_v19 = vadd.f32 %v3102_v2, %v1484_v63  ;;  %v2989_v63 = vld [vmem:[%s3517_s22 + $0x18] sm:$0xff] }
 0x7e4   : > { %v1473_v3 = vmul.f32 %v3145_v57, %v1472_v13 }
 0x7e5   : > { %2187 = vmatpush.bf16.msra.mxu2 %v2989_v63 }
 0x7e6   : > { %v1477_v61 = vsel %vm1476_vm0, %v3145_v57, %v1473_v3 }
 0x7e7   : > { %v1479_v62 = vmul.f32 %v1477_v61, %v3768_v60  ;;  %v3009_v60 = vld [vmem:[%s3517_s22 + $0xb8] sm:$0xff]  ;;  %v3004_v61 = vld [vmem:[%s3517_s22 + $0x90] sm:$0xff] }
 0x7e8   : > { %2211 = vmatpush.bf16.msra.mxu0 %v3009_v60 }
 0x7e9   : > { %v1485_v0 = vmul.f32 %v3101_v59, %v1479_v62  ;;  %v3012_v62 = vld [vmem:[%s3517_s22 + $0xd0] sm:$0xff] }
 0x7ea   : > { %2230 = vmatpush.bf16.msrb.mxu1 %v3012_v62 }
 0x7eb   : > { %v1491_v1 = vadd.f32 %v3102_v2, %v1485_v0  ;;  %v2997_v2 = vld [vmem:[%s3517_s22 + $0x58] sm:$0xff] }
 0x7ec   : > { %2212 = vmatpush.bf16.msra.mxu0 %v3008_v8  ;;  %2201 = vmatpush.bf16.msrb.mxu3 %v2997_v2  ;;  %v2988_v8 = vld [vmem:[%s3517_s22 + $0x10] sm:$0xff] }
 0x7ed   : > { %v1492_v17 = vpack.c.bf16 %v1491_v1, %v1490_v19  ;;  %2188 = vmatpush.bf16.msra.mxu2 %v2988_v8 }
 0x7ef   : > { %1703 = vmatmul.bf16.vlgmr.msrb.gmra.mxu2 %v1492_v17  ;;  %1717 = vmatmul.bf16.vlgmr.msra.gmra.mxu3 %v1492_v17 }
 0x7f0   : > { %1731 = vmatmul.bf16.vlgmr.msrb.gmra.mxu0 %v1492_v17  ;;  %1745 = vmatmul.bf16.vlgmr.msra.gmra.mxu1 %v1492_v17  ;;  %v3003_v17 = vld [vmem:[%s3517_s22 + $0x88] sm:$0xff] }
 0x7f1   : > { %2213 = vmatpush.bf16.msra.mxu0 %v3007_v25  ;;  %2202 = vmatpush.bf16.msrb.mxu3 %v2996_v9 }
 0x7f5   : > { %2214 = vmatpush.bf16.msra.mxu0 %v3006_v34  ;;  %2203 = vmatpush.bf16.msrb.mxu3 %v2995_v4 }
 0x7f9   : > { %2215 = vmatpush.bf16.msra.mxu0 %v3005_v48 }
 0x7fd   : > { %2216 = vmatpush.bf16.msra.mxu0 %v3004_v61 }
 0x801   : > { %2217 = vmatpush.bf16.msra.mxu0 %v3003_v17 }
 0x86d   : > { %v1732_v11 = vpop.f32.mrf.mxu0  ;;  %v1746_v12 = vpop.f32.mrf.mxu1 }
 0x86e   : > { %v3859_v14 = vadd.f32 %v1732_v11, %v1529_v6  ;;  %v3861_v15 = vadd.f32 %v1746_v12, %v1530_v7 }
 0x870   : > { %v2779_v23 = vmul.f32 -1.702, %v3859_v14  ;;  %v2780_v24 = vmul.f32 -1.702, %v3861_v15 }
 0x872   : > { %v1771_v28 = vmul.f32 1.442695, %v2779_v23  ;;  %v1773_v29 = vmul.f32 1.442695, %v2780_v24  ;;  %v1704_v21 = vpop.f32.mrf.mxu2  ;;  %v1718_v30 = vpop.f32.mrf.mxu3  ;;  %v3002_v23 = vld [vmem:[%s3517_s22 + $0x80] sm:$0xff] }
 0x873   : > { %v3873_v33 = vadd.f32 %v1704_v21, %v1527_v20  ;;  %v3877_v26 = vadd.f32 %v1718_v30, %v1528_v22  ;;  %v3010_v24 = vld [vmem:[%s3517_s22 + $0xc0] sm:$0xff]  ;;  %2218 = vmatpush.bf16.msra.mxu0 %v3002_v23  ;;  %v2987_v30 = vld [vmem:[%s3517_s22 + $0x8] sm:$0xff] }
 0x874   : > { %3146 = vpow2.f32 %v1771_v28  ;;  %2189 = vmatpush.bf16.msra.mxu2 %v2987_v30 }
 0x875   : > { %3148 = vpow2.f32 %v1773_v29  ;;  %v2777_v36 = vmul.f32 -1.702, %v3873_v33  ;;  %v2778_v37 = vmul.f32 -1.702, %v3877_v26  ;;  %v1734_v38 = vpop.f32.mrf.mxu0  ;;  %v1748_v39 = vpop.f32.mrf.mxu1 }
 0x876   : > { %v3883_v40 = vadd.f32 %v1734_v38, %v1529_v6  ;;  %v3885_v41 = vadd.f32 %v1748_v39, %v1530_v7  ;;  %v3011_v6 = vld [vmem:[%s3517_s22 + $0xc8] sm:$0xff]  ;;  %v2994_v38 = vld [vmem:[%s3517_s22 + $0x40] sm:$0xff] }
 0x877   : > { %v1767_v44 = vmul.f32 1.442695, %v2777_v36  ;;  %v1769_v45 = vmul.f32 1.442695, %v2778_v37  ;;  %2231 = vmatpush.bf16.msrb.mxu1 %v3011_v6  ;;  %v2986_v37 = vld [vmem:[%s3517_s22] sm:$0xff]  ;;  %2204 = vmatpush.bf16.msrb.mxu3 %v2994_v38 }
 0x878   : > { %v2783_v46 = vmul.f32 -1.702, %v3883_v40  ;;  %v2784_v47 = vmul.f32 -1.702, %v3885_v41  ;;  %2190 = vmatpush.bf16.msra.mxu2 %v2986_v37 }
 0x879   : > { %3150 = vpow2.f32 %v1767_v44 }
 0x87a   : > { %v3147_v57 = vpop.eup %3146  ;;  %v1779_v50 = vmul.f32 1.442695, %v2783_v46  ;;  %v1706_v56 = vpop.f32.mrf.mxu2  ;;  %3152 = vpow2.f32 %v1769_v45  ;;  %v1781_v58 = vmul.f32 1.442695, %v2784_v47 }
 0x87b   : > { %v3149_v55 = vpop.eup %3148  ;;  %v3895_v13 = vadd.f32 1.0, %v3147_v57  ;;  %v3897_v59 = vadd.f32 %v1706_v56, %v1527_v20  ;;  %v1720_v5 = vpop.f32.mrf.mxu3  ;;  %2232 = vmatpush.bf16.msrb.mxu1 %v3010_v24 }
 0x87c   : > { %v3899_v3 = vadd.f32 1.0, %v3149_v55  ;;  %3154 = vpow2.f32 %v1779_v50  ;;  %v3923_v20 = vadd.f32 %v1720_v5, %v1528_v22 }
 0x87d   : > { %3156 = vrcp.f32 %v3895_v13  ;;  %v2781_v19 = vmul.f32 -1.702, %v3897_v59  ;;  %v1830_v36 = vand.u32 2147483647, %v3895_v13  ;;  %v1832_v39 = vand.u32 2147483648, %v3895_v13 }
 0x87e   : > { %3158 = vrcp.f32 %v3899_v3  ;;  %v2782_v31 = vmul.f32 -1.702, %v3923_v20  ;;  %v1845_v42 = vand.u32 2147483647, %v3899_v3  ;;  %v1847_v43 = vand.u32 2147483648, %v3899_v3 }
 0x87f   : > { %v3151_v0 = vpop.eup %3150  ;;  %3160 = vpow2.f32 %v1781_v58  ;;  %v1775_v12 = vmul.f32 1.442695, %v2781_v19  ;;  %vm1826_vm2 = vweird.f32 %v3895_v13  ;;  %vm3956_vm3 = vcmp.eq.f32.partialorder %v1830_v36, 8.507059e+37 }
 0x880   : > { %v3908_v1 = vadd.f32 1.0, %v3151_v0  ;;  %v3153_v60 = vpop.eup %3152  ;;  %v1777_v44 = vmul.f32 1.442695, %v2782_v31  ;;  %vm1841_vm4 = vweird.f32 %v3899_v3  ;;  %v1833_v50 = vor.u32 1.1754944e-38, %v1832_v39 }
 0x881   : > { %v3929_v29 = vadd.f32 1.0, %v3153_v60  ;;  %vm3961_vm5 = vcmp.eq.f32.partialorder %v1845_v42, 8.507059e+37  ;;  %v1848_v52 = vor.u32 1.1754944e-38, %v1847_v43 }
 0x882   : > { %v3155_v7 = vpop.eup %3154  ;;  %3162 = vrcp.f32 %v3908_v1  ;;  %v1802_v17 = vand.u32 2147483648, %v3908_v1  ;;  %v1800_v43 = vand.u32 2147483647, %v3908_v1 }
 0x883   : > { %v3914_v11 = vpop.eup %3156  ;;  %v3931_v21 = vadd.f32 1.0, %v3155_v7  ;;  %3164 = vpow2.f32 %v1775_v12 }
 0x884   : > { %v3916_v16 = vpop.eup %3158  ;;  %v1822_v18 = vmul.f32 %v3914_v11, %v3895_v13  ;;  %vm1827_vm1 = vweird.f32 %v3914_v11 }
 0x885   : > { %v3161_v25 = vpop.eup %3160  ;;  %v1837_v27 = vmul.f32 %v3916_v16, %v3899_v3  ;;  %3166 = vrcp.f32 %v3931_v21  ;;  %vm3968_vm6 = vmor %vm1826_vm2, %vm1827_vm1  ;;  %vm1842_vm7 = vweird.f32 %v3916_v16  ;;  %v1890_v13 = vand.u32 2147483647, %v3931_v21 }
 0x886   : > { %v1823_v28 = vsub.f32 1.0, %v1822_v18  ;;  %v3935_v22 = vadd.f32 1.0, %v3161_v25  ;;  %3168 = vrcp.f32 %v3929_v29  ;;  %vm1886_vm8 = vweird.f32 %v3931_v21  ;;  %vm3993_vm10 = vmor %vm1841_vm4, %vm1842_vm7 }
 0x887   : > { %v1838_v34 = vsub.f32 1.0, %v1837_v27  ;;  %v1892_v60 = vand.u32 2147483648, %v3931_v21  ;;  %vm3998_vm12 = vcmp.eq.f32.partialorder %v1890_v13, 8.507059e+37  ;;  %vm1796_vm1 = vweird.f32 %v3908_v1 }
 0x888   : > { %v1824_v32 = vmul.f32 %v3914_v11, %v1823_v28  ;;  %v3940_v35 = vpop.eup %3162  ;;  %3170 = vrcp.f32 %v3935_v22  ;;  %v1907_v3 = vand.u32 2147483648, %v3935_v22  ;;  %v1905_v30 = vand.u32 2147483647, %v3935_v22 }
 0x889   : > { %v3165_v45 = vpop.eup %3164  ;;  %v1839_v47 = vmul.f32 %v3916_v16, %v1838_v34  ;;  %v1792_v48 = vmul.f32 %v3940_v35, %v3908_v1  ;;  %3172 = vpow2.f32 %v1777_v44  ;;  %vm1797_vm11 = vweird.f32 %v3940_v35 }
 0x88a   : > { %v1825_v46 = vadd.f32 %v3914_v11, %v1824_v32  ;;  %v3974_v61 = vadd.f32 1.0, %v3165_v45  ;;  %v1893_v27 = vor.u32 1.1754944e-38, %v1892_v60  ;;  %vm1901_vm15 = vweird.f32 %v3935_v22 }
 0x88b   : > { %v3167_v49 = vpop.eup %3166  ;;  %v1840_v2 = vadd.f32 %v3916_v16, %v1839_v47  ;;  %v1793_v0 = vsub.f32 1.0, %v1792_v48  ;;  %v1908_v42 = vor.u32 1.1754944e-38, %v1907_v3  ;;  %vm1906_vm2 = vcmp.eq.f32.partialorder %v1905_v30, 8.507059e+37 }
 0x88c   : > { %v1882_v53 = vmul.f32 %v3167_v49, %v3931_v21  ;;  %v3966_v55 = vpop.eup %3168  ;;  %v1829_v63 = vsel %vm3968_vm6, %v3914_v11, %v1825_v46  ;;  %vm1887_vm9 = vweird.f32 %v3167_v49  ;;  %3174 = vrcp.f32 %v3974_v61 }
 0x88d   : > { %v1807_v6 = vmul.f32 %v3966_v55, %v3929_v29  ;;  %v1834_v8 = vsel %vm3956_vm3, %v1833_v50, %v1829_v63  ;;  %v1844_v18 = vsel %vm3993_vm10, %v3916_v16, %v1840_v2  ;;  %v1794_v23 = vmul.f32 %v3940_v35, %v1793_v0  ;;  %vm1888_vm13 = vmor %vm1886_vm8, %vm1887_vm9 }
 0x88e   : > { %v3171_v62 = vpop.eup %3170  ;;  %v1883_v19 = vsub.f32 1.0, %v1882_v53  ;;  %v1913_v16 = vmul.f32 %v1834_v8, %v3859_v14  ;;  %v1849_v34 = vsel %vm3961_vm5, %v1848_v52, %v1844_v18  ;;  %vm4028_vm3 = vmor %vm1796_vm1, %vm1797_vm11  ;;  %v1803_v1 = vor.u32 1.1754944e-38, %v1802_v17 }
 0x88f   : > { %v1897_v5 = vmul.f32 %v3171_v62, %v3935_v22  ;;  %v3173_v25 = vpop.eup %3172  ;;  %vm1902_vm14 = vweird.f32 %v3171_v62  ;;  %v1808_v4 = vsub.f32 1.0, %v1807_v6  ;;  %v1795_v38 = vadd.f32 %v3940_v35, %v1794_v23 }
 0x890   : > { %v1884_v7 = vmul.f32 %v3167_v49, %v1883_v19  ;;  %v4011_v32 = vadd.f32 1.0, %v3173_v25  ;;  %vm1903_vm0 = vmor %vm1901_vm15, %vm1902_vm14  ;;  %v1914_v47 = vmul.f32 %v1849_v34, %v3861_v15  ;;  %v1862_v50 = vand.u32 2147483648, %v3974_v61  ;;  %v3103_v25 = vld [vmem:[%s754_s16] ss:$0 sm:$0xff]  ;;  %s4167_s16 = sld [smem:[#allocation23_spill]] (!%p2512_p7) }
 0x891   : > { %v1898_v12 = vsub.f32 1.0, %v1897_v5  ;;  %v1809_v44 = vmul.f32 %v3966_v55, %v1808_v4  ;;  %v1799_v57 = vsel %vm4028_vm3, %v3940_v35, %v1795_v38  ;;  %v1860_v15 = vand.u32 2147483647, %v3974_v61 }
 0x892   : > { %v1885_v24 = vadd.f32 %v3167_v49, %v1884_v7  ;;  %v3175_v37 = vpop.eup %3174  ;;  %3176 = vrcp.f32 %v4011_v32  ;;  %vm1801_vm5 = vcmp.eq.f32.partialorder %v1800_v43, 8.507059e+37  ;;  %vm1812_vm6 = vweird.f32 %v3966_v55 }
 0x893   : > { %v1899_v28 = vmul.f32 %v3171_v62, %v1898_v12  ;;  %v1852_v14 = vmul.f32 %v3175_v37, %v3974_v61  ;;  %vm1857_vm4 = vweird.f32 %v3175_v37  ;;  %v1810_v58 = vadd.f32 %v3966_v55, %v1809_v44 }
 0x894   : > { %v1889_v31 = vsel %vm1888_vm13, %v3167_v49, %v1885_v24  ;;  %vm1856_vm7 = vweird.f32 %v3974_v61  ;;  %vm1811_vm8 = vweird.f32 %v3929_v29  ;;  %v1863_v63 = vor.u32 1.1754944e-38, %v1862_v50 }
 0x895   : > { %v1894_v21 = vsel %vm3998_vm12, %v1893_v27, %v1889_v31  ;;  %v1900_v36 = vadd.f32 %v3171_v62, %v1899_v28  ;;  %v1853_v49 = vsub.f32 1.0, %v1852_v14  ;;  %vm1858_vm9 = vmor %vm1856_vm7, %vm1857_vm4  ;;  %v1815_v0 = vand.u32 2147483647, %v3929_v29 }
 0x896   : > { %v1917_v39 = vmul.f32 %v1894_v21, %v3883_v40  ;;  %vm4044_vm10 = vmor %vm1811_vm8, %vm1812_vm6  ;;  %vm1861_vm11 = vcmp.eq.f32.partialorder %v1860_v15, 8.507059e+37  ;;  %v1877_v6 = vand.u32 2147483648, %v4011_v32  ;;  %v1875_v9 = vand.u32 2147483647, %v4011_v32 }
 0x897   : > { %v1904_v22 = vsel %vm1903_vm0, %v3171_v62, %v1900_v36  ;;  %v1854_v52 = vmul.f32 %v3175_v37, %v1853_v49  ;;  %v1817_v62 = vand.u32 2147483648, %v3929_v29  ;;  %v1814_v60 = vsel %vm4044_vm10, %v3966_v55, %v1810_v58 }
 0x898   : > { %v1921_v45 = vpack.c.bf16 %v1917_v39, %v1913_v16  ;;  %v1909_v46 = vsel %vm1906_vm2, %v1908_v42, %v1904_v22  ;;  %v3177_v53 = vpop.eup %3176  ;;  %vm1816_vm13 = vcmp.eq.f32.partialorder %v1815_v0, 8.507059e+37  ;;  %vm1871_vm14 = vweird.f32 %v4011_v32 }
 0x899   : > { %v1918_v48 = vmul.f32 %v1909_v46, %v3885_v41  ;;  %v1804_v41 = vsel %vm1801_vm5, %v1803_v1, %v1799_v57  ;;  %v1855_v13 = vadd.f32 %v3175_v37, %v1854_v52  ;;  %v1867_v35 = vmul.f32 %v3177_v53, %v4011_v32 }
 0x89a   : > { %2219 = vmatmul.bf16.vlgmr.msra.gmra.mxu0 %v1921_v45  ;;  %v1911_v61 = vmul.f32 %v1804_v41, %v3873_v33  ;;  %vm1872_vm12 = vweird.f32 %v3177_v53  ;;  %v1818_v11 = vor.u32 1.1754944e-38, %v1817_v62  ;;  %v1878_v18 = vor.u32 1.1754944e-38, %v1877_v6 }
 0x89b   : > { %v1922_v56 = vpack.c.bf16 %v1918_v48, %v1914_v47  ;;  %v1859_v19 = vsel %vm1858_vm9, %v3175_v37, %v1855_v13  ;;  %v1868_v17 = vsub.f32 1.0, %v1867_v35  ;;  %vm1873_vm15 = vmor %vm1871_vm14, %vm1872_vm12  ;;  %vm1876_vm0 = vcmp.eq.f32.partialorder %v1875_v9, 8.507059e+37 }
 0x89c   : > { %v1864_v5 = vsel %vm1861_vm11, %v1863_v63, %v1859_v19  ;;  %v1819_v33 = vsel %vm1816_vm13, %v1818_v11, %v1814_v60 }
 0x89d   : > { %2233 = vmatmul.bf16.vlgmr.msrb.gmra.mxu1 %v1922_v56  ;;  %v1915_v7 = vmul.f32 %v1864_v5, %v3897_v59  ;;  %v1869_v8 = vmul.f32 %v3177_v53, %v1868_v17  ;;  %v1912_v59 = vmul.f32 %v1819_v33, %v3877_v26 }
 0x89f   : > { %v1919_v29 = vpack.c.bf16 %v1915_v7, %v1911_v61  ;;  %v1870_v12 = vadd.f32 %v3177_v53, %v1869_v8 }
 0x8a1   : > { %v1874_v55 = vsel %vm1873_vm15, %v3177_v53, %v1870_v12  ;;  %2191 = vmatmul.bf16.vlgmr.msra.gmra.mxu2 %v1919_v29 }
 0x8a2   : > { %v1879_v23 = vsel %vm1876_vm0, %v1878_v18, %v1874_v55 }
 0x8a3   : > { %v1916_v24 = vmul.f32 %v1879_v23, %v3923_v20 }
 0x8a5   : > { %v1920_v3 = vpack.c.bf16 %v1916_v24, %v1912_v59 }
 0x8a7   : > { %2205 = vmatmul.bf16.vlgmr.msrb.gmra.mxu3 %v1920_v3 }
 0x917   : > { %v2220_v30 = vpop.f32.mrf.mxu0 }
 0x91a   : > { %v2234_v32 = vpop.f32.mrf.mxu1 }
 0x91f   : > { %v2222_v38 = vpop.f32.mrf.mxu0 }
 0x922   : > { %v2236_v42 = vpop.f32.mrf.mxu1 }
 0x924   : > { %v2192_v27 = vpop.f32.mrf.mxu2 }
 0x925   : > { %v2193_v28 = vadd.f32 %v3103_v25, %v2192_v27 }
 0x92a   : > { %v2206_v4 = vpop.f32.mrf.mxu3 }
 0x92b   : > { %v2207_v31 = vadd.f32 %v2206_v4, %v2193_v28 }
 0x92c   : > { %v2194_v16 = vpop.f32.mrf.mxu2 }
 0x92d   : > { %v2221_v34 = vadd.f32 %v2220_v30, %v2207_v31  ;;  %v2195_v36 = vadd.f32 %v3103_v25, %v2194_v16 }
 0x92f   : > { %v2235_v21 = vadd.f32 %v2234_v32, %v2221_v34 }
 0x931   : > { %v2239_v26 = vadd.f32 %v2235_v21, %v3753_v51 }
 0x932   : > { %v2208_v20 = vpop.f32.mrf.mxu3 }
 0x933   : > { %2241 = vst [vmem:[#allocation2] sm:$0xff] %v2239_v26  ;;  %v2209_v37 = vadd.f32 %v2208_v20, %v2195_v36 }
 0x935   : > { %v2223_v39 = vadd.f32 %v2222_v38, %v2209_v37 }
 0x937   : > { %v2237_v22 = vadd.f32 %v2236_v42, %v2223_v39  ;;  %2245 = sbr.rel (%p2512_p7) target bundleno = 2366 (0x93e), region = 100 }
 0x939   : > { %v2240_v14 = vadd.f32 %v2237_v22, %v3757_v54 }
 0x93b   : > { %2242 = vst [vmem:[#allocation2 + $0x8] sm:$0xff] %v2240_v14 }
 0x93c   : > { %2246 = vst [vmem:[%s4167_s16] sm:$0xff] %v2239_v26 }
 0x93d   : > { %2247 = vst [vmem:[%s4167_s16 + $0x8] sm:$0xff] %v2240_v14 }
 0x93e PF: > { %p2914_p11 = scmp.ne.s32.totalorder %s3436_s28, 1 }
 0x93f   : > { %s4168_s21 = sld [smem:[#allocation21_spill]] (!%p2914_p11) }
 0x940   : > { %2251 = sbr.rel (%p2914_p11) target bundleno = 2648 (0xa58), region = 104  ;;  %s4169_s20 = sld [smem:[#allocation22_spill]] (!%p2914_p11) }
 0x945   : > { %2252 = vadd.xlane.f32.xlu0 %v2239_v26  ;;  %v3178_v63 = vld [vmem:[%s4168_s21] ss:$0 sm:$0xff] }
 0x946   : > { %v3179_v19 = vld [vmem:[%s4169_s20] ss:$0 sm:$0xff] }
 0x94d   : > { %2254 = vadd.xlane.f32.xlu0 %v2240_v14 }
 0x9b8   : > { %v2253_v51 = vpop.xlane.xlu0 %2252 }
 0x9b9   : > { %v2256_v54 = vmul.f32 %v2253_v51, %v3590_v10 }
 0x9bb   : > { %v2258_v43 = vsub.f32 %v2239_v26, %v2256_v54 }
 0x9bd   : > { %v2260_v44 = vmul.f32 %v2258_v43, %v2258_v43 }
 0x9bf   : > { %2262 = vadd.xlane.f32.xlu1 %v2260_v44 }
 0x9c0   : > { %v2255_v45 = vpop.xlane.xlu0 %2254 }
 0x9c1   : > { %v2257_v46 = vmul.f32 %v2255_v45, %v3590_v10 }
 0x9c3   : > { %v2259_v47 = vsub.f32 %v2240_v14, %v2257_v46 }
 0x9c5   : > { %v2261_v40 = vmul.f32 %v2259_v47, %v2259_v47 }
 0x9c7   : > { %2264 = vadd.xlane.f32.xlu1 %v2261_v40 }
 0xa32   : > { %v2263_v48 = vpop.xlane.xlu1 %2262 }
 0xa33   : > { %v2266_v49 = vmul.f32 %v2263_v48, %v3590_v10 }
 0xa35   : > { %v2268_v57 = vadd.f32 1e-05, %v2266_v49 }
 0xa37   : > { %3180 = vrsqrt.f32 %v2268_v57  ;;  %vm2276_vm2 = vweird.f32 %v2268_v57 }
 0xa3a   : > { %v2265_v1 = vpop.xlane.xlu1 %2264 }
 0xa3b   : > { %v2267_v50 = vmul.f32 %v2265_v1, %v3590_v10 }
 0xa3d   : > { %v3181_v56 = vpop.eup %3180  ;;  %v2269_v52 = vadd.f32 1e-05, %v2267_v50 }
 0xa3e   : > { %v2271_v15 = vmul.f32 %v3181_v56, %v2268_v57  ;;  %vm2277_vm1 = vweird.f32 %v3181_v56 }
 0xa3f   : > { %3182 = vrsqrt.f32 %v2269_v52  ;;  %vm2278_vm3 = vmor %vm2276_vm2, %vm2277_vm1  ;;  %vm2286_vm5 = vweird.f32 %v2269_v52 }
 0xa40   : > { %v2272_v53 = vmul.f32 %v3181_v56, %v2271_v15 }
 0xa42   : > { %v2273_v58 = vmul.f32 0.5, %v2272_v53 }
 0xa44   : > { %v2274_v41 = vsub.f32 1.5, %v2273_v58 }
 0xa45   : > { %v3183_v13 = vpop.eup %3182 }
 0xa46   : > { %v2275_v35 = vmul.f32 %v3181_v56, %v2274_v41  ;;  %v2281_v62 = vmul.f32 %v3183_v13, %v2269_v52  ;;  %vm2287_vm4 = vweird.f32 %v3183_v13 }
 0xa47   : > { %vm2288_vm6 = vmor %vm2286_vm5, %vm2287_vm4 }
 0xa48   : > { %v2279_v2 = vsel %vm2278_vm3, %v3181_v56, %v2275_v35  ;;  %v2282_v0 = vmul.f32 %v3183_v13, %v2281_v62 }
 0xa49   : > { %v2290_v10 = vmul.f32 %v2279_v2, %v2258_v43 }
 0xa4a   : > { %v2283_v17 = vmul.f32 0.5, %v2282_v0 }
 0xa4b   : > { %v2296_v61 = vmul.f32 %v3178_v63, %v2290_v10 }
 0xa4c   : > { %v2284_v60 = vsub.f32 1.5, %v2283_v17 }
 0xa4d   : > { %v2302_v5 = vadd.f32 %v3179_v19, %v2296_v61 }
 0xa4e   : > { %v2285_v6 = vmul.f32 %v3183_v13, %v2284_v60 }
 0xa4f   : > { %2304 = vst [vmem:[#allocation8] sm:$0xff] %v2302_v5 }
 0xa50   : > { %v2289_v7 = vsel %vm2288_vm6, %v3183_v13, %v2285_v6 }
 0xa51   : > { %v2291_v8 = vmul.f32 %v2289_v7, %v2259_v47 }
 0xa53   : > { %v2297_v9 = vmul.f32 %v3178_v63, %v2291_v8 }
 0xa55   : > { %v2303_v11 = vadd.f32 %v3179_v19, %v2297_v9 }
 0xa57   : > { %2305 = vst [vmem:[#allocation8 + $0x8] sm:$0xff] %v2303_v11 }
 0xa58 PF: > { %p3038_p2 = scmp.eq.s32.totalorder %s3436_s28, 1  ;;  %s3324_s14 = smov [#allocation8]  }
 0xa59   : > { %s2314_s6 = sshll.u32 %s3324_s14, 4  ;;  %s4170_s13 = sld [smem:[#allocation24_spill]]  ;;  %s2315_s6 = int_to_ptr.vmem [resolvable:$true] %s2314_s6 }
 0xa5a   : > { %s3325_s22 = smov 128   ;;  %s3326_s15 = smov 8  }
 0xa5f   : > { %s2316_s12 = sshll.u32 %s4170_s13, 4  ;;  %s2317_s12 = int_to_ptr.hbm [resolvable:$true] %s2316_s12 }
 0xa60   : > { %3027 = dma.vmem_to_hbm [thread:$0]  (%p3038_p2), %s2315_s6, 256, %s2317_s12, [#allocation5], %s3325_s22, %s3325_s22, %s3326_s15  }
 0xa61   : > { %3297 = dma.done.wait (%p3038_p2), [#allocation5], 256  }
 0xa62   : > { %3299 = vsyncadd (%p3038_p2), [#allocation5], 4294967040 }
 0xa63 PF: > { %s4171_s27 = sld [smem:[#allocation13_spill]]  ;;  %s4174_s24 = smov %s3306_s25 }
 0xa64   : > { %s4172_s4 = sld [smem:[#allocation12_spill]] }
 0xa65   : > { %s4173_s26 = sld [smem:[#allocation14_spill]] }
 0xa69   : > { %p32_p3 = scmp.ge.s32.totalorder %s4171_s27, 4  }
 0xa6a   : > { %s4175_s25 = smov %s4172_s4 }
 0xa6b   :  { %34 = sbr.rel (!%p32_p3) target bundleno = 17 (0x11), region = 184 }
 0xa70   :  { %2336 = vsyncpa [#allocation4], 1 }
 0xa71   :  { %2338 = vsyncpa [#allocation4 + $0x1], 1 }
 0xa72   :  { %2339 = vsyncpa [#allocation7], 1 }
 0xa73   :  { %2341 = vsyncpa [#allocation7 + $0x1], 1 }
 0xa74   :  { %2342 = vsyncpa [#allocation5], 1 }
 0xa75   :  { %2344 = vsyncpa [#allocation5 + $0x1], 1 }

// kernel: prompt_encoder_forward.4
= control target key start
LH: loop header
LB: loop body
LE: loop exit
PB: predicated region body
PF: predicated region fallthrough
CT: control target
= control target key end

     0   :  { %s10268_s0 = inlined_call_operand.vmem [shape: f32[16,256], index: 0, kind: input, shape index: {}]   ;;  %s10269_s1 = inlined_call_operand.vmem [shape: f32[16,16], index: 1, kind: input, shape index: {}]   ;;  %s10270_s2 = inlined_call_operand.vmem [shape: f32[2,1,256], index: 2, kind: input, shape index: {}]   ;;  %s10271_s3 = inlined_call_operand.hbm [shape: f32[2,1,256], index: 3, kind: input, shape index: {}]   ;;  %s10272_s4 = inlined_call_operand.hbm [shape: bf16[2,256,768], index: 4, kind: input, shape index: {}]   ;;  %s10273_s5 = inlined_call_operand.vmem [shape: f32[2,1,768], index: 5, kind: input, shape index: {}]   ;;  %s10274_s6 = inlined_call_operand.hbm [shape: bf16[2,256,256], index: 6, kind: input, shape index: {}]   ;;  %s10275_s7 = inlined_call_operand.hbm [shape: f32[2,1,256], index: 7, kind: input, shape index: {}]   ;;  %s10276_s8 = inlined_call_operand.hbm [shape: f32[2,1,256], index: 8, kind: input, shape index: {}]   ;;  %s10277_s9 = inlined_call_operand.hbm [shape: f32[2,1,256], index: 9, kind: input, shape index: {}]   ;;  %s10278_s10 = inlined_call_operand.hbm [shape: bf16[2,256,1024], index: 10, kind: input, shape index: {}]   ;;  %s10279_s11 = inlined_call_operand.vmem [shape: f32[2,1,1024], index: 11, kind: input, shape index: {}]   ;;  %s10280_s12 = inlined_call_operand.hbm [shape: bf16[2,1024,256], index: 12, kind: input, shape index: {}]   ;;  %s10281_s13 = inlined_call_operand.vmem [shape: f32[2,1,256], index: 13, kind: input, shape index: {}]   ;;  %s10282_s14 = inlined_call_operand.hbm [shape: f32[1,256], index: 14, kind: input, shape index: {}]   ;;  %s10283_s15 = inlined_call_operand.vmem [shape: f32[1,256], index: 15, kind: input, shape index: {}]   ;;  %s10284_s16 = inlined_call_operand.vmem [shape: f32[16,256], index: 16, kind: output, shape index: {0}]   ;;  %s10285_s17 = inlined_call_operand.vmem [shape: f32[16,256], index: 17, kind: output, shape index: {1}]  }
   0x1   :  { %10300 = sst [smem:[#allocation29_spill]] %s10268_s0 }
   0x2   :  { %10301 = sst [smem:[#allocation30_spill]] %s10269_s1 }
   0x3   :  { %10302 = sst [smem:[#allocation31_spill]] %s10270_s2 }
   0x4   :  { %10303 = sst [smem:[#allocation32_spill]] %s10271_s3 }
   0x5   :  { %10304 = sst [smem:[#allocation33_spill]] %s10272_s4 }
   0x6   :  { %10305 = sst [smem:[#allocation34_spill]] %s10273_s5 }
   0x7   :  { %10306 = sst [smem:[#allocation35_spill]] %s10274_s6 }
   0x8   :  { %10307 = sst [smem:[#allocation36_spill]] %s10279_s11 }
   0x9   :  { %10308 = sst [smem:[#allocation37_spill]] %s10281_s13 }
   0xa   :  { %10309 = sst [smem:[#allocation38_spill]] %s10282_s14 }
   0xb   :  { %10310 = sst [smem:[#allocation39_spill]] %s10283_s15 }
   0xc   :  { %10311 = sst [smem:[#allocation40_spill]] %s10284_s16 }
   0xd   :  { %10312 = sst [smem:[#allocation41_spill]] %s10285_s17 }
   0xe   :  { %23 = vsyncpa [#allocation4], 0 }
   0xf   :  { %25 = vsyncpa [#allocation4 + $0x1], 0 }
  0x10   :  { %26 = vsyncpa [#allocation6], 0 }
  0x11   :  { %28 = vsyncpa [#allocation6 + $0x1], 0 }
  0x12   :  { %29 = vsyncpa [#allocation9], 0 }
  0x13   :  { %31 = vsyncpa [#allocation9 + $0x1], 0 }
  0x14   :  { %32 = vsyncpa [#allocation12], 0 }
  0x15   :  { %34 = vsyncpa [#allocation12 + $0x1], 0 }
  0x16   :  { %35 = vsyncpa [#allocation15], 0 }
  0x17   :  { %37 = vsyncpa [#allocation15 + $0x1], 0  ;;  %s8122_s24 = smov 0   ;;  %s8124_s25 = smov 0  }
  0x18   :  { %s8126_s26 = smov 0   ;;  %s8128_s27 = smov 0  }
  0x19 LB: > { %10313 = sst [smem:[#allocation23_spill]] %s8011_s25  ;;  %s8141_s28 = sadd.s32 4294967295, %s8019_s27   ;;  %s8019_s27 = sphi %s8128_s27, %s10405_s27   ;;  %s8015_s26 = sphi %s8126_s26, %s10408_s26   ;;  %s8011_s25 = sphi %s8124_s25, %s10407_s25   ;;  %s8007_s24 = sphi %s8122_s24, %s10406_s24  }
  0x1a   : > { %10314 = sst [smem:[#allocation24_spill]] %s8015_s26  ;;  %s8144_s29 = sadd.s32 1, %s8019_s27  }
  0x1b   : > { %10315 = sst [smem:[#allocation25_spill]] %s8141_s28  ;;  %s115_s0 = ssub.s32 %s8019_s27, %s8144_s29 }
  0x1c   : > { %10316 = sst [smem:[#allocation26_spill]] %s8144_s29  ;;  %s118_s30 = sadd.s32 1, %s8015_s26 }
  0x1d   : > { %p116_p0 = scmp.eq.s32.totalorder %s115_s0, 0  ;;  %p125_p1 = scmp.ne.s32.totalorder %s8015_s26, %s8011_s25 }
  0x1e   : > { %p126_p2 = scmp.eq.s32.totalorder %s8019_s27, 0  ;;  %p131_p3 = scmp.ne.s32.totalorder %s8011_s25, %s8007_s24 }
  0x1f   : > { %s8154_s18 = scalar_select %p116_p0, %s8015_s26, %s118_s30  }
  0x20   : > { %p8156_p4 = por %p126_p2, %p125_p1  ;;  %p132_p5 = scmp.eq.s32.totalorder %s8141_s28, 0 }
  0x21   : > { %10317 = sst [smem:[#allocation27_spill]] %s8154_s18  ;;  %p5427_p6 = scmp.ge.s32.totalorder %s8019_s27, 1 }
  0x22   : > { %p486_p7 = scmp.lt.s32.totalorder %s8019_s27, 3  ;;  %p8165_p8 = por %p132_p5, %p131_p3 }
  0x23   : > { %p5428_p9 = scmp.ne.s32.totalorder %s8141_s28, 0  ;;  %s10322_s14 = sld [smem:[#allocation38_spill]] }
  0x24   : > { %s10319_s1 = scalar_select %p8165_p8, 1, 0 }
  0x25   : > { %p8170_p10 = pnand %p5427_p6, %p486_p7  ;;  %s8021_s24 = smov [#allocation16]  }
  0x26   : > { %10320 = sst [smem:[#allocation28_spill]] %s10319_s1  ;;  %s506_s0 = sshll.u32 %s8021_s24, 4  ;;  %s507_s0 = int_to_ptr.vmem [resolvable:$true] %s506_s0 }
  0x27   : > { %p7444_p11 = pneg %p8170_p10  ;;  %p7474_p13 = scmp.lt.s32.totalorder %s8019_s27, 2 }
  0x28   : > { %s8183_s30 = sand.u32 1, %s8015_s26   ;;  %s8186_s18 = sand.u32 1, %s8019_s27  }
  0x29   : > { %s504_s23 = sshll.u32 %s10322_s14, 4  ;;  %p7445_p12 = pnand %p7444_p11, %p132_p5  ;;  %s505_s23 = int_to_ptr.hbm [resolvable:$true] %s504_s23 }
  0x2a   : > { %p8190_p0 = pnand %p7474_p13, %p8156_p4  ;;  %s7420_s22 = smul.u32 768, %s8183_s30 }
  0x2b   : > { %7447 = dma.hbm_to_vmem [thread:$0]  (!%p7445_p12), %s505_s23, 32, %s507_s0, [#allocation15]  }
  0x2c   : > { %s7421_s24 = smul.u32 768, %s8019_s27  ;;  %s8197_s14 = sshll.u32 %s8183_s30, 1 }
  0x2d   : > { %s10324_s4 = sld [smem:[#allocation33_spill]]  ;;  %s550_s15 = scalar_lea.vmem [#allocation5], %s7420_s22 }
  0x2e   : > { %s558_s16 = sshll.u32 %s550_s15, 4  ;;  %s8203_s19 = sshll.u32 %s8019_s27, 1  ;;  %s559_s16 = int_to_ptr.vmem [resolvable:$true] %s558_s16 }
  0x2f   : > { %p8208_p2 = pneg %p8190_p0 }
  0x33   : > { %s555_s26 = scalar_lea.hbm %s10324_s4, %s7421_s24 }
  0x34   : > { %s556_s13 = sshll.u32 %s555_s26, 4  ;;  %s7732_s26 = scalar_lea.hbm %s10324_s4, 1536  ;;  %s557_s13 = int_to_ptr.hbm [resolvable:$true] %s556_s13 }
  0x35   : > { %s7725_s5 = sshra.s32 %s557_s13, 4  ;;  %s7726_s5 = int_to_ptr.hbm [resolvable:$true] %s7725_s5 }
  0x36   : > { %s7727_s23 = scalar_lea.hbm %s7726_s5, 768  ;;  %p7733_p6 = scmp.lt.s32.totalorder %s7726_s5, %s10324_s4 }
  0x37   : > { %p7728_p1 = scmp.ne.s32.totalorder %s7726_s5, %s7727_s23  ;;  %p7734_p7 = scmp.lt.s32.totalorder %s7732_s26, %s7727_s23 }
  0x39   : > { %p7730_p3 = pnand %p8208_p2, %p7728_p1  ;;  %p7735_p11 = por %p7734_p7, %p7733_p6 }
  0x3b   : > { %p7731_p4 = pneg %p7730_p3 }
  0x3d   : > { %p7736_p12 = pnand %p7735_p11, %p7731_p4 }
  0x3f   : > { %7739 = shalt.err (!%p7736_p12)
}
  0x40   : > { %s8022_s24 = smov 384   ;;  %s8023_s11 = smov 24  }
  0x41   : > { %s10326_s2 = scalar_lea.sflag [#allocation6], %s8186_s18  ;;  %s605_s29 = scalar_lea.hbm %s10275_s7, %s8203_s19 }
  0x42   : > { %7454 = dma.hbm_to_vmem [thread:$0]  (!%p8190_p0), %s557_s13, 12288, %s559_s16, %s10326_s2, %s8022_s24, %s8022_s24, %s8023_s11  }
  0x43   : > { %s601_s5 = scalar_lea.vmem [#allocation8], %s8197_s14  ;;  %s607_s26 = sshll.u32 %s605_s29, 4  ;;  %s608_s26 = int_to_ptr.hbm [resolvable:$true] %s607_s26 }
  0x44   : > { %s609_s23 = sshll.u32 %s601_s5, 4  ;;  %s10299_s22 = scalar_lea.sflag [#allocation9], %s8186_s18  ;;  %s610_s23 = int_to_ptr.vmem [resolvable:$true] %s609_s23 }
  0x45   : > { %s7755_s4 = sshra.s32 %s608_s26, 4  ;;  %s7762_s2 = scalar_lea.hbm %s10275_s7, 4  ;;  %s7756_s4 = int_to_ptr.hbm [resolvable:$true] %s7755_s4 }
  0x46   : > { %s7757_s28 = scalar_lea.hbm %s7756_s4, 2  ;;  %p7763_p4 = scmp.lt.s32.totalorder %s7756_s4, %s10275_s7 }
  0x47   : > { %p7758_p13 = scmp.ne.s32.totalorder %s7756_s4, %s7757_s28  ;;  %p7764_p6 = scmp.lt.s32.totalorder %s7762_s2, %s7757_s28 }
  0x49   : > { %p7760_p1 = pnand %p7758_p13, %p8208_p2  ;;  %p7765_p7 = por %p7764_p6, %p7763_p4 }
  0x4b   : > { %p7761_p3 = pneg %p7760_p1 }
  0x4d   : > { %p7766_p11 = pnand %p7765_p7, %p7761_p3 }
  0x4f   : > { %7769 = shalt.err (!%p7766_p11)
}
  0x50   : > { %7460 = dma.hbm_to_vmem [thread:$0]  (!%p8190_p0), %s608_s26, 32, %s610_s23, %s10299_s22  }
  0x51   : > { %s643_s1 = scalar_lea.hbm %s10277_s9, %s8203_s19  ;;  %s639_s15 = scalar_lea.vmem [#allocation11], %s8197_s14 }
  0x52   : > { %s645_s24 = sshll.u32 %s643_s1, 4  ;;  %s647_s4 = sshll.u32 %s639_s15, 4  ;;  %s646_s24 = int_to_ptr.hbm [resolvable:$true] %s645_s24  ;;  %s648_s4 = int_to_ptr.vmem [resolvable:$true] %s647_s4 }
  0x53   : > { %s10298_s28 = scalar_lea.sflag [#allocation12], %s8186_s18  ;;  %s7785_s17 = sshra.s32 %s646_s24, 4  ;;  %s7786_s17 = int_to_ptr.hbm [resolvable:$true] %s7785_s17 }
  0x54   : > { %s7787_s29 = scalar_lea.hbm %s7786_s17, 2  ;;  %s7792_s23 = scalar_lea.hbm %s10277_s9, 4 }
  0x55   : > { %p7788_p12 = scmp.ne.s32.totalorder %s7786_s17, %s7787_s29  ;;  %p7793_p3 = scmp.lt.s32.totalorder %s7786_s17, %s10277_s9 }
  0x56   : > { %p7794_p4 = scmp.lt.s32.totalorder %s7792_s23, %s7787_s29 }
  0x57   : > { %p7790_p13 = pnand %p7788_p12, %p8208_p2 }
  0x58   : > { %p7795_p6 = por %p7794_p4, %p7793_p3 }
  0x59   : > { %p7791_p1 = pneg %p7790_p13 }
  0x5b   : > { %p7796_p7 = pnand %p7795_p6, %p7791_p1 }
  0x5d   : > { %7799 = shalt.err (!%p7796_p7)
}
  0x5e   : > { %7466 = dma.hbm_to_vmem [thread:$0]  (!%p8190_p0), %s646_s24, 32, %s648_s4, %s10298_s28  }
  0x5f   : > { %s10327_s3 = sld [smem:[#allocation32_spill]]  ;;  %s531_s1 = scalar_lea.vmem [#allocation3], %s8197_s14 }
  0x60   : > { %s539_s15 = sshll.u32 %s531_s1, 4  ;;  %s5433_s29 = sshll.u32 %s8183_s30, 8  ;;  %s540_s15 = int_to_ptr.vmem [resolvable:$true] %s539_s15 }
  0x61   : > { %s528_s5 = scalar_lea.sflag [#allocation4], %s8183_s30 }
  0x65   : > { %s535_s25 = scalar_lea.hbm %s10327_s3, %s8203_s19  ;;  %s7822_s4 = scalar_lea.hbm %s10327_s3, 4 }
  0x66   : > { %s537_s17 = sshll.u32 %s535_s25, 4  ;;  %s538_s17 = int_to_ptr.hbm [resolvable:$true] %s537_s17 }
  0x67   : > { %s7815_s2 = sshra.s32 %s538_s17, 4  ;;  %s7816_s2 = int_to_ptr.hbm [resolvable:$true] %s7815_s2 }
  0x68   : > { %s7817_s23 = scalar_lea.hbm %s7816_s2, 2  ;;  %p7823_p1 = scmp.lt.s32.totalorder %s7816_s2, %s10327_s3 }
  0x69   : > { %p7818_p11 = scmp.ne.s32.totalorder %s7816_s2, %s7817_s23  ;;  %p7824_p3 = scmp.lt.s32.totalorder %s7822_s4, %s7817_s23 }
  0x6b   : > { %p7820_p12 = pnand %p7818_p11, %p8208_p2  ;;  %p7825_p4 = por %p7824_p3, %p7823_p1 }
  0x6d   : > { %p7821_p13 = pneg %p7820_p12 }
  0x6f   : > { %p7826_p6 = pnand %p7825_p4, %p7821_p13 }
  0x71   : > { %7829 = shalt.err (!%p7826_p6)
}
  0x72   : > { %7451 = dma.hbm_to_vmem [thread:$0]  (!%p8190_p0), %s538_s17, 32, %s540_s15, %s528_s5  }
  0x73   : > { %s7033_s16 = sshll.u32 %s8019_s27, 8  ;;  %s10328_s6 = sld [smem:[#allocation35_spill]] }
  0x74   : > { %s579_s26 = scalar_lea.vmem [#allocation7], %s5433_s29 }
  0x75   : > { %s587_s24 = sshll.u32 %s579_s26, 4  ;;  %s588_s24 = int_to_ptr.vmem [resolvable:$true] %s587_s24 }
  0x79   : > { %s584_s28 = scalar_lea.hbm %s10328_s6, %s7033_s16  ;;  %s7852_s15 = scalar_lea.hbm %s10328_s6, 512 }
  0x7a   : > { %s585_s22 = sshll.u32 %s584_s28, 4  ;;  %s586_s22 = int_to_ptr.hbm [resolvable:$true] %s585_s22 }
  0x7b   : > { %s7845_s2 = sshra.s32 %s586_s22, 4  ;;  %s7846_s2 = int_to_ptr.hbm [resolvable:$true] %s7845_s2 }
  0x7c   : > { %s7847_s23 = scalar_lea.hbm %s7846_s2, 256  ;;  %p7853_p13 = scmp.lt.s32.totalorder %s7846_s2, %s10328_s6 }
  0x7d   : > { %p7848_p7 = scmp.ne.s32.totalorder %s7846_s2, %s7847_s23  ;;  %p7854_p1 = scmp.lt.s32.totalorder %s7852_s15, %s7847_s23 }
  0x7f   : > { %p7850_p11 = pnand %p7848_p7, %p8208_p2  ;;  %p7855_p3 = por %p7854_p1, %p7853_p13 }
  0x81   : > { %p7851_p12 = pneg %p7850_p11 }
  0x83   : > { %p7856_p4 = pnand %p7855_p3, %p7851_p12 }
  0x85   : > { %7859 = shalt.err (!%p7856_p4)
}
  0x86   : > { %s8024_s28 = smov 128   ;;  %s8025_s29 = smov 8  }
  0x87   : > { %s10329_s13 = scalar_lea.sflag [#allocation6], %s8186_s18  ;;  %s624_s1 = scalar_lea.hbm %s10276_s8, %s8203_s19 }
  0x88   : > { %7457 = dma.hbm_to_vmem [thread:$0]  (!%p8190_p0), %s586_s22, 4096, %s588_s24, %s10329_s13, %s8024_s28, %s8024_s28, %s8025_s29  }
  0x89   : > { %s620_s26 = scalar_lea.vmem [#allocation10], %s8197_s14  ;;  %s626_s23 = sshll.u32 %s624_s1, 4  ;;  %s627_s23 = int_to_ptr.hbm [resolvable:$true] %s626_s23 }
  0x8a   : > { %s628_s2 = sshll.u32 %s620_s26, 4  ;;  %s5442_s4 = sshll.u32 %s8183_s30, 10  ;;  %s629_s2 = int_to_ptr.vmem [resolvable:$true] %s628_s2 }
  0x8b   : > { %s7875_s11 = sshra.s32 %s627_s23, 4  ;;  %s7882_s22 = scalar_lea.hbm %s10276_s8, 4  ;;  %s7876_s11 = int_to_ptr.hbm [resolvable:$true] %s7875_s11 }
  0x8c   : > { %s7877_s15 = scalar_lea.hbm %s7876_s11, 2  ;;  %p7883_p12 = scmp.lt.s32.totalorder %s7876_s11, %s10276_s8 }
  0x8d   : > { %p7878_p6 = scmp.ne.s32.totalorder %s7876_s11, %s7877_s15  ;;  %p7884_p13 = scmp.lt.s32.totalorder %s7882_s22, %s7877_s15 }
  0x8f   : > { %p7880_p7 = pnand %p7878_p6, %p8208_p2  ;;  %p7885_p1 = por %p7884_p13, %p7883_p12 }
  0x91   : > { %p7881_p11 = pneg %p7880_p7 }
  0x93   : > { %p7886_p3 = pnand %p7885_p1, %p7881_p11 }
  0x95   : > { %7889 = shalt.err (!%p7886_p3)
}
  0x96   : > { %s10330_s14 = scalar_lea.sflag [#allocation9], %s8186_s18  ;;  %s7034_s19 = sshll.u32 %s8019_s27, 10 }
  0x97   : > { %7463 = dma.hbm_to_vmem [thread:$0]  (!%p8190_p0), %s627_s23, 32, %s629_s2, %s10330_s14  }
  0x98   : > { %s663_s1 = scalar_lea.hbm %s10278_s10, %s7034_s19  ;;  %s658_s26 = scalar_lea.vmem [#allocation13], %s5442_s4 }
  0x99   : > { %s666_s11 = sshll.u32 %s658_s26, 4  ;;  %s664_s15 = sshll.u32 %s663_s1, 4  ;;  %s667_s11 = int_to_ptr.vmem [resolvable:$true] %s666_s11  ;;  %s665_s15 = int_to_ptr.hbm [resolvable:$true] %s664_s15 }
  0x9a   : > { %s7905_s17 = sshra.s32 %s665_s15, 4  ;;  %s7912_s27 = scalar_lea.hbm %s10278_s10, 2048  ;;  %s7906_s17 = int_to_ptr.hbm [resolvable:$true] %s7905_s17 }
  0x9b   : > { %s7907_s5 = scalar_lea.hbm %s7906_s17, 1024  ;;  %p7913_p11 = scmp.lt.s32.totalorder %s7906_s17, %s10278_s10 }
  0x9c   : > { %p7908_p4 = scmp.ne.s32.totalorder %s7906_s17, %s7907_s5  ;;  %p7914_p12 = scmp.lt.s32.totalorder %s7912_s27, %s7907_s5 }
  0x9e   : > { %p7910_p6 = pnand %p7908_p4, %p8208_p2  ;;  %p7915_p13 = por %p7914_p12, %p7913_p11 }
  0xa0   : > { %p7911_p7 = pneg %p7910_p6 }
  0xa2   : > { %p7916_p1 = pnand %p7915_p13, %p7911_p7 }
  0xa4   : > { %7919 = shalt.err (!%p7916_p1)
}
  0xa5   : > { %s8026_s13 = smov 512   ;;  %s8027_s14 = smov 32  }
  0xa6   : > { %s10331_s16 = scalar_lea.sflag [#allocation12], %s8186_s18  ;;  %s692_s26 = scalar_lea.hbm %s10280_s12, %s7034_s19 }
  0xa7   : > { %7469 = dma.hbm_to_vmem [thread:$0]  (!%p8190_p0), %s665_s15, 16384, %s667_s11, %s10331_s16, %s8026_s13, %s8026_s13, %s8027_s14  }
  0xa8   : > { %s693_s22 = sshll.u32 %s692_s26, 4  ;;  %s687_s17 = scalar_lea.vmem [#allocation14], %s5442_s4  ;;  %s694_s22 = int_to_ptr.hbm [resolvable:$true] %s693_s22 }
  0xa9   : > { %s695_s5 = sshll.u32 %s687_s17, 4  ;;  %s684_s2 = scalar_lea.sflag [#allocation15], %s8186_s18  ;;  %s696_s5 = int_to_ptr.vmem [resolvable:$true] %s695_s5 }
  0xaa   : > { %s7935_s27 = sshra.s32 %s694_s22, 4  ;;  %s7942_s15 = scalar_lea.hbm %s10280_s12, 2048  ;;  %s7936_s27 = int_to_ptr.hbm [resolvable:$true] %s7935_s27 }
  0xab   : > { %s7937_s23 = scalar_lea.hbm %s7936_s27, 1024  ;;  %p7943_p7 = scmp.lt.s32.totalorder %s7936_s27, %s10280_s12 }
  0xac   : > { %p7938_p3 = scmp.ne.s32.totalorder %s7936_s27, %s7937_s23  ;;  %p7944_p11 = scmp.lt.s32.totalorder %s7942_s15, %s7937_s23 }
  0xae   : > { %p7940_p4 = pnand %p7938_p3, %p8208_p2  ;;  %p7945_p12 = por %p7944_p11, %p7943_p7 }
  0xb0   : > { %p7941_p6 = pneg %p7940_p4 }
  0xb2   : > { %p7946_p13 = pnand %p7945_p12, %p7941_p6 }
  0xb4   : > { %7949 = shalt.err (!%p7946_p13)
}
  0xb5   : > { %7472 = dma.hbm_to_vmem [thread:$0]  (!%p8190_p0), %s694_s22, 16384, %s696_s5, %s684_s2, %s8024_s28, %s8024_s28, %s8025_s29  }
  0xb6   : > { %714 = sbr.rel (%p8170_p10) target bundleno = 2706 (0xa92), region = 84  ;;  %s10332_s18 = sld [smem:[#allocation23_spill]] (!%p8170_p10) }
  0xbc   : > { %s716_s0 = sand.u32 1, %s10332_s18  }
  0xbd   : > { %s8354_s4 = sshll.u32 %s716_s0, 1  ;;  %s717_s14 = scalar_lea.sflag [#allocation4], %s716_s0 }
  0xbe   : > { %7982 = dma.done.wait (%p8165_p8), %s717_s14, 32  }
  0xbf   : > { %7984 = vsyncadd (%p8165_p8), %s717_s14, 4294967264  ;;  %s10334_s21 = sld [smem:[#allocation25_spill]]  ;;  %s7422_s28 = smul.u32 768, %s716_s0 }
  0xc1   : > { %s8362_s20 = scalar_lea.vmem [#allocation5], %s7422_s28 }
  0xc5   : > { %s726_s25 = sand.u32 1, %s10334_s21  }
  0xc6   : > { %s727_s29 = scalar_lea.sflag [#allocation6], %s726_s25 }
  0xc7   : > { %7986 = dma.done.wait (%p8165_p8), %s727_s29, 16384  }
  0xc8   : > { %7988 = vsyncadd (%p8165_p8), %s727_s29, 4294950912  ;;  %s5450_s1 = sshll.u32 %s716_s0, 8  ;;  %s747_s22 = scalar_lea.sflag [#allocation9], %s726_s25 }
  0xc9   : > { %s8368_s26 = scalar_lea.vmem [#allocation7], %s5450_s1 }
  0xca   : > { %7990 = dma.done.wait (%p8165_p8), %s747_s22, 64  }
  0xcb   : > { %7992 = vsyncadd (%p8165_p8), %s747_s22, 4294967232  ;;  %s767_s2 = scalar_lea.sflag [#allocation12], %s726_s25 }
  0xcc   : > { %7994 = dma.done.wait (%p8165_p8), %s767_s2, 16416  }
  0xcd   : > { %7996 = vsyncadd (%p8165_p8), %s767_s2, 4294950880  ;;  %s5454_s23 = sshll.u32 %s716_s0, 10  ;;  %s787_s11 = scalar_lea.sflag [#allocation15], %s726_s25 }
  0xce   : > { %s8381_s24 = scalar_lea.vmem [#allocation13], %s5454_s23  ;;  %s8383_s15 = scalar_lea.vmem [#allocation14], %s5454_s23 }
  0xcf   : > { %7998 = dma.done.wait (%p8165_p8), %s787_s11, 16384  }
  0xd0   : > { %8000 = vsyncadd (%p8165_p8), %s787_s11, 4294950912 }
  0xd1   : > { %8002 = dma.done.wait (%p132_p5), [#allocation15], 32  }
  0xd2   : > { %8004 = vsyncadd (%p132_p5), [#allocation15], 4294967264  ;;  %p893_p10 = scmp.lt.s32.totalorder %s10334_s21, 1  ;;  %s10335_s25 = sld [smem:[#allocation31_spill]] }
  0xd3   : > { %s10336_s22 = sld [smem:[#allocation34_spill]] }
  0xd4   : > { %s894_s13 = scalar_select %p893_p10, %s10334_s21, 1 }
  0xd5   : > { %s10337_s27 = sld [smem:[#allocation36_spill]] }
  0xd6   : > { %s5457_s19 = sshll.u32 %s894_s13, 1  ;;  %s7423_s18 = smul.u32 6, %s894_s13 }
  0xd7   : > { %s5458_s29 = sshll.u32 %s894_s13, 3  ;;  %s10338_s3 = sld [smem:[#allocation37_spill]] }
  0xd8   : > { %s8398_s28 = scalar_lea.vmem %s10335_s25, %s5457_s19  ;;  %s10339_s14 = sld [smem:[#allocation29_spill]] (!%p5428_p9) }
  0xd9   : > { %s8403_s2 = scalar_lea.vmem %s10336_s22, %s7423_s18  ;;  %913 = sbr.rel (%p5428_p9) target bundleno = 227 (0xe3), region = 124 }
  0xdb   : > { %s8408_s5 = scalar_lea.vmem %s10337_s27, %s5458_s29 }
  0xdd   : > { %s8413_s6 = scalar_lea.vmem %s10338_s3, %s5457_s19 }
  0xde   : > { %v914_v0 = vld [vmem:[%s10339_s14] sm:$0xff]  ;;  %v915_v1 = vld [vmem:[%s10339_s14 + $0x8] sm:$0xff]  ;;  %v916_v2 = vld [vmem:[%s10339_s14 + $0x10] sm:$0xff] }
  0xdf   : > { %918 = vst [vmem:[#allocation2 + $0x10] sm:$0xff] %v914_v0  ;;  %v917_v3 = vld [vmem:[%s10339_s14 + $0x18] sm:$0xff] }
  0xe0   : > { %919 = vst [vmem:[#allocation2] sm:$0xff] %v915_v1 }
  0xe1   : > { %920 = vst [vmem:[#allocation2 + $0x18] sm:$0xff] %v916_v2 }
  0xe2   : > { %921 = vst [vmem:[#allocation2 + $0x8] sm:$0xff] %v917_v3 }
  0xe3 PF: > { %v8028_v10 = vmov 256.0   ;;  %v5631_v14 = vld [vmem:[%s8362_s20 + $0x150] sm:$0xf]  ;;  %v7081_v15 = vld [vmem:[%s8362_s20 + $0x164] sm:$0xf0]  ;;  %s10340_s3 = scalar_lea.vmem [#allocation3], %s8354_s4 }
  0xe4   : > { %7549 = vrcp.f32 %v8028_v10  ;;  %v5823_v16 = vld [vmem:[%s8362_s20 + $0x2d0] sm:$0xf]  ;;  %v5632_v17 = vor.u32 %v7081_v15, %v5631_v14  ;;  %v7129_v18 = vld [vmem:[%s8362_s20 + $0x2e4] sm:$0xf0]  ;;  %v7078_v19 = vld [vmem:[%s8362_s20 + $0x154] sm:$0xf] }
  0xe5   : > { %v5633_v20 = vld [vmem:[%s8362_s20 + $0x168] sm:$0xf0]  ;;  %v5824_v21 = vor.u32 %v7129_v18, %v5823_v16  ;;  %v7126_v23 = vld [vmem:[%s8362_s20 + $0x2d4] sm:$0xf]  ;;  %v5607_v25 = vld [vmem:[%s8362_s20 + $0x120] sm:$0xf] }
  0xe6   : > { %v8429_v4 = vld [vmem:[#allocation2 + $0x10] sm:$0xff]  ;;  %v5636_v22 = vor.u32 %v7078_v19, %v5633_v20  ;;  %1595 = vmatpush.bf16.msra.mxu0 %v5632_v17  ;;  %v7075_v27 = vld [vmem:[%s8362_s20 + $0x134] sm:$0xf0]  ;;  %v5799_v28 = vld [vmem:[%s8362_s20 + $0x2a0] sm:$0xf]  ;;  %s8029_s21 = smov 32  }
  0xe7   : > { %v8431_v5 = vld [vmem:[#allocation2] sm:$0xff]  ;;  %v5825_v24 = vld [vmem:[%s8362_s20 + $0x2e8] sm:$0xf0]  ;;  %v7123_v29 = vld [vmem:[%s8362_s20 + $0x2b4] sm:$0xf0]  ;;  %1609 = vmatpush.bf16.msra.mxu1 %v5824_v21  ;;  %v5608_v30 = vor.u32 %v7075_v27, %v5607_v25  ;;  %vm1768_vm7 = vcmask 261120  }
  0xe8   : > { %v926_v6 = vadd.f32 %v8431_v5, %v8429_v4  ;;  %v8435_v7 = vld [vmem:[#allocation2 + $0x18] sm:$0xff]  ;;  %v5828_v26 = vor.u32 %v7126_v23, %v5825_v24  ;;  %1623 = vmatpush.bf16.msra.mxu2 %v5636_v22  ;;  %v5800_v31 = vor.u32 %v7123_v29, %v5799_v28  ;;  %v7072_v32 = vld [vmem:[%s8362_s20 + $0x124] sm:$0xf]  ;;  %v5609_v33 = vld [vmem:[%s8362_s20 + $0x138] sm:$0xf0]  ;;  %s8031_s17 = smov 64  }
  0xe9   : > { %v8437_v8 = vld [vmem:[#allocation2 + $0x8] sm:$0xff]  ;;  %v5612_v36 = vor.u32 %v7072_v32, %v5609_v33  ;;  %v5801_v37 = vld [vmem:[%s8362_s20 + $0x2b8] sm:$0xf0]  ;;  %v5583_v38 = vld [vmem:[%s8362_s20 + $0xf0] sm:$0xf]  ;;  %s10341_s29 = sld [smem:[#allocation30_spill]] }
  0xea   : > { %927 = vadd.xlane.f32.xlu0 %v926_v6  ;;  %v929_v9 = vadd.f32 %v8437_v8, %v8435_v7  ;;  %v8441_v11 = vpop.eup %7549  ;;  %v7120_v34 = vld [vmem:[%s8362_s20 + $0x2a4] sm:$0xf]  ;;  %1637 = vmatpush.bf16.msra.mxu3 %v5828_v26  ;;  %v7069_v39 = vld [vmem:[%s8362_s20 + $0x104] sm:$0xf0]  ;;  %v5775_v41 = vld [vmem:[%s8362_s20 + $0x270] sm:$0xf] }
  0xeb   : > { %v933_v12 = vmul.f32 256.0, %v8441_v11  ;;  %v5804_v40 = vor.u32 %v7120_v34, %v5801_v37  ;;  %v7117_v42 = vld [vmem:[%s8362_s20 + $0x284] sm:$0xf0]  ;;  %v7066_v43 = vld [vmem:[%s8362_s20 + $0xf4] sm:$0xf]  ;;  %1596 = vmatpush.bf16.msra.mxu0 %v5608_v30  ;;  %v5584_v44 = vor.u32 %v7069_v39, %v5583_v38  ;;  %1610 = vmatpush.bf16.msra.mxu1 %v5800_v31  ;;  %vm937_vm0 = vweird.f32 %v8441_v11  ;;  %s10343_s23 = scalar_lea.vmem [#allocation10], %s8354_s4 }
  0xec   : > { %v5585_v45 = vld [vmem:[%s8362_s20 + $0x108] sm:$0xf0]  ;;  %v7114_v46 = vld [vmem:[%s8362_s20 + $0x274] sm:$0xf]  ;;  %1624 = vmatpush.bf16.msra.mxu2 %v5612_v36  ;;  %v5776_v48 = vor.u32 %v7117_v42, %v5775_v41  ;;  %v5559_v50 = vld [vmem:[%s8362_s20 + $0xc0] sm:$0xf] }
  0xed   : > { %v934_v13 = vsub.f32 1.0, %v933_v12  ;;  %v5777_v47 = vld [vmem:[%s8362_s20 + $0x288] sm:$0xf0]  ;;  %v5588_v49 = vor.u32 %v7066_v43, %v5585_v45  ;;  %v7063_v51 = vld [vmem:[%s8362_s20 + $0xd4] sm:$0xf0]  ;;  %vm1793_vm8 = vcmask 130048  }
  0xee   : > { %v5751_v52 = vld [vmem:[%s8362_s20 + $0x240] sm:$0xf]  ;;  %1638 = vmatpush.bf16.msra.mxu3 %v5804_v40  ;;  %v5780_v54 = vor.u32 %v7114_v46, %v5777_v47  ;;  %v7111_v55 = vld [vmem:[%s8362_s20 + $0x254] sm:$0xf0]  ;;  %v7060_v56 = vld [vmem:[%s8362_s20 + $0xc4] sm:$0xf]  ;;  %v5560_v60 = vor.u32 %v7063_v51, %v5559_v50 }
  0xef   : > { %v935_v35 = vmul.f32 %v8441_v11, %v934_v13  ;;  %v5561_v57 = vld [vmem:[%s8362_s20 + $0xd8] sm:$0xf0]  ;;  %v7108_v58 = vld [vmem:[%s8362_s20 + $0x244] sm:$0xf]  ;;  %1597 = vmatpush.bf16.msra.mxu0 %v5584_v44  ;;  %1611 = vmatpush.bf16.msra.mxu1 %v5776_v48  ;;  %v5752_v61 = vor.u32 %v7111_v55, %v5751_v52  ;;  %v5535_v63 = vld [vmem:[%s8362_s20 + $0x90] sm:$0xf] }
  0xf0   : > { %v5753_v59 = vld [vmem:[%s8362_s20 + $0x258] sm:$0xf0]  ;;  %1625 = vmatpush.bf16.msra.mxu2 %v5588_v49  ;;  %v5564_v62 = vor.u32 %v7060_v56, %v5561_v57  ;;  %v7057_v0 = vld [vmem:[%s8362_s20 + $0xa4] sm:$0xf0]  ;;  %v5727_v1 = vld [vmem:[%s8362_s20 + $0x210] sm:$0xf] }
  0xf1   : > { %v936_v53 = vadd.f32 %v8441_v11, %v935_v35  ;;  %v5756_v3 = vor.u32 %v7108_v58, %v5753_v59  ;;  %v7105_v6 = vld [vmem:[%s8362_s20 + $0x224] sm:$0xf0]  ;;  %v5537_v10 = vld [vmem:[%s8362_s20 + $0xa8] sm:$0xf0]  ;;  %v7102_v12 = vld [vmem:[%s8362_s20 + $0x214] sm:$0xf]  ;;  %v5536_v15 = vor.u32 %v7057_v0, %v5535_v63 }
  0xf2   : > { %930 = vadd.xlane.f32.xlu0 %v929_v9  ;;  %1639 = vmatpush.bf16.msra.mxu3 %v5780_v54  ;;  %v7054_v9 = vld [vmem:[%s8362_s20 + $0x94] sm:$0xf]  ;;  %v5729_v13 = vld [vmem:[%s8362_s20 + $0x228] sm:$0xf0]  ;;  %v5728_v17 = vor.u32 %v7105_v6, %v5727_v1  ;;  %v5511_v29 = vld [vmem:[%s8362_s20 + $0x60] sm:$0xf] }
  0xf3   : > { %v8483_v2 = vsel %vm937_vm0, %v8441_v11, %v936_v53  ;;  %1598 = vmatpush.bf16.msra.mxu0 %v5560_v60  ;;  %1612 = vmatpush.bf16.msra.mxu1 %v5752_v61  ;;  %v5540_v18 = vor.u32 %v7054_v9, %v5537_v10  ;;  %v5732_v19 = vor.u32 %v7102_v12, %v5729_v13  ;;  %v7051_v30 = vld [vmem:[%s8362_s20 + $0x74] sm:$0xf0]  ;;  %v5703_v31 = vld [vmem:[%s8362_s20 + $0x1e0] sm:$0xf]  ;;  %v7048_v33 = vld [vmem:[%s8362_s20 + $0x64] sm:$0xf] }
  0xf4   : > { %1626 = vmatpush.bf16.msra.mxu2 %v5564_v62  ;;  %v7099_v32 = vld [vmem:[%s8362_s20 + $0x1f4] sm:$0xf0]  ;;  %v7096_v36 = vld [vmem:[%s8362_s20 + $0x1e4] sm:$0xf]  ;;  %v5705_v37 = vld [vmem:[%s8362_s20 + $0x1f8] sm:$0xf0] }
  0xf5   : > { %v5704_v34 = vor.u32 %v7099_v32, %v5703_v31  ;;  %v5708_v38 = vor.u32 %v7096_v36, %v5705_v37  ;;  %v5487_v39 = vld [vmem:[%s8362_s20 + $0x30] sm:$0xf]  ;;  %v7045_v40 = vld [vmem:[%s8362_s20 + $0x44] sm:$0xf0]  ;;  %v7042_v44 = vld [vmem:[%s8362_s20 + $0x34] sm:$0xf] }
  0xf6   : > { %1640 = vmatpush.bf16.msra.mxu3 %v5756_v3  ;;  %v5679_v41 = vld [vmem:[%s8362_s20 + $0x1b0] sm:$0xf]  ;;  %v5488_v42 = vor.u32 %v7045_v40, %v5487_v39  ;;  %v7093_v43 = vld [vmem:[%s8362_s20 + $0x1c4] sm:$0xf0]  ;;  %v5489_v45 = vld [vmem:[%s8362_s20 + $0x48] sm:$0xf0] }
  0xf7   : > { %1599 = vmatpush.bf16.msra.mxu0 %v5536_v15  ;;  %1613 = vmatpush.bf16.msra.mxu1 %v5728_v17  ;;  %v5680_v46 = vor.u32 %v7093_v43, %v5679_v41  ;;  %v5492_v47 = vor.u32 %v7042_v44, %v5489_v45  ;;  %v7090_v48 = vld [vmem:[%s8362_s20 + $0x1b4] sm:$0xf]  ;;  %v5681_v49 = vld [vmem:[%s8362_s20 + $0x1c8] sm:$0xf0]  ;;  %v5463_v51 = vld [vmem:[%s8362_s20] sm:$0xf] }
  0xf8   : > { %1627 = vmatpush.bf16.msra.mxu2 %v5540_v18  ;;  %v5684_v50 = vor.u32 %v7090_v48, %v5681_v49  ;;  %v7039_v52 = vld [vmem:[%s8362_s20 + $0x14] sm:$0xf0]  ;;  %v5655_v53 = vld [vmem:[%s8362_s20 + $0x180] sm:$0xf]  ;;  %v7036_v56 = vld [vmem:[%s8362_s20 + $0x4] sm:$0xf] }
  0xf9   : > { %v5464_v54 = vor.u32 %v7039_v52, %v5463_v51  ;;  %v7087_v55 = vld [vmem:[%s8362_s20 + $0x194] sm:$0xf0]  ;;  %v5465_v57 = vld [vmem:[%s8362_s20 + $0x18] sm:$0xf0]  ;;  %v7084_v60 = vld [vmem:[%s8362_s20 + $0x184] sm:$0xf] }
  0xfa   : > { %1641 = vmatpush.bf16.msra.mxu3 %v5732_v19  ;;  %v5656_v58 = vor.u32 %v7087_v55, %v5655_v53  ;;  %v5468_v59 = vor.u32 %v7036_v56, %v5465_v57  ;;  %v5657_v61 = vld [vmem:[%s8362_s20 + $0x198] sm:$0xf0]  ;;  %v5639_v62 = vld [vmem:[%s8362_s20 + $0x158] sm:$0xf]  ;;  %v7082_v0 = vld [vmem:[%s8362_s20 + $0x16c] sm:$0xf0] }
  0xfb   : > { %1614 = vmatpush.bf16.msra.mxu1 %v5704_v34  ;;  %v5660_v63 = vor.u32 %v7084_v60, %v5657_v61  ;;  %v5831_v1 = vld [vmem:[%s8362_s20 + $0x2d8] sm:$0xf]  ;;  %v7130_v3 = vld [vmem:[%s8362_s20 + $0x2ec] sm:$0xf0]  ;;  %v5640_v6 = vor.u32 %v7082_v0, %v5639_v62  ;;  %v7079_v10 = vld [vmem:[%s8362_s20 + $0x15c] sm:$0xf] }
  0xfc   : > { %v5832_v9 = vor.u32 %v7130_v3, %v5831_v1  ;;  %v5641_v12 = vld [vmem:[%s8362_s20 + $0x170] sm:$0xf0]  ;;  %v7127_v13 = vld [vmem:[%s8362_s20 + $0x2dc] sm:$0xf]  ;;  %v7076_v17 = vld [vmem:[%s8362_s20 + $0x13c] sm:$0xf0] }
  0xfd   : > { %v5833_v15 = vld [vmem:[%s8362_s20 + $0x2f0] sm:$0xf0]  ;;  %v7070_v31 = vld [vmem:[%s8362_s20 + $0x10c] sm:$0xf0]  ;;  %v7115_v37 = vld [vmem:[%s8362_s20 + $0x27c] sm:$0xf] }
  0xfe   : > { %1642 = vmatpush.bf16.msra.mxu3 %v5708_v38  ;;  %v5836_v18 = vor.u32 %v7127_v13, %v5833_v15  ;;  %v5593_v34 = vld [vmem:[%s8362_s20 + $0x110] sm:$0xf0]  ;;  %v5567_v40 = vld [vmem:[%s8362_s20 + $0xc8] sm:$0xf]  ;;  %v7064_v41 = vld [vmem:[%s8362_s20 + $0xdc] sm:$0xf0] }
  0xff   : > { %1615 = vmatpush.bf16.msra.mxu1 %v5680_v46  ;;  %v5785_v38 = vld [vmem:[%s8362_s20 + $0x290] sm:$0xf0]  ;;  %v5568_v43 = vor.u32 %v7064_v41, %v5567_v40  ;;  %v7112_v44 = vld [vmem:[%s8362_s20 + $0x25c] sm:$0xf0]  ;;  %v7061_v45 = vld [vmem:[%s8362_s20 + $0xcc] sm:$0xf] }
 0x100   : > { %v5788_v39 = vor.u32 %v7115_v37, %v5785_v38  ;;  %v5569_v46 = vld [vmem:[%s8362_s20 + $0xe0] sm:$0xf0]  ;;  %v7109_v49 = vld [vmem:[%s8362_s20 + $0x24c] sm:$0xf]  ;;  %v5543_v52 = vld [vmem:[%s8362_s20 + $0x98] sm:$0xf] }
 0x101   : > { %v5572_v48 = vor.u32 %v7061_v45, %v5569_v46  ;;  %v7058_v53 = vld [vmem:[%s8362_s20 + $0xac] sm:$0xf0]  ;;  %v7055_v57 = vld [vmem:[%s8362_s20 + $0x9c] sm:$0xf]  ;;  %v5737_v62 = vld [vmem:[%s8362_s20 + $0x230] sm:$0xf0] }
 0x102   : > { %1643 = vmatpush.bf16.msra.mxu3 %v5684_v50  ;;  %v5761_v50 = vld [vmem:[%s8362_s20 + $0x260] sm:$0xf0]  ;;  %v5544_v55 = vor.u32 %v7058_v53, %v5543_v52  ;;  %v7106_v56 = vld [vmem:[%s8362_s20 + $0x22c] sm:$0xf0]  ;;  %v7103_v61 = vld [vmem:[%s8362_s20 + $0x21c] sm:$0xf] }
 0x103   : > { %1616 = vmatpush.bf16.msra.mxu1 %v5656_v58  ;;  %v5764_v51 = vor.u32 %v7109_v49, %v5761_v50  ;;  %v5545_v58 = vld [vmem:[%s8362_s20 + $0xb0] sm:$0xf0]  ;;  %v5519_v0 = vld [vmem:[%s8362_s20 + $0x68] sm:$0xf]  ;;  %v7052_v1 = vld [vmem:[%s8362_s20 + $0x7c] sm:$0xf0] }
 0x104   : > { %v5548_v60 = vor.u32 %v7055_v57, %v5545_v58  ;;  %v5711_v3 = vld [vmem:[%s8362_s20 + $0x1e8] sm:$0xf]  ;;  %v7097_v15 = vld [vmem:[%s8362_s20 + $0x1ec] sm:$0xf]  ;;  %v5473_v38 = vld [vmem:[%s8362_s20 + $0x20] sm:$0xf0] }
 0x105   : > { %v7037_v37 = vld [vmem:[%s8362_s20 + $0xc] sm:$0xf]  ;;  %vm2383_vm9 = vcmask 523264   ;;  %vm2386_vm10 = vcmask 785408   ;;  %s10344_s11 = scalar_lea.vmem [#allocation11], %s8354_s4 }
 0x106   : > { %1644 = vmatpush.bf16.msra.mxu3 %v5660_v63  ;;  %v5740_v63 = vor.u32 %v7103_v61, %v5737_v62  ;;  %v5476_v40 = vor.u32 %v7037_v37, %v5473_v38  ;;  %v7085_v41 = vld [vmem:[%s8362_s20 + $0x18c] sm:$0xf]  ;;  %v993_v62 = vld [vmem:[%s10340_s3] sm:$0x3] }
 0x107   : > { %1665 = vmatpush.bf16.msrb.mxu1 %v5832_v9  ;;  %v7100_v9 = vld [vmem:[%s8362_s20 + $0x1fc] sm:$0xf0]  ;;  %v5817_v37 = vld [vmem:[%s8362_s20 + $0x2c8] sm:$0xf0] }
 0x108   : > { %v5712_v13 = vor.u32 %v7100_v9, %v5711_v3  ;;  %v995_v3 = vperm.slane %v993_v62, 0 }
 0x10a   : > { %1693 = vmatpush.bf16.msrb.mxu3 %v5836_v18 }
 0x15d   : > { %v928_v14 = vpop.xlane.xlu0 %927 }
 0x15e   : > { %v939_v16 = vmul.f32 %v8483_v2, %v928_v14  ;;  %v5644_v14 = vor.u32 %v7079_v10, %v5641_v12  ;;  %v7049_v10 = vld [vmem:[%s8362_s20 + $0x6c] sm:$0xf]  ;;  %v5521_v12 = vld [vmem:[%s8362_s20 + $0x80] sm:$0xf0] }
 0x160   : > { %v8492_v11 = vsub.f32 %v8429_v4, %v939_v16  ;;  %v8495_v20 = vsub.f32 %v8431_v5, %v939_v16  ;;  %v5615_v16 = vld [vmem:[%s8362_s20 + $0x128] sm:$0xf] }
 0x161   : > { %v5616_v19 = vor.u32 %v7076_v17, %v5615_v16  ;;  %v5713_v16 = vld [vmem:[%s8362_s20 + $0x200] sm:$0xf0] }
 0x162   : > { %v945_v21 = vmul.f32 %v8492_v11, %v8492_v11  ;;  %v946_v22 = vmul.f32 %v8495_v20, %v8495_v20  ;;  %v5716_v17 = vor.u32 %v7097_v15, %v5713_v16  ;;  %v7083_v16 = vld [vmem:[%s8362_s20 + $0x174] sm:$0xf0] }
 0x164   : > { %v949_v4 = vadd.f32 %v946_v22, %v945_v21  ;;  %v5807_v21 = vld [vmem:[%s8362_s20 + $0x2a8] sm:$0xf]  ;;  %v7124_v22 = vld [vmem:[%s8362_s20 + $0x2bc] sm:$0xf0] }
 0x165   : > { %v931_v23 = vpop.xlane.xlu0 %930 }
 0x166   : > { %v940_v5 = vmul.f32 %v8483_v2, %v931_v23  ;;  %950 = vadd.xlane.f32.xlu1 %v949_v4  ;;  %v7073_v4 = vld [vmem:[%s8362_s20 + $0x12c] sm:$0xf]  ;;  %v5808_v23 = vor.u32 %v7124_v22, %v5807_v21  ;;  %v7046_v21 = vld [vmem:[%s8362_s20 + $0x4c] sm:$0xf0]  ;;  %v5687_v22 = vld [vmem:[%s8362_s20 + $0x1b8] sm:$0xf] }
 0x168   : > { %v8503_v24 = vsub.f32 %v8435_v7, %v940_v5  ;;  %v8506_v25 = vsub.f32 %v8437_v8, %v940_v5  ;;  %v5512_v7 = vor.u32 %v7051_v30, %v5511_v29  ;;  %v5513_v8 = vld [vmem:[%s8362_s20 + $0x78] sm:$0xf0]  ;;  %v5617_v5 = vld [vmem:[%s8362_s20 + $0x140] sm:$0xf0]  ;;  %v5591_v30 = vld [vmem:[%s8362_s20 + $0xf8] sm:$0xf]  ;;  %1666 = vmatpush.bf16.msrb.mxu1 %v5808_v23 }
 0x169   : > { %v5516_v35 = vor.u32 %v7048_v33, %v5513_v8  ;;  %v5592_v32 = vor.u32 %v7070_v31, %v5591_v30  ;;  %v7118_v33 = vld [vmem:[%s8362_s20 + $0x28c] sm:$0xf0]  ;;  %v7067_v8 = vld [vmem:[%s8362_s20 + $0xfc] sm:$0xf]  ;;  %v5689_v31 = vld [vmem:[%s8362_s20 + $0x1d0] sm:$0xf0] }
 0x16a   : > { %v947_v26 = vmul.f32 %v8503_v24, %v8503_v24  ;;  %v948_v27 = vmul.f32 %v8506_v25, %v8506_v25  ;;  %1600 = vmatpush.bf16.msra.mxu0 %v5512_v7  ;;  %v5783_v7 = vld [vmem:[%s8362_s20 + $0x278] sm:$0xf]  ;;  %v5596_v36 = vor.u32 %v7067_v8, %v5593_v34  ;;  %v7091_v30 = vld [vmem:[%s8362_s20 + $0x1bc] sm:$0xf]  ;;  %v7040_v8 = vld [vmem:[%s8362_s20 + $0x1c] sm:$0xf0] }
 0x16b   : > { %1628 = vmatpush.bf16.msra.mxu2 %v5516_v35  ;;  %v5784_v35 = vor.u32 %v7118_v33, %v5783_v7  ;;  %v5471_v33 = vld [vmem:[%s8362_s20 + $0x8] sm:$0xf] }
 0x16c   : > { %v952_v28 = vadd.f32 %v948_v27, %v947_v26  ;;  %v7121_v26 = vld [vmem:[%s8362_s20 + $0x2ac] sm:$0xf]  ;;  %v5809_v27 = vld [vmem:[%s8362_s20 + $0x2c0] sm:$0xf0]  ;;  %v5663_v34 = vld [vmem:[%s8362_s20 + $0x188] sm:$0xf] }
 0x16d   : > { %v5812_v29 = vor.u32 %v7121_v26, %v5809_v27  ;;  %1667 = vmatpush.bf16.msrb.mxu1 %v5784_v35  ;;  %v7043_v26 = vld [vmem:[%s8362_s20 + $0x3c] sm:$0xf]  ;;  %v5497_v27 = vld [vmem:[%s8362_s20 + $0x50] sm:$0xf0]  ;;  %v5472_v35 = vor.u32 %v7040_v8, %v5471_v33  ;;  %v5815_v33 = vld [vmem:[%s8362_s20 + $0x2b0] sm:$0xf] }
 0x16e   : > { %953 = vadd.xlane.f32.xlu1 %v952_v28  ;;  %1601 = vmatpush.bf16.msra.mxu0 %v5488_v42  ;;  %v5620_v28 = vor.u32 %v7073_v4, %v5617_v5  ;;  %v5759_v42 = vld [vmem:[%s8362_s20 + $0x248] sm:$0xf]  ;;  %v7094_v5 = vld [vmem:[%s8362_s20 + $0x1cc] sm:$0xf0] }
 0x16f   : > { %1629 = vmatpush.bf16.msra.mxu2 %v5492_v47  ;;  %1694 = vmatpush.bf16.msrb.mxu3 %v5812_v29  ;;  %v5760_v47 = vor.u32 %v7112_v44, %v5759_v42  ;;  %v5500_v29 = vor.u32 %v7043_v26, %v5497_v27  ;;  %v5665_v42 = vld [vmem:[%s8362_s20 + $0x1a0] sm:$0xf0]  ;;  %v7125_v8 = vld [vmem:[%s8362_s20 + $0x2c4] sm:$0xf0] }
 0x170   : > { %v5668_v44 = vor.u32 %v7085_v41, %v5665_v42  ;;  %v7071_v41 = vld [vmem:[%s8362_s20 + $0x114] sm:$0xf0] }
 0x171   : > { %1668 = vmatpush.bf16.msrb.mxu1 %v5760_v47 }
 0x172   : > { %1602 = vmatpush.bf16.msra.mxu0 %v5464_v54  ;;  %v5735_v54 = vld [vmem:[%s8362_s20 + $0x218] sm:$0xf] }
 0x173   : > { %1630 = vmatpush.bf16.msra.mxu2 %v5468_v59  ;;  %1695 = vmatpush.bf16.msrb.mxu3 %v5788_v39  ;;  %v5736_v59 = vor.u32 %v7106_v56, %v5735_v54  ;;  %v983_v56 = vld [vmem:[%s8398_s28] sm:$0x3] }
 0x174   : > { %v986_v61 = vperm.slane %v983_v56, 1 }
 0x175   : > { %1669 = vmatpush.bf16.msrb.mxu1 %v5736_v59 }
 0x176   : > { %1651 = vmatpush.bf16.msrb.mxu0 %v5640_v6  ;;  %v5520_v6 = vor.u32 %v7052_v1, %v5519_v0 }
 0x177   : > { %1679 = vmatpush.bf16.msrb.mxu2 %v5644_v14  ;;  %1696 = vmatpush.bf16.msrb.mxu3 %v5764_v51  ;;  %v5524_v14 = vor.u32 %v7049_v10, %v5521_v12 }
 0x179   : > { %1670 = vmatpush.bf16.msrb.mxu1 %v5712_v13 }
 0x17a   : > { %1652 = vmatpush.bf16.msrb.mxu0 %v5616_v19  ;;  %v5495_v19 = vld [vmem:[%s8362_s20 + $0x38] sm:$0xf] }
 0x17b   : > { %1680 = vmatpush.bf16.msrb.mxu2 %v5620_v28  ;;  %1697 = vmatpush.bf16.msrb.mxu3 %v5740_v63  ;;  %v5496_v23 = vor.u32 %v7046_v21, %v5495_v19  ;;  %v5688_v28 = vor.u32 %v7094_v5, %v5687_v22  ;;  %v7080_v19 = vld [vmem:[%s8362_s20 + $0x164] sm:$0xf]  ;;  %v5649_v5 = vld [vmem:[%s8362_s20 + $0x178] sm:$0xf0] }
 0x17d   : > { %1671 = vmatpush.bf16.msrb.mxu1 %v5688_v28 }
 0x17e   : > { %1653 = vmatpush.bf16.msrb.mxu0 %v5592_v32  ;;  %v5692_v32 = vor.u32 %v7091_v30, %v5689_v31  ;;  %v5623_v30 = vld [vmem:[%s8362_s20 + $0x130] sm:$0xf]  ;;  %v7077_v31 = vld [vmem:[%s8362_s20 + $0x144] sm:$0xf0] }
 0x17f   : > { %1681 = vmatpush.bf16.msrb.mxu2 %v5596_v36  ;;  %1698 = vmatpush.bf16.msrb.mxu3 %v5716_v17  ;;  %v7088_v36 = vld [vmem:[%s8362_s20 + $0x19c] sm:$0xf0]  ;;  %v5624_v38 = vor.u32 %v7077_v31, %v5623_v30  ;;  %v7047_v30 = vld [vmem:[%s8362_s20 + $0x54] sm:$0xf0] }
 0x180   : > { %v5664_v39 = vor.u32 %v7088_v36, %v5663_v34  ;;  %v5839_v17 = vld [vmem:[%s8362_s20 + $0x2e0] sm:$0xf]  ;;  %v7074_v34 = vld [vmem:[%s8362_s20 + $0x134] sm:$0xf] }
 0x181   : > { %v7122_v36 = vld [vmem:[%s8362_s20 + $0x2b4] sm:$0xf] }
 0x182   : > { %1654 = vmatpush.bf16.msrb.mxu0 %v5568_v43  ;;  %1672 = vmatpush.bf16.msrb.mxu1 %v5664_v39  ;;  %v5816_v39 = vor.u32 %v7125_v8, %v5815_v33  ;;  %v7095_v33 = vld [vmem:[%s8362_s20 + $0x1d4] sm:$0xf0]  ;;  %v7044_v8 = vld [vmem:[%s8362_s20 + $0x44] sm:$0xf] }
 0x183   : > { %1682 = vmatpush.bf16.msrb.mxu2 %v5572_v48  ;;  %1699 = vmatpush.bf16.msrb.mxu3 %v5692_v32 }
 0x186   : > { %1655 = vmatpush.bf16.msrb.mxu0 %v5544_v55 }
 0x187   : > { %1683 = vmatpush.bf16.msrb.mxu2 %v5548_v60  ;;  %1700 = vmatpush.bf16.msrb.mxu3 %v5668_v44  ;;  %v985_v60 = vperm.slane %v983_v56, 0  ;;  %v5791_v44 = vld [vmem:[%s8362_s20 + $0x280] sm:$0xf]  ;;  %v5767_v56 = vld [vmem:[%s8362_s20 + $0x250] sm:$0xf] }
 0x18a   : > { %1656 = vmatpush.bf16.msrb.mxu0 %v5520_v6  ;;  %v996_v6 = vperm.slane %v993_v62, 1 }
 0x18b   : > { %1684 = vmatpush.bf16.msrb.mxu2 %v5524_v14 }
 0x18e   : > { %1657 = vmatpush.bf16.msrb.mxu0 %v5496_v23 }
 0x18f   : > { %1685 = vmatpush.bf16.msrb.mxu2 %v5500_v29 }
 0x192   : > { %1658 = vmatpush.bf16.msrb.mxu0 %v5472_v35  ;;  %v5625_v35 = vld [vmem:[%s8362_s20 + $0x148] sm:$0xf0] }
 0x193   : > { %1686 = vmatpush.bf16.msrb.mxu2 %v5476_v40  ;;  %v5599_v40 = vld [vmem:[%s8362_s20 + $0x100] sm:$0xf]  ;;  %v5628_v42 = vor.u32 %v7074_v34, %v5625_v35  ;;  %v5505_v34 = vld [vmem:[%s8362_s20 + $0x58] sm:$0xf0]  ;;  %v7092_v35 = vld [vmem:[%s8362_s20 + $0x1c4] sm:$0xf] }
 0x1d9   : > { %v951_v18 = vpop.xlane.xlu1 %950 }
 0x1da   : > { %v955_v4 = vmul.f32 %v951_v18, %v8483_v2  ;;  %v7131_v18 = vld [vmem:[%s8362_s20 + $0x2f4] sm:$0xf0] }
 0x1db   : > { %v5840_v29 = vor.u32 %v7131_v18, %v5839_v17  ;;  %v7053_v17 = vld [vmem:[%s8362_s20 + $0x84] sm:$0xf0] }
 0x1dc   : > { %v957_v7 = vadd.f32 1e-05, %v955_v4 }
 0x1de   : > { %7551 = vrsqrt.f32 %v957_v7  ;;  %vm965_vm2 = vweird.f32 %v957_v7 }
 0x1e1   : > { %v954_v43 = vpop.xlane.xlu1 %953 }
 0x1e2   : > { %v956_v45 = vmul.f32 %v954_v43, %v8483_v2  ;;  %v5820_v43 = vor.u32 %v7122_v36, %v5817_v37  ;;  %v5697_v36 = vld [vmem:[%s8362_s20 + $0x1d8] sm:$0xf0] }
 0x1e4   : > { %v7552_v46 = vpop.eup %7551  ;;  %v958_v47 = vadd.f32 1e-05, %v956_v45  ;;  %v7119_v45 = vld [vmem:[%s8362_s20 + $0x294] sm:$0xf0] }
 0x1e5   : > { %v960_v48 = vmul.f32 %v7552_v46, %v957_v7  ;;  %vm966_vm1 = vweird.f32 %v7552_v46  ;;  %v5652_v7 = vor.u32 %v7080_v19, %v5649_v5  ;;  %v7098_v5 = vld [vmem:[%s8362_s20 + $0x1f4] sm:$0xf] }
 0x1e6   : > { %7553 = vrsqrt.f32 %v958_v47  ;;  %vm967_vm3 = vmor %vm965_vm2, %vm966_vm1  ;;  %vm975_vm5 = vweird.f32 %v958_v47 }
 0x1e7   : > { %v961_v49 = vmul.f32 %v7552_v46, %v960_v48  ;;  %v7116_v48 = vld [vmem:[%s8362_s20 + $0x284] sm:$0xf] }
 0x1e9   : > { %v962_v50 = vmul.f32 0.5, %v961_v49  ;;  %v5793_v49 = vld [vmem:[%s8362_s20 + $0x298] sm:$0xf0] }
 0x1eb   : > { %v963_v51 = vsub.f32 1.5, %v962_v50  ;;  %v5600_v50 = vor.u32 %v7071_v41, %v5599_v40  ;;  %v7041_v40 = vld [vmem:[%s8362_s20 + $0x24] sm:$0xf0]  ;;  %v5508_v41 = vor.u32 %v7044_v8, %v5505_v34 }
 0x1ec   : > { %v7554_v52 = vpop.eup %7553 }
 0x1ed   : > { %v964_v53 = vmul.f32 %v7552_v46, %v963_v51  ;;  %v970_v54 = vmul.f32 %v7554_v52, %v958_v47  ;;  %vm976_vm4 = vweird.f32 %v7554_v52  ;;  %v5601_v47 = vld [vmem:[%s8362_s20 + $0x118] sm:$0xf0]  ;;  %v5792_v51 = vor.u32 %v7119_v45, %v5791_v44  ;;  %v7089_v44 = vld [vmem:[%s8362_s20 + $0x1a4] sm:$0xf0]  ;;  %v7038_v45 = vld [vmem:[%s8362_s20 + $0x14] sm:$0xf] }
 0x1ee   : > { %vm977_vm6 = vmor %vm975_vm5, %vm976_vm4 }
 0x1ef   : > { %v971_v55 = vmul.f32 %v7554_v52, %v970_v54  ;;  %v968_v57 = vsel %vm967_vm3, %v7552_v46, %v964_v53  ;;  %v7068_v46 = vld [vmem:[%s8362_s20 + $0x104] sm:$0xf]  ;;  %v7065_v53 = vld [vmem:[%s8362_s20 + $0xe4] sm:$0xf0] }
 0x1f0   : > { %v979_v63 = vmul.f32 %v968_v57, %v8492_v11  ;;  %v980_v0 = vmul.f32 %v968_v57, %v8495_v20  ;;  %v5647_v20 = vld [vmem:[%s8362_s20 + $0x160] sm:$0xf]  ;;  %v5604_v54 = vor.u32 %v7068_v46, %v5601_v47  ;;  %v7113_v57 = vld [vmem:[%s8362_s20 + $0x264] sm:$0xf0]  ;;  %v5481_v46 = vld [vmem:[%s8362_s20 + $0x28] sm:$0xf0] }
 0x1f1   : > { %v972_v58 = vmul.f32 0.5, %v971_v55  ;;  %v5648_v28 = vor.u32 %v7083_v16, %v5647_v20  ;;  %v5796_v55 = vor.u32 %v7116_v48, %v5793_v49  ;;  %v5527_v16 = vld [vmem:[%s8362_s20 + $0x70] sm:$0xf]  ;;  %v7086_v47 = vld [vmem:[%s8362_s20 + $0x194] sm:$0xf] }
 0x1f2   : > { %v989_v10 = vmul.f32 %v985_v60, %v979_v63  ;;  %v990_v12 = vmul.f32 %v986_v61, %v980_v0  ;;  %v5768_v63 = vor.u32 %v7113_v57, %v5767_v56  ;;  %v5551_v0 = vld [vmem:[%s8362_s20 + $0xa0] sm:$0xf]  ;;  %v5673_v48 = vld [vmem:[%s8362_s20 + $0x1a8] sm:$0xf0] }
 0x1f3   : > { %v973_v59 = vsub.f32 1.5, %v972_v58  ;;  %v7062_v58 = vld [vmem:[%s8362_s20 + $0xd4] sm:$0xf] }
 0x1f4   : > { %v999_v21 = vadd.f32 %v995_v3, %v989_v10  ;;  %v1000_v22 = vadd.f32 %v996_v6, %v990_v12  ;;  %v7107_v10 = vld [vmem:[%s8362_s20 + $0x234] sm:$0xf0]  ;;  %v7056_v12 = vld [vmem:[%s8362_s20 + $0xa4] sm:$0xf] }
 0x1f5   : > { %v974_v1 = vmul.f32 %v7554_v52, %v973_v59  ;;  %v5577_v59 = vld [vmem:[%s8362_s20 + $0xe8] sm:$0xf0] }
 0x1f7   : > { %v978_v9 = vsel %vm977_vm6, %v7554_v52, %v974_v1  ;;  %v5575_v52 = vld [vmem:[%s8362_s20 + $0xd0] sm:$0xf]  ;;  %v7059_v1 = vld [vmem:[%s8362_s20 + $0xb4] sm:$0xf0] }
 0x1f8   : > { %v981_v13 = vmul.f32 %v978_v9, %v8503_v24  ;;  %v982_v11 = vmul.f32 %v978_v9, %v8506_v25  ;;  %v7128_v24 = vld [vmem:[%s8362_s20 + $0x2e4] sm:$0xf]  ;;  %v5841_v25 = vld [vmem:[%s8362_s20 + $0x2f8] sm:$0xf0]  ;;  %v5576_v62 = vor.u32 %v7065_v53, %v5575_v52  ;;  %v5743_v9 = vld [vmem:[%s8362_s20 + $0x220] sm:$0xf]  ;;  %v5676_v52 = vor.u32 %v7086_v47, %v5673_v48 }
 0x1f9   : > { %v5844_v32 = vor.u32 %v7128_v24, %v5841_v25  ;;  %v5744_v20 = vor.u32 %v7107_v10, %v5743_v9  ;;  %v5721_v24 = vld [vmem:[%s8362_s20 + $0x208] sm:$0xf0]  ;;  %v5528_v25 = vor.u32 %v7053_v17, %v5527_v16  ;;  %v8690_v53 = vld [vmem:[%s8403_s2] sm:$0x3f] }
 0x1fa   : > { %v991_v14 = vmul.f32 %v985_v60, %v981_v13  ;;  %v992_v15 = vmul.f32 %v986_v61, %v982_v11  ;;  %v7110_v60 = vld [vmem:[%s8362_s20 + $0x254] sm:$0xf]  ;;  %v5769_v61 = vld [vmem:[%s8362_s20 + $0x268] sm:$0xf0]  ;;  %v5553_v13 = vld [vmem:[%s8362_s20 + $0xb8] sm:$0xf0] }
 0x1fb   : > { %v7104_v11 = vld [vmem:[%s8362_s20 + $0x224] sm:$0xf]  ;;  %v5556_v18 = vor.u32 %v7056_v12, %v5553_v13  ;;  %v1103_v56 = vperm.slane %v8690_v53, 0 }
 0x1fc   : > { %v1001_v4 = vadd.f32 %v995_v3, %v991_v14  ;;  %v1002_v23 = vadd.f32 %v996_v6, %v992_v15  ;;  %v5580_v3 = vor.u32 %v7062_v58, %v5577_v59  ;;  %v5772_v6 = vor.u32 %v7110_v60, %v5769_v61  ;;  %v5745_v14 = vld [vmem:[%s8362_s20 + $0x238] sm:$0xf0] }
 0x1fd   : > { %v5552_v15 = vor.u32 %v7059_v1, %v5551_v0  ;;  %v5748_v19 = vor.u32 %v7104_v11, %v5745_v14  ;;  %v1104_v0 = vperm.slane %v8690_v53, 1  ;;  %v1105_v14 = vperm.slane %v8690_v53, 2 }
 0x1fe   : > { %v8617_v26 = vpack.c.bf16 %v1001_v4, %v999_v21  ;;  %v8619_v27 = vpack.c.bf16 %v1002_v23, %v1000_v22  ;;  %v5719_v21 = vld [vmem:[%s8362_s20 + $0x1f0] sm:$0xf]  ;;  %v7101_v22 = vld [vmem:[%s8362_s20 + $0x204] sm:$0xf0]  ;;  %v7050_v4 = vld [vmem:[%s8362_s20 + $0x74] sm:$0xf] }
 0x1ff   : > { %v5529_v23 = vld [vmem:[%s8362_s20 + $0x88] sm:$0xf0] }
 0x200   : > { %1603 = vmatmul.bf16.vlgmr.msra.gmra.mxu0 %v8617_v26  ;;  %1617 = vmatmul.bf16.vlgmr.msra.gmra.mxu1 %v8619_v27  ;;  %v5532_v31 = vor.u32 %v7050_v4, %v5529_v23 }
 0x201   : > { %1631 = vmatmul.bf16.vlgmr.msra.gmra.mxu2 %v8617_v26  ;;  %1645 = vmatmul.bf16.vlgmr.msra.gmra.mxu3 %v8619_v27 }
 0x202   : > { %1707 = vmatpush.bf16.msra.mxu0 %v5648_v28  ;;  %1721 = vmatpush.bf16.msra.mxu1 %v5840_v29  ;;  %v5720_v28 = vor.u32 %v7101_v22, %v5719_v21  ;;  %v5503_v29 = vld [vmem:[%s8362_s20 + $0x40] sm:$0xf] }
 0x203   : > { %1735 = vmatpush.bf16.msra.mxu2 %v5652_v7  ;;  %1749 = vmatpush.bf16.msra.mxu3 %v5844_v32  ;;  %v5724_v7 = vor.u32 %v7098_v5, %v5721_v24  ;;  %v5695_v32 = vld [vmem:[%s8362_s20 + $0x1c0] sm:$0xf]  ;;  %v5504_v37 = vor.u32 %v7047_v30, %v5503_v29  ;;  %v1106_v29 = vperm.slane %v8690_v53, 3  ;;  %v1107_v30 = vperm.slane %v8690_v53, 4 }
 0x206   : > { %1708 = vmatpush.bf16.msra.mxu0 %v5624_v38  ;;  %1722 = vmatpush.bf16.msra.mxu1 %v5816_v39  ;;  %v5696_v38 = vor.u32 %v7095_v33, %v5695_v32  ;;  %v5479_v39 = vld [vmem:[%s8362_s20 + $0x10] sm:$0xf] }
 0x207   : > { %1736 = vmatpush.bf16.msra.mxu2 %v5628_v42  ;;  %1750 = vmatpush.bf16.msra.mxu3 %v5820_v43  ;;  %v5700_v42 = vor.u32 %v7092_v35, %v5697_v36  ;;  %v5671_v43 = vld [vmem:[%s8362_s20 + $0x190] sm:$0xf]  ;;  %v5480_v49 = vor.u32 %v7041_v40, %v5479_v39  ;;  %s8030_s20 = smov 96  }
 0x20a   : > { %1709 = vmatpush.bf16.msra.mxu0 %v5600_v50  ;;  %1723 = vmatpush.bf16.msra.mxu1 %v5792_v51  ;;  %v5672_v50 = vor.u32 %v7089_v44, %v5671_v43  ;;  %v5484_v51 = vor.u32 %v7038_v45, %v5481_v46 }
 0x20b   : > { %1737 = vmatpush.bf16.msra.mxu2 %v5604_v54  ;;  %1751 = vmatpush.bf16.msra.mxu3 %v5796_v55 }
 0x20e   : > { %1710 = vmatpush.bf16.msra.mxu0 %v5576_v62  ;;  %1724 = vmatpush.bf16.msra.mxu1 %v5768_v63 }
 0x20f   : > { %1738 = vmatpush.bf16.msra.mxu2 %v5580_v3  ;;  %1752 = vmatpush.bf16.msra.mxu3 %v5772_v6 }
 0x210   : > { %1659 = vmatmul.bf16.vlgmr.msrb.gmra.mxu0 %v8617_v26  ;;  %1673 = vmatmul.bf16.vlgmr.msrb.gmra.mxu1 %v8619_v27 }
 0x211   : > { %1687 = vmatmul.bf16.vlgmr.msrb.gmra.mxu2 %v8617_v26  ;;  %1701 = vmatmul.bf16.vlgmr.msrb.gmra.mxu3 %v8619_v27 }
 0x212   : > { %1711 = vmatpush.bf16.msra.mxu0 %v5552_v15  ;;  %1725 = vmatpush.bf16.msra.mxu1 %v5744_v20 }
 0x213   : > { %1739 = vmatpush.bf16.msra.mxu2 %v5556_v18  ;;  %1753 = vmatpush.bf16.msra.mxu3 %v5748_v19 }
 0x216   : > { %1712 = vmatpush.bf16.msra.mxu0 %v5528_v25  ;;  %1726 = vmatpush.bf16.msra.mxu1 %v5720_v28 }
 0x217   : > { %1740 = vmatpush.bf16.msra.mxu2 %v5532_v31  ;;  %1754 = vmatpush.bf16.msra.mxu3 %v5724_v7 }
 0x21a   : > { %1713 = vmatpush.bf16.msra.mxu0 %v5504_v37  ;;  %1727 = vmatpush.bf16.msra.mxu1 %v5696_v38 }
 0x21b   : > { %1741 = vmatpush.bf16.msra.mxu2 %v5508_v41  ;;  %1755 = vmatpush.bf16.msra.mxu3 %v5700_v42 }
 0x21e   : > { %1714 = vmatpush.bf16.msra.mxu0 %v5480_v49  ;;  %1728 = vmatpush.bf16.msra.mxu1 %v5672_v50 }
 0x21f   : > { %1742 = vmatpush.bf16.msra.mxu2 %v5484_v51  ;;  %1756 = vmatpush.bf16.msra.mxu3 %v5676_v52 }
 0x221   : > { %1715 = vmatmul.bf16.vlgmr.msra.gmra.mxu0 %v8617_v26  ;;  %1729 = vmatmul.bf16.vlgmr.msra.gmra.mxu1 %v8619_v27 }
 0x222   : > { %1743 = vmatmul.bf16.vlgmr.msra.gmra.mxu2 %v8617_v26  ;;  %1757 = vmatmul.bf16.vlgmr.msra.gmra.mxu3 %v8619_v27 }
 0x27d   : > { %v1604_v54 = vpop.f32.mrf.mxu0  ;;  %v1618_v55 = vpop.f32.mrf.mxu1 }
 0x27e   : > { %v1605_v57 = vadd.f32 %v1604_v54, %v1103_v56 }
 0x280   : > { %v1619_v63 = vadd.f32 %v1618_v55, %v1605_v57 }
 0x284   : > { %v1632_v58 = vpop.f32.mrf.mxu2  ;;  %v1646_v59 = vpop.f32.mrf.mxu3 }
 0x285   : > { %v1606_v60 = vpop.f32.mrf.mxu0  ;;  %v1620_v61 = vpop.f32.mrf.mxu1  ;;  %v1633_v26 = vadd.f32 %v1632_v58, %v1104_v0 }
 0x286   : > { %v1607_v62 = vadd.f32 %v1606_v60, %v1103_v56 }
 0x287   : > { %v1647_v11 = vadd.f32 %v1646_v59, %v1633_v26  ;;  %v8744_v26 = vld [vmem:[%s10341_s29 + $0x8] sm:$0xff] }
 0x288   : > { %v1621_v1 = vadd.f32 %v1620_v61, %v1607_v62  ;;  %v8734_v61 = vld [vmem:[%s10341_s29] sm:$0xff] }
 0x28a   : > { %v1765_v3 = vpack.c.bf16 %v1621_v1, %v1619_v63 }
 0x28c   : > { %v1634_v6 = vpop.f32.mrf.mxu2  ;;  %1979 = vrot.lane.b32.xlu1 %v1765_v3, %s8029_s21  ;;  %v1648_v12 = vpop.f32.mrf.mxu3 }
 0x28d   : > { %v1635_v27 = vadd.f32 %v1634_v6, %v1104_v0  ;;  %v1660_v9 = vpop.f32.mrf.mxu0  ;;  %v1674_v10 = vpop.f32.mrf.mxu1 }
 0x28e   : > { %v1661_v20 = vadd.f32 %v1660_v9, %v1105_v14 }
 0x28f   : > { %v1649_v13 = vadd.f32 %v1648_v12, %v1635_v27 }
 0x290   : > { %v1675_v21 = vadd.f32 %v1674_v10, %v1661_v20 }
 0x291   : > { %v8696_v15 = vpack.c.bf16 %v1649_v13, %v1647_v11 }
 0x294   : > { %v1688_v16 = vpop.f32.mrf.mxu2  ;;  %2262 = vrot.lane.b32.xlu1 %v8696_v15, %s8029_s21  ;;  %v1702_v23 = vpop.f32.mrf.mxu3 }
 0x295   : > { %v1662_v17 = vpop.f32.mrf.mxu0  ;;  %v1676_v18 = vpop.f32.mrf.mxu1  ;;  %v1689_v7 = vadd.f32 %v1688_v16, %v1106_v29 }
 0x296   : > { %v1663_v19 = vadd.f32 %v1662_v17, %v1105_v14 }
 0x297   : > { %v1703_v36 = vadd.f32 %v1702_v23, %v1689_v7 }
 0x298   : > { %v1677_v22 = vadd.f32 %v1676_v18, %v1663_v19 }
 0x29a   : > { %v1766_v4 = vpack.c.bf16 %v1677_v22, %v1675_v21 }
 0x29c   : > { %1981 = vrot.lane.b32.xlu0 %v1766_v4, %s8029_s21  ;;  %1838 = vrot.lane.b32.xlu2 %v1766_v4, %s8030_s20  ;;  %v1773_v5 = vsel %vm1768_vm7, %v1766_v4, 0  ;;  %v1690_v28 = vpop.f32.mrf.mxu2  ;;  %v1704_v32 = vpop.f32.mrf.mxu3 }
 0x29d   : > { %1782 = vmatpush.bf16.xpose.msrb.mxu0 %v1773_v5  ;;  %v1691_v31 = vadd.f32 %v1690_v28, %v1106_v29 }
 0x29e   : > { %v1716_v24 = vpop.f32.mrf.mxu0  ;;  %v1730_v25 = vpop.f32.mrf.mxu1 }
 0x29f   : > { %v1717_v33 = vadd.f32 %v1716_v24, %v1107_v30  ;;  %v1705_v8 = vadd.f32 %v1704_v32, %v1691_v31 }
 0x2a1   : > { %v1731_v38 = vadd.f32 %v1730_v25, %v1717_v33  ;;  %v2051_v40 = vpack.c.bf16 %v1705_v8, %v1703_v36 }
 0x2a3   : > { %v2057_v47 = vsel %vm1768_vm7, %v2051_v40, 0 }
 0x2a4   : > { %2118 = vrot.lane.b32.xlu0 %v8696_v15, %s8030_s20  ;;  %1835 = vrot.lane.b32.xlu2 %v1765_v3, %s8030_s20 }
 0x2a5   : > { %5845 = vmatmul.msk.bf16.vlgmr.msrb.gmra.mxu0 %vm1768_vm7, %v1765_v3  ;;  %v8750_v13 = vpop.f32.mrf.mxu2 }
 0x2a6   : > { %v1718_v34 = vpop.f32.mrf.mxu0  ;;  %v1732_v37 = vpop.f32.mrf.mxu1 }
 0x2a7   : > { %v1719_v35 = vadd.f32 %v1718_v34, %v1107_v30 }
 0x2a9   : > { %v1733_v39 = vadd.f32 %v1732_v37, %v1719_v35 }
 0x2ab   : > { %v8709_v41 = vpack.c.bf16 %v1733_v39, %v1731_v38 }
 0x2ac   : > { %2193 = vrot.lane.b32.xlu0 %v2051_v40, %s8031_s17  ;;  %1910 = vrot.lane.b32.xlu2 %v1766_v4, %s8031_s17 }
 0x2ad   : > { %1827 = vmatpush.bf16.msrb.mxu1 %v8709_v41  ;;  %v8752_v11 = vpop.f32.mrf.mxu2 }
 0x2b4   : > { %2121 = vrot.lane.b32.xlu2 %v2051_v40, %s8030_s20 }
 0x2bc   : > { %1908 = vrot.lane.b32.xlu2 %v1765_v3, %s8031_s17 }
 0x2c4   : > { %2264 = vrot.lane.b32.xlu2 %v2051_v40, %s8029_s21 }
 0x2cc   : > { %2191 = vrot.lane.b32.xlu2 %v8696_v15, %s8031_s17 }
 0x2d4   : > { %1888 = vrot.lane.b32.xlu2 %v8709_v41, %s8030_s20 }
 0x2f6   : > { %v1839_v42 = vpop.permute.xlu2 %1838 }
 0x2f7   : > { %v1844_v43 = vsel %vm1768_vm7, %v1839_v42, 0 }
 0x2f8   : > { %1853 = vmatpush.bf16.xpose.msrb.mxu2 %v1844_v43 }
 0x2fe   : > { %v1836_v44 = vpop.permute.xlu2 %1835  ;;  %v1980_v52 = vpop.permute.xlu1 %1979 }
 0x2ff   : > { %5847 = vmatmul.msk.bf16.vlgmr.msrb.gmra.mxu2 %vm1768_vm7, %v1836_v44 }
 0x306   : > { %v1911_v45 = vpop.permute.xlu2 %1910  ;;  %v2263_v12 = vpop.permute.xlu1 %2262 }
 0x307   : > { %v1916_v46 = vsel %vm1768_vm7, %v1911_v45, 0 }
 0x308   : > { %1925 = vmatpush.bf16.xpose.msra.mxu0 %v1916_v46 }
 0x30e   : > { %v1982_v48 = vpop.permute.xlu0 %1981  ;;  %v2122_v49 = vpop.permute.xlu2 %2121 }
 0x30f   : > { %v1987_v50 = vsel %vm1768_vm7, %v1982_v48, 0  ;;  %v2127_v51 = vsel %vm1768_vm7, %v2122_v49, 0 }
 0x310   : > { %2066 = vmatpush.bf16.xpose.msrb.mxu0 %v2057_v47  ;;  %1996 = vmatpush.bf16.xpose.msra.mxu2 %v1987_v50 }
 0x316   : > { %v2119_v54 = vpop.permute.xlu0 %2118  ;;  %v1909_v55 = vpop.permute.xlu2 %1908 }
 0x317   : > { %5849 = vmatmul.msk.bf16.vlgmr.msra.gmra.mxu0 %vm1768_vm7, %v1909_v55  ;;  %5851 = vmatmul.msk.bf16.vlgmr.msra.gmra.mxu2 %vm1768_vm7, %v1980_v52 }
 0x318   : > { %2136 = vmatpush.bf16.xpose.msrb.mxu2 %v2127_v51 }
 0x31e   : > { %v2194_v56 = vpop.permute.xlu0 %2193  ;;  %v2265_v57 = vpop.permute.xlu2 %2264 }
 0x31f   : > { %v2199_v58 = vsel %vm1768_vm7, %v2194_v56, 0  ;;  %v2270_v59 = vsel %vm1768_vm7, %v2265_v57, 0 }
 0x320   : > { %2208 = vmatpush.bf16.xpose.msra.mxu0 %v2199_v58  ;;  %2279 = vmatpush.bf16.xpose.msra.mxu2 %v2270_v59 }
 0x322   : > { %v1784_v60 = vpop.f32.mrf.mxu0 }
 0x323   : > { %v1789_v62 = vmul.f32 0.17677669, %v1784_v60 }
 0x325   : > { %v1791_v63 = vadd.f32 %v1789_v62, %v8734_v61 }
 0x326   : > { %v2192_v0 = vpop.permute.xlu2 %2191 }
 0x327   : > { %5853 = vmatmul.msk.bf16.vlgmr.msrb.gmra.mxu0 %vm1768_vm7, %v8696_v15  ;;  %5855 = vmatmul.msk.bf16.vlgmr.msrb.gmra.mxu2 %vm1768_vm7, %v2119_v54  ;;  %v1794_v1 = vsel %vm1793_vm8, %v1791_v63, -inf }
 0x328   : > { %1795 = vmax.xlane.f32.xlu2 %v1794_v1 }
 0x32a   : > { %v1786_v3 = vpop.f32.mrf.mxu0 }
 0x32b   : > { %v1790_v6 = vmul.f32 0.17677669, %v1786_v3 }
 0x32d   : > { %v1792_v27 = vadd.f32 %v1790_v6, %v8744_v26 }
 0x32e   : > { %v1889_v9 = vpop.permute.xlu2 %1888 }
 0x32f   : > { %1901 = vmatpush.bf16.msrb.mxu3 %v1889_v9  ;;  %v1797_v10 = vsel %vm1793_vm8, %v1792_v27, -inf }
 0x330   : > { %1798 = vmax.xlane.f32.xlu1 %v1797_v10 }
 0x337   : > { %5857 = vmatmul.msk.bf16.vlgmr.msra.gmra.mxu0 %vm1768_vm7, %v2192_v0  ;;  %5859 = vmatmul.msk.bf16.vlgmr.msra.gmra.mxu2 %vm1768_vm7, %v2263_v12 }
 0x382   : > { %v1855_v14 = vpop.f32.mrf.mxu2 }
 0x383   : > { %v1860_v18 = vmul.f32 0.17677669, %v1855_v14 }
 0x385   : > { %v8760_v24 = vadd.f32 %v1860_v18, %v8734_v61 }
 0x387   : > { %v1864_v31 = vsel %vm1793_vm8, %v8760_v24, -inf }
 0x38a   : > { %v1857_v15 = vpop.f32.mrf.mxu2 }
 0x38b   : > { %v1861_v29 = vmul.f32 0.17677669, %v1857_v15 }
 0x38d   : > { %v8770_v8 = vadd.f32 %v1861_v29, %v8744_v26 }
 0x38f   : > { %v1867_v37 = vsel %vm1793_vm8, %v8770_v8, -inf }
 0x394   : > { %v1927_v20 = vpop.f32.mrf.mxu0 }
 0x395   : > { %v1932_v16 = vmul.f32 0.17677669, %v1927_v20 }
 0x397   : > { %v8755_v17 = vadd.f32 %v1932_v16, %v8734_v61 }
 0x399   : > { %v1936_v19 = vsel %vm1793_vm8, %v8755_v17, -inf }
 0x39a   : > { %v1998_v21 = vpop.f32.mrf.mxu2  ;;  %1937 = vmax.xlane.f32.xlu1 %v1936_v19 }
 0x39b   : > { %v1796_v22 = vpop.xlane.xlu2 %1795  ;;  %v2003_v57 = vmul.f32 0.17677669, %v1998_v21 }
 0x39c   : > { %v1800_v4 = vsub.f32 %v1791_v63, %v1796_v22  ;;  %v1929_v23 = vpop.f32.mrf.mxu0 }
 0x39d   : > { %v1933_v5 = vmul.f32 0.17677669, %v1929_v23  ;;  %v8809_v3 = vadd.f32 %v2003_v57, %v8734_v61 }
 0x39e   : > { %v1802_v25 = vmul.f32 1.442695, %v1800_v4 }
 0x39f   : > { %v8763_v28 = vadd.f32 %v1933_v5, %v8744_v26  ;;  %v2007_v14 = vsel %vm1793_vm8, %v8809_v3, -inf }
 0x3a0   : > { %7555 = vpow2.f32 %v1802_v25 }
 0x3a1   : > { %v1939_v30 = vsel %vm1793_vm8, %v8763_v28, -inf }
 0x3a2   : > { %v2000_v7 = vpop.f32.mrf.mxu2  ;;  %1940 = vmax.xlane.f32.xlu0 %v1939_v30  ;;  %1865 = vmax.xlane.f32.xlu1 %v1864_v31 }
 0x3a3   : > { %v1799_v33 = vpop.xlane.xlu1 %1798  ;;  %v2004_v46 = vmul.f32 0.17677669, %v2000_v7 }
 0x3a4   : > { %v2068_v32 = vpop.f32.mrf.mxu0  ;;  %v1801_v35 = vsub.f32 %v1792_v27, %v1799_v33 }
 0x3a5   : > { %v2073_v36 = vmul.f32 0.17677669, %v2068_v32  ;;  %v8792_v54 = vadd.f32 %v2004_v46, %v8744_v26 }
 0x3a6   : > { %v8772_v34 = vpop.eup %7555  ;;  %v1804_v40 = vmul.f32 1.442695, %v1801_v35 }
 0x3a7   : > { %v1806_v38 = vsel %vm1793_vm8, %v8772_v34, 0.0  ;;  %v8779_v44 = vadd.f32 %v2073_v36, %v8734_v61  ;;  %v2010_v59 = vsel %vm1793_vm8, %v8792_v54, -inf }
 0x3a8   : > { %7557 = vpow2.f32 %v1804_v40 }
 0x3a9   : > { %v2077_v48 = vsel %vm1793_vm8, %v8779_v44, -inf }
 0x3aa   : > { %v2138_v39 = vpop.f32.mrf.mxu2  ;;  %1868 = vmax.xlane.f32.xlu0 %v1867_v37  ;;  %1807 = vadd.xlane.f32.xlu1 %v1806_v38 }
 0x3ab   : > { %v2143_v58 = vmul.f32 0.17677669, %v2138_v39 }
 0x3ac   : > { %v2070_v42 = vpop.f32.mrf.mxu0 }
 0x3ad   : > { %v2074_v43 = vmul.f32 0.17677669, %v2070_v42  ;;  %v8806_v1 = vadd.f32 %v2143_v58, %v8734_v61 }
 0x3ae   : > { %v8794_v55 = vpop.eup %7557 }
 0x3af   : > { %v8782_v45 = vadd.f32 %v2074_v43, %v8744_v26  ;;  %v1809_v60 = vsel %vm1793_vm8, %v8794_v55, 0.0  ;;  %v2147_v12 = vsel %vm1793_vm8, %v8806_v1, -inf  ;;  %v1758_v43 = vpop.f32.mrf.mxu3 }
 0x3b1   : > { %v2080_v47 = vsel %vm1793_vm8, %v8782_v45, -inf }
 0x3b2   : > { %v2140_v49 = vpop.f32.mrf.mxu2  ;;  %2081 = vmax.xlane.f32.xlu2 %v2080_v47  ;;  %2078 = vmax.xlane.f32.xlu0 %v2077_v48  ;;  %v1108_v47 = vperm.slane %v8690_v53, 5 }
 0x3b3   : > { %v2144_v50 = vmul.f32 0.17677669, %v2140_v49 }
 0x3b4   : > { %v2210_v51 = vpop.f32.mrf.mxu0  ;;  %v1747_v48 = vadd.f32 %v8752_v11, %v1108_v47 }
 0x3b5   : > { %v8789_v52 = vadd.f32 %v2144_v50, %v8744_v26  ;;  %v2215_v9 = vmul.f32 0.17677669, %v2210_v51  ;;  %v1745_v50 = vadd.f32 %v8750_v13, %v1108_v47 }
 0x3b7   : > { %v2150_v56 = vsel %vm1793_vm8, %v8789_v52, -inf  ;;  %v8821_v20 = vadd.f32 %v2215_v9, %v8734_v61 }
 0x3b8   : > { %2151 = vmax.xlane.f32.xlu1 %v2150_v56  ;;  %v1760_v56 = vpop.f32.mrf.mxu3 }
 0x3b9   : > { %v2219_v21 = vsel %vm1793_vm8, %v8821_v20, -inf  ;;  %v1761_v57 = vadd.f32 %v1760_v56, %v1747_v48 }
 0x3ba   : > { %v2281_v62 = vpop.f32.mrf.mxu2  ;;  %2011 = vmax.xlane.f32.xlu2 %v2010_v59  ;;  %1810 = vadd.xlane.f32.xlu0 %v1809_v60 }
 0x3bb   : > { %v2286_v63 = vmul.f32 0.17677669, %v2281_v62 }
 0x3bc   : > { %v2212_v6 = vpop.f32.mrf.mxu0 }
 0x3bd   : > { %v8803_v0 = vadd.f32 %v2286_v63, %v8734_v61  ;;  %v2216_v10 = vmul.f32 0.17677669, %v2212_v6  ;;  %v1759_v63 = vadd.f32 %v1758_v43, %v1745_v50 }
 0x3bf   : > { %v2290_v27 = vsel %vm1793_vm8, %v8803_v0, -inf  ;;  %v8818_v15 = vadd.f32 %v2216_v10, %v8744_v26  ;;  %v8862_v11 = vpack.c.bf16 %v1761_v57, %v1759_v63 }
 0x3c0   : > { %2291 = vmax.xlane.f32.xlu1 %v2290_v27 }
 0x3c1   : > { %v2222_v19 = vsel %vm1793_vm8, %v8818_v15, -inf }
 0x3c2   : > { %2148 = vmax.xlane.f32.xlu2 %v2147_v12  ;;  %2008 = vmax.xlane.f32.xlu0 %v2007_v14  ;;  %v2283_v16 = vpop.f32.mrf.mxu2 }
 0x3c3   : > { %v2287_v18 = vmul.f32 0.17677669, %v2283_v16 }
 0x3c5   : > { %v8828_v22 = vadd.f32 %v2287_v18, %v8744_v26 }
 0x3c7   : > { %v2293_v4 = vsel %vm1793_vm8, %v8828_v22, -inf }
 0x3ca   : > { %2223 = vmax.xlane.f32.xlu2 %v2222_v19  ;;  %2220 = vmax.xlane.f32.xlu0 %v2219_v21 }
 0x3d2   : > { %2294 = vmax.xlane.f32.xlu0 %v2293_v4 }
 0x40d   : > { %v1938_v23 = vpop.xlane.xlu1 %1937 }
 0x40e   : > { %v1942_v61 = vsub.f32 %v8755_v17, %v1938_v23 }
 0x410   : > { %v1944_v5 = vmul.f32 1.442695, %v1942_v61 }
 0x412   : > { %7559 = vpow2.f32 %v1944_v5 }
 0x415   : > { %v1941_v25 = vpop.xlane.xlu0 %1940  ;;  %v1866_v29 = vpop.xlane.xlu1 %1865 }
 0x416   : > { %v1943_v30 = vsub.f32 %v8763_v28, %v1941_v25  ;;  %v1870_v31 = vsub.f32 %v8760_v24, %v1866_v29 }
 0x418   : > { %v8835_v7 = vpop.eup %7559  ;;  %v1946_v32 = vmul.f32 1.442695, %v1943_v30  ;;  %v1872_v26 = vmul.f32 1.442695, %v1870_v31 }
 0x419   : > { %v1948_v33 = vsel %vm1793_vm8, %v8835_v7, 0.0 }
 0x41a   : > { %7561 = vpow2.f32 %v1946_v32  ;;  %1949 = vadd.xlane.f32.xlu1 %v1948_v33 }
 0x41b   : > { %7563 = vpow2.f32 %v1872_v26 }
 0x41d   : > { %v1869_v35 = vpop.xlane.xlu0 %1868  ;;  %v1808_v42 = vpop.xlane.xlu1 %1807 }
 0x41e   : > { %v1871_v17 = vsub.f32 %v8770_v8, %v1869_v35 }
 0x420   : > { %v8840_v36 = vpop.eup %7561  ;;  %v1874_v37 = vmul.f32 1.442695, %v1871_v17 }
 0x421   : > { %v8842_v38 = vpop.eup %7563  ;;  %v1951_v24 = vsel %vm1793_vm8, %v8840_v36, 0.0 }
 0x422   : > { %7565 = vpow2.f32 %v1874_v37  ;;  %1952 = vadd.xlane.f32.xlu0 %v1951_v24  ;;  %v1876_v28 = vsel %vm1793_vm8, %v8842_v38, 0.0 }
 0x423   : > { %1877 = vadd.xlane.f32.xlu2 %v1876_v28  ;;  %7567 = vrcp.f32 %v1808_v42 }
 0x425   : > { %v8848_v39 = vpop.xlane.xlu0 %2078 }
 0x428   : > { %v8850_v40 = vpop.eup %7565 }
 0x429   : > { %v1879_v8 = vsel %vm1793_vm8, %v8850_v40, 0.0  ;;  %v7568_v49 = vpop.eup %7567 }
 0x42a   : > { %1880 = vadd.xlane.f32.xlu1 %v1879_v8  ;;  %v1814_v58 = vmul.f32 %v7568_v49, %v8772_v34  ;;  %v2082_v34 = vpop.xlane.xlu2 %2081 }
 0x42b   : > { %v2084_v9 = vsub.f32 %v8782_v45, %v2082_v34  ;;  %v2152_v19 = vpop.xlane.xlu1 %2151 }
 0x42d   : > { %v1811_v46 = vpop.xlane.xlu0 %1810  ;;  %v2087_v14 = vmul.f32 1.442695, %v2084_v9 }
 0x42e   : > { %7569 = vrcp.f32 %v1811_v46 }
 0x433   : > { %v2292_v25 = vpop.xlane.xlu1 %2291 }
 0x434   : > { %v7570_v51 = vpop.eup %7569 }
 0x435   : > { %v1815_v59 = vmul.f32 %v7570_v51, %v8794_v55  ;;  %v2009_v60 = vpop.xlane.xlu0 %2008 }
 0x436   : > { %v2013_v62 = vsub.f32 %v8809_v3, %v2009_v60  ;;  %1959 = vrot.lane.b32.xlu0 %v8709_v41, %s8031_s17  ;;  %v2012_v3 = vpop.xlane.xlu2 %2011 }
 0x437   : > { %v1816_v53 = vpack.c.bf16 %v1815_v59, %v1814_v58  ;;  %v2014_v27 = vsub.f32 %v8792_v54, %v2012_v3  ;;  %v2154_v54 = vsub.f32 %v8789_v52, %v2152_v19 }
 0x438   : > { %v2015_v6 = vmul.f32 1.442695, %v2013_v62 }
 0x439   : > { %5846 = vmatmul.msk.bf16.vlgmr.msrb.gmra.mxu1 %vm1793_vm8, %v1816_v53  ;;  %v2017_v10 = vmul.f32 1.442695, %v2014_v27 }
 0x43a   : > { %7571 = vpow2.f32 %v2015_v6 }
 0x43b   : > { %2171 = vrot.lane.b32.xlu2 %v8862_v11, %s8030_s20  ;;  %7573 = vpow2.f32 %v2017_v10 }
 0x43c   : > { %7575 = vpow2.f32 %v2087_v14 }
 0x43d   : > { %v2221_v12 = vpop.xlane.xlu0 %2220 }
 0x43e   : > { %v2225_v16 = vsub.f32 %v8821_v20, %v2221_v12  ;;  %v2149_v18 = vpop.xlane.xlu2 %2148  ;;  %v2157_v20 = vmul.f32 1.442695, %v2154_v54 }
 0x43f   : > { %v2153_v21 = vsub.f32 %v8806_v1, %v2149_v18 }
 0x440   : > { %v8867_v13 = vpop.eup %7571  ;;  %v2227_v4 = vmul.f32 1.442695, %v2225_v16 }
 0x441   : > { %v2019_v55 = vsel %vm1793_vm8, %v8867_v13, 0.0  ;;  %v8875_v23 = vpop.eup %7573  ;;  %v2155_v45 = vmul.f32 1.442695, %v2153_v21 }
 0x442   : > { %2020 = vadd.xlane.f32.xlu1 %v2019_v55  ;;  %7577 = vpow2.f32 %v2227_v4  ;;  %v2022_v61 = vsel %vm1793_vm8, %v8875_v23, 0.0  ;;  %v8882_v5 = vpop.eup %7575 }
 0x443   : > { %7579 = vpow2.f32 %v2155_v45  ;;  %v2092_v1 = vsel %vm1793_vm8, %v8882_v5, 0.0 }
 0x444   : > { %7581 = vpow2.f32 %v2157_v20 }
 0x445   : > { %v2295_v24 = vpop.xlane.xlu0 %2294 }
 0x446   : > { %v2297_v28 = vsub.f32 %v8828_v22, %v2295_v24  ;;  %v2224_v8 = vpop.xlane.xlu2 %2223 }
 0x447   : > { %v2226_v46 = vsub.f32 %v8818_v15, %v2224_v8 }
 0x448   : > { %v8886_v29 = vpop.eup %7577  ;;  %v2300_v42 = vmul.f32 1.442695, %v2297_v28 }
 0x449   : > { %v2231_v52 = vsel %vm1793_vm8, %v8886_v29, 0.0  ;;  %v8891_v30 = vpop.eup %7579 }
 0x44a   : > { %v2159_v32 = vsel %vm1793_vm8, %v8891_v30, 0.0  ;;  %v8895_v26 = vpop.eup %7581 }
 0x44b   : > { %v2162_v33 = vsel %vm1793_vm8, %v8895_v26, 0.0 }
 0x45b   : > { %2030 = vrot.lane.b32.xlu1 %v8709_v41, %s8029_s21  ;;  %v2296_v41 = vsub.f32 %v8803_v0, %v2292_v25  ;;  %v2083_v0 = vsub.f32 %v8779_v44, %v8848_v39  ;;  %v2229_v39 = vmul.f32 1.442695, %v2226_v46 }
 0x45d   : > { %v2298_v31 = vmul.f32 1.442695, %v2296_v41  ;;  %v2085_v37 = vmul.f32 1.442695, %v2083_v0 }
 0x45f   : > { %7583 = vpow2.f32 %v2298_v31 }
 0x460   : > { %2023 = vadd.xlane.f32.xlu0 %v2022_v61  ;;  %7585 = vpow2.f32 %v2085_v37 }
 0x461   : > { %7587 = vpow2.f32 %v2300_v42 }
 0x462   : > { %7589 = vpow2.f32 %v2229_v39 }
 0x464   : > { %2093 = vadd.xlane.f32.xlu2 %v2092_v1 }
 0x465   : > { %v8899_v35 = vpop.eup %7583 }
 0x466   : > { %v2302_v17 = vsel %vm1793_vm8, %v8899_v35, 0.0  ;;  %v8906_v43 = vpop.eup %7585 }
 0x467   : > { %v2089_v44 = vsel %vm1793_vm8, %v8906_v43, 0.0  ;;  %v8913_v47 = vpop.eup %7587 }
 0x468   : > { %2232 = vadd.xlane.f32.xlu0 %v2231_v52  ;;  %v2305_v22 = vsel %vm1793_vm8, %v8913_v47, 0.0  ;;  %v8919_v15 = vpop.eup %7589 }
 0x469   : > { %v2234_v49 = vsel %vm1793_vm8, %v8919_v15, 0.0 }
 0x46c   : > { %2160 = vadd.xlane.f32.xlu2 %v2159_v32 }
 0x470   : > { %2163 = vadd.xlane.f32.xlu0 %v2162_v33 }
 0x478   : > { %2303 = vadd.xlane.f32.xlu0 %v2302_v17 }
 0x484   : > { %2313 = vrot.lane.b32.xlu2 %v8862_v11, %s8029_s21 }
 0x485   : > { %2090 = vadd.xlane.f32.xlu1 %v2089_v44 }
 0x48c   : > { %2242 = vrot.lane.b32.xlu0 %v8862_v11, %s8031_s17 }
 0x48d   : > { %2306 = vadd.xlane.f32.xlu1 %v2305_v22  ;;  %v1950_v48 = vpop.xlane.xlu1 %1949 }
 0x495   : > { %2235 = vadd.xlane.f32.xlu1 %v2234_v49  ;;  %v1953_v51 = vpop.xlane.xlu0 %1952 }
 0x496   : > { %v1878_v50 = vpop.xlane.xlu2 %1877 }
 0x497   : > { %7591 = vrcp.f32 %v1878_v50 }
 0x498   : > { %7593 = vrcp.f32 %v1953_v51 }
 0x49d   : > { %v1881_v56 = vpop.xlane.xlu1 %1880  ;;  %v7592_v57 = vpop.eup %7591 }
 0x49e   : > { %7595 = vrcp.f32 %v1881_v56  ;;  %v7594_v58 = vpop.eup %7593  ;;  %v1884_v62 = vmul.f32 %v7592_v57, %v8842_v38  ;;  %v2172_v10 = vpop.permute.xlu2 %2171 }
 0x49f   : > { %7597 = vrcp.f32 %v1950_v48  ;;  %v1957_v53 = vmul.f32 %v7594_v58, %v8840_v36 }
 0x4a4   : > { %v7596_v59 = vpop.eup %7595 }
 0x4a5   : > { %v7598_v60 = vpop.eup %7597  ;;  %v1885_v63 = vmul.f32 %v7596_v59, %v8850_v40 }
 0x4a6   : > { %v1956_v34 = vmul.f32 %v7598_v60, %v8835_v7  ;;  %v5919_v60 = vld [vmem:[%s8368_s26 + $0x70] sm:$0xf] }
 0x4a7   : > { %v1886_v6 = vpack.c.bf16 %v1885_v63, %v1884_v62  ;;  %v7147_v62 = vld [vmem:[%s8368_s26 + $0x74] sm:$0xf0]  ;;  %v7146_v63 = vld [vmem:[%s8368_s26 + $0x74] sm:$0xf] }
 0x4a8   : > { %v1960_v55 = vpop.permute.xlu0 %1959  ;;  %v1958_v3 = vpack.c.bf16 %v1957_v53, %v1956_v34  ;;  %v5920_v53 = vor.u32 %v7147_v62, %v5919_v60  ;;  %v5911_v34 = vld [vmem:[%s8368_s26 + $0x60] sm:$0xf] }
 0x4a9   : > { %5848 = vmatmul.msk.bf16.vlgmr.msrb.gmra.mxu3 %vm1793_vm8, %v1886_v6  ;;  %1972 = vmatpush.bf16.msra.mxu1 %v1960_v55  ;;  %v5921_v6 = vld [vmem:[%s8368_s26 + $0x78] sm:$0xf0]  ;;  %v7145_v55 = vld [vmem:[%s8368_s26 + $0x64] sm:$0xf0] }
 0x4aa   : > { %2595 = vmatpush.bf16.msrb.mxu0 %v5920_v53 }
 0x4ac   : > { %5850 = vmatmul.msk.bf16.vlgmr.msra.gmra.mxu1 %vm1793_vm8, %v1958_v3  ;;  %v5924_v3 = vor.u32 %v7146_v63, %v5921_v6 }
 0x4ad   : > { %2110 = vmatpush.bf16.msrb.mxu1 %v8862_v11 }
 0x4ae   : > { %2623 = vmatpush.bf16.msrb.mxu2 %v5924_v3 }
 0x4b5   : > { %v2021_v27 = vpop.xlane.xlu1 %2020 }
 0x4b6   : > { %7599 = vrcp.f32 %v2021_v27  ;;  %v8945_v46 = vpop.f32.mrf.mxu1  ;;  %v7144_v27 = vld [vmem:[%s8368_s26 + $0x64] sm:$0xf] }
 0x4bc   : > { %v7600_v40 = vpop.eup %7599 }
 0x4bd   : > { %v2027_v12 = vmul.f32 %v7600_v40, %v8867_v13  ;;  %v5903_v40 = vld [vmem:[%s8368_s26 + $0x50] sm:$0xf] }
 0x4be   : > { %v8947_v44 = vpop.f32.mrf.mxu1 }
 0x4cd   : > { %v2031_v9 = vpop.permute.xlu1 %2030 }
 0x4ce   : > { %2043 = vmatpush.bf16.msra.mxu3 %v2031_v9  ;;  %v5913_v9 = vld [vmem:[%s8368_s26 + $0x68] sm:$0xf0] }
 0x4d2   : > { %2184 = vmatpush.bf16.msrb.mxu3 %v2172_v10  ;;  %v5912_v10 = vor.u32 %v7145_v55, %v5911_v34 }
 0x4d3   : > { %v2024_v38 = vpop.xlane.xlu0 %2023 }
 0x4d4   : > { %7601 = vrcp.f32 %v2024_v38  ;;  %2596 = vmatpush.bf16.msrb.mxu0 %v5912_v10  ;;  %v7163_v10 = vld [vmem:[%s8368_s26 + $0xf4] sm:$0xf0] }
 0x4d7   : > { %v2094_v36 = vpop.xlane.xlu2 %2093 }
 0x4da   : > { %v7602_v7 = vpop.eup %7601 }
 0x4db   : > { %v2028_v14 = vmul.f32 %v7602_v7, %v8875_v23  ;;  %v2233_v16 = vpop.xlane.xlu0 %2232  ;;  %v7143_v7 = vld [vmem:[%s8368_s26 + $0x54] sm:$0xf0] }
 0x4dd   : > { %v2029_v18 = vpack.c.bf16 %v2028_v14, %v2027_v12  ;;  %v7142_v12 = vld [vmem:[%s8368_s26 + $0x54] sm:$0xf]  ;;  %v5905_v14 = vld [vmem:[%s8368_s26 + $0x58] sm:$0xf0] }
 0x4df   : > { %v2161_v11 = vpop.xlane.xlu2 %2160  ;;  %5852 = vmatmul.msk.bf16.vlgmr.msra.gmra.mxu3 %vm1793_vm8, %v2029_v18  ;;  %v5904_v18 = vor.u32 %v7143_v7, %v5903_v40  ;;  %v5985_v40 = vld [vmem:[%s8368_s26 + $0xf8] sm:$0xf0] }
 0x4e0   : > { %7603 = vrcp.f32 %v2161_v11  ;;  %v5908_v11 = vor.u32 %v7142_v12, %v5905_v14  ;;  %v5975_v12 = vld [vmem:[%s8368_s26 + $0xe0] sm:$0xf]  ;;  %v7161_v14 = vld [vmem:[%s8368_s26 + $0xe4] sm:$0xf0] }
 0x4e1   : > { %2597 = vmatpush.bf16.msrb.mxu0 %v5904_v18  ;;  %v5976_v18 = vor.u32 %v7161_v14, %v5975_v12 }
 0x4e3   : > { %v2164_v19 = vpop.xlane.xlu0 %2163 }
 0x4e4   : > { %7605 = vrcp.f32 %v2164_v19  ;;  %v5895_v19 = vld [vmem:[%s8368_s26 + $0x40] sm:$0xf] }
 0x4e5   : > { %7607 = vrcp.f32 %v2094_v36  ;;  %v5916_v36 = vor.u32 %v7144_v27, %v5913_v9  ;;  %v5983_v9 = vld [vmem:[%s8368_s26 + $0xf0] sm:$0xf] }
 0x4e6   : > { %v7604_v4 = vpop.eup %7603 }
 0x4e7   : > { %v2314_v21 = vpop.permute.xlu2 %2313  ;;  %v2167_v45 = vmul.f32 %v7604_v4, %v8891_v30  ;;  %2624 = vmatpush.bf16.msrb.mxu2 %v5916_v36  ;;  %v7140_v4 = vld [vmem:[%s8368_s26 + $0x44] sm:$0xf]  ;;  %v5984_v36 = vor.u32 %v7163_v10, %v5983_v9 }
 0x4e8   : > { %2326 = vmatpush.bf16.msra.mxu3 %v2314_v21  ;;  %v7141_v21 = vld [vmem:[%s8368_s26 + $0x44] sm:$0xf0] }
 0x4ea   : > { %v7606_v54 = vpop.eup %7605 }
 0x4eb   : > { %v2168_v61 = vmul.f32 %v7606_v54, %v8895_v26  ;;  %v2304_v13 = vpop.xlane.xlu0 %2303  ;;  %v7608_v25 = vpop.eup %7607  ;;  %v5897_v54 = vld [vmem:[%s8368_s26 + $0x48] sm:$0xf0]  ;;  %2625 = vmatpush.bf16.msrb.mxu2 %v5908_v11 }
 0x4ec   : > { %v2098_v52 = vmul.f32 %v7608_v25, %v8882_v5  ;;  %v5977_v11 = vld [vmem:[%s8368_s26 + $0xe8] sm:$0xf0] }
 0x4ed   : > { %v2169_v20 = vpack.c.bf16 %v2168_v61, %v2167_v45  ;;  %v5896_v45 = vor.u32 %v7141_v21, %v5895_v19  ;;  %v5967_v21 = vld [vmem:[%s8368_s26 + $0xd0] sm:$0xf] }
 0x4ef   : > { %5856 = vmatmul.msk.bf16.vlgmr.msrb.gmra.mxu3 %vm1793_vm8, %v2169_v20  ;;  %v5900_v20 = vor.u32 %v7140_v4, %v5897_v54  ;;  %2598 = vmatpush.bf16.msrb.mxu0 %v5896_v45  ;;  %v7159_v4 = vld [vmem:[%s8368_s26 + $0xd4] sm:$0xf0]  ;;  %v7158_v54 = vld [vmem:[%s8368_s26 + $0xd4] sm:$0xf] }
 0x4f0   : > { %v5968_v45 = vor.u32 %v7159_v4, %v5967_v21  ;;  %v7687_v4 = vld [vmem:[#allocation2 + $0x10] sm:$0xff] }
 0x4f1   : > { %2626 = vmatpush.bf16.msrb.mxu2 %v5900_v20  ;;  %v5959_v20 = vld [vmem:[%s8368_s26 + $0xc0] sm:$0xf] }
 0x4f8   : > { %v2091_v23 = vpop.xlane.xlu1 %2090 }
 0x4f9   : > { %7609 = vrcp.f32 %v2091_v23  ;;  %v7139_v23 = vld [vmem:[%s8368_s26 + $0x34] sm:$0xf0] }
 0x4fa   : > { %7611 = vrcp.f32 %v2304_v13  ;;  %v5887_v13 = vld [vmem:[%s8368_s26 + $0x30] sm:$0xf] }
 0x4fe   : > { %v2243_v1 = vpop.permute.xlu0 %2242 }
 0x4ff   : > { %2255 = vmatpush.bf16.msra.mxu1 %v2243_v1  ;;  %v7610_v41 = vpop.eup %7609  ;;  %v7138_v1 = vld [vmem:[%s8368_s26 + $0x34] sm:$0xf] }
 0x500   : > { %v2097_v31 = vmul.f32 %v7610_v41, %v8906_v43  ;;  %v2307_v32 = vpop.xlane.xlu1 %2306  ;;  %v7612_v26 = vpop.eup %7611  ;;  %v5889_v41 = vld [vmem:[%s8368_s26 + $0x38] sm:$0xf0] }
 0x501   : > { %7613 = vrcp.f32 %v2307_v32  ;;  %v2310_v0 = vmul.f32 %v7612_v26, %v8899_v35  ;;  %v5888_v32 = vor.u32 %v7139_v23, %v5887_v13  ;;  %v5879_v26 = vld [vmem:[%s8368_s26 + $0x20] sm:$0xf]  ;;  %v7157_v13 = vld [vmem:[%s8368_s26 + $0xc4] sm:$0xf0] }
 0x502   : > { %v2099_v30 = vpack.c.bf16 %v2098_v52, %v2097_v31  ;;  %7615 = vrcp.f32 %v2233_v16 }
 0x503   : > { %2599 = vmatpush.bf16.msrb.mxu0 %v5888_v32  ;;  %v7155_v32 = vld [vmem:[%s8368_s26 + $0xb4] sm:$0xf0] }
 0x504   : > { %5854 = vmatmul.msk.bf16.vlgmr.msrb.gmra.mxu1 %vm1793_vm8, %v2099_v30  ;;  %v5892_v30 = vor.u32 %v7138_v1, %v5889_v41  ;;  %v5961_v1 = vld [vmem:[%s8368_s26 + $0xc8] sm:$0xf0]  ;;  %v5960_v41 = vor.u32 %v7157_v13, %v5959_v20 }
 0x505   : > { %2609 = vmatpush.bf16.msrb.mxu1 %v5984_v36 }
 0x506   : > { %2627 = vmatpush.bf16.msrb.mxu2 %v5892_v30  ;;  %v7154_v30 = vld [vmem:[%s8368_s26 + $0xb4] sm:$0xf] }
 0x507   : > { %v7614_v33 = vpop.eup %7613 }
 0x508   : > { %v2311_v17 = vmul.f32 %v7614_v33, %v8913_v47  ;;  %v2236_v37 = vpop.xlane.xlu1 %2235  ;;  %v7616_v5 = vpop.eup %7615  ;;  %v7137_v33 = vld [vmem:[%s8368_s26 + $0x24] sm:$0xf0] }
 0x509   : > { %7617 = vrcp.f32 %v2236_v37  ;;  %v2239_v42 = vmul.f32 %v7616_v5, %v8886_v29  ;;  %v5880_v37 = vor.u32 %v7137_v33, %v5879_v26  ;;  %v5871_v5 = vld [vmem:[%s8368_s26 + $0x10] sm:$0xf]  ;;  %2610 = vmatpush.bf16.msrb.mxu1 %v5976_v18  ;;  %v5953_v26 = vld [vmem:[%s8368_s26 + $0xb8] sm:$0xf0] }
 0x50a   : > { %v2312_v24 = vpack.c.bf16 %v2311_v17, %v2310_v0  ;;  %v7136_v0 = vld [vmem:[%s8368_s26 + $0x24] sm:$0xf]  ;;  %v5881_v17 = vld [vmem:[%s8368_s26 + $0x28] sm:$0xf0] }
 0x50b   : > { %2600 = vmatpush.bf16.msrb.mxu0 %v5880_v37  ;;  %v7153_v37 = vld [vmem:[%s8368_s26 + $0xa4] sm:$0xf0] }
 0x50c   : > { %5860 = vmatmul.msk.bf16.vlgmr.msra.gmra.mxu3 %vm1793_vm8, %v2312_v24  ;;  %v5884_v24 = vor.u32 %v7136_v0, %v5881_v17  ;;  %v5956_v0 = vor.u32 %v7154_v30, %v5953_v26  ;;  %v5943_v17 = vld [vmem:[%s8368_s26 + $0xa0] sm:$0xf]  ;;  %v7690_v26 = vld [vmem:[#allocation2 + $0x8] sm:$0xff] }
 0x50d   : > { %2611 = vmatpush.bf16.msrb.mxu1 %v5968_v45  ;;  %v7688_v45 = vld [vmem:[#allocation2] sm:$0xff] }
 0x50e   : > { %2628 = vmatpush.bf16.msrb.mxu2 %v5884_v24  ;;  %v7152_v24 = vld [vmem:[%s8368_s26 + $0xa4] sm:$0xf] }
 0x50f   : > { %v7618_v28 = vpop.eup %7617 }
 0x510   : > { %v2240_v8 = vmul.f32 %v7618_v28, %v8919_v15  ;;  %v7135_v28 = vld [vmem:[%s8368_s26 + $0x14] sm:$0xf0] }
 0x511   : > { %2612 = vmatpush.bf16.msrb.mxu1 %v5960_v41 }
 0x512   : > { %v2241_v43 = vpack.c.bf16 %v2240_v8, %v2239_v42  ;;  %v7134_v42 = vld [vmem:[%s8368_s26 + $0x14] sm:$0xf]  ;;  %v5873_v8 = vld [vmem:[%s8368_s26 + $0x18] sm:$0xf0] }
 0x514   : > { %5858 = vmatmul.msk.bf16.vlgmr.msra.gmra.mxu1 %vm1793_vm8, %v2241_v43  ;;  %v5872_v43 = vor.u32 %v7135_v28, %v5871_v5  ;;  %v5945_v5 = vld [vmem:[%s8368_s26 + $0xa8] sm:$0xf0]  ;;  %v5944_v28 = vor.u32 %v7153_v37, %v5943_v17 }
 0x515   : > { %v6215_v17 = vld [vmem:[%s8381_s24 + $0x1c0] sm:$0xf] }
 0x516   : > { %2601 = vmatpush.bf16.msrb.mxu0 %v5872_v43  ;;  %v7151_v43 = vld [vmem:[%s8368_s26 + $0x94] sm:$0xf0]  ;;  %v7224_v37 = vld [vmem:[%s8381_s24 + $0x1dc] sm:$0xf0] }
 0x529   : > { %v1974_v35 = vpop.f32.mrf.mxu1 }
 0x52c   : > { %v1903_v39 = vpop.f32.mrf.mxu3 }
 0x531   : > { %v1976_v47 = vpop.f32.mrf.mxu1 }
 0x532   : > { %v7519_v22 = vpack.i.bf16 %v1976_v47, %v1974_v35  ;;  %v5876_v35 = vor.u32 %v7134_v42, %v5873_v8  ;;  %v7133_v47 = vld [vmem:[%s8368_s26 + $0x4] sm:$0xf0]  ;;  %v5948_v42 = vor.u32 %v7152_v24, %v5945_v5  ;;  %v5935_v8 = vld [vmem:[%s8368_s26 + $0x90] sm:$0xf]  ;;  %v6471_v24 = vld [vmem:[%s8381_s24 + $0x3c0] sm:$0xf]  ;;  %v6216_v5 = vor.u32 %v7224_v37, %v6215_v17 }
 0x534   : > { %7520 = vrot.lane.b32.xlu2 %v7519_v22, %s8031_s17  ;;  %v1905_v48 = vpop.f32.mrf.mxu3  ;;  %2629 = vmatpush.bf16.msrb.mxu2 %v5876_v35  ;;  %v7132_v22 = vld [vmem:[%s8368_s26 + $0x4] sm:$0xf]  ;;  %v7150_v35 = vld [vmem:[%s8368_s26 + $0x94] sm:$0xf] }
 0x535   : > { %v7524_v29 = vpack.i.bf16 %v1905_v48, %v1903_v39  ;;  %v5863_v39 = vld [vmem:[%s8368_s26] sm:$0xf] }
 0x536   : > { %v5864_v48 = vor.u32 %v7133_v47, %v5863_v39  ;;  %v5937_v39 = vld [vmem:[%s8368_s26 + $0x98] sm:$0xf0]  ;;  %v5936_v47 = vor.u32 %v7151_v43, %v5935_v8  ;;  %v6217_v8 = vld [vmem:[%s8381_s24 + $0x1e0] sm:$0xf0] }
 0x537   : > { %7525 = vrot.lane.b32.xlu1 %v7524_v29, %s8029_s21  ;;  %v5865_v29 = vld [vmem:[%s8368_s26 + $0x8] sm:$0xf0] }
 0x538   : > { %2602 = vmatpush.bf16.msrb.mxu0 %v5864_v48  ;;  %v5927_v48 = vld [vmem:[%s8368_s26 + $0x80] sm:$0xf] }
 0x53c   : > { %3513 = vmatpush.bf16.msra.mxu0 %v6216_v5 }
 0x562   : > { %v2045_v15 = vpop.f32.mrf.mxu3 }
 0x56a   : > { %v2047_v49 = vpop.f32.mrf.mxu3 }
 0x56b   : > { %v7529_v50 = vpack.i.bf16 %v2047_v49, %v2045_v15  ;;  %v5868_v15 = vor.u32 %v7132_v22, %v5865_v29  ;;  %v5940_v22 = vor.u32 %v7150_v35, %v5937_v39  ;;  %v7149_v29 = vld [vmem:[%s8368_s26 + $0x84] sm:$0xf0]  ;;  %v7284_v39 = vld [vmem:[%s8381_s24 + $0x3c4] sm:$0xf] }
 0x56d   : > { %7530 = vrot.lane.b32.xlu2 %v7529_v50, %s8030_s20  ;;  %2630 = vmatpush.bf16.msrb.mxu2 %v5868_v15  ;;  %v7148_v15 = vld [vmem:[%s8368_s26 + $0x84] sm:$0xf] }
 0x572   : > { %v2186_v51 = vpop.f32.mrf.mxu3 }
 0x57a   : > { %v2188_v56 = vpop.f32.mrf.mxu3 }
 0x57b   : > { %v7534_v57 = vpack.i.bf16 %v2188_v56, %v2186_v51 }
 0x57d   : > { %7535 = vrot.lane.b32.xlu0 %v7534_v57, %s8029_s21 }
 0x581   : > { %v8953_v58 = vpop.f32.mrf.mxu1 }
 0x589   : > { %v8955_v59 = vpop.f32.mrf.mxu1 }
 0x58e   : > { %v7521_v49 = vpop.permute.xlu2 %7520 }
 0x58f   : > { %v2328_v38 = vpop.f32.mrf.mxu3  ;;  %v7523_v62 = vunpack.i.h.bf16 %v7521_v49  ;;  %v7522_v63 = vunpack.i.l.bf16 %v7521_v49  ;;  %v5928_v49 = vor.u32 %v7149_v29, %v5927_v48  ;;  %v7216_v29 = vld [vmem:[%s8381_s24 + $0x19c] sm:$0xf0] }
 0x591   : > { %v2257_v16 = vpop.f32.mrf.mxu1 }
 0x597   : > { %v2330_v61 = vpop.f32.mrf.mxu3 }
 0x598   : > { %v7544_v25 = vpack.i.bf16 %v2330_v61, %v2328_v38  ;;  %v7162_v38 = vld [vmem:[%s8368_s26 + $0xf4] sm:$0xf]  ;;  %v5969_v61 = vld [vmem:[%s8368_s26 + $0xd8] sm:$0xf0] }
 0x599   : > { %v2259_v52 = vpop.f32.mrf.mxu1  ;;  %v5988_v7 = vor.u32 %v7162_v38, %v5985_v40  ;;  %v5972_v23 = vor.u32 %v7158_v54, %v5969_v61 }
 0x59a   : > { %v7539_v31 = vpack.i.bf16 %v2259_v52, %v2257_v16  ;;  %7545 = vrot.lane.b32.xlu1 %v7544_v25, %s8030_s20  ;;  %v7160_v16 = vld [vmem:[%s8368_s26 + $0xe4] sm:$0xf] }
 0x59b   : > { %2637 = vmatpush.bf16.msrb.mxu3 %v5988_v7  ;;  %v5980_v19 = vor.u32 %v7160_v16, %v5977_v11  ;;  %v7156_v25 = vld [vmem:[%s8368_s26 + $0xc4] sm:$0xf] }
 0x59c   : > { %7540 = vrot.lane.b32.xlu2 %v7539_v31, %s8031_s17  ;;  %v5964_v52 = vor.u32 %v7156_v25, %v5961_v1  ;;  %v5951_v31 = vld [vmem:[%s8368_s26 + $0xb0] sm:$0xf] }
 0x59d   : > { %v5952_v33 = vor.u32 %v7155_v32, %v5951_v31  ;;  %v7689_v32 = vld [vmem:[#allocation2 + $0x18] sm:$0xff] }
 0x59f   : > { %2638 = vmatpush.bf16.msrb.mxu3 %v5980_v19  ;;  %2613 = vmatpush.bf16.msrb.mxu1 %v5952_v33 }
 0x5a3   : > { %2639 = vmatpush.bf16.msrb.mxu3 %v5972_v23  ;;  %2614 = vmatpush.bf16.msrb.mxu1 %v5944_v28  ;;  %v7288_v28 = vld [vmem:[%s8381_s24 + $0x3dc] sm:$0xf0] }
 0x5a4   : > { %v6472_v43 = vor.u32 %v7288_v28, %v6471_v24 }
 0x5a7   : > { %2640 = vmatpush.bf16.msrb.mxu3 %v5964_v52  ;;  %2615 = vmatpush.bf16.msrb.mxu1 %v5936_v47  ;;  %v6473_v47 = vld [vmem:[%s8381_s24 + $0x3e0] sm:$0xf0] }
 0x5a8   : > { %v6476_v48 = vor.u32 %v7284_v39, %v6473_v47 }
 0x5a9   : > { %v7526_v50 = vpop.permute.xlu1 %7525 }
 0x5aa   : > { %v7528_v51 = vunpack.i.h.bf16 %v7526_v50  ;;  %v7527_v56 = vunpack.i.l.bf16 %v7526_v50  ;;  %v5929_v50 = vld [vmem:[%s8368_s26 + $0x88] sm:$0xf0]  ;;  %s10342_s26 = scalar_lea.vmem [#allocation8], %s8354_s4 }
 0x5ab   : > { %2641 = vmatpush.bf16.msrb.mxu3 %v5956_v0  ;;  %2616 = vmatpush.bf16.msrb.mxu1 %v5928_v49  ;;  %v2429_v36 = vld [vmem:[%s10342_s26] sm:$0x3]  ;;  %v7280_v49 = vld [vmem:[%s8381_s24 + $0x39c] sm:$0xf0] }
 0x5ac   : > { %v2382_v57 = vsel %vm1768_vm7, %v8947_v44, %v7528_v51  ;;  %v2381_v60 = vsel %vm1768_vm7, %v8945_v46, %v7527_v56  ;;  %v5932_v51 = vor.u32 %v7148_v15, %v5929_v50  ;;  %v6439_v15 = vld [vmem:[%s8381_s24 + $0x380] sm:$0xf] }
 0x5ad   : > { %v2384_v55 = vsel %vm2383_vm9, %v2381_v60, %v7522_v63  ;;  %v2385_v44 = vsel %vm2383_vm9, %v2382_v57, %v7523_v62 }
 0x5af   : > { %2642 = vmatpush.bf16.msrb.mxu3 %v5948_v42  ;;  %v7220_v42 = vld [vmem:[%s8381_s24 + $0x1c4] sm:$0xf]  ;;  %3527 = vmatpush.bf16.msra.mxu1 %v6472_v43 }
 0x5b0   : > { %v6220_v35 = vor.u32 %v7220_v42, %v6217_v8 }
 0x5b2   : > { %3541 = vmatpush.bf16.msra.mxu2 %v6220_v35 }
 0x5b3   : > { %2643 = vmatpush.bf16.msrb.mxu3 %v5940_v22  ;;  %v6183_v22 = vld [vmem:[%s8381_s24 + $0x180] sm:$0xf] }
 0x5b4   : > { %v6184_v50 = vor.u32 %v7216_v29, %v6183_v22 }
 0x5b6   : > { %3514 = vmatpush.bf16.msra.mxu0 %v6184_v50  ;;  %v7184_v50 = vld [vmem:[%s8381_s24 + $0x9c] sm:$0xf0] }
 0x5b7   : > { %2644 = vmatpush.bf16.msrb.mxu3 %v5932_v51  ;;  %v6440_v51 = vor.u32 %v7280_v49, %v6439_v15  ;;  %v6055_v49 = vld [vmem:[%s8381_s24 + $0x80] sm:$0xf] }
 0x5b9   : > { %3528 = vmatpush.bf16.msra.mxu1 %v6440_v51  ;;  %v6311_v51 = vld [vmem:[%s8381_s24 + $0x280] sm:$0xf] }
 0x5bb   : > { %3555 = vmatpush.bf16.msra.mxu3 %v6476_v48 }
 0x5c7   : > { %v7531_v53 = vpop.permute.xlu2 %7530 }
 0x5c8   : > { %v7533_v6 = vunpack.i.h.bf16 %v7531_v53  ;;  %v7532_v34 = vunpack.i.l.bf16 %v7531_v53 }
 0x5ca   : > { %v2387_v3 = vsel %vm2386_vm10, %v2384_v55, %v7532_v34  ;;  %v2388_v46 = vsel %vm2386_vm10, %v2385_v44, %v7533_v6 }
 0x5cb   : > { %v2395_v27 = vpack.c.bf16 %v2388_v46, %v2387_v3 }
 0x5cd   : > { %2603 = vmatmul.bf16.vlgmr.msrb.gmra.mxu0 %v2395_v27  ;;  %2631 = vmatmul.bf16.vlgmr.msrb.gmra.mxu2 %v2395_v27 }
 0x5ef   : > { %v7536_v56 = vpop.permute.xlu0 %7535 }
 0x5f0   : > { %v7538_v60 = vunpack.i.h.bf16 %v7536_v56  ;;  %v7537_v62 = vunpack.i.l.bf16 %v7536_v56  ;;  %v7212_v56 = vld [vmem:[%s8381_s24 + $0x184] sm:$0xf] }
 0x5f2   : > { %v2389_v34 = vsel %vm1768_vm7, %v8953_v58, %v7537_v62  ;;  %v2390_v55 = vsel %vm1768_vm7, %v8955_v59, %v7538_v60  ;;  %v2431_v58 = vperm.slane %v2429_v36, 0  ;;  %v2432_v59 = vperm.slane %v2429_v36, 1  ;;  %v7276_v60 = vld [vmem:[%s8381_s24 + $0x384] sm:$0xf] }
 0x5f6   : > { %v7541_v57 = vpop.permute.xlu2 %7540 }
 0x5f7   : > { %v7543_v63 = vunpack.i.h.bf16 %v7541_v57  ;;  %v7542_v53 = vunpack.i.l.bf16 %v7541_v57  ;;  %v6185_v57 = vld [vmem:[%s8381_s24 + $0x1a0] sm:$0xf0] }
 0x5f8   : > { %v6188_v62 = vor.u32 %v7212_v56, %v6185_v57  ;;  %v6056_v56 = vor.u32 %v7184_v50, %v6055_v49  ;;  %v7248_v57 = vld [vmem:[%s8381_s24 + $0x29c] sm:$0xf0]  ;;  %v6193_v49 = vld [vmem:[%s8381_s24 + $0x1a8] sm:$0xf0] }
 0x5f9   : > { %v2392_v46 = vsel %vm2383_vm9, %v2390_v55, %v7543_v63  ;;  %v2391_v27 = vsel %vm2383_vm9, %v2389_v34, %v7542_v53  ;;  %v6441_v63 = vld [vmem:[%s8381_s24 + $0x3a0] sm:$0xf0]  ;;  %v6151_v53 = vld [vmem:[%s8381_s24 + $0x140] sm:$0xf]  ;;  %v7277_v50 = vld [vmem:[%s8381_s24 + $0x38c] sm:$0xf] }
 0x5fa   : > { %v6444_v34 = vor.u32 %v7276_v60, %v6441_v63  ;;  %v6407_v55 = vld [vmem:[%s8381_s24 + $0x340] sm:$0xf]  ;;  %3542 = vmatpush.bf16.msra.mxu2 %v6188_v62  ;;  %v7180_v60 = vld [vmem:[%s8381_s24 + $0x84] sm:$0xf]  ;;  %v6312_v63 = vor.u32 %v7248_v57, %v6311_v51  ;;  %v6449_v51 = vld [vmem:[%s8381_s24 + $0x3a8] sm:$0xf0] }
 0x5fb   : > { %v6057_v62 = vld [vmem:[%s8381_s24 + $0xa0] sm:$0xf0]  ;;  %v6452_v57 = vor.u32 %v7277_v50, %v6449_v51  ;;  %v6287_v50 = vld [vmem:[%s8381_s24 + $0x248] sm:$0xf] }
 0x5fc   : > { %3556 = vmatpush.bf16.msra.mxu3 %v6444_v34  ;;  %v6313_v34 = vld [vmem:[%s8381_s24 + $0x2a0] sm:$0xf0] }
 0x60c   : > { %v7546_v6 = vpop.permute.xlu1 %7545 }
 0x60d   : > { %v7548_v44 = vunpack.i.h.bf16 %v7546_v6  ;;  %v7547_v3 = vunpack.i.l.bf16 %v7546_v6  ;;  %v7208_v6 = vld [vmem:[%s8381_s24 + $0x15c] sm:$0xf0] }
 0x60f   : > { %v2394_v9 = vsel %vm2386_vm10, %v2392_v46, %v7548_v44  ;;  %v2393_v10 = vsel %vm2386_vm10, %v2391_v27, %v7547_v3  ;;  %v7272_v44 = vld [vmem:[%s8381_s24 + $0x35c] sm:$0xf0]  ;;  %v7204_v3 = vld [vmem:[%s8381_s24 + $0x144] sm:$0xf]  ;;  %v6152_v46 = vor.u32 %v7208_v6, %v6151_v53  ;;  %v6060_v53 = vor.u32 %v7180_v60, %v6057_v62  ;;  %v6159_v60 = vld [vmem:[%s8381_s24 + $0x148] sm:$0xf] }
 0x610   : > { %v2396_v38 = vpack.c.bf16 %v2394_v9, %v2393_v10  ;;  %v6153_v27 = vld [vmem:[%s8381_s24 + $0x160] sm:$0xf0]  ;;  %v7209_v62 = vld [vmem:[%s8381_s24 + $0x164] sm:$0xf0] }
 0x611   : > { %v7268_v9 = vld [vmem:[%s8381_s24 + $0x344] sm:$0xf]  ;;  %v6156_v36 = vor.u32 %v7204_v3, %v6153_v27  ;;  %3515 = vmatpush.bf16.msra.mxu0 %v6152_v46  ;;  %v7176_v3 = vld [vmem:[%s8381_s24 + $0x5c] sm:$0xf0] }
 0x612   : > { %2617 = vmatmul.bf16.vlgmr.msrb.gmra.mxu1 %v2396_v38  ;;  %2645 = vmatmul.bf16.vlgmr.msrb.gmra.mxu3 %v2396_v38  ;;  %v6409_v10 = vld [vmem:[%s8381_s24 + $0x360] sm:$0xf0]  ;;  %v6408_v38 = vor.u32 %v7272_v44, %v6407_v55  ;;  %v6023_v44 = vld [vmem:[%s8381_s24 + $0x40] sm:$0xf] }
 0x613   : > { %3543 = vmatpush.bf16.msra.mxu2 %v6156_v36  ;;  %v7244_v6 = vld [vmem:[%s8381_s24 + $0x284] sm:$0xf]  ;;  %v6279_v46 = vld [vmem:[%s8381_s24 + $0x240] sm:$0xf]  ;;  %v6024_v27 = vor.u32 %v7176_v3, %v6023_v44 }
 0x614   : > { %3529 = vmatpush.bf16.msra.mxu1 %v6408_v38  ;;  %v6316_v55 = vor.u32 %v7244_v6, %v6313_v34  ;;  %v6025_v38 = vld [vmem:[%s8381_s24 + $0x60] sm:$0xf0]  ;;  %v7273_v6 = vld [vmem:[%s8381_s24 + $0x364] sm:$0xf0]  ;;  %v7205_v34 = vld [vmem:[%s8381_s24 + $0x14c] sm:$0xf] }
 0x64a   : > { %v2604_v40 = vpop.f32.mrf.mxu0 }
 0x64b   : > { %v2605_v14 = vadd.f32 %v2604_v40, %v2431_v58  ;;  %v6119_v40 = vld [vmem:[%s8381_s24 + $0x100] sm:$0xf] }
 0x650   : > { %v2632_v7 = vpop.f32.mrf.mxu2 }
 0x651   : > { %v2633_v16 = vadd.f32 %v2632_v7, %v2432_v59  ;;  %v6375_v7 = vld [vmem:[%s8381_s24 + $0x300] sm:$0xf] }
 0x652   : > { %v2606_v21 = vpop.f32.mrf.mxu0 }
 0x653   : > { %v2607_v23 = vadd.f32 %v2606_v21, %v2431_v58  ;;  %v7200_v58 = vld [vmem:[%s8381_s24 + $0x11c] sm:$0xf0] }
 0x658   : > { %v2634_v20 = vpop.f32.mrf.mxu2 }
 0x659   : > { %v2635_v1 = vadd.f32 %v2634_v20, %v2432_v59  ;;  %v7264_v59 = vld [vmem:[%s8381_s24 + $0x31c] sm:$0xf0] }
 0x65a   : > { %v6376_v21 = vor.u32 %v7264_v59, %v6375_v7  ;;  %v7192_v20 = vld [vmem:[%s8381_s24 + $0xdc] sm:$0xf0]  ;;  %v6281_v7 = vld [vmem:[%s8381_s24 + $0x260] sm:$0xf0] }
 0x65b   : > { %v5991_v59 = vld [vmem:[%s8381_s24] sm:$0xf] }
 0x65c   : > { %3530 = vmatpush.bf16.msra.mxu1 %v6376_v21  ;;  %v5993_v21 = vld [vmem:[%s8381_s24 + $0x20] sm:$0xf0] }
 0x68f   : > { %v2618_v12 = vpop.f32.mrf.mxu1 }
 0x690   : > { %v2619_v18 = vadd.f32 %v2618_v12, %v2605_v14  ;;  %v6412_v12 = vor.u32 %v7268_v9, %v6409_v10  ;;  %v7196_v14 = vld [vmem:[%s8381_s24 + $0x104] sm:$0xf]  ;;  %v7240_v9 = vld [vmem:[%s8381_s24 + $0x25c] sm:$0xf0] }
 0x691   : > { %v7172_v10 = vld [vmem:[%s8381_s24 + $0x44] sm:$0xf]  ;;  %v6280_v36 = vor.u32 %v7240_v9, %v6279_v46  ;;  %v7269_v46 = vld [vmem:[%s8381_s24 + $0x34c] sm:$0xf] }
 0x692   : > { %v9041_v54 = vadd.f32 %v7687_v4, %v2619_v18  ;;  %v7260_v18 = vld [vmem:[%s8381_s24 + $0x304] sm:$0xf]  ;;  %3557 = vmatpush.bf16.msra.mxu3 %v6412_v12 }
 0x695   : > { %v2646_v11 = vpop.f32.mrf.mxu3 }
 0x696   : > { %v2647_v19 = vadd.f32 %v2646_v11, %v2633_v16  ;;  %v6121_v16 = vld [vmem:[%s8381_s24 + $0x120] sm:$0xf0] }
 0x697   : > { %v2620_v13 = vpop.f32.mrf.mxu1  ;;  %v6377_v11 = vld [vmem:[%s8381_s24 + $0x320] sm:$0xf0]  ;;  %v6124_v4 = vor.u32 %v7196_v14, %v6121_v16  ;;  %v7168_v14 = vld [vmem:[%s8381_s24 + $0x1c] sm:$0xf0] }
 0x698   : > { %v9043_v61 = vadd.f32 %v7688_v45, %v2647_v19  ;;  %v2621_v41 = vadd.f32 %v2620_v13, %v2607_v23  ;;  %v6120_v19 = vor.u32 %v7200_v58, %v6119_v40  ;;  %v6087_v45 = vld [vmem:[%s8381_s24 + $0xc0] sm:$0xf]  ;;  %v6380_v23 = vor.u32 %v7260_v18, %v6377_v11  ;;  %v7236_v58 = vld [vmem:[%s8381_s24 + $0x244] sm:$0xf] }
 0x699   : > { %v6343_v13 = vld [vmem:[%s8381_s24 + $0x2c0] sm:$0xf]  ;;  %3544 = vmatpush.bf16.msra.mxu2 %v6124_v4  ;;  %v6028_v40 = vor.u32 %v7172_v10, %v6025_v38  ;;  %v6284_v12 = vor.u32 %v7236_v58, %v6281_v7  ;;  %v5992_v18 = vor.u32 %v7168_v14, %v5991_v59  ;;  %v6127_v10 = vld [vmem:[%s8381_s24 + $0x108] sm:$0xf]  ;;  %v7197_v7 = vld [vmem:[%s8381_s24 + $0x10c] sm:$0xf] }
 0x69a   : > { %v2655_v25 = vadd.f32 %v9043_v61, %v9041_v54  ;;  %v9047_v30 = vadd.f32 %v7689_v32, %v2621_v41  ;;  %v6089_v41 = vld [vmem:[%s8381_s24 + $0xe0] sm:$0xf0]  ;;  %3516 = vmatpush.bf16.msra.mxu0 %v6120_v19  ;;  %3558 = vmatpush.bf16.msra.mxu3 %v6380_v23  ;;  %v6247_v16 = vld [vmem:[%s8381_s24 + $0x200] sm:$0xf]  ;;  %v6223_v23 = vld [vmem:[%s8381_s24 + $0x1c8] sm:$0xf] }
 0x69b   : > { %v7232_v11 = vld [vmem:[%s8381_s24 + $0x21c] sm:$0xf0]  ;;  %v7164_v19 = vld [vmem:[%s8381_s24 + $0x4] sm:$0xf]  ;;  %v7201_v38 = vld [vmem:[%s8381_s24 + $0x124] sm:$0xf0] }
 0x69c   : > { %2656 = vadd.xlane.f32.xlu0 %v2655_v25  ;;  %v7256_v25 = vld [vmem:[%s8381_s24 + $0x2dc] sm:$0xf0]  ;;  %v6248_v4 = vor.u32 %v7232_v11, %v6247_v16  ;;  %v7265_v58 = vld [vmem:[%s8381_s24 + $0x324] sm:$0xf0]  ;;  %v7261_v16 = vld [vmem:[%s8381_s24 + $0x30c] sm:$0xf] }
 0x69d   : > { %v2648_v52 = vpop.f32.mrf.mxu3  ;;  %v6344_v17 = vor.u32 %v7256_v25, %v6343_v13  ;;  %v6249_v13 = vld [vmem:[%s8381_s24 + $0x220] sm:$0xf0] }
 0x69e   : > { %v2649_v31 = vadd.f32 %v2648_v52, %v2635_v1  ;;  %v7188_v1 = vld [vmem:[%s8381_s24 + $0xc4] sm:$0xf] }
 0x69f   : > { %v7252_v52 = vld [vmem:[%s8381_s24 + $0x2c4] sm:$0xf]  ;;  %v6092_v37 = vor.u32 %v7188_v1, %v6089_v41  ;;  %3531 = vmatpush.bf16.msra.mxu1 %v6344_v17  ;;  %v7225_v1 = vld [vmem:[%s8381_s24 + $0x1e4] sm:$0xf0]  ;;  %v7285_v17 = vld [vmem:[%s8381_s24 + $0x3cc] sm:$0xf] }
 0x6a0   : > { %v9049_v33 = vadd.f32 %v7690_v26, %v2649_v31  ;;  %v6345_v31 = vld [vmem:[%s8381_s24 + $0x2e0] sm:$0xf0]  ;;  %v6088_v26 = vor.u32 %v7192_v20, %v6087_v45  ;;  %v5996_v45 = vor.u32 %v7164_v19, %v5993_v21  ;;  %v6479_v41 = vld [vmem:[%s8381_s24 + $0x3c8] sm:$0xf] }
 0x6a1   : > { %v6348_v24 = vor.u32 %v7252_v52, %v6345_v31  ;;  %3545 = vmatpush.bf16.msra.mxu2 %v6092_v37  ;;  %v7228_v20 = vld [vmem:[%s8381_s24 + $0x204] sm:$0xf]  ;;  %v7289_v52 = vld [vmem:[%s8381_s24 + $0x3e4] sm:$0xf0]  ;;  %v6224_v31 = vor.u32 %v7225_v1, %v6223_v23  ;;  %v6097_v23 = vld [vmem:[%s8381_s24 + $0xe8] sm:$0xf0] }
 0x6a2   : > { %v2658_v0 = vadd.f32 %v9049_v33, %v9047_v30  ;;  %3517 = vmatpush.bf16.msra.mxu0 %v6088_v26  ;;  %v6252_v25 = vor.u32 %v7228_v20, %v6249_v13  ;;  %v7221_v26 = vld [vmem:[%s8381_s24 + $0x1cc] sm:$0xf]  ;;  %v6095_v19 = vld [vmem:[%s8381_s24 + $0xc8] sm:$0xf] }
 0x6a3   : > { %3559 = vmatpush.bf16.msra.mxu3 %v6348_v24  ;;  %3532 = vmatpush.bf16.msra.mxu1 %v6312_v63  ;;  %v6481_v24 = vld [vmem:[%s8381_s24 + $0x3e8] sm:$0xf0]  ;;  %v6415_v63 = vld [vmem:[%s8381_s24 + $0x348] sm:$0xf] }
 0x6a4   : > { %2659 = vadd.xlane.f32.xlu2 %v2658_v0  ;;  %v6416_v44 = vor.u32 %v7273_v6, %v6415_v63  ;;  %v7193_v21 = vld [vmem:[%s8381_s24 + $0xe4] sm:$0xf0]  ;;  %v7189_v13 = vld [vmem:[%s8381_s24 + $0xcc] sm:$0xf] }
 0x6a5   : > { %3546 = vmatpush.bf16.msra.mxu2 %v6060_v53  ;;  %v6160_v53 = vor.u32 %v7209_v62, %v6159_v60  ;;  %v7257_v20 = vld [vmem:[%s8381_s24 + $0x2e4] sm:$0xf0]  ;;  %v6100_v1 = vor.u32 %v7189_v13, %v6097_v23  ;;  %v7173_v60 = vld [vmem:[%s8381_s24 + $0x4c] sm:$0xf] }
 0x6a6   : > { %3518 = vmatpush.bf16.msra.mxu0 %v6056_v56  ;;  %v6033_v62 = vld [vmem:[%s8381_s24 + $0x68] sm:$0xf0] }
 0x6a7   : > { %3560 = vmatpush.bf16.msra.mxu3 %v6316_v55  ;;  %3533 = vmatpush.bf16.msra.mxu1 %v6280_v36  ;;  %v6161_v55 = vld [vmem:[%s8381_s24 + $0x168] sm:$0xf0]  ;;  %v6383_v36 = vld [vmem:[%s8381_s24 + $0x308] sm:$0xf] }
 0x6a8   : > { %v6164_v3 = vor.u32 %v7205_v34, %v6161_v55  ;;  %v6384_v59 = vor.u32 %v7265_v58, %v6383_v36  ;;  %v7237_v6 = vld [vmem:[%s8381_s24 + $0x24c] sm:$0xf] }
 0x6a9   : > { %3547 = vmatpush.bf16.msra.mxu2 %v6028_v40  ;;  %v6128_v40 = vor.u32 %v7201_v38, %v6127_v10  ;;  %v6289_v34 = vld [vmem:[%s8381_s24 + $0x268] sm:$0xf0]  ;;  %v7233_v10 = vld [vmem:[%s8381_s24 + $0x224] sm:$0xf0] }
 0x6aa   : > { %3519 = vmatpush.bf16.msra.mxu0 %v6024_v27  ;;  %v6417_v27 = vld [vmem:[%s8381_s24 + $0x368] sm:$0xf0] }
 0x6ab   : > { %3561 = vmatpush.bf16.msra.mxu3 %v6284_v12  ;;  %3534 = vmatpush.bf16.msra.mxu1 %v6248_v4  ;;  %v6420_v9 = vor.u32 %v7269_v46, %v6417_v27  ;;  %v6129_v12 = vld [vmem:[%s8381_s24 + $0x128] sm:$0xf0]  ;;  %v6351_v4 = vld [vmem:[%s8381_s24 + $0x2c8] sm:$0xf] }
 0x6ac   : > { %v6132_v14 = vor.u32 %v7197_v7, %v6129_v12  ;;  %v7169_v46 = vld [vmem:[%s8381_s24 + $0x24] sm:$0xf0]  ;;  %v7165_v38 = vld [vmem:[%s8381_s24 + $0xc] sm:$0xf] }
 0x6ad   : > { %3548 = vmatpush.bf16.msra.mxu2 %v5996_v45  ;;  %v6096_v45 = vor.u32 %v7193_v21, %v6095_v19  ;;  %v6255_v27 = vld [vmem:[%s8381_s24 + $0x208] sm:$0xf]  ;;  %v6001_v36 = vld [vmem:[%s8381_s24 + $0x28] sm:$0xf0] }
 0x6ae   : > { %3520 = vmatpush.bf16.msra.mxu0 %v5992_v18  ;;  %v6385_v18 = vld [vmem:[%s8381_s24 + $0x328] sm:$0xf0]  ;;  %v6004_v58 = vor.u32 %v7165_v38, %v6001_v36  ;;  %v7282_v38 = vld [vmem:[%s8381_s24 + $0x3ac] sm:$0xf0]  ;;  %v7214_v36 = vld [vmem:[%s8381_s24 + $0x194] sm:$0xf] }
 0x6af   : > { %3562 = vmatpush.bf16.msra.mxu3 %v6252_v25  ;;  %v6388_v11 = vor.u32 %v7261_v16, %v6385_v18  ;;  %v6352_v25 = vor.u32 %v7257_v20, %v6351_v4  ;;  %v7229_v7 = vld [vmem:[%s8381_s24 + $0x20c] sm:$0xf] }
 0x6b0   : > { %v6257_v12 = vld [vmem:[%s8381_s24 + $0x228] sm:$0xf0] }
 0x6b2   : > { %3569 = vmatpush.bf16.msrb.mxu0 %v6224_v31 }
 0x70f   : > { %v2657_v32 = vpop.xlane.xlu0 %2656 }
 0x710   : > { %v2661_v0 = vmul.f32 %v2657_v32, %v8483_v2  ;;  %v6480_v32 = vor.u32 %v7289_v52, %v6479_v41  ;;  %v7253_v41 = vld [vmem:[%s8381_s24 + $0x2cc] sm:$0xf] }
 0x711   : > { %v6353_v52 = vld [vmem:[%s8381_s24 + $0x2e8] sm:$0xf0] }
 0x712   : > { %v9095_v5 = vsub.f32 %v9041_v54, %v2661_v0  ;;  %v9098_v28 = vsub.f32 %v9043_v61, %v2661_v0  ;;  %v6225_v0 = vld [vmem:[%s8381_s24 + $0x1e8] sm:$0xf0]  ;;  %3583 = vmatpush.bf16.msrb.mxu1 %v6480_v32  ;;  %v6356_v31 = vor.u32 %v7253_v41, %v6353_v52  ;;  %v6063_v32 = vld [vmem:[%s8381_s24 + $0x88] sm:$0xf] }
 0x713   : > { %v6228_v37 = vor.u32 %v7221_v26, %v6225_v0  ;;  %v7185_v26 = vld [vmem:[%s8381_s24 + $0xa4] sm:$0xf0] }
 0x714   : > { %v2667_v42 = vmul.f32 %v9095_v5, %v9095_v5  ;;  %v2668_v8 = vmul.f32 %v9098_v28, %v9098_v28  ;;  %v6319_v0 = vld [vmem:[%s8381_s24 + $0x288] sm:$0xf] }
 0x715   : > { %3597 = vmatpush.bf16.msrb.mxu2 %v6228_v37  ;;  %v7249_v37 = vld [vmem:[%s8381_s24 + $0x2a4] sm:$0xf0] }
 0x716   : > { %v2671_v43 = vadd.f32 %v2668_v8, %v2667_v42  ;;  %v6191_v42 = vld [vmem:[%s8381_s24 + $0x188] sm:$0xf] }
 0x717   : > { %v2660_v35 = vpop.xlane.xlu2 %2659  ;;  %v7217_v8 = vld [vmem:[%s8381_s24 + $0x1a4] sm:$0xf0] }
 0x718   : > { %v2662_v39 = vmul.f32 %v2660_v35, %v8483_v2  ;;  %2672 = vadd.xlane.f32.xlu1 %v2671_v43  ;;  %v6484_v43 = vor.u32 %v7285_v17, %v6481_v24  ;;  %v6192_v35 = vor.u32 %v7217_v8, %v6191_v42  ;;  %v6064_v17 = vor.u32 %v7185_v26, %v6063_v32  ;;  %v7181_v24 = vld [vmem:[%s8381_s24 + $0x8c] sm:$0xf] }
 0x719   : > { %v6065_v42 = vld [vmem:[%s8381_s24 + $0xa8] sm:$0xf0]  ;;  %v6320_v8 = vor.u32 %v7249_v37, %v6319_v0  ;;  %v2715_v0 = vld [vmem:[%s10344_s11] sm:$0x3] }
 0x71a   : > { %v9106_v47 = vsub.f32 %v9047_v30, %v2662_v39  ;;  %v9109_v22 = vsub.f32 %v9049_v33, %v2662_v39  ;;  %v6447_v39 = vld [vmem:[%s8381_s24 + $0x388] sm:$0xf]  ;;  %3611 = vmatpush.bf16.msrb.mxu3 %v6484_v43  ;;  %3570 = vmatpush.bf16.msrb.mxu0 %v6192_v35  ;;  %v6068_v43 = vor.u32 %v7181_v24, %v6065_v42  ;;  %v7245_v35 = vld [vmem:[%s8381_s24 + $0x28c] sm:$0xf]  ;;  %v2717_v42 = vperm.slane %v2715_v0, 0 }
 0x71c   : > { %v2669_v48 = vmul.f32 %v9106_v47, %v9106_v47  ;;  %v2670_v29 = vmul.f32 %v9109_v22, %v9109_v22 }
 0x71e   : > { %v2674_v15 = vadd.f32 %v2670_v29, %v2669_v48  ;;  %v7281_v48 = vld [vmem:[%s8381_s24 + $0x3a4] sm:$0xf0]  ;;  %v7213_v29 = vld [vmem:[%s8381_s24 + $0x18c] sm:$0xf]  ;;  %3612 = vmatpush.bf16.msrb.mxu3 %v6452_v57  ;;  %3571 = vmatpush.bf16.msrb.mxu0 %v6160_v53  ;;  %v6036_v53 = vor.u32 %v7173_v60, %v6033_v62 }
 0x71f   : > { %v6196_v56 = vor.u32 %v7213_v29, %v6193_v49  ;;  %v7177_v49 = vld [vmem:[%s8381_s24 + $0x64] sm:$0xf0] }
 0x720   : > { %2675 = vadd.xlane.f32.xlu0 %v2674_v15  ;;  %v6448_v15 = vor.u32 %v7281_v48, %v6447_v39  ;;  %v6321_v39 = vld [vmem:[%s8381_s24 + $0x2a8] sm:$0xf0]  ;;  %v7241_v57 = vld [vmem:[%s8381_s24 + $0x264] sm:$0xf0] }
 0x721   : > { %3598 = vmatpush.bf16.msrb.mxu2 %v6196_v56  ;;  %v6324_v48 = vor.u32 %v7245_v35, %v6321_v39  ;;  %v6288_v63 = vor.u32 %v7241_v57, %v6287_v50  ;;  %v6487_v50 = vld [vmem:[%s8381_s24 + $0x3d0] sm:$0xf] }
 0x722   : > { %3584 = vmatpush.bf16.msrb.mxu1 %v6448_v15  ;;  %3613 = vmatpush.bf16.msrb.mxu3 %v6420_v9  ;;  %v6031_v15 = vld [vmem:[%s8381_s24 + $0x48] sm:$0xf] }
 0x723   : > { %3572 = vmatpush.bf16.msrb.mxu0 %v6128_v40  ;;  %v6032_v56 = vor.u32 %v7177_v49, %v6031_v15  ;;  %v6256_v40 = vor.u32 %v7233_v10, %v6255_v27  ;;  %v7226_v49 = vld [vmem:[%s8381_s24 + $0x1ec] sm:$0xf0] }
 0x724   : > { %v6455_v10 = vld [vmem:[%s8381_s24 + $0x390] sm:$0xf] }
 0x725   : > { %3599 = vmatpush.bf16.msrb.mxu2 %v6164_v3  ;;  %v5999_v3 = vld [vmem:[%s8381_s24 + $0x8] sm:$0xf] }
 0x726   : > { %3585 = vmatpush.bf16.msrb.mxu1 %v6416_v44  ;;  %3614 = vmatpush.bf16.msrb.mxu3 %v6388_v11  ;;  %v6292_v44 = vor.u32 %v7237_v6, %v6289_v34  ;;  %v6000_v9 = vor.u32 %v7169_v46, %v5999_v3  ;;  %v6199_v3 = vld [vmem:[%s8381_s24 + $0x190] sm:$0xf] }
 0x727   : > { %3573 = vmatpush.bf16.msrb.mxu0 %v6096_v45  ;;  %v7218_v46 = vld [vmem:[%s8381_s24 + $0x1ac] sm:$0xf0] }
 0x729   : > { %3600 = vmatpush.bf16.msrb.mxu2 %v6132_v14 }
 0x72a   : > { %3586 = vmatpush.bf16.msrb.mxu1 %v6384_v59  ;;  %3615 = vmatpush.bf16.msrb.mxu3 %v6356_v31  ;;  %v6260_v59 = vor.u32 %v7229_v7, %v6257_v12  ;;  %v6457_v7 = vld [vmem:[%s8381_s24 + $0x3b0] sm:$0xf0]  ;;  %v6200_v12 = vor.u32 %v7218_v46, %v6199_v3 }
 0x72b   : > { %3574 = vmatpush.bf16.msrb.mxu0 %v6064_v17  ;;  %v6329_v3 = vld [vmem:[%s8381_s24 + $0x2b0] sm:$0xf0] }
 0x72d   : > { %3601 = vmatpush.bf16.msrb.mxu2 %v6100_v1  ;;  %v2705_v1 = vld [vmem:[%s10343_s23] sm:$0x3] }
 0x72e   : > { %3587 = vmatpush.bf16.msrb.mxu1 %v6352_v25  ;;  %3616 = vmatpush.bf16.msrb.mxu3 %v6324_v48  ;;  %v2707_v32 = vperm.slane %v2705_v1, 0  ;;  %v2708_v26 = vperm.slane %v2705_v1, 1  ;;  %v6135_v1 = vld [vmem:[%s8381_s24 + $0x110] sm:$0xf] }
 0x72f   : > { %3575 = vmatpush.bf16.msrb.mxu0 %v6032_v56  ;;  %v7222_v56 = vld [vmem:[%s8381_s24 + $0x1d4] sm:$0xf] }
 0x731   : > { %3602 = vmatpush.bf16.msrb.mxu2 %v6068_v43 }
 0x732   : > { %3588 = vmatpush.bf16.msrb.mxu1 %v6320_v8  ;;  %3617 = vmatpush.bf16.msrb.mxu3 %v6292_v44  ;;  %v2718_v8 = vperm.slane %v2715_v0, 1  ;;  %v7198_v0 = vld [vmem:[%s8381_s24 + $0x114] sm:$0xf] }
 0x733   : > { %3576 = vmatpush.bf16.msrb.mxu0 %v6000_v9 }
 0x735   : > { %3603 = vmatpush.bf16.msrb.mxu2 %v6036_v53  ;;  %v6233_v53 = vld [vmem:[%s8381_s24 + $0x1f0] sm:$0xf0] }
 0x736   : > { %3589 = vmatpush.bf16.msrb.mxu1 %v6288_v63  ;;  %3618 = vmatpush.bf16.msrb.mxu3 %v6260_v59  ;;  %v6236_v27 = vor.u32 %v7222_v56, %v6233_v53  ;;  %v6456_v59 = vor.u32 %v7282_v38, %v6455_v10  ;;  %v6327_v53 = vld [vmem:[%s8381_s24 + $0x290] sm:$0xf] }
 0x737   : > { %v7178_v10 = vld [vmem:[%s8381_s24 + $0x6c] sm:$0xf0] }
 0x739   : > { %3604 = vmatpush.bf16.msrb.mxu2 %v6004_v58  ;;  %v7278_v58 = vld [vmem:[%s8381_s24 + $0x394] sm:$0xf] }
 0x73a   : > { %3590 = vmatpush.bf16.msrb.mxu1 %v6256_v40  ;;  %v6201_v40 = vld [vmem:[%s8381_s24 + $0x1b0] sm:$0xf0] }
 0x78b   : > { %v2673_v29 = vpop.xlane.xlu1 %2672 }
 0x78c   : > { %v2677_v51 = vmul.f32 %v2673_v29, %v8483_v2 }
 0x78e   : > { %v2679_v55 = vadd.f32 1e-05, %v2677_v51  ;;  %v7290_v51 = vld [vmem:[%s8381_s24 + $0x3ec] sm:$0xf0] }
 0x78f   : > { %v6488_v44 = vor.u32 %v7290_v51, %v6487_v50  ;;  %v6361_v50 = vld [vmem:[%s8381_s24 + $0x2f0] sm:$0xf0] }
 0x790   : > { %7619 = vrsqrt.f32 %v2679_v55  ;;  %vm2687_vm12 = vweird.f32 %v2679_v55 }
 0x793   : > { %v2676_v14 = vpop.xlane.xlu0 %2675 }
 0x794   : > { %v2678_v16 = vmul.f32 %v2676_v14, %v8483_v2  ;;  %v6167_v14 = vld [vmem:[%s8381_s24 + $0x150] sm:$0xf] }
 0x796   : > { %v7620_v18 = vpop.eup %7619  ;;  %v2680_v11 = vadd.f32 1e-05, %v2678_v16  ;;  %v7210_v16 = vld [vmem:[%s8381_s24 + $0x16c] sm:$0xf0] }
 0x797   : > { %v2682_v19 = vmul.f32 %v7620_v18, %v2679_v55  ;;  %vm2688_vm11 = vweird.f32 %v7620_v18 }
 0x798   : > { %7621 = vrsqrt.f32 %v2680_v11  ;;  %vm2689_vm13 = vmor %vm2687_vm12, %vm2688_vm11  ;;  %vm2697_vm15 = vweird.f32 %v2680_v11 }
 0x799   : > { %v2683_v21 = vmul.f32 %v7620_v18, %v2682_v19  ;;  %v6423_v19 = vld [vmem:[%s8381_s24 + $0x350] sm:$0xf] }
 0x79b   : > { %v2684_v4 = vmul.f32 0.5, %v2683_v21  ;;  %v7274_v21 = vld [vmem:[%s8381_s24 + $0x36c] sm:$0xf0] }
 0x79d   : > { %v2685_v45 = vsub.f32 1.5, %v2684_v4  ;;  %v7206_v4 = vld [vmem:[%s8381_s24 + $0x154] sm:$0xf] }
 0x79e   : > { %v7622_v20 = vpop.eup %7621 }
 0x79f   : > { %v2686_v13 = vmul.f32 %v7620_v18, %v2685_v45  ;;  %v2692_v23 = vmul.f32 %v7622_v20, %v2680_v11  ;;  %vm2698_vm14 = vweird.f32 %v7622_v20  ;;  %v6460_v11 = vor.u32 %v7278_v58, %v6457_v7  ;;  %v6169_v45 = vld [vmem:[%s8381_s24 + $0x170] sm:$0xf0]  ;;  %v7242_v58 = vld [vmem:[%s8381_s24 + $0x26c] sm:$0xf0] }
 0x7a0   : > { %vm2699_vm0 = vmor %vm2697_vm15, %vm2698_vm14  ;;  %v7174_v7 = vld [vmem:[%s8381_s24 + $0x54] sm:$0xf] }
 0x7a1   : > { %v2693_v25 = vmul.f32 %v7622_v20, %v2692_v23  ;;  %v2690_v41 = vsel %vm2689_vm13, %v7620_v18, %v2686_v13  ;;  %v6204_v18 = vor.u32 %v7214_v36, %v6201_v40  ;;  %v6425_v13 = vld [vmem:[%s8381_s24 + $0x370] sm:$0xf0]  ;;  %v6168_v23 = vor.u32 %v7210_v16, %v6167_v14  ;;  %v6295_v40 = vld [vmem:[%s8381_s24 + $0x250] sm:$0xf] }
 0x7a2   : > { %v2701_v17 = vmul.f32 %v2690_v41, %v9095_v5  ;;  %v2702_v37 = vmul.f32 %v2690_v41, %v9098_v28  ;;  %v6231_v28 = vld [vmem:[%s8381_s24 + $0x1d0] sm:$0xf]  ;;  %v6297_v14 = vld [vmem:[%s8381_s24 + $0x270] sm:$0xf0] }
 0x7a3   : > { %v2694_v52 = vmul.f32 0.5, %v2693_v25  ;;  %v6232_v55 = vor.u32 %v7226_v49, %v6231_v28  ;;  %v6424_v25 = vor.u32 %v7274_v21, %v6423_v19  ;;  %v7202_v41 = vld [vmem:[%s8381_s24 + $0x12c] sm:$0xf0]  ;;  %v6105_v28 = vld [vmem:[%s8381_s24 + $0xf0] sm:$0xf0] }
 0x7a4   : > { %v2711_v35 = vmul.f32 %v2707_v32, %v2701_v17  ;;  %v2712_v39 = vmul.f32 %v2708_v26, %v2702_v37  ;;  %v6137_v17 = vld [vmem:[%s8381_s24 + $0x130] sm:$0xf0]  ;;  %v6007_v16 = vld [vmem:[%s8381_s24 + $0x10] sm:$0xf] }
 0x7a5   : > { %v2695_v31 = vsub.f32 1.5, %v2694_v52  ;;  %v6172_v52 = vor.u32 %v7206_v4, %v6169_v45  ;;  %v7262_v37 = vld [vmem:[%s8381_s24 + $0x314] sm:$0xf]  ;;  %v7170_v19 = vld [vmem:[%s8381_s24 + $0x2c] sm:$0xf0] }
 0x7a6   : > { %v2721_v57 = vadd.f32 %v2717_v42, %v2711_v35  ;;  %v2722_v60 = vadd.f32 %v2718_v8, %v2712_v39  ;;  %v7194_v35 = vld [vmem:[%s8381_s24 + $0xec] sm:$0xf0]  ;;  %v6140_v39 = vor.u32 %v7198_v0, %v6137_v17  ;;  %v7254_v49 = vld [vmem:[%s8381_s24 + $0x2d4] sm:$0xf]  ;;  %v6008_v0 = vor.u32 %v7170_v19, %v6007_v16  ;;  %v6145_v16 = vld [vmem:[%s8381_s24 + $0x138] sm:$0xf0] }
 0x7a7   : > { %v2696_v24 = vmul.f32 %v7622_v20, %v2695_v31  ;;  %v6263_v21 = vld [vmem:[%s8381_s24 + $0x210] sm:$0xf] }
 0x7a8   : > { %v7234_v4 = vld [vmem:[%s8381_s24 + $0x22c] sm:$0xf0] }
 0x7a9   : > { %v2700_v43 = vsel %vm2699_vm0, %v7622_v20, %v2696_v24  ;;  %v7270_v20 = vld [vmem:[%s8381_s24 + $0x354] sm:$0xf]  ;;  %v6264_v17 = vor.u32 %v7234_v4, %v6263_v21  ;;  %v6111_v4 = vld [vmem:[%s8381_s24 + $0xd8] sm:$0xf] }
 0x7aa   : > { %v2703_v48 = vmul.f32 %v2700_v43, %v9106_v47  ;;  %v2704_v5 = vmul.f32 %v2700_v43, %v9109_v22  ;;  %v7286_v47 = vld [vmem:[%s8381_s24 + $0x3d4] sm:$0xf]  ;;  %v6428_v31 = vor.u32 %v7270_v20, %v6425_v13  ;;  %v6103_v43 = vld [vmem:[%s8381_s24 + $0xd0] sm:$0xf] }
 0x7ab   : > { %v6489_v22 = vld [vmem:[%s8381_s24 + $0x3f0] sm:$0xf0]  ;;  %v6104_v51 = vor.u32 %v7194_v35, %v6103_v43 }
 0x7ac   : > { %v2713_v29 = vmul.f32 %v2707_v32, %v2703_v48  ;;  %v2714_v15 = vmul.f32 %v2708_v26, %v2704_v5  ;;  %v6492_v9 = vor.u32 %v7286_v47, %v6489_v22  ;;  %v6391_v32 = vld [vmem:[%s8381_s24 + $0x310] sm:$0xf]  ;;  %v6393_v24 = vld [vmem:[%s8381_s24 + $0x330] sm:$0xf0] }
 0x7ad   : > { %v7266_v26 = vld [vmem:[%s8381_s24 + $0x32c] sm:$0xf0]  ;;  %v6396_v48 = vor.u32 %v7262_v37, %v6393_v24  ;;  %v7182_v22 = vld [vmem:[%s8381_s24 + $0x94] sm:$0xf]  ;;  %v6241_v37 = vld [vmem:[%s8381_s24 + $0x1f8] sm:$0xf0] }
 0x7ae   : > { %v2723_v62 = vadd.f32 %v2717_v42, %v2713_v29  ;;  %v2724_v63 = vadd.f32 %v2718_v8, %v2714_v15  ;;  %v6136_v42 = vor.u32 %v7202_v41, %v6135_v1  ;;  %v6392_v8 = vor.u32 %v7266_v26, %v6391_v32  ;;  %v6359_v5 = vld [vmem:[%s8381_s24 + $0x2d0] sm:$0xf]  ;;  %v7190_v15 = vld [vmem:[%s8381_s24 + $0xd4] sm:$0xf]  ;;  %v6239_v41 = vld [vmem:[%s8381_s24 + $0x1d8] sm:$0xf] }
 0x7af   : > { %v7258_v29 = vld [vmem:[%s8381_s24 + $0x2ec] sm:$0xf0]  ;;  %v7166_v13 = vld [vmem:[%s8381_s24 + $0x14] sm:$0xf]  ;;  %v7291_v32 = vld [vmem:[%s8381_s24 + $0x3f4] sm:$0xf0] }
 0x7b0   : > { %v9221_v6 = vpack.c.bf16 %v2723_v62, %v2721_v57  ;;  %v9223_v34 = vpack.c.bf16 %v2724_v63, %v2722_v60  ;;  %v6360_v56 = vor.u32 %v7258_v29, %v6359_v5  ;;  %v6071_v57 = vld [vmem:[%s8381_s24 + $0x90] sm:$0xf]  ;;  %v6108_v62 = vor.u32 %v7190_v15, %v6105_v28  ;;  %v6265_v1 = vld [vmem:[%s8381_s24 + $0x230] sm:$0xf0]  ;;  %v7223_v26 = vld [vmem:[%s8381_s24 + $0x1dc] sm:$0xf] }
 0x7b1   : > { %v7186_v60 = vld [vmem:[%s8381_s24 + $0xac] sm:$0xf0]  ;;  %v6364_v63 = vor.u32 %v7254_v49, %v6361_v50  ;;  %v7287_v24 = vld [vmem:[%s8381_s24 + $0x3dc] sm:$0xf]  ;;  %v7219_v5 = vld [vmem:[%s8381_s24 + $0x1b4] sm:$0xf0]  ;;  %v6244_v29 = vor.u32 %v7223_v26, %v6241_v37 }
 0x7b2   : > { %3521 = vmatmul.bf16.vlgmr.msra.gmra.mxu0 %v9221_v6  ;;  %3535 = vmatmul.bf16.vlgmr.msra.gmra.mxu1 %v9223_v34  ;;  %v7250_v47 = vld [vmem:[%s8381_s24 + $0x2ac] sm:$0xf0]  ;;  %v6072_v46 = vor.u32 %v7186_v60, %v6071_v57  ;;  %v6463_v28 = vld [vmem:[%s8381_s24 + $0x398] sm:$0xf]  ;;  %v7215_v50 = vld [vmem:[%s8381_s24 + $0x19c] sm:$0xf] }
 0x7b3   : > { %3549 = vmatmul.bf16.vlgmr.msra.gmra.mxu2 %v9221_v6  ;;  %3563 = vmatmul.bf16.vlgmr.msra.gmra.mxu3 %v9223_v34  ;;  %v7283_v49 = vld [vmem:[%s8381_s24 + $0x3b4] sm:$0xf0]  ;;  %v6465_v57 = vld [vmem:[%s8381_s24 + $0x3b8] sm:$0xf0] }
 0x7b4   : > { %3625 = vmatpush.bf16.msra.mxu0 %v6232_v55  ;;  %3639 = vmatpush.bf16.msra.mxu1 %v6488_v44  ;;  %v6073_v55 = vld [vmem:[%s8381_s24 + $0xb0] sm:$0xf0] }
 0x7b5   : > { %3653 = vmatpush.bf16.msra.mxu2 %v6236_v27  ;;  %3667 = vmatpush.bf16.msra.mxu3 %v6492_v9  ;;  %v7246_v44 = vld [vmem:[%s8381_s24 + $0x294] sm:$0xf]  ;;  %v6328_v27 = vor.u32 %v7250_v47, %v6327_v53  ;;  %v6039_v9 = vld [vmem:[%s8381_s24 + $0x50] sm:$0xf]  ;;  %v6076_v38 = vor.u32 %v7182_v22, %v6073_v55  ;;  %v7211_v53 = vld [vmem:[%s8381_s24 + $0x174] sm:$0xf0] }
 0x7b6   : > { %v6332_v36 = vor.u32 %v7246_v44, %v6329_v3  ;;  %v6431_v55 = vld [vmem:[%s8381_s24 + $0x358] sm:$0xf]  ;;  %v7207_v3 = vld [vmem:[%s8381_s24 + $0x15c] sm:$0xf] }
 0x7b7   : > { %v7275_v44 = vld [vmem:[%s8381_s24 + $0x374] sm:$0xf0] }
 0x7b8   : > { %3626 = vmatpush.bf16.msra.mxu0 %v6200_v12  ;;  %3640 = vmatpush.bf16.msra.mxu1 %v6456_v59  ;;  %v6041_v12 = vld [vmem:[%s8381_s24 + $0x70] sm:$0xf0] }
 0x7b9   : > { %3654 = vmatpush.bf16.msra.mxu2 %v6204_v18  ;;  %3668 = vmatpush.bf16.msra.mxu3 %v6460_v11  ;;  %v7238_v59 = vld [vmem:[%s8381_s24 + $0x254] sm:$0xf]  ;;  %v6040_v18 = vor.u32 %v7178_v10, %v6039_v9  ;;  %v6296_v11 = vor.u32 %v7242_v58, %v6295_v40  ;;  %v6044_v45 = vor.u32 %v7174_v7, %v6041_v12  ;;  %v6433_v9 = vld [vmem:[%s8381_s24 + $0x378] sm:$0xf0]  ;;  %v7203_v40 = vld [vmem:[%s8381_s24 + $0x134] sm:$0xf0] }
 0x7ba   : > { %v6300_v20 = vor.u32 %v7238_v59, %v6297_v14  ;;  %v6399_v12 = vld [vmem:[%s8381_s24 + $0x318] sm:$0xf]  ;;  %v7199_v14 = vld [vmem:[%s8381_s24 + $0x11c] sm:$0xf] }
 0x7bb   : > { %v7267_v59 = vld [vmem:[%s8381_s24 + $0x334] sm:$0xf0] }
 0x7bc   : > { %3627 = vmatpush.bf16.msra.mxu0 %v6168_v23  ;;  %3641 = vmatpush.bf16.msra.mxu1 %v6424_v25  ;;  %v6009_v23 = vld [vmem:[%s8381_s24 + $0x30] sm:$0xf0]  ;;  %v6400_v21 = vor.u32 %v7267_v59, %v6399_v12  ;;  %v7323_v12 = vld [vmem:[%s8383_s15 + $0xf4] sm:$0xf0] }
 0x7bd   : > { %3655 = vmatpush.bf16.msra.mxu2 %v6172_v52  ;;  %3669 = vmatpush.bf16.msra.mxu3 %v6428_v31  ;;  %v7230_v25 = vld [vmem:[%s8381_s24 + $0x214] sm:$0xf]  ;;  %v7227_v52 = vld [vmem:[%s8381_s24 + $0x1f4] sm:$0xf0] }
 0x7be   : > { %v6495_v31 = vld [vmem:[%s8381_s24 + $0x3d8] sm:$0xf]  ;;  %v6268_v43 = vor.u32 %v7230_v25, %v6265_v1  ;;  %v6240_v35 = vor.u32 %v7227_v52, %v6239_v41  ;;  %v7191_v1 = vld [vmem:[%s8381_s24 + $0xdc] sm:$0xf] }
 0x7bf   : > { %v7259_v25 = vld [vmem:[%s8381_s24 + $0x2f4] sm:$0xf0]  ;;  %v6113_v41 = vld [vmem:[%s8381_s24 + $0xf8] sm:$0xf0] }
 0x7c0   : > { %3628 = vmatpush.bf16.msra.mxu0 %v6136_v42  ;;  %3642 = vmatpush.bf16.msra.mxu1 %v6392_v8  ;;  %v6497_v42 = vld [vmem:[%s8381_s24 + $0x3f8] sm:$0xf0]  ;;  %v6012_v8 = vor.u32 %v7166_v13, %v6009_v23  ;;  %v6367_v23 = vld [vmem:[%s8381_s24 + $0x2d8] sm:$0xf]  ;;  %v6116_v37 = vor.u32 %v7191_v1, %v6113_v41  ;;  %v7321_v1 = vld [vmem:[%s8383_s15 + $0xe4] sm:$0xf0] }
 0x7c1   : > { %3656 = vmatpush.bf16.msra.mxu2 %v6140_v39  ;;  %3670 = vmatpush.bf16.msra.mxu3 %v6396_v48  ;;  %v6496_v39 = vor.u32 %v7291_v32, %v6495_v31  ;;  %v6207_v48 = vld [vmem:[%s8381_s24 + $0x198] sm:$0xf]  ;;  %v6500_v15 = vor.u32 %v7287_v24, %v6497_v42  ;;  %v7255_v52 = vld [vmem:[%s8381_s24 + $0x2dc] sm:$0xf]  ;;  %v6368_v26 = vor.u32 %v7259_v25, %v6367_v23  ;;  %v6631_v25 = vld [vmem:[%s8383_s15 + $0xe0] sm:$0xf] }
 0x7c2   : > { %3577 = vmatmul.bf16.vlgmr.msrb.gmra.mxu0 %v9221_v6  ;;  %3591 = vmatmul.bf16.vlgmr.msrb.gmra.mxu1 %v9223_v34  ;;  %v6208_v60 = vor.u32 %v7219_v5, %v6207_v48  ;;  %v6369_v31 = vld [vmem:[%s8381_s24 + $0x2f8] sm:$0xf0]  ;;  %v6335_v42 = vld [vmem:[%s8381_s24 + $0x298] sm:$0xf]  ;;  %v6632_v41 = vor.u32 %v7321_v1, %v6631_v25  ;;  %v6687_v25 = vld [vmem:[%s8383_s15 + $0x150] sm:$0xf] }
 0x7c3   : > { %3605 = vmatmul.bf16.vlgmr.msrb.gmra.mxu2 %v9221_v6  ;;  %3619 = vmatmul.bf16.vlgmr.msrb.gmra.mxu3 %v9223_v34  ;;  %v6372_v24 = vor.u32 %v7255_v52, %v6369_v31  ;;  %v6337_v48 = vld [vmem:[%s8381_s24 + $0x2b8] sm:$0xf0]  ;;  %v6551_v52 = vld [vmem:[%s8383_s15 + $0x40] sm:$0xf]  ;;  %v7301_v31 = vld [vmem:[%s8383_s15 + $0x44] sm:$0xf0] }
 0x7c4   : > { %3629 = vmatpush.bf16.msra.mxu0 %v6104_v51  ;;  %3643 = vmatpush.bf16.msra.mxu1 %v6360_v56  ;;  %v6209_v51 = vld [vmem:[%s8381_s24 + $0x1b8] sm:$0xf0]  ;;  %v7335_v1 = vld [vmem:[%s8383_s15 + $0x154] sm:$0xf0] }
 0x7c5   : > { %3657 = vmatpush.bf16.msra.mxu2 %v6108_v62  ;;  %3671 = vmatpush.bf16.msra.mxu3 %v6364_v63  ;;  %v7279_v56 = vld [vmem:[%s8381_s24 + $0x39c] sm:$0xf]  ;;  %v6464_v62 = vor.u32 %v7283_v49, %v6463_v28  ;;  %v6175_v63 = vld [vmem:[%s8381_s24 + $0x158] sm:$0xf]  ;;  %v6212_v47 = vor.u32 %v7215_v50, %v6209_v51 }
 0x7c6   : > { %v6468_v22 = vor.u32 %v7279_v56, %v6465_v57  ;;  %v6176_v10 = vor.u32 %v7211_v53, %v6175_v63  ;;  %v7179_v28 = vld [vmem:[%s8381_s24 + $0x74] sm:$0xf0]  ;;  %v7175_v57 = vld [vmem:[%s8381_s24 + $0x5c] sm:$0xf] }
 0x7c7   : > { %v6303_v51 = vld [vmem:[%s8381_s24 + $0x258] sm:$0xf]  ;;  %v6305_v63 = vld [vmem:[%s8381_s24 + $0x278] sm:$0xf0] }
 0x7c8   : > { %3630 = vmatpush.bf16.msra.mxu0 %v6072_v46  ;;  %3644 = vmatpush.bf16.msra.mxu1 %v6328_v27  ;;  %v6177_v46 = vld [vmem:[%s8381_s24 + $0x178] sm:$0xf0]  ;;  %v7243_v56 = vld [vmem:[%s8381_s24 + $0x274] sm:$0xf0] }
 0x7c9   : > { %3658 = vmatpush.bf16.msra.mxu2 %v6076_v38  ;;  %3672 = vmatpush.bf16.msra.mxu3 %v6332_v36  ;;  %v7271_v27 = vld [vmem:[%s8381_s24 + $0x35c] sm:$0xf]  ;;  %v6432_v38 = vor.u32 %v7275_v44, %v6431_v55  ;;  %v6143_v36 = vld [vmem:[%s8381_s24 + $0x118] sm:$0xf]  ;;  %v6180_v58 = vor.u32 %v7207_v3, %v6177_v46 }
 0x7ca   : > { %v6436_v7 = vor.u32 %v7271_v27, %v6433_v9  ;;  %v6144_v19 = vor.u32 %v7203_v40, %v6143_v36  ;;  %v7171_v55 = vld [vmem:[%s8381_s24 + $0x34] sm:$0xf0]  ;;  %v7167_v9 = vld [vmem:[%s8381_s24 + $0x1c] sm:$0xf]  ;;  %v6575_v40 = vld [vmem:[%s8383_s15 + $0x70] sm:$0xf] }
 0x7cb   : > { %v6271_v44 = vld [vmem:[%s8381_s24 + $0x218] sm:$0xf]  ;;  %v6273_v36 = vld [vmem:[%s8381_s24 + $0x238] sm:$0xf0] }
 0x7cc   : > { %3631 = vmatpush.bf16.msra.mxu0 %v6040_v18  ;;  %3645 = vmatpush.bf16.msra.mxu1 %v6296_v11  ;;  %v7263_v18 = vld [vmem:[%s8381_s24 + $0x31c] sm:$0xf]  ;;  %v7235_v27 = vld [vmem:[%s8381_s24 + $0x234] sm:$0xf0] }
 0x7cd   : > { %3659 = vmatpush.bf16.msra.mxu2 %v6044_v45  ;;  %3673 = vmatpush.bf16.msra.mxu3 %v6300_v20  ;;  %v6401_v11 = vld [vmem:[%s8381_s24 + $0x338] sm:$0xf0]  ;;  %v7195_v45 = vld [vmem:[%s8381_s24 + $0xf4] sm:$0xf0]  ;;  %v6148_v20 = vor.u32 %v7199_v14, %v6145_v16  ;;  %v6272_v14 = vor.u32 %v7235_v27, %v6271_v44  ;;  %v9396_v27 = vld [vmem:[%s8408_s5] sm:$0xff] }
 0x7ce   : > { %v6404_v13 = vor.u32 %v7263_v18, %v6401_v11  ;;  %v6112_v32 = vor.u32 %v7195_v45, %v6111_v4  ;;  %v7305_v4 = vld [vmem:[%s8383_s15 + $0x64] sm:$0xf0] }
 0x7d0   : > { %3632 = vmatpush.bf16.msra.mxu0 %v6008_v0  ;;  %3646 = vmatpush.bf16.msra.mxu1 %v6264_v17  ;;  %v6079_v0 = vld [vmem:[%s8381_s24 + $0x98] sm:$0xf] }
 0x7d1   : > { %3660 = vmatpush.bf16.msra.mxu2 %v6012_v8  ;;  %3674 = vmatpush.bf16.msra.mxu3 %v6268_v43  ;;  %v7187_v17 = vld [vmem:[%s8381_s24 + $0xb4] sm:$0xf0]  ;;  %v7183_v43 = vld [vmem:[%s8381_s24 + $0x9c] sm:$0xf] }
 0x7d2   : > { %v7251_v8 = vld [vmem:[%s8381_s24 + $0x2b4] sm:$0xf0]  ;;  %v6080_v5 = vor.u32 %v7187_v17, %v6079_v0  ;;  %v6543_v0 = vld [vmem:[%s8383_s15 + $0x30] sm:$0xf] }
 0x7d3   : > { %3633 = vmatmul.bf16.vlgmr.msra.gmra.mxu0 %v9221_v6  ;;  %3647 = vmatmul.bf16.vlgmr.msra.gmra.mxu1 %v9223_v34  ;;  %v7299_v17 = vld [vmem:[%s8383_s15 + $0x34] sm:$0xf0] }
 0x7d4   : > { %3681 = vmatpush.bf16.msrb.mxu0 %v6240_v35  ;;  %3695 = vmatpush.bf16.msrb.mxu1 %v6496_v39  ;;  %v6081_v35 = vld [vmem:[%s8381_s24 + $0xb8] sm:$0xf0] }
 0x7d5   : > { %3709 = vmatpush.bf16.msrb.mxu2 %v6244_v29  ;;  %3723 = vmatpush.bf16.msrb.mxu3 %v6500_v15  ;;  %v7247_v39 = vld [vmem:[%s8381_s24 + $0x29c] sm:$0xf]  ;;  %v6336_v29 = vor.u32 %v7251_v8, %v6335_v42  ;;  %v6047_v15 = vld [vmem:[%s8381_s24 + $0x58] sm:$0xf]  ;;  %v6084_v49 = vor.u32 %v7183_v43, %v6081_v35  ;;  %v7317_v42 = vld [vmem:[%s8383_s15 + $0xc4] sm:$0xf0] }
 0x7d6   : > { %3661 = vmatmul.bf16.vlgmr.msra.gmra.mxu2 %v9221_v6  ;;  %3675 = vmatmul.bf16.vlgmr.msra.gmra.mxu3 %v9223_v34  ;;  %v6340_v50 = vor.u32 %v7247_v39, %v6337_v48  ;;  %v6048_v53 = vor.u32 %v7179_v28, %v6047_v15  ;;  %v6535_v43 = vld [vmem:[%s8383_s15 + $0x20] sm:$0xf]  ;;  %v7297_v35 = vld [vmem:[%s8383_s15 + $0x24] sm:$0xf0]  ;;  %v6607_v48 = vld [vmem:[%s8383_s15 + $0xb0] sm:$0xf] }
 0x7d7   : > { %v6536_v39 = vor.u32 %v7297_v35, %v6535_v43  ;;  %v6527_v15 = vld [vmem:[%s8383_s15 + $0x10] sm:$0xf]  ;;  %v7295_v28 = vld [vmem:[%s8383_s15 + $0x14] sm:$0xf0] }
 0x7d8   : > { %3682 = vmatpush.bf16.msrb.mxu0 %v6208_v60  ;;  %3696 = vmatpush.bf16.msrb.mxu1 %v6464_v62  ;;  %v6049_v60 = vld [vmem:[%s8381_s24 + $0x78] sm:$0xf0] }
 0x7d9   : > { %3710 = vmatpush.bf16.msrb.mxu2 %v6212_v47  ;;  %3724 = vmatpush.bf16.msrb.mxu3 %v6468_v22  ;;  %v7239_v62 = vld [vmem:[%s8381_s24 + $0x25c] sm:$0xf]  ;;  %v6304_v47 = vor.u32 %v7243_v56, %v6303_v51  ;;  %v6015_v22 = vld [vmem:[%s8381_s24 + $0x18] sm:$0xf]  ;;  %v6052_v3 = vor.u32 %v7175_v57, %v6049_v60  ;;  %v7313_v51 = vld [vmem:[%s8383_s15 + $0xa4] sm:$0xf0] }
 0x7da   : > { %v6308_v46 = vor.u32 %v7239_v62, %v6305_v63  ;;  %v6016_v59 = vor.u32 %v7171_v55, %v6015_v22  ;;  %v6519_v57 = vld [vmem:[%s8383_s15] sm:$0xf]  ;;  %v7293_v60 = vld [vmem:[%s8383_s15 + $0x4] sm:$0xf0]  ;;  %v6703_v62 = vld [vmem:[%s8383_s15 + $0x170] sm:$0xf] }
 0x7db   : > { %v6520_v63 = vor.u32 %v7293_v60, %v6519_v57  ;;  %v7371_v22 = vld [vmem:[%s8383_s15 + $0x274] sm:$0xf0]  ;;  %v7365_v57 = vld [vmem:[%s8383_s15 + $0x244] sm:$0xf0] }
 0x7dc   : > { %3683 = vmatpush.bf16.msrb.mxu0 %v6176_v10  ;;  %3697 = vmatpush.bf16.msrb.mxu1 %v6432_v38  ;;  %v6017_v10 = vld [vmem:[%s8381_s24 + $0x38] sm:$0xf0] }
 0x7dd   : > { %3711 = vmatpush.bf16.msrb.mxu2 %v6180_v58  ;;  %3725 = vmatpush.bf16.msrb.mxu3 %v6436_v7  ;;  %v7231_v38 = vld [vmem:[%s8381_s24 + $0x21c] sm:$0xf]  ;;  %v7307_v58 = vld [vmem:[%s8383_s15 + $0x74] sm:$0xf0]  ;;  %v6639_v7 = vld [vmem:[%s8383_s15 + $0xf0] sm:$0xf]  ;;  %v6020_v16 = vor.u32 %v7167_v9, %v6017_v10 }
 0x7de   : > { %v6276_v18 = vor.u32 %v7231_v38, %v6273_v36  ;;  %v6576_v11 = vor.u32 %v7307_v58, %v6575_v40  ;;  %v2857_v10 = vperm.slane %v9396_v27, 0  ;;  %v6695_v38 = vld [vmem:[%s8383_s15 + $0x160] sm:$0xf]  ;;  %v7337_v36 = vld [vmem:[%s8383_s15 + $0x164] sm:$0xf0]  ;;  %s10400_s24 = sld [smem:[#allocation40_spill]] (!%p5428_p9) }
 0x7df   : > { %v6696_v40 = vor.u32 %v7337_v36, %v6695_v38  ;;  %v6823_v58 = vld [vmem:[%s8383_s15 + $0x260] sm:$0xf]  ;;  %v7331_v38 = vld [vmem:[%s8383_s15 + $0x134] sm:$0xf0] }
 0x7e0   : > { %3684 = vmatpush.bf16.msrb.mxu0 %v6144_v19  ;;  %3698 = vmatpush.bf16.msrb.mxu1 %v6400_v21  ;;  %v6640_v19 = vor.u32 %v7323_v12, %v6639_v7  ;;  %v6567_v21 = vld [vmem:[%s8383_s15 + $0x60] sm:$0xf]  ;;  %v7369_v7 = vld [vmem:[%s8383_s15 + $0x264] sm:$0xf0] }
 0x7e1   : > { %3712 = vmatpush.bf16.msrb.mxu2 %v6148_v20  ;;  %3726 = vmatpush.bf16.msrb.mxu3 %v6404_v13  ;;  %v6568_v45 = vor.u32 %v7305_v4, %v6567_v21  ;;  %v6559_v20 = vld [vmem:[%s8383_s15 + $0x50] sm:$0xf]  ;;  %v7303_v13 = vld [vmem:[%s8383_s15 + $0x54] sm:$0xf0]  ;;  %v6824_v12 = vor.u32 %v7369_v7, %v6823_v58 }
 0x7e2   : > { %v6560_v23 = vor.u32 %v7303_v13, %v6559_v20  ;;  %v7355_v21 = vld [vmem:[%s8383_s15 + $0x1f4] sm:$0xf0]  ;;  %v6895_v4 = vld [vmem:[%s8383_s15 + $0x2f0] sm:$0xf] }
 0x7e3   : > { %v6799_v58 = vld [vmem:[%s8383_s15 + $0x230] sm:$0xf]  ;;  %v7363_v7 = vld [vmem:[%s8383_s15 + $0x234] sm:$0xf0] }
 0x7e4   : > { %3685 = vmatpush.bf16.msrb.mxu0 %v6112_v32  ;;  %3699 = vmatpush.bf16.msrb.mxu1 %v6368_v26  ;;  %v6623_v32 = vld [vmem:[%s8383_s15 + $0xd0] sm:$0xf] }
 0x7e5   : > { %3713 = vmatpush.bf16.msrb.mxu2 %v6116_v37  ;;  %3727 = vmatpush.bf16.msrb.mxu3 %v6372_v24  ;;  %v6544_v37 = vor.u32 %v7299_v17, %v6543_v0  ;;  %v6615_v24 = vld [vmem:[%s8383_s15 + $0xc0] sm:$0xf]  ;;  %v7353_v17 = vld [vmem:[%s8383_s15 + $0x1e4] sm:$0xf0] }
 0x7e6   : > { %v6616_v8 = vor.u32 %v7317_v42, %v6615_v24  ;;  %v6759_v0 = vld [vmem:[%s8383_s15 + $0x1e0] sm:$0xf] }
 0x7e8   : > { %3686 = vmatpush.bf16.msrb.mxu0 %v6080_v5  ;;  %3700 = vmatpush.bf16.msrb.mxu1 %v6336_v29  ;;  %v7315_v5 = vld [vmem:[%s8383_s15 + $0xb4] sm:$0xf0] }
 0x7e9   : > { %3714 = vmatpush.bf16.msrb.mxu2 %v6084_v49  ;;  %3728 = vmatpush.bf16.msrb.mxu3 %v6340_v50  ;;  %v6608_v29 = vor.u32 %v7315_v5, %v6607_v48  ;;  %v6528_v49 = vor.u32 %v7295_v28, %v6527_v15  ;;  %v6599_v50 = vld [vmem:[%s8383_s15 + $0xa0] sm:$0xf]  ;;  %v7385_v5 = vld [vmem:[%s8383_s15 + $0x2e4] sm:$0xf0] }
 0x7ea   : > { %v6600_v56 = vor.u32 %v7313_v51, %v6599_v50  ;;  %v6887_v48 = vld [vmem:[%s8383_s15 + $0x2e0] sm:$0xf] }
 0x7eb   : > { %v6888_v15 = vor.u32 %v7385_v5, %v6887_v48  ;;  %v6679_v28 = vld [vmem:[%s8383_s15 + $0x140] sm:$0xf]  ;;  %v6863_v48 = vld [vmem:[%s8383_s15 + $0x2b0] sm:$0xf] }
 0x7ec   : > { %3687 = vmatpush.bf16.msrb.mxu0 %v6048_v53  ;;  %3701 = vmatpush.bf16.msrb.mxu1 %v6304_v47  ;;  %v7339_v53 = vld [vmem:[%s8383_s15 + $0x174] sm:$0xf0]  ;;  %v6831_v47 = vld [vmem:[%s8383_s15 + $0x270] sm:$0xf] }
 0x7ed   : > { %3715 = vmatpush.bf16.msrb.mxu2 %v6052_v3  ;;  %3729 = vmatpush.bf16.msrb.mxu3 %v6308_v46  ;;  %v6704_v55 = vor.u32 %v7339_v53, %v6703_v62  ;;  %v6832_v44 = vor.u32 %v7371_v22, %v6831_v47  ;;  %v6591_v3 = vld [vmem:[%s8383_s15 + $0x90] sm:$0xf]  ;;  %v7311_v46 = vld [vmem:[%s8383_s15 + $0x94] sm:$0xf0]  ;;  %v2859_v62 = vperm.slane %v9396_v27, 2 }
 0x7ee   : > { %v6592_v9 = vor.u32 %v7311_v46, %v6591_v3  ;;  %v6751_v53 = vld [vmem:[%s8383_s15 + $0x1d0] sm:$0xf]  ;;  %v7351_v47 = vld [vmem:[%s8383_s15 + $0x1d4] sm:$0xf0] }
 0x7ef   : > { %v7383_v3 = vld [vmem:[%s8383_s15 + $0x2d4] sm:$0xf0] }
 0x7f0   : > { %3688 = vmatpush.bf16.msrb.mxu0 %v6016_v59  ;;  %3702 = vmatpush.bf16.msrb.mxu1 %v6272_v14  ;;  %v6583_v59 = vld [vmem:[%s8383_s15 + $0x80] sm:$0xf]  ;;  %v7309_v14 = vld [vmem:[%s8383_s15 + $0x84] sm:$0xf0] }
 0x7f1   : > { %3716 = vmatpush.bf16.msrb.mxu2 %v6020_v16  ;;  %3730 = vmatpush.bf16.msrb.mxu3 %v6276_v18  ;;  %v6767_v16 = vld [vmem:[%s8383_s15 + $0x1f0] sm:$0xf] }
 0x7f2   : > { %v6768_v13 = vor.u32 %v7355_v21, %v6767_v16 }
 0x7f3   : > { %3689 = vmatmul.bf16.vlgmr.msrb.gmra.mxu0 %v9221_v6  ;;  %3703 = vmatmul.bf16.vlgmr.msrb.gmra.mxu1 %v9223_v34 }
 0x7f4   : > { %4855 = vmatpush.bf16.msra.mxu0 %v6576_v11  ;;  %4869 = vmatpush.bf16.msra.mxu1 %v6640_v19  ;;  %v6584_v19 = vor.u32 %v7309_v14, %v6583_v59 }
 0x7f5   : > { %3717 = vmatmul.bf16.vlgmr.msrb.gmra.mxu2 %v9221_v6  ;;  %3731 = vmatmul.bf16.vlgmr.msrb.gmra.mxu3 %v9223_v34  ;;  %v6552_v6 = vor.u32 %v7301_v31, %v6551_v52  ;;  %v7319_v34 = vld [vmem:[%s8383_s15 + $0xd4] sm:$0xf0]  ;;  %v2858_v31 = vperm.slane %v9396_v27, 1 }
 0x7f6   : > { %v6624_v26 = vor.u32 %v7319_v34, %v6623_v32  ;;  %4883 = vmatpush.bf16.msra.mxu2 %v6704_v55  ;;  %4897 = vmatpush.bf16.msra.mxu3 %v6768_v13  ;;  %v7367_v32 = vld [vmem:[%s8383_s15 + $0x254] sm:$0xf0]  ;;  %v6752_v55 = vor.u32 %v7351_v47, %v6751_v53 }
 0x7f8   : > { %4856 = vmatpush.bf16.msra.mxu0 %v6568_v45  ;;  %4870 = vmatpush.bf16.msra.mxu1 %v6632_v41  ;;  %v7387_v45 = vld [vmem:[%s8383_s15 + $0x2f4] sm:$0xf0]  ;;  %v6688_v41 = vor.u32 %v7335_v1, %v6687_v25  ;;  %v7381_v25 = vld [vmem:[%s8383_s15 + $0x2c4] sm:$0xf0] }
 0x7fa   : > { %4884 = vmatpush.bf16.msra.mxu2 %v6696_v40 }
 0x7fc   : > { %4857 = vmatpush.bf16.msra.mxu0 %v6560_v23  ;;  %4871 = vmatpush.bf16.msra.mxu1 %v6624_v26  ;;  %v6896_v23 = vor.u32 %v7387_v45, %v6895_v4 }
 0x7fe   : > { %4885 = vmatpush.bf16.msra.mxu2 %v6688_v41  ;;  %v6663_v41 = vld [vmem:[%s8383_s15 + $0x120] sm:$0xf] }
 0x800   : > { %4858 = vmatpush.bf16.msra.mxu0 %v6552_v6  ;;  %4872 = vmatpush.bf16.msra.mxu1 %v6616_v8  ;;  %v6815_v6 = vld [vmem:[%s8383_s15 + $0x250] sm:$0xf] }
 0x801   : > { %v6816_v26 = vor.u32 %v7367_v32, %v6815_v6 }
 0x804   : > { %4859 = vmatpush.bf16.msra.mxu0 %v6544_v37  ;;  %4873 = vmatpush.bf16.msra.mxu1 %v6608_v29  ;;  %v6760_v37 = vor.u32 %v7353_v17, %v6759_v0  ;;  %v7361_v0 = vld [vmem:[%s8383_s15 + $0x224] sm:$0xf0]  ;;  %v2860_v17 = vperm.slane %v9396_v27, 3 }
 0x806   : > { %4898 = vmatpush.bf16.msra.mxu3 %v6760_v37 }
 0x808   : > { %4860 = vmatpush.bf16.msra.mxu0 %v6536_v39  ;;  %4874 = vmatpush.bf16.msra.mxu1 %v6600_v56  ;;  %v6807_v56 = vld [vmem:[%s8383_s15 + $0x240] sm:$0xf] }
 0x80a   : > { %4899 = vmatpush.bf16.msra.mxu3 %v6752_v55 }
 0x80c   : > { %4861 = vmatpush.bf16.msra.mxu0 %v6528_v49  ;;  %4875 = vmatpush.bf16.msra.mxu1 %v6592_v9  ;;  %v7333_v49 = vld [vmem:[%s8383_s15 + $0x144] sm:$0xf0] }
 0x80d   : > { %v6680_v51 = vor.u32 %v7333_v49, %v6679_v28  ;;  %v7327_v28 = vld [vmem:[%s8383_s15 + $0x114] sm:$0xf0] }
 0x80f   : > { %4886 = vmatpush.bf16.msra.mxu2 %v6680_v51 }
 0x810   : > { %4862 = vmatpush.bf16.msra.mxu0 %v6520_v63  ;;  %4876 = vmatpush.bf16.msra.mxu1 %v6584_v19  ;;  %v6808_v63 = vor.u32 %v7365_v57, %v6807_v56  ;;  %v7349_v19 = vld [vmem:[%s8383_s15 + $0x1c4] sm:$0xf0] }
 0x814   : > { %4911 = vmatpush.bf16.msrb.mxu0 %v6832_v44  ;;  %4925 = vmatpush.bf16.msrb.mxu1 %v6896_v23  ;;  %v6879_v44 = vld [vmem:[%s8383_s15 + $0x2d0] sm:$0xf]  ;;  %v6871_v23 = vld [vmem:[%s8383_s15 + $0x2c0] sm:$0xf] }
 0x815   : > { %v6880_v9 = vor.u32 %v7383_v3, %v6879_v44  ;;  %v6872_v32 = vor.u32 %v7381_v25, %v6871_v23  ;;  %v6775_v23 = vld [vmem:[%s8383_s15 + $0x200] sm:$0xf]  ;;  %v7357_v25 = vld [vmem:[%s8383_s15 + $0x204] sm:$0xf0] }
 0x818   : > { %4912 = vmatpush.bf16.msrb.mxu0 %v6824_v12  ;;  %4926 = vmatpush.bf16.msrb.mxu1 %v6888_v15  ;;  %v6655_v15 = vld [vmem:[%s8383_s15 + $0x110] sm:$0xf] }
 0x819   : > { %v6656_v3 = vor.u32 %v7327_v28, %v6655_v15 }
 0x81c   : > { %4913 = vmatpush.bf16.msrb.mxu0 %v6816_v26  ;;  %4927 = vmatpush.bf16.msrb.mxu1 %v6880_v9  ;;  %v6791_v26 = vld [vmem:[%s8383_s15 + $0x220] sm:$0xf] }
 0x820   : > { %4914 = vmatpush.bf16.msrb.mxu0 %v6808_v63  ;;  %4928 = vmatpush.bf16.msrb.mxu1 %v6872_v32 }
 0x82f   : > { %v3522_v18 = vpop.f32.mrf.mxu0  ;;  %v3536_v11 = vpop.f32.mrf.mxu1 }
 0x830   : > { %v3523_v20 = vadd.f32 %v3522_v18, %v2857_v10  ;;  %v6800_v18 = vor.u32 %v7363_v7, %v6799_v58  ;;  %v6727_v58 = vld [vmem:[%s8383_s15 + $0x1a0] sm:$0xf]  ;;  %v7345_v7 = vld [vmem:[%s8383_s15 + $0x1a4] sm:$0xf0] }
 0x832   : > { %v9411_v52 = vadd.f32 %v3536_v11, %v3523_v20  ;;  %v6743_v11 = vld [vmem:[%s8383_s15 + $0x1c0] sm:$0xf]  ;;  %4915 = vmatpush.bf16.msrb.mxu0 %v6800_v18 }
 0x833   : > { %v6744_v13 = vor.u32 %v7349_v19, %v6743_v11  ;;  %v2862_v11 = vperm.slane %v9396_v27, 5  ;;  %v6647_v19 = vld [vmem:[%s8383_s15 + $0x100] sm:$0xf] }
 0x834   : > { %v6501_v34 = vmul.f32 -1.702, %v9411_v52 }
 0x835   : > { %4900 = vmatpush.bf16.msra.mxu3 %v6744_v13 }
 0x836   : > { %v3769_v24 = vmul.f32 1.442695, %v6501_v34  ;;  %v3550_v42 = vpop.f32.mrf.mxu2  ;;  %v3564_v8 = vpop.f32.mrf.mxu3  ;;  %v7329_v34 = vld [vmem:[%s8383_s15 + $0x124] sm:$0xf0] }
 0x837   : > { %v3551_v43 = vadd.f32 %v3550_v42, %v2858_v31  ;;  %v3524_v35 = vpop.f32.mrf.mxu0  ;;  %v3538_v39 = vpop.f32.mrf.mxu1  ;;  %v6664_v37 = vor.u32 %v7329_v34, %v6663_v41  ;;  %v6735_v42 = vld [vmem:[%s8383_s15 + $0x1b0] sm:$0xf]  ;;  %v6728_v34 = vor.u32 %v7345_v7, %v6727_v58 }
 0x838   : > { %7623 = vpow2.f32 %v3769_v24  ;;  %v3525_v29 = vadd.f32 %v3524_v35, %v2857_v10  ;;  %v6671_v10 = vld [vmem:[%s8383_s15 + $0x130] sm:$0xf]  ;;  %v6792_v24 = vor.u32 %v7361_v0, %v6791_v26 }
 0x839   : > { %v9423_v50 = vadd.f32 %v3564_v8, %v3551_v43  ;;  %v6672_v40 = vor.u32 %v7331_v38, %v6671_v10  ;;  %v7347_v8 = vld [vmem:[%s8383_s15 + $0x1b4] sm:$0xf0]  ;;  %v2861_v10 = vperm.slane %v9396_v27, 4  ;;  %v6783_v38 = vld [vmem:[%s8383_s15 + $0x210] sm:$0xf] }
 0x83a   : > { %v9427_v60 = vadd.f32 %v3538_v39, %v3525_v29  ;;  %v6736_v39 = vor.u32 %v7347_v8, %v6735_v42  ;;  %4916 = vmatpush.bf16.msrb.mxu0 %v6792_v24  ;;  %v7379_v29 = vld [vmem:[%s8383_s15 + $0x2b4] sm:$0xf0] }
 0x83b   : > { %v6502_v22 = vmul.f32 -1.702, %v9423_v50  ;;  %4887 = vmatpush.bf16.msra.mxu2 %v6672_v40  ;;  %v6864_v63 = vor.u32 %v7379_v29, %v6863_v48  ;;  %v7359_v40 = vld [vmem:[%s8383_s15 + $0x214] sm:$0xf0] }
 0x83c   : > { %v6509_v46 = vmul.f32 -1.702, %v9427_v60  ;;  %4901 = vmatpush.bf16.msra.mxu3 %v6736_v39  ;;  %v6784_v32 = vor.u32 %v7359_v40, %v6783_v38 }
 0x83d   : > { %v3771_v36 = vmul.f32 1.442695, %v6502_v22  ;;  %4929 = vmatpush.bf16.msrb.mxu1 %v6864_v63 }
 0x83e   : > { %v7624_v12 = vpop.eup %7623  ;;  %v3785_v59 = vmul.f32 1.442695, %v6509_v46  ;;  %v3552_v14 = vpop.f32.mrf.mxu2  ;;  %4917 = vmatpush.bf16.msrb.mxu0 %v6784_v32 }
 0x83f   : > { %v3566_v16 = vpop.f32.mrf.mxu3  ;;  %v9442_v21 = vadd.f32 1.0, %v7624_v12  ;;  %7625 = vpow2.f32 %v3771_v36  ;;  %v3553_v4 = vadd.f32 %v3552_v14, %v2858_v31  ;;  %v3578_v45 = vpop.f32.mrf.mxu0  ;;  %4888 = vmatpush.bf16.msra.mxu2 %v6664_v37  ;;  %v6855_v14 = vld [vmem:[%s8383_s15 + $0x2a0] sm:$0xf] }
 0x840   : > { %7627 = vpow2.f32 %v3785_v59  ;;  %v3579_v20 = vadd.f32 %v3578_v45, %v2859_v62  ;;  %v3592_v1 = vpop.f32.mrf.mxu1  ;;  %4902 = vmatpush.bf16.msra.mxu3 %v6728_v34 }
 0x841   : > { %7629 = vrcp.f32 %v9442_v21  ;;  %v9450_v31 = vadd.f32 %v3566_v16, %v3553_v4  ;;  %v3826_v9 = vand.u32 2147483647, %v9442_v21  ;;  %v3828_v59 = vand.u32 2147483648, %v9442_v21  ;;  %v7377_v16 = vld [vmem:[%s8383_s15 + $0x2a4] sm:$0xf0] }
 0x842   : > { %v9452_v6 = vadd.f32 %v3592_v1, %v3579_v20  ;;  %vm3822_vm1 = vweird.f32 %v9442_v21  ;;  %v7325_v4 = vld [vmem:[%s8383_s15 + $0x104] sm:$0xf0]  ;;  %v6856_v26 = vor.u32 %v7377_v16, %v6855_v14 }
 0x843   : > { %v6510_v43 = vmul.f32 -1.702, %v9450_v31  ;;  %4889 = vmatpush.bf16.msra.mxu2 %v6656_v3  ;;  %vm9495_vm3 = vcmp.eq.f32.partialorder %v3826_v9, 8.507059e+37  ;;  %v3829_v24 = vor.u32 1.1754944e-38, %v3828_v59 }
 0x844   : > { %v6503_v35 = vmul.f32 -1.702, %v9452_v6  ;;  %4930 = vmatpush.bf16.msrb.mxu1 %v6856_v26 }
 0x845   : > { %v7626_v5 = vpop.eup %7625  ;;  %v3787_v56 = vmul.f32 1.442695, %v6510_v43  ;;  %v6648_v43 = vor.u32 %v7325_v4, %v6647_v19 }
 0x846   : > { %v7628_v49 = vpop.eup %7627  ;;  %v9466_v51 = vadd.f32 1.0, %v7626_v5  ;;  %v3606_v57 = vpop.f32.mrf.mxu2  ;;  %v3773_v22 = vmul.f32 1.442695, %v6503_v35  ;;  %v6776_v5 = vor.u32 %v7357_v25, %v6775_v23 }
 0x847   : > { %v9468_v53 = vpop.eup %7629  ;;  %v9470_v47 = vadd.f32 1.0, %v7628_v49  ;;  %v3607_v55 = vadd.f32 %v3606_v57, %v2860_v17  ;;  %v3620_v44 = vpop.f32.mrf.mxu3  ;;  %4890 = vmatpush.bf16.msra.mxu2 %v6648_v43 }
 0x848   : > { %v3818_v46 = vmul.f32 %v9468_v53, %v9442_v21  ;;  %7631 = vrcp.f32 %v9466_v51  ;;  %v3580_v36 = vpop.f32.mrf.mxu0  ;;  %vm3823_vm2 = vweird.f32 %v9468_v53  ;;  %v3594_v41 = vpop.f32.mrf.mxu1  ;;  %vm3837_vm4 = vweird.f32 %v9466_v51  ;;  %4918 = vmatpush.bf16.msrb.mxu0 %v6776_v5 }
 0x849   : > { %7633 = vrcp.f32 %v9470_v47  ;;  %v9488_v18 = vadd.f32 %v3620_v44, %v3607_v55  ;;  %v3581_v13 = vadd.f32 %v3580_v36, %v2859_v62  ;;  %v3841_v39 = vand.u32 2147483647, %v9466_v51  ;;  %vm9517_vm5 = vmor %vm3822_vm1, %vm3823_vm2 }
 0x84a   : > { %v3819_v12 = vsub.f32 1.0, %v3818_v46  ;;  %7635 = vpow2.f32 %v3787_v56  ;;  %v3843_v28 = vand.u32 2147483648, %v9466_v51  ;;  %v3946_v56 = vand.u32 2147483647, %v9470_v47 }
 0x84b   : > { %7637 = vpow2.f32 %v3773_v22  ;;  %v6504_v1 = vmul.f32 -1.702, %v9488_v18  ;;  %v9507_v42 = vadd.f32 %v3594_v41, %v3581_v13  ;;  %vm3942_vm6 = vweird.f32 %v9470_v47 }
 0x84c   : > { %v3820_v45 = vmul.f32 %v9468_v53, %v3819_v12  ;;  %v3948_v40 = vand.u32 2147483648, %v9470_v47  ;;  %vm9543_vm9 = vcmp.eq.f32.partialorder %v3841_v39, 8.507059e+37  ;;  %v3844_v59 = vor.u32 1.1754944e-38, %v3843_v28 }
 0x84d   : > { %v3775_v48 = vmul.f32 1.442695, %v6504_v1  ;;  %v6511_v57 = vmul.f32 -1.702, %v9507_v42  ;;  %vm9547_vm10 = vcmp.eq.f32.partialorder %v3946_v56, 8.507059e+37 }
 0x84e   : > { %v9504_v0 = vpop.eup %7631  ;;  %v3821_v37 = vadd.f32 %v9468_v53, %v3820_v45  ;;  %v3608_v8 = vpop.f32.mrf.mxu2  ;;  %v3949_v20 = vor.u32 1.1754944e-38, %v3948_v40 }
 0x84f   : > { %v7634_v35 = vpop.eup %7633  ;;  %v3833_v62 = vmul.f32 %v9504_v0, %v9466_v51  ;;  %7639 = vpow2.f32 %v3775_v48  ;;  %v3622_v44 = vpop.f32.mrf.mxu3  ;;  %v3789_v9 = vmul.f32 1.442695, %v6511_v57  ;;  %v3609_v38 = vadd.f32 %v3608_v8, %v2860_v17 }
 0x850   : > { %v7636_v29 = vpop.eup %7635  ;;  %v3938_v49 = vmul.f32 %v7634_v35, %v9470_v47  ;;  %v3825_v22 = vsel %vm9517_vm5, %v9468_v53, %v3821_v37  ;;  %vm3943_vm7 = vweird.f32 %v7634_v35  ;;  %v3634_v7 = vpop.f32.mrf.mxu0  ;;  %vm3838_vm8 = vweird.f32 %v9504_v0 }
 0x851   : > { %v7638_v63 = vpop.eup %7637  ;;  %v3834_v21 = vsub.f32 1.0, %v3833_v62  ;;  %v9528_v55 = vadd.f32 1.0, %v7636_v29  ;;  %v3830_v53 = vsel %vm9495_vm3, %v3829_v24, %v3825_v22  ;;  %v9551_v19 = vadd.f32 %v3622_v44, %v3609_v38  ;;  %vm3944_vm11 = vmor %vm3942_vm6, %vm3943_vm7  ;;  %v3648_v47 = vpop.f32.mrf.mxu1 }
 0x852   : > { %v3939_v3 = vsub.f32 1.0, %v3938_v49  ;;  %v9530_v46 = vadd.f32 1.0, %v7638_v63  ;;  %v4057_v45 = vmul.f32 %v3830_v53, %v9411_v52  ;;  %v3635_v23 = vadd.f32 %v3634_v7, %v2861_v10  ;;  %vm9561_vm12 = vmor %vm3837_vm4, %vm3838_vm8 }
 0x853   : > { %v3835_v36 = vmul.f32 %v9504_v0, %v3834_v21  ;;  %7641 = vrcp.f32 %v9528_v55  ;;  %v3961_v13 = vand.u32 2147483647, %v9528_v55  ;;  %v3963_v41 = vand.u32 2147483648, %v9528_v55 }
 0x854   : > { %v3940_v58 = vmul.f32 %v7634_v35, %v3939_v3  ;;  %7643 = vrcp.f32 %v9530_v46  ;;  %v6512_v52 = vmul.f32 -1.702, %v9551_v19  ;;  %vm3957_vm13 = vweird.f32 %v9528_v55 }
 0x855   : > { %v3836_v12 = vadd.f32 %v9504_v0, %v3835_v36  ;;  %7645 = vpow2.f32 %v3789_v9  ;;  %v7640_v4 = vpop.eup %7639  ;;  %v9575_v24 = vadd.f32 %v3648_v47, %v3635_v23  ;;  %vm9584_vm14 = vcmp.eq.f32.partialorder %v3961_v13, 8.507059e+37 }
 0x856   : > { %v3941_v14 = vadd.f32 %v7634_v35, %v3940_v58  ;;  %v9566_v32 = vadd.f32 1.0, %v7640_v4  ;;  %vm3852_vm15 = vweird.f32 %v9530_v46  ;;  %v3856_v48 = vand.u32 2147483647, %v9530_v46 }
 0x857   : > { %v3840_v37 = vsel %vm9561_vm12, %v9504_v0, %v3836_v12  ;;  %v3964_v49 = vor.u32 1.1754944e-38, %v3963_v41  ;;  %v3791_v56 = vmul.f32 1.442695, %v6512_v52  ;;  %v6505_v21 = vmul.f32 -1.702, %v9575_v24 }
 0x858   : > { %v3945_v1 = vsel %vm3944_vm11, %v7634_v35, %v3941_v14  ;;  %7647 = vrcp.f32 %v9566_v32  ;;  %v3845_v57 = vsel %vm9543_vm9, %v3844_v59, %v3840_v37  ;;  %vm9604_vm1 = vcmp.eq.f32.partialorder %v3856_v48, 8.507059e+37  ;;  %v3636_v59 = vpop.f32.mrf.mxu0  ;;  %v7403_v48 = vld [vmem:[%s8383_s15 + $0x374] sm:$0xf0] }
 0x859   : > { %v3662_v34 = vpop.f32.mrf.mxu2  ;;  %v7642_v26 = vpop.eup %7641  ;;  %v3950_v51 = vsel %vm9547_vm10, %v3949_v20, %v3945_v1  ;;  %7649 = vpow2.f32 %v3791_v56  ;;  %v3871_v40 = vand.u32 2147483647, %v9566_v32  ;;  %v4058_v58 = vmul.f32 %v3845_v57, %v9423_v50 }
 0x85a   : > { %v9577_v8 = vpop.eup %7643  ;;  %v4065_v43 = vmul.f32 %v3950_v51, %v9427_v60  ;;  %v3953_v35 = vmul.f32 %v7642_v26, %v9528_v55  ;;  %v3663_v62 = vadd.f32 %v3662_v34, %v2862_v11  ;;  %v3858_v60 = vand.u32 2147483648, %v9530_v46  ;;  %v3676_v5 = vpop.f32.mrf.mxu3 }
 0x85b   : > { %v3848_v39 = vmul.f32 %v9577_v8, %v9530_v46  ;;  %v7646_v29 = vpop.eup %7645  ;;  %vm3958_vm0 = vweird.f32 %v7642_v26  ;;  %v3777_v12 = vmul.f32 1.442695, %v6505_v21  ;;  %vm3853_vm3 = vweird.f32 %v9577_v8  ;;  %v3650_v34 = vpop.f32.mrf.mxu1  ;;  %v7343_v21 = vld [vmem:[%s8383_s15 + $0x194] sm:$0xf0] }
 0x85c   : > { %v9593_v15 = vpack.c.bf16 %v4065_v43, %v4057_v45  ;;  %v3954_v28 = vsub.f32 1.0, %v3953_v35  ;;  %v9597_v22 = vadd.f32 1.0, %v7646_v29  ;;  %v9600_v3 = vadd.f32 %v3676_v5, %v3663_v62  ;;  %vm3959_vm2 = vmor %vm3957_vm13, %vm3958_vm0 }
 0x85d   : > { %v3849_v63 = vsub.f32 1.0, %v3848_v39  ;;  %v3859_v36 = vor.u32 1.1754944e-38, %v3858_v60  ;;  %vm3867_vm4 = vweird.f32 %v9566_v32  ;;  %v3873_v45 = vand.u32 2147483648, %v9566_v32  ;;  %vm9637_vm6 = vmor %vm3852_vm15, %vm3853_vm3  ;;  %v6959_v39 = vld [vmem:[%s8383_s15 + $0x370] sm:$0xf] }
 0x85e   : > { %v3955_v44 = vmul.f32 %v7642_v26, %v3954_v28  ;;  %4863 = vmatmul.bf16.vlgmr.msra.gmra.mxu0 %v9593_v15  ;;  %7651 = vrcp.f32 %v9597_v22  ;;  %v9610_v53 = vpop.eup %7647  ;;  %v6506_v17 = vmul.f32 -1.702, %v9600_v3  ;;  %vm9625_vm5 = vcmp.eq.f32.partialorder %v3871_v40, 8.507059e+37 }
 0x85f   : > { %v3850_v9 = vmul.f32 %v9577_v8, %v3849_v63  ;;  %v3863_v16 = vmul.f32 %v9610_v53, %v9566_v32  ;;  %7653 = vpow2.f32 %v3777_v12  ;;  %v3976_v25 = vand.u32 2147483647, %v9597_v22  ;;  %v7650_v41 = vpop.eup %7649  ;;  %v6719_v63 = vld [vmem:[%s8383_s15 + $0x190] sm:$0xf] }
 0x860   : > { %v3956_v7 = vadd.f32 %v7642_v26, %v3955_v44  ;;  %v3779_v20 = vmul.f32 1.442695, %v6506_v17  ;;  %v3637_v1 = vadd.f32 %v3636_v59, %v2861_v10  ;;  %vm3868_vm7 = vweird.f32 %v9610_v53  ;;  %v6577_v17 = vld [vmem:[%s8383_s15 + $0x78] sm:$0xf0] }
 0x861   : > { %v3851_v14 = vadd.f32 %v9577_v8, %v3850_v9  ;;  %v3664_v4 = vpop.f32.mrf.mxu2  ;;  %v3864_v55 = vsub.f32 1.0, %v3863_v16  ;;  %v9650_v37 = vadd.f32 1.0, %v7650_v41  ;;  %v3874_v62 = vor.u32 1.1754944e-38, %v3873_v45  ;;  %vm9672_vm9 = vmor %vm3867_vm4, %vm3868_vm7  ;;  %v6847_v45 = vld [vmem:[%s8383_s15 + $0x290] sm:$0xf] }
 0x862   : > { %v3960_v50 = vsel %vm3959_vm2, %v7642_v26, %v3956_v7  ;;  %7655 = vpow2.f32 %v3779_v20  ;;  %v3665_v10 = vadd.f32 %v3664_v4, %v2862_v11  ;;  %v9652_v51 = vadd.f32 %v3650_v34, %v3637_v1  ;;  %v3678_v43 = vpop.f32.mrf.mxu3  ;;  %v7375_v20 = vld [vmem:[%s8383_s15 + $0x294] sm:$0xf0]  ;;  %v6711_v41 = vld [vmem:[%s8383_s15 + $0x180] sm:$0xf] }
 0x863   : > { %v3965_v13 = vsel %vm9584_vm14, %v3964_v49, %v3960_v50  ;;  %v3865_v46 = vmul.f32 %v9610_v53, %v3864_v55  ;;  %vm3972_vm8 = vweird.f32 %v9597_v22  ;;  %v3978_v60 = vand.u32 2147483648, %v9597_v22 }
 0x864   : > { %v4066_v52 = vmul.f32 %v3965_v13, %v9450_v31  ;;  %v9644_v26 = vpop.eup %7651  ;;  %v3855_v31 = vsel %vm9637_vm6, %v9577_v8, %v3851_v14  ;;  %v9658_v0 = vadd.f32 %v3678_v43, %v3665_v10  ;;  %7657 = vrcp.f32 %v9650_v37  ;;  %v7401_v13 = vld [vmem:[%s8383_s15 + $0x364] sm:$0xf0] }
 0x865   : > { %v3968_v11 = vmul.f32 %v9644_v26, %v9597_v22  ;;  %v3866_v8 = vadd.f32 %v9610_v53, %v3865_v46  ;;  %v7654_v5 = vpop.eup %7653  ;;  %v3860_v29 = vsel %vm9604_vm1, %v3859_v36, %v3855_v31  ;;  %vm9676_vm10 = vcmp.eq.f32.partialorder %v3976_v25, 8.507059e+37  ;;  %v7306_v36 = vld [vmem:[%s8383_s15 + $0x74] sm:$0xf]  ;;  %v7304_v31 = vld [vmem:[%s8383_s15 + $0x64] sm:$0xf] }
 0x866   : > { %v9654_v35 = vpack.c.bf16 %v4066_v52, %v4058_v58  ;;  %v6513_v57 = vmul.f32 -1.702, %v9652_v51  ;;  %v9687_v44 = vadd.f32 1.0, %v7654_v5  ;;  %v6514_v9 = vmul.f32 -1.702, %v9658_v0 }
 0x867   : > { %v3969_v49 = vsub.f32 1.0, %v3968_v11  ;;  %v3870_v32 = vsel %vm9672_vm9, %v9610_v53, %v3866_v8  ;;  %v6960_v38 = vor.u32 %v7403_v48, %v6959_v39  ;;  %vm3973_vm11 = vweird.f32 %v9644_v26  ;;  %v7341_v52 = vld [vmem:[%s8383_s15 + $0x184] sm:$0xf0]  ;;  %v6569_v46 = vld [vmem:[%s8383_s15 + $0x68] sm:$0xf0] }
 0x868   : > { %4877 = vmatmul.bf16.vlgmr.msra.gmra.mxu1 %v9654_v35  ;;  %v7656_v40 = vpop.eup %7655  ;;  %v3991_v7 = vand.u32 2147483647, %v9650_v37  ;;  %v3793_v12 = vmul.f32 1.442695, %v6513_v57  ;;  %v4059_v53 = vmul.f32 %v3860_v29, %v9452_v6  ;;  %v3979_v59 = vor.u32 1.1754944e-38, %v3978_v60  ;;  %vm3974_vm12 = vmor %vm3972_vm8, %vm3973_vm11 }
 0x869   : > { %v3970_v58 = vmul.f32 %v9644_v26, %v3969_v49  ;;  %v3993_v14 = vand.u32 2147483648, %v9650_v37  ;;  %7659 = vrcp.f32 %v9687_v44  ;;  %4939 = vmatpush.bf16.msrb.mxu2 %v6960_v38  ;;  %v3875_v16 = vsel %vm9625_vm5, %v3874_v62, %v3870_v32  ;;  %v6951_v6 = vld [vmem:[%s8383_s15 + $0x360] sm:$0xf]  ;;  %v7373_v39 = vld [vmem:[%s8383_s15 + $0x284] sm:$0xf0] }
 0x86a   : > { %v9701_v50 = vadd.f32 1.0, %v7656_v40  ;;  %7661 = vpow2.f32 %v3793_v12  ;;  %v9707_v55 = vpop.eup %7657  ;;  %vm3987_vm13 = vweird.f32 %v9650_v37  ;;  %v3795_v23 = vmul.f32 1.442695, %v6514_v9  ;;  %v6839_v11 = vld [vmem:[%s8383_s15 + $0x280] sm:$0xf] }
 0x86b   : > { %v3971_v4 = vadd.f32 %v9644_v26, %v3970_v58  ;;  %v6720_v25 = vor.u32 %v7343_v21, %v6719_v63  ;;  %v6580_v1 = vor.u32 %v7306_v36, %v6577_v17  ;;  %v3983_v34 = vmul.f32 %v9707_v55, %v9650_v37  ;;  %v7419_v60 = vld [vmem:[%s8383_s15 + $0x3f4] sm:$0xf0]  ;;  %v7322_v57 = vld [vmem:[%s8383_s15 + $0xf4] sm:$0xf]  ;;  %v6641_v63 = vld [vmem:[%s8383_s15 + $0xf8] sm:$0xf0] }
 0x86c   : > { %vm9719_vm14 = vcmp.eq.f32.partialorder %v3991_v7, 8.507059e+37  ;;  %v3886_v22 = vand.u32 2147483647, %v9687_v44  ;;  %v9727_v43 = vmul.f32 %v3875_v16, %v9488_v18  ;;  %7663 = vrcp.f32 %v9701_v50  ;;  %v7023_v18 = vld [vmem:[%s8383_s15 + $0x3f0] sm:$0xf] }
 0x86d   : > { %v3975_v47 = vsel %vm3974_vm12, %v9644_v26, %v3971_v4  ;;  %v3994_v26 = vor.u32 1.1754944e-38, %v3993_v14  ;;  %4903 = vmatpush.bf16.msra.mxu3 %v6720_v25  ;;  %4967 = vmatpush.bf16.msra.mxu0 %v6580_v1  ;;  %v3984_v8 = vsub.f32 1.0, %v3983_v34  ;;  %vm3882_vm15 = vweird.f32 %v9687_v44 }
 0x86e   : > { %v3980_v62 = vsel %vm9676_vm10, %v3979_v59, %v3975_v47  ;;  %7665 = vpow2.f32 %v3795_v23  ;;  %v3888_v29 = vand.u32 2147483648, %v9687_v44  ;;  %v6848_v28 = vor.u32 %v7375_v20, %v6847_v45  ;;  %v6943_v20 = vld [vmem:[%s8383_s15 + $0x350] sm:$0xf]  ;;  %v7393_v47 = vld [vmem:[%s8383_s15 + $0x324] sm:$0xf0] }
 0x86f   : > { %v4067_v48 = vmul.f32 %v3980_v62, %v9507_v42  ;;  %v9738_v5 = vpop.eup %7659  ;;  %v6952_v49 = vor.u32 %v7401_v13, %v6951_v6  ;;  %v6712_v56 = vor.u32 %v7341_v52, %v6711_v41  ;;  %v3985_v42 = vmul.f32 %v9707_v55, %v3984_v8  ;;  %v7399_v6 = vld [vmem:[%s8383_s15 + $0x354] sm:$0xf0]  ;;  %v7302_v41 = vld [vmem:[%s8383_s15 + $0x54] sm:$0xf]  ;;  %v6633_v8 = vld [vmem:[%s8383_s15 + $0xe8] sm:$0xf0] }
 0x870   : > { %v7662_v21 = vpop.eup %7661  ;;  %vm3988_vm0 = vweird.f32 %v9707_v55  ;;  %v3878_v9 = vmul.f32 %v9738_v5, %v9687_v44  ;;  %vm9749_vm1 = vcmp.eq.f32.partialorder %v3886_v22, 8.507059e+37  ;;  %v3901_v36 = vand.u32 2147483647, %v9701_v50  ;;  %4931 = vmatpush.bf16.msrb.mxu1 %v6848_v28  ;;  %v3690_v13 = vpop.f32.mrf.mxu0 }
 0x871   : > { %v9743_v32 = vpack.c.bf16 %v4067_v48, %v4059_v53  ;;  %v9754_v40 = vadd.f32 1.0, %v7662_v21  ;;  %4940 = vmatpush.bf16.msrb.mxu2 %v6952_v49  ;;  %v6572_v58 = vor.u32 %v7304_v31, %v6569_v46  ;;  %v6840_v7 = vor.u32 %v7373_v39, %v6839_v11  ;;  %4904 = vmatpush.bf16.msra.mxu3 %v6712_v56  ;;  %vm9764_vm2 = vmor %vm3987_vm13, %vm3988_vm0  ;;  %v6561_v31 = vld [vmem:[%s8383_s15 + $0x58] sm:$0xf0]  ;;  %v7015_v11 = vld [vmem:[%s8383_s15 + $0x3e0] sm:$0xf]  ;;  %v3704_v28 = vpop.f32.mrf.mxu1 }
 0x872   : > { %v3986_v12 = vadd.f32 %v9707_v55, %v3985_v42  ;;  %v3879_v17 = vsub.f32 1.0, %v3878_v9  ;;  %v7024_v53 = vor.u32 %v7419_v60, %v7023_v18  ;;  %v6644_v59 = vor.u32 %v7322_v57, %v6641_v63  ;;  %v9758_v14 = vpop.eup %7663  ;;  %v7417_v39 = vld [vmem:[%s8383_s15 + $0x3e4] sm:$0xf0]  ;;  %v7320_v48 = vld [vmem:[%s8383_s15 + $0xe4] sm:$0xf] }
 0x873   : > { %4891 = vmatmul.bf16.vlgmr.msra.gmra.mxu2 %v9743_v32  ;;  %v3889_v4 = vor.u32 1.1754944e-38, %v3888_v29  ;;  %vm3897_vm3 = vweird.f32 %v9701_v50  ;;  %v3903_v45 = vand.u32 2147483648, %v9701_v50  ;;  %7667 = vrcp.f32 %v9754_v40  ;;  %4968 = vmatpush.bf16.msra.mxu0 %v6572_v58  ;;  %v9799_v18 = vld [vmem:[%s8383_s15 + $0x340] sm:$0xf]  ;;  %v7397_v49 = vld [vmem:[%s8383_s15 + $0x344] sm:$0xf0] }
 0x874   : > { %v7666_v23 = vpop.eup %7665  ;;  %v3990_v37 = vsel %vm9764_vm2, %v9707_v55, %v3986_v12  ;;  %v3880_v25 = vmul.f32 %v9738_v5, %v3879_v17  ;;  %vm3883_vm4 = vweird.f32 %v9738_v5  ;;  %v3893_v1 = vmul.f32 %v9758_v14, %v9701_v50  ;;  %4932 = vmatpush.bf16.msrb.mxu1 %v6840_v7  ;;  %v7300_v56 = vld [vmem:[%s8383_s15 + $0x44] sm:$0xf]  ;;  %v6553_v42 = vld [vmem:[%s8383_s15 + $0x48] sm:$0xf0]  ;;  %v9823_v9 = vld [vmem:[%s8383_s15 + $0x3d0] sm:$0xf] }
 0x875   : > { %4953 = vmatpush.bf16.msrb.mxu3 %v7024_v53  ;;  %v3995_v52 = vsel %vm9719_vm14, %v3994_v26, %v3990_v37  ;;  %vm9783_vm5 = vcmp.eq.f32.partialorder %v3901_v36, 8.507059e+37  ;;  %v4006_v55 = vand.u32 2147483647, %v9754_v40  ;;  %v4008_v34 = vand.u32 2147483648, %v9754_v40  ;;  %vm9805_vm6 = vmor %vm3882_vm15, %vm3883_vm4  ;;  %v9826_v36 = vld [vmem:[%s8383_s15 + $0x3d4] sm:$0xf0] }
 0x876   : > { %v9789_v22 = vadd.f32 1.0, %v7666_v23  ;;  %v4068_v46 = vmul.f32 %v3995_v52, %v9551_v19  ;;  %v3881_v10 = vadd.f32 %v9738_v5, %v3880_v25  ;;  %v3894_v62 = vsub.f32 1.0, %v3893_v1  ;;  %v7318_v17 = vld [vmem:[%s8383_s15 + $0xd4] sm:$0xf]  ;;  %v6625_v53 = vld [vmem:[%s8383_s15 + $0xd8] sm:$0xf0] }
 0x877   : > { %v6944_v26 = vor.u32 %v7399_v6, %v6943_v20  ;;  %vm3898_vm7 = vweird.f32 %v9758_v14  ;;  %v3904_v60 = vor.u32 1.1754944e-38, %v3903_v45  ;;  %v6564_v21 = vor.u32 %v7302_v41, %v6561_v31  ;;  %v6927_v20 = vld [vmem:[%s8383_s15 + $0x330] sm:$0xf]  ;;  %v7395_v41 = vld [vmem:[%s8383_s15 + $0x334] sm:$0xf0] }
 0x878   : > { %4981 = vmatpush.bf16.msra.mxu1 %v6644_v59  ;;  %7669 = vrcp.f32 %v9789_v22  ;;  %v4023_v29 = vand.u32 2147483648, %v9789_v22  ;;  %v9815_v57 = vpack.c.bf16 %v4068_v46, %v9727_v43  ;;  %v3885_v44 = vsel %vm9805_vm6, %v9738_v5, %v3881_v10  ;;  %v3718_v58 = vpop.f32.mrf.mxu2  ;;  %vm9854_vm10 = vmor %vm3897_vm3, %vm3898_vm7  ;;  %v7298_v52 = vld [vmem:[%s8383_s15 + $0x34] sm:$0xf]  ;;  %v6545_v46 = vld [vmem:[%s8383_s15 + $0x38] sm:$0xf0] }
 0x879   : > { %v3895_v63 = vmul.f32 %v9758_v14, %v3894_v62  ;;  %4941 = vmatpush.bf16.msrb.mxu2 %v6944_v26  ;;  %v9828_v7 = vpop.eup %7667  ;;  %v3890_v43 = vsel %vm9749_vm1, %v3889_v4, %v3885_v44  ;;  %vm4002_vm8 = vweird.f32 %v9754_v40  ;;  %v9833_v12 = vor.u32 1.1754944e-38, %v4008_v34  ;;  %4969 = vmatpush.bf16.msra.mxu0 %v6564_v21  ;;  %v9870_v10 = vld [vmem:[%s8383_s15 + $0x3c0] sm:$0xf]  ;;  %v7296_v21 = vld [vmem:[%s8383_s15 + $0x24] sm:$0xf] }
 0x87a   : > { %v2863_v5 = vperm.slane %v9396_v27, 6  ;;  %v3998_v16 = vmul.f32 %v9828_v7, %v9754_v40  ;;  %vm9841_vm9 = vcmp.eq.f32.partialorder %v4006_v55, 8.507059e+37  ;;  %v4021_v38 = vand.u32 2147483647, %v9789_v22  ;;  %4905 = vmatmul.bf16.vlgmr.msra.gmra.mxu3 %v9815_v57  ;;  %v7411_v6 = vld [vmem:[%s8383_s15 + $0x3b4] sm:$0xf0] }
 0x87b   : > { %v3896_v59 = vadd.f32 %v9758_v14, %v3895_v63  ;;  %v9846_v4 = vor.u32 1.1754944e-38, %v4023_v29  ;;  %v7016_v37 = vor.u32 %v7417_v39, %v7015_v11  ;;  %v6636_v25 = vor.u32 %v7320_v48, %v6633_v8  ;;  %v3692_v39 = vpop.f32.mrf.mxu0  ;;  %v7413_v48 = vld [vmem:[%s8383_s15 + $0x3c4] sm:$0xf0]  ;;  %v7316_v8 = vld [vmem:[%s8383_s15 + $0xc4] sm:$0xf] }
 0x87c   : > { %v3691_v23 = vadd.f32 %v3690_v13, %v2863_v5  ;;  %v6936_v1 = vor.u32 %v7397_v49, %v9799_v18  ;;  %v9862_v55 = vmul.f32 %v3890_v43, %v9575_v24  ;;  %v3999_v50 = vsub.f32 1.0, %v3998_v16  ;;  %v3732_v13 = vpop.f32.mrf.mxu3  ;;  %v6919_v49 = vld [vmem:[%s8383_s15 + $0x320] sm:$0xf]  ;;  %v3706_v16 = vpop.f32.mrf.mxu1 }
 0x87d   : > { %v3900_v34 = vsel %vm9854_vm10, %v9758_v14, %v3896_v59  ;;  %vm4017_vm11 = vweird.f32 %v9789_v22  ;;  %v6556_v31 = vor.u32 %v7300_v56, %v6553_v42  ;;  %4954 = vmatpush.bf16.msrb.mxu3 %v7016_v37  ;;  %4982 = vmatpush.bf16.msra.mxu1 %v6636_v25  ;;  %v7008_v24 = vor.u32 %v9826_v36, %v9823_v9 }
 0x87e   : > { %v9872_v62 = vpop.eup %7669  ;;  %v9874_v26 = vadd.f32 %v3704_v28, %v3691_v23  ;;  %v6628_v14 = vor.u32 %v7318_v17, %v6625_v53  ;;  %v2864_v11 = vperm.slane %v9396_v27, 7  ;;  %v9883_v18 = vsel %vm9783_vm5, %v3904_v60, %v3900_v34  ;;  %4942 = vmatpush.bf16.msrb.mxu2 %v6936_v1  ;;  %v6617_v27 = vld [vmem:[%s8383_s15 + $0xc8] sm:$0xf0]  ;;  %v9902_v53 = vld [vmem:[%s8383_s15 + $0x3b0] sm:$0xf] }
 0x87f   : > { %v4000_v19 = vmul.f32 %v9828_v7, %v3999_v50  ;;  %vm4003_vm12 = vweird.f32 %v9828_v7  ;;  %v4013_v29 = vmul.f32 %v9872_v62, %v9789_v22  ;;  %vm9889_vm13 = vcmp.eq.f32.partialorder %v4021_v38, 8.507059e+37  ;;  %4970 = vmatpush.bf16.msra.mxu0 %v6556_v31  ;;  %v6537_v17 = vld [vmem:[%s8383_s15 + $0x28] sm:$0xf0]  ;;  %v7314_v23 = vld [vmem:[%s8383_s15 + $0xb4] sm:$0xf] }
 0x880   : > { %v6507_v60 = vmul.f32 -1.702, %v9874_v26  ;;  %v3719_v56 = vadd.f32 %v3718_v58, %v2864_v11  ;;  %v6928_v44 = vor.u32 %v7395_v41, %v6927_v20  ;;  %v6548_v63 = vor.u32 %v7298_v52, %v6545_v46  ;;  %vm9908_vm14 = vmor %vm4002_vm8, %vm4003_vm12  ;;  %v6609_v1 = vld [vmem:[%s8383_s15 + $0xb8] sm:$0xf0]  ;;  %v3720_v41 = vpop.f32.mrf.mxu2  ;;  %v6911_v52 = vld [vmem:[%s8383_s15 + $0x310] sm:$0xf] }
 0x881   : > { %v4001_v42 = vadd.f32 %v9828_v7, %v4000_v19  ;;  %v4014_v9 = vsub.f32 1.0, %v4013_v29  ;;  %v3693_v36 = vadd.f32 %v3692_v39, %v2863_v5  ;;  %v7000_v43 = vor.u32 %v7413_v48, %v9870_v10  ;;  %4955 = vmatpush.bf16.msrb.mxu3 %v7008_v24  ;;  %4983 = vmatpush.bf16.msra.mxu1 %v6628_v14  ;;  %v7391_v34 = vld [vmem:[%s8383_s15 + $0x314] sm:$0xf0]  ;;  %v6529_v46 = vld [vmem:[%s8383_s15 + $0x18] sm:$0xf0] }
 0x882   : > { %v3781_v59 = vmul.f32 1.442695, %v6507_v60  ;;  %v9912_v5 = vadd.f32 %v3732_v13, %v3719_v56  ;;  %v6620_v38 = vor.u32 %v7316_v8, %v6617_v27  ;;  %v6920_v20 = vor.u32 %v7393_v47, %v6919_v49  ;;  %4943 = vmatpush.bf16.msrb.mxu2 %v6928_v44  ;;  %v7294_v13 = vld [vmem:[%s8383_s15 + $0x14] sm:$0xf]  ;;  %v6983_v48 = vld [vmem:[%s8383_s15 + $0x3a0] sm:$0xf] }
 0x883   : > { %v4005_v40 = vsel %vm9908_vm14, %v9828_v7, %v4001_v42  ;;  %v4015_v37 = vmul.f32 %v9872_v62, %v4014_v9  ;;  %vm4018_vm15 = vweird.f32 %v9872_v62  ;;  %4971 = vmatpush.bf16.msra.mxu0 %v6548_v63  ;;  %v9921_v25 = vadd.f32 %v3706_v16, %v3693_v36  ;;  %v7409_v8 = vld [vmem:[%s8383_s15 + $0x3a4] sm:$0xf0]  ;;  %v7312_v27 = vld [vmem:[%s8383_s15 + $0xa4] sm:$0xf]  ;;  %v6601_v49 = vld [vmem:[%s8383_s15 + $0xa8] sm:$0xf0] }
 0x884   : > { %v4010_v50 = vsel %vm9841_vm9, %v9833_v12, %v4005_v40  ;;  %7671 = vpow2.f32 %v3781_v59  ;;  %v6508_v7 = vmul.f32 -1.702, %v9912_v5  ;;  %v6540_v31 = vor.u32 %v7296_v21, %v6537_v17  ;;  %vm9942_vm0 = vmor %vm4017_vm11, %vm4018_vm15  ;;  %v3734_v56 = vpop.f32.mrf.mxu3  ;;  %v6903_v44 = vld [vmem:[%s8383_s15 + $0x300] sm:$0xf]  ;;  %v7389_v63 = vld [vmem:[%s8383_s15 + $0x304] sm:$0xf0] }
 0x885   : > { %v4069_v10 = vmul.f32 %v4010_v50, %v9652_v51  ;;  %v4016_v24 = vadd.f32 %v9872_v62, %v4015_v37  ;;  %v6515_v14 = vmul.f32 -1.702, %v9921_v25  ;;  %v6992_v39 = vor.u32 %v7411_v6, %v9902_v53  ;;  %4956 = vmatpush.bf16.msrb.mxu3 %v7000_v43  ;;  %4984 = vmatpush.bf16.msra.mxu1 %v6620_v38  ;;  %v7292_v42 = vld [vmem:[%s8383_s15 + $0x4] sm:$0xf]  ;;  %v7338_v9 = vld [vmem:[%s8383_s15 + $0x174] sm:$0xf] }
 0x886   : > { %v3783_v45 = vmul.f32 1.442695, %v6508_v7  ;;  %v6612_v51 = vor.u32 %v7314_v23, %v6609_v1  ;;  %v3721_v19 = vadd.f32 %v3720_v41, %v2864_v11  ;;  %v6912_v29 = vor.u32 %v7391_v34, %v6911_v52  ;;  %4944 = vmatpush.bf16.msrb.mxu2 %v6920_v20  ;;  %v6705_v17 = vld [vmem:[%s8383_s15 + $0x178] sm:$0xf0]  ;;  %v7370_v53 = vld [vmem:[%s8383_s15 + $0x274] sm:$0xf] }
 0x887   : > { %v9949_v47 = vpack.c.bf16 %v4069_v10, %v9862_v55  ;;  %v4020_v22 = vsel %vm9942_vm0, %v9872_v62, %v4016_v24  ;;  %v3797_v60 = vmul.f32 1.442695, %v6515_v14  ;;  %4972 = vmatpush.bf16.msra.mxu0 %v6540_v31  ;;  %v6532_v11 = vor.u32 %v7294_v13, %v6529_v46  ;;  %v6521_v62 = vld [vmem:[%s8383_s15 + $0x8] sm:$0xf0]  ;;  %v7310_v23 = vld [vmem:[%s8383_s15 + $0x94] sm:$0xf] }
 0x888   : > { %v4025_v21 = vsel %vm9889_vm13, %v9846_v4, %v4020_v22  ;;  %7673 = vpow2.f32 %v3783_v45  ;;  %v9959_v55 = vadd.f32 %v3734_v56, %v3721_v19  ;;  %v4062_v36 = vmul.f32 %v9883_v18, %v9600_v3  ;;  %v6833_v4 = vld [vmem:[%s8383_s15 + $0x278] sm:$0xf0]  ;;  %v6975_v3 = vld [vmem:[%s8383_s15 + $0x390] sm:$0xf]  ;;  %v7336_v52 = vld [vmem:[%s8383_s15 + $0x164] sm:$0xf] }
 0x889   : > { %v4070_v43 = vmul.f32 %v4025_v21, %v9658_v0  ;;  %7675 = vpow2.f32 %v3797_v60  ;;  %4919 = vmatmul.bf16.vlgmr.msrb.gmra.mxu0 %v9949_v47  ;;  %4957 = vmatpush.bf16.msrb.mxu3 %v6992_v39  ;;  %v6984_v59 = vor.u32 %v7409_v8, %v6983_v48  ;;  %v6604_v16 = vor.u32 %v7312_v27, %v6601_v49  ;;  %v7407_v0 = vld [vmem:[%s8383_s15 + $0x394] sm:$0xf0]  ;;  %v6593_v40 = vld [vmem:[%s8383_s15 + $0x98] sm:$0xf0]  ;;  %v6697_v34 = vld [vmem:[%s8383_s15 + $0x168] sm:$0xf0] }
 0x88a   : > { %v7672_v28 = vpop.eup %7671  ;;  %4985 = vmatpush.bf16.msra.mxu1 %v6612_v51  ;;  %v6516_v58 = vmul.f32 -1.702, %v9959_v55  ;;  %4945 = vmatpush.bf16.msrb.mxu2 %v6912_v29  ;;  %v6904_v20 = vor.u32 %v7389_v63, %v6903_v44  ;;  %v6524_v6 = vor.u32 %v7292_v42, %v6521_v62  ;;  %v6708_v1 = vor.u32 %v7338_v9, %v6705_v17  ;;  %v6967_v50 = vld [vmem:[%s8383_s15 + $0x380] sm:$0xf]  ;;  %v7405_v7 = vld [vmem:[%s8383_s15 + $0x384] sm:$0xf0] }
 0x88b   : > { %v9974_v18 = vpack.c.bf16 %v4070_v43, %v4062_v36  ;;  %v9976_v38 = vadd.f32 1.0, %v7672_v28  ;;  %4973 = vmatpush.bf16.msra.mxu0 %v6532_v11  ;;  %v6836_v41 = vor.u32 %v7370_v53, %v6833_v4  ;;  %v7368_v31 = vld [vmem:[%s8383_s15 + $0x264] sm:$0xf]  ;;  %v6825_v13 = vld [vmem:[%s8383_s15 + $0x268] sm:$0xf0]  ;;  %v6976_v10 = vor.u32 %v7407_v0, %v6975_v3 }
 0x88c   : > { %v3799_v37 = vmul.f32 1.442695, %v6516_v58  ;;  %v6596_v24 = vor.u32 %v7310_v23, %v6593_v40  ;;  %v7308_v14 = vld [vmem:[%s8383_s15 + $0x84] sm:$0xf]  ;;  %v6585_v39 = vld [vmem:[%s8383_s15 + $0x88] sm:$0xf0]  ;;  %v6700_v29 = vor.u32 %v7336_v52, %v6697_v34  ;;  %v6828_v27 = vor.u32 %v7368_v31, %v6825_v13 }
 0x88d   : > { %7677 = vrcp.f32 %v9976_v38  ;;  %4933 = vmatmul.bf16.vlgmr.msrb.gmra.mxu1 %v9974_v18  ;;  %4958 = vmatpush.bf16.msrb.mxu3 %v6984_v59  ;;  %v7354_v48 = vld [vmem:[%s8383_s15 + $0x1f4] sm:$0xf]  ;;  %v6769_v45 = vld [vmem:[%s8383_s15 + $0x1f8] sm:$0xf0]  ;;  %v6968_v44 = vor.u32 %v7405_v7, %v6967_v50  ;;  %v6588_v63 = vor.u32 %v7308_v14, %v6585_v39  ;;  %v7352_v21 = vld [vmem:[%s8383_s15 + $0x1e4] sm:$0xf]  ;;  %vm3912_vm1 = vweird.f32 %v9976_v38 }
 0x88e   : > { %v7674_v46 = vpop.eup %7673  ;;  %7679 = vpow2.f32 %v3799_v37  ;;  %4986 = vmatpush.bf16.msra.mxu1 %v6604_v16  ;;  %4946 = vmatpush.bf16.msrb.mxu2 %v6904_v20  ;;  %v7386_v51 = vld [vmem:[%s8383_s15 + $0x2f4] sm:$0xf]  ;;  %v6897_v49 = vld [vmem:[%s8383_s15 + $0x2f8] sm:$0xf0]  ;;  %v6761_v42 = vld [vmem:[%s8383_s15 + $0x1e8] sm:$0xf0]  ;;  %v6772_v36 = vor.u32 %v7354_v48, %v6769_v45 }
 0x88f   : > { %v7676_v8 = vpop.eup %7675  ;;  %v9991_v12 = vadd.f32 1.0, %v7674_v46  ;;  %4974 = vmatpush.bf16.msra.mxu0 %v6524_v6  ;;  %v7334_v22 = vld [vmem:[%s8383_s15 + $0x154] sm:$0xf]  ;;  %v6689_v60 = vld [vmem:[%s8383_s15 + $0x158] sm:$0xf0]  ;;  %v6900_v43 = vor.u32 %v7386_v51, %v6897_v49  ;;  %v3918_v58 = vand.u32 2147483648, %v9976_v38  ;;  %v6764_v52 = vor.u32 %v7352_v21, %v6761_v42 }
 0x890   : > { %v9995_v19 = vadd.f32 1.0, %v7676_v8  ;;  %v7366_v56 = vld [vmem:[%s8383_s15 + $0x254] sm:$0xf]  ;;  %v6817_v11 = vld [vmem:[%s8383_s15 + $0x258] sm:$0xf0]  ;;  %v6692_v59 = vor.u32 %v7334_v22, %v6689_v60 }
 0x891   : > { %7681 = vrcp.f32 %v9991_v12  ;;  %4959 = vmatpush.bf16.msrb.mxu3 %v6976_v10  ;;  %v3916_v9 = vand.u32 2147483647, %v9976_v38  ;;  %v7384_v17 = vld [vmem:[%s8383_s15 + $0x2e4] sm:$0xf]  ;;  %v6889_v53 = vld [vmem:[%s8383_s15 + $0x2e8] sm:$0xf0]  ;;  %v6820_v16 = vor.u32 %v7366_v56, %v6817_v11  ;;  %vm3927_vm4 = vweird.f32 %v9991_v12 }
 0x892   : > { %4995 = vmatpush.bf16.msra.mxu2 %v6708_v1  ;;  %7683 = vrcp.f32 %v9995_v19  ;;  %4987 = vmatpush.bf16.msra.mxu1 %v6596_v24  ;;  %v7332_v3 = vld [vmem:[%s8383_s15 + $0x144] sm:$0xf]  ;;  %v6681_v0 = vld [vmem:[%s8383_s15 + $0x148] sm:$0xf0]  ;;  %v10022_v37 = vld [vmem:[%s8383_s15 + $0x1d4] sm:$0xf]  ;;  %v6892_v34 = vor.u32 %v7384_v17, %v6889_v53  ;;  %vm4032_vm6 = vweird.f32 %v9995_v19 }
 0x893   : > { %5023 = vmatpush.bf16.msrb.mxu0 %v6836_v41  ;;  %v10006_v62 = vpop.eup %7677  ;;  %v7364_v6 = vld [vmem:[%s8383_s15 + $0x244] sm:$0xf]  ;;  %v6809_v23 = vld [vmem:[%s8383_s15 + $0x248] sm:$0xf0]  ;;  %vm10026_vm2 = vcmp.eq.f32.partialorder %v3916_v9, 8.507059e+37  ;;  %v6684_v50 = vor.u32 %v7332_v3, %v6681_v0  ;;  %v3919_v24 = vor.u32 1.1754944e-38, %v3918_v58 }
 0x894   : > { %v7680_v4 = vpop.eup %7679  ;;  %v3908_v28 = vmul.f32 %v10006_v62, %v9976_v38  ;;  %v6753_v7 = vld [vmem:[%s8383_s15 + $0x1d8] sm:$0xf0]  ;;  %v7382_v31 = vld [vmem:[%s8383_s15 + $0x2d4] sm:$0xf]  ;;  %v6812_v39 = vor.u32 %v7364_v6, %v6809_v23  ;;  %vm3913_vm3 = vweird.f32 %v10006_v62  ;;  %v3931_v45 = vand.u32 2147483647, %v9991_v12 }
 0x895   : > { %v10016_v20 = vadd.f32 1.0, %v7680_v4  ;;  %4960 = vmatpush.bf16.msrb.mxu3 %v6968_v44  ;;  %v6881_v13 = vld [vmem:[%s8383_s15 + $0x2d8] sm:$0xf0]  ;;  %v7330_v48 = vld [vmem:[%s8383_s15 + $0x134] sm:$0xf]  ;;  %v3933_v60 = vand.u32 2147483648, %v9991_v12  ;;  %v6756_v42 = vor.u32 %v10022_v37, %v6753_v7  ;;  %vm10069_vm5 = vmor %vm3912_vm1, %vm3913_vm3 }
 0x896   : > { %4996 = vmatpush.bf16.msra.mxu2 %v6700_v29  ;;  %v3909_v40 = vsub.f32 1.0, %v3908_v28  ;;  %4988 = vmatpush.bf16.msra.mxu1 %v6588_v63  ;;  %v6673_v8 = vld [vmem:[%s8383_s15 + $0x138] sm:$0xf0]  ;;  %v7362_v29 = vld [vmem:[%s8383_s15 + $0x234] sm:$0xf]  ;;  %v6884_v9 = vor.u32 %v7382_v31, %v6881_v13  ;;  %vm10082_vm7 = vcmp.eq.f32.partialorder %v3931_v45, 8.507059e+37 }
 0x897   : > { %5024 = vmatpush.bf16.msrb.mxu0 %v6828_v27  ;;  %v10024_v1 = vpop.eup %7681  ;;  %7685 = vrcp.f32 %v10016_v20  ;;  %v6801_v27 = vld [vmem:[%s8383_s15 + $0x238] sm:$0xf0]  ;;  %v4036_v56 = vand.u32 2147483647, %v9995_v19  ;;  %v10053_v11 = vld [vmem:[%s8383_s15 + $0x1c4] sm:$0xf]  ;;  %v6676_v4 = vor.u32 %v7330_v48, %v6673_v8  ;;  %vm4047_vm14 = vweird.f32 %v10016_v20 }
 0x898   : > { %v10034_v46 = vpop.eup %7683  ;;  %v3910_v10 = vmul.f32 %v10006_v62, %v3909_v40  ;;  %v3923_v14 = vmul.f32 %v10024_v1, %v9991_v12  ;;  %v10056_v44 = vld [vmem:[%s8383_s15 + $0x1c8] sm:$0xf0]  ;;  %v10059_v63 = vld [vmem:[%s8383_s15 + $0x2c4] sm:$0xf]  ;;  %v6804_v28 = vor.u32 %v7362_v29, %v6801_v27  ;;  %v10091_v23 = vld [vmem:[%s8383_s15 + $0x1b4] sm:$0xf]  ;;  %vm3928_vm9 = vweird.f32 %v10024_v1 }
 0x899   : > { %5009 = vmatpush.bf16.msra.mxu3 %v6772_v36  ;;  %v4028_v51 = vmul.f32 %v10034_v46, %v9995_v19  ;;  %4975 = vmatmul.bf16.vlgmr.msra.gmra.mxu0 %v9593_v15  ;;  %v4038_v15 = vand.u32 2147483648, %v9995_v19  ;;  %v6873_v36 = vld [vmem:[%s8383_s15 + $0x2c8] sm:$0xf0]  ;;  %vm4033_vm8 = vweird.f32 %v10034_v46  ;;  %vm10095_vm10 = vcmp.eq.f32.partialorder %v4036_v56, 8.507059e+37  ;;  %v6865_v13 = vld [vmem:[%s8383_s15 + $0x2b8] sm:$0xf0]  ;;  %vm10125_vm12 = vmor %vm3927_vm4, %vm3928_vm9 }
 0x89a   : > { %5037 = vmatpush.bf16.msrb.mxu1 %v6900_v43  ;;  %4997 = vmatpush.bf16.msra.mxu2 %v6692_v59  ;;  %v3911_v49 = vadd.f32 %v10006_v62, %v3910_v10  ;;  %v3924_v22 = vsub.f32 1.0, %v3923_v14  ;;  %v7328_v43 = vld [vmem:[%s8383_s15 + $0x124] sm:$0xf]  ;;  %v6665_v58 = vld [vmem:[%s8383_s15 + $0x128] sm:$0xf0]  ;;  %v6748_v7 = vor.u32 %v10053_v11, %v10056_v44  ;;  %v6876_v31 = vor.u32 %v10059_v63, %v6873_v36  ;;  %vm10115_vm11 = vmor %vm4032_vm6, %vm4033_vm8 }
 0x89b   : > { %5025 = vmatpush.bf16.msrb.mxu0 %v6820_v16  ;;  %v4029_v21 = vsub.f32 1.0, %v4028_v51  ;;  %v7360_v59 = vld [vmem:[%s8383_s15 + $0x224] sm:$0xf]  ;;  %v6793_v6 = vld [vmem:[%s8383_s15 + $0x228] sm:$0xf0]  ;;  %v6668_v8 = vor.u32 %v7328_v43, %v6665_v58  ;;  %v4053_v27 = vand.u32 2147483648, %v10016_v20 }
 0x89c   : > { %v3925_v53 = vmul.f32 %v10024_v1, %v3924_v22  ;;  %v3915_v38 = vsel %vm10069_vm5, %v10006_v62, %v3911_v49  ;;  %v7326_v10 = vld [vmem:[%s8383_s15 + $0x114] sm:$0xf]  ;;  %v6796_v45 = vor.u32 %v7360_v59, %v6793_v6  ;;  %v6657_v51 = vld [vmem:[%s8383_s15 + $0x118] sm:$0xf0]  ;;  %v7324_v43 = vld [vmem:[%s8383_s15 + $0x104] sm:$0xf] }
 0x89d   : > { %5010 = vmatpush.bf16.msra.mxu3 %v6764_v52  ;;  %v10077_v16 = vpop.eup %7685  ;;  %v4030_v0 = vmul.f32 %v10034_v46, %v4029_v21  ;;  %4989 = vmatmul.bf16.vlgmr.msra.gmra.mxu1 %v9654_v35  ;;  %v6737_v52 = vld [vmem:[%s8383_s15 + $0x1b8] sm:$0xf0]  ;;  %v4039_v35 = vor.u32 1.1754944e-38, %v4038_v15  ;;  %v3920_v14 = vsel %vm10026_vm2, %v3919_v24, %v3915_v38  ;;  %v7358_v29 = vld [vmem:[%s8383_s15 + $0x214] sm:$0xf]  ;;  %v3934_v21 = vor.u32 1.1754944e-38, %v3933_v60 }
 0x89e   : > { %5038 = vmatpush.bf16.msrb.mxu1 %v6892_v34  ;;  %4998 = vmatpush.bf16.msra.mxu2 %v6684_v50  ;;  %v3926_v40 = vadd.f32 %v10024_v1, %v3925_v53  ;;  %v4043_v37 = vmul.f32 %v10077_v16, %v10016_v20  ;;  %v7378_v34 = vld [vmem:[%s8383_s15 + $0x2b4] sm:$0xf]  ;;  %v4051_v24 = vand.u32 2147483647, %v10016_v20  ;;  %v6740_v49 = vor.u32 %v10091_v23, %v6737_v52  ;;  %v6785_v22 = vld [vmem:[%s8383_s15 + $0x218] sm:$0xf0] }
 0x89f   : > { %5026 = vmatpush.bf16.msrb.mxu0 %v6812_v39  ;;  %v4031_v50 = vadd.f32 %v10034_v46, %v4030_v0  ;;  %vm4048_vm13 = vweird.f32 %v10077_v16  ;;  %v4063_v63 = vmul.f32 %v3920_v14, %v9874_v26  ;;  %v6660_v26 = vor.u32 %v7326_v10, %v6657_v51  ;;  %v6857_v60 = vld [vmem:[%s8383_s15 + $0x2a8] sm:$0xf0]  ;;  %v7356_v20 = vld [vmem:[%s8383_s15 + $0x204] sm:$0xf]  ;;  %v7402_v38 = vld [vmem:[%s8383_s15 + $0x374] sm:$0xf] }
 0x8a0   : > { %v4044_v48 = vsub.f32 1.0, %v4043_v37  ;;  %v3930_v56 = vsel %vm10125_vm12, %v10024_v1, %v3926_v40  ;;  %v6868_v1 = vor.u32 %v7378_v34, %v6865_v13  ;;  %v6788_v12 = vor.u32 %v7358_v29, %v6785_v22  ;;  %vm4049_vm15 = vmor %vm4047_vm14, %vm4048_vm13  ;;  %v6961_v0 = vld [vmem:[%s8383_s15 + $0x378] sm:$0xf0]  ;;  %v7342_v40 = vld [vmem:[%s8383_s15 + $0x194] sm:$0xf] }
 0x8a1   : > { %5011 = vmatpush.bf16.msra.mxu3 %v6756_v42  ;;  %v4035_v19 = vsel %vm10115_vm11, %v10034_v46, %v4031_v50  ;;  %v7344_v46 = vld [vmem:[%s8383_s15 + $0x1a4] sm:$0xf]  ;;  %v6729_v42 = vld [vmem:[%s8383_s15 + $0x1a8] sm:$0xf0]  ;;  %v3935_v17 = vsel %vm10082_vm7, %v3934_v21, %v3930_v56  ;;  %vm4052_vm0 = vcmp.eq.f32.partialorder %v4051_v24, 8.507059e+37 }
 0x8a2   : > { %5039 = vmatpush.bf16.msrb.mxu1 %v6884_v9  ;;  %4999 = vmatpush.bf16.msra.mxu2 %v6676_v4  ;;  %v4040_v11 = vsel %vm10095_vm10, %v4039_v35, %v4035_v19  ;;  %v4045_v44 = vmul.f32 %v10077_v16, %v4044_v48  ;;  %v7376_v9 = vld [vmem:[%s8383_s15 + $0x2a4] sm:$0xf]  ;;  %v4054_v4 = vor.u32 1.1754944e-38, %v4053_v27  ;;  %v6732_v59 = vor.u32 %v7344_v46, %v6729_v42  ;;  %v6721_v52 = vld [vmem:[%s8383_s15 + $0x198] sm:$0xf0] }
 0x8a3   : > { %5027 = vmatpush.bf16.msrb.mxu0 %v6804_v28  ;;  %v4071_v15 = vmul.f32 %v4040_v11, %v9921_v25  ;;  %v6649_v25 = vld [vmem:[%s8383_s15 + $0x108] sm:$0xf0]  ;;  %v6860_v6 = vor.u32 %v7376_v9, %v6857_v60  ;;  %v4064_v62 = vmul.f32 %v3935_v17, %v9912_v5  ;;  %v7374_v34 = vld [vmem:[%s8383_s15 + $0x294] sm:$0xf]  ;;  %v6849_v50 = vld [vmem:[%s8383_s15 + $0x298] sm:$0xf0]  ;;  %v6964_v35 = vor.u32 %v7402_v38, %v6961_v0 }
 0x8a4   : > { %v4046_v36 = vadd.f32 %v10077_v16, %v4045_v44  ;;  %v6777_v28 = vld [vmem:[%s8383_s15 + $0x208] sm:$0xf0]  ;;  %v6652_v23 = vor.u32 %v7324_v43, %v6649_v25  ;;  %v6852_v13 = vor.u32 %v7374_v34, %v6849_v50  ;;  %v7340_v10 = vld [vmem:[%s8383_s15 + $0x184] sm:$0xf]  ;;  %v7025_v51 = vld [vmem:[%s8383_s15 + $0x3f8] sm:$0xf0] }
 0x8a5   : > { %5012 = vmatpush.bf16.msra.mxu3 %v6748_v7  ;;  %v10157_v53 = vpack.c.bf16 %v4071_v15, %v4063_v63  ;;  %v6953_v5 = vld [vmem:[%s8383_s15 + $0x368] sm:$0xf0]  ;;  %v7372_v39 = vld [vmem:[%s8383_s15 + $0x284] sm:$0xf]  ;;  %v7398_v29 = vld [vmem:[%s8383_s15 + $0x354] sm:$0xf] }
 0x8a6   : > { %5040 = vmatpush.bf16.msrb.mxu1 %v6876_v31  ;;  %5000 = vmatpush.bf16.msra.mxu2 %v6668_v8  ;;  %v4050_v58 = vsel %vm4049_vm15, %v10077_v16, %v4046_v36  ;;  %v6780_v16 = vor.u32 %v7356_v20, %v6777_v28  ;;  %v7400_v31 = vld [vmem:[%s8383_s15 + $0x364] sm:$0xf]  ;;  %v6713_v14 = vld [vmem:[%s8383_s15 + $0x188] sm:$0xf0]  ;;  %v6945_v41 = vld [vmem:[%s8383_s15 + $0x358] sm:$0xf0] }
 0x8a7   : > { %5028 = vmatpush.bf16.msrb.mxu0 %v6796_v45  ;;  %v4055_v3 = vsel %vm4052_vm0, %v4054_v4, %v4050_v58  ;;  %4947 = vmatmul.bf16.vlgmr.msrb.gmra.mxu2 %v10157_v53  ;;  %v6841_v48 = vld [vmem:[%s8383_s15 + $0x288] sm:$0xf0]  ;;  %v6956_v8 = vor.u32 %v7400_v31, %v6953_v5  ;;  %v7418_v45 = vld [vmem:[%s8383_s15 + $0x3f4] sm:$0xf]  ;;  %v6716_v19 = vor.u32 %v7340_v10, %v6713_v14  ;;  %v7416_v22 = vld [vmem:[%s8383_s15 + $0x3e4] sm:$0xf] }
 0x8a8   : > { %v4072_v37 = vmul.f32 %v4055_v3, %v9959_v55  ;;  %v6724_v55 = vor.u32 %v7342_v40, %v6721_v52  ;;  %v6844_v24 = vor.u32 %v7372_v39, %v6841_v48  ;;  %v7028_v27 = vor.u32 %v7418_v45, %v7025_v51  ;;  %v7017_v56 = vld [vmem:[%s8383_s15 + $0x3e8] sm:$0xf0]  ;;  %v7396_v11 = vld [vmem:[%s8383_s15 + $0x344] sm:$0xf]  ;;  %v7009_v21 = vld [vmem:[%s8383_s15 + $0x3d8] sm:$0xf0] }
 0x8a9   : > { %5013 = vmatpush.bf16.msra.mxu3 %v6740_v49  ;;  %v6948_v49 = vor.u32 %v7398_v29, %v6945_v41  ;;  %v6937_v44 = vld [vmem:[%s8383_s15 + $0x348] sm:$0xf0]  ;;  %v7020_v46 = vor.u32 %v7416_v22, %v7017_v56  ;;  %v7394_v15 = vld [vmem:[%s8383_s15 + $0x334] sm:$0xf]  ;;  %v7412_v36 = vld [vmem:[%s8383_s15 + $0x3c4] sm:$0xf] }
 0x8aa   : > { %5041 = vmatpush.bf16.msrb.mxu1 %v6868_v1  ;;  %5001 = vmatpush.bf16.msra.mxu2 %v6660_v26  ;;  %v10173_v7 = vpack.c.bf16 %v4072_v37, %v4064_v62  ;;  %v6940_v63 = vor.u32 %v7396_v11, %v6937_v44  ;;  %v6929_v1 = vld [vmem:[%s8383_s15 + $0x338] sm:$0xf0]  ;;  %v7001_v26 = vld [vmem:[%s8383_s15 + $0x3c8] sm:$0xf0]  ;;  %v7410_v25 = vld [vmem:[%s8383_s15 + $0x3b4] sm:$0xf] }
 0x8ab   : > { %5029 = vmatpush.bf16.msrb.mxu0 %v6788_v12  ;;  %v6932_v9 = vor.u32 %v7394_v15, %v6929_v1  ;;  %v7392_v12 = vld [vmem:[%s8383_s15 + $0x324] sm:$0xf]  ;;  %v6921_v60 = vld [vmem:[%s8383_s15 + $0x328] sm:$0xf0]  ;;  %v6993_v17 = vld [vmem:[%s8383_s15 + $0x3b8] sm:$0xf0] }
 0x8ac   : > { %4961 = vmatmul.bf16.vlgmr.msrb.gmra.mxu3 %v10173_v7  ;;  %v6924_v43 = vor.u32 %v7392_v12, %v6921_v60  ;;  %v7390_v4 = vld [vmem:[%s8383_s15 + $0x314] sm:$0xf]  ;;  %v6913_v20 = vld [vmem:[%s8383_s15 + $0x318] sm:$0xf0]  ;;  %v7408_v58 = vld [vmem:[%s8383_s15 + $0x3a4] sm:$0xf] }
 0x8ad   : > { %5014 = vmatpush.bf16.msra.mxu3 %v6732_v59  ;;  %v6916_v28 = vor.u32 %v7390_v4, %v6913_v20  ;;  %v6985_v59 = vld [vmem:[%s8383_s15 + $0x3a8] sm:$0xf0]  ;;  %v7388_v38 = vld [vmem:[%s8383_s15 + $0x304] sm:$0xf] }
 0x8ae   : > { %5042 = vmatpush.bf16.msrb.mxu1 %v6860_v6  ;;  %5002 = vmatpush.bf16.msra.mxu2 %v6652_v23  ;;  %v6905_v0 = vld [vmem:[%s8383_s15 + $0x308] sm:$0xf0]  ;;  %v6988_v3 = vor.u32 %v7408_v58, %v6985_v59  ;;  %v7406_v6 = vld [vmem:[%s8383_s15 + $0x394] sm:$0xf]  ;;  %v6977_v23 = vld [vmem:[%s8383_s15 + $0x398] sm:$0xf0] }
 0x8af   : > { %5030 = vmatpush.bf16.msrb.mxu0 %v6780_v16  ;;  %v6980_v40 = vor.u32 %v7406_v6, %v6977_v23  ;;  %v7404_v62 = vld [vmem:[%s8383_s15 + $0x384] sm:$0xf]  ;;  %v6969_v37 = vld [vmem:[%s8383_s15 + $0x388] sm:$0xf0] }
 0x8b0   : > { %v6972_v16 = vor.u32 %v7404_v62, %v6969_v37 }
 0x8b1   : > { %5015 = vmatpush.bf16.msra.mxu3 %v6724_v55 }
 0x8b2   : > { %5051 = vmatpush.bf16.msrb.mxu2 %v6964_v35  ;;  %5043 = vmatpush.bf16.msrb.mxu1 %v6852_v13  ;;  %v4209_v35 = vld [vmem:[%s8413_s6] sm:$0x3] }
 0x8b3   : > { %5031 = vmatmul.bf16.vlgmr.msrb.gmra.mxu0 %v9949_v47  ;;  %v7414_v47 = vld [vmem:[%s8383_s15 + $0x3d4] sm:$0xf]  ;;  %v4211_v55 = vperm.slane %v4209_v35, 0  ;;  %s10401_s15 = smov (!%p5428_p9), %s10400_s24 }
 0x8b4   : > { %v7012_v42 = vor.u32 %v7414_v47, %v7009_v21 }
 0x8b5   : > { %5016 = vmatpush.bf16.msra.mxu3 %v6716_v19 }
 0x8b6   : > { %5052 = vmatpush.bf16.msrb.mxu2 %v6956_v8  ;;  %5044 = vmatpush.bf16.msrb.mxu1 %v6844_v24 }
 0x8b7   : > { %5003 = vmatmul.bf16.vlgmr.msra.gmra.mxu2 %v9743_v32  ;;  %v6996_v32 = vor.u32 %v7410_v25, %v6993_v17 }
 0x8b9   : > { %5065 = vmatpush.bf16.msrb.mxu3 %v7028_v27  ;;  %5045 = vmatmul.bf16.vlgmr.msrb.gmra.mxu1 %v9974_v18  ;;  %v7004_v18 = vor.u32 %v7412_v36, %v7001_v26 }
 0x8ba   : > { %5053 = vmatpush.bf16.msrb.mxu2 %v6948_v49 }
 0x8bc   : > { %5017 = vmatmul.bf16.vlgmr.msra.gmra.mxu3 %v9815_v57  ;;  %v6908_v57 = vor.u32 %v7388_v38, %v6905_v0 }
 0x8bd   : > { %5066 = vmatpush.bf16.msrb.mxu3 %v7020_v46 }
 0x8be   : > { %5054 = vmatpush.bf16.msrb.mxu2 %v6940_v63 }
 0x8c1   : > { %5067 = vmatpush.bf16.msrb.mxu3 %v7012_v42 }
 0x8c2   : > { %5055 = vmatpush.bf16.msrb.mxu2 %v6932_v9 }
 0x8c5   : > { %5068 = vmatpush.bf16.msrb.mxu3 %v7004_v18  ;;  %v4212_v18 = vperm.slane %v4209_v35, 1 }
 0x8c6   : > { %5056 = vmatpush.bf16.msrb.mxu2 %v6924_v43 }
 0x8c9   : > { %5069 = vmatpush.bf16.msrb.mxu3 %v6996_v32 }
 0x8ca   : > { %5057 = vmatpush.bf16.msrb.mxu2 %v6916_v28 }
 0x8cd   : > { %5070 = vmatpush.bf16.msrb.mxu3 %v6988_v3 }
 0x8ce   : > { %5058 = vmatpush.bf16.msrb.mxu2 %v6908_v57 }
 0x8d1   : > { %5071 = vmatpush.bf16.msrb.mxu3 %v6980_v40  ;;  %5059 = vmatmul.bf16.vlgmr.msrb.gmra.mxu2 %v10157_v53 }
 0x8d5   : > { %5072 = vmatpush.bf16.msrb.mxu3 %v6972_v16 }
 0x8d8   : > { %5073 = vmatmul.bf16.vlgmr.msrb.gmra.mxu3 %v10173_v7 }
 0x8db   : > { %v4864_v52 = vpop.f32.mrf.mxu0 }
 0x8dc   : > { %v4865_v10 = vadd.f32 %v4864_v52, %v4211_v55 }
 0x8e3   : > { %v4866_v31 = vpop.f32.mrf.mxu0 }
 0x8e4   : > { %v4867_v29 = vadd.f32 %v4866_v31, %v4211_v55 }
 0x8e5   : > { %v4878_v34 = vpop.f32.mrf.mxu1 }
 0x8e6   : > { %v4879_v48 = vadd.f32 %v4878_v34, %v4865_v10 }
 0x8ed   : > { %v4880_v13 = vpop.f32.mrf.mxu1 }
 0x8ee   : > { %v4881_v7 = vadd.f32 %v4880_v13, %v4867_v29 }
 0x8f6   : > { %v4892_v50 = vpop.f32.mrf.mxu2 }
 0x8f7   : > { %v4893_v8 = vadd.f32 %v4892_v50, %v4879_v48 }
 0x8fd   : > { %v4906_v5 = vpop.f32.mrf.mxu3 }
 0x8fe   : > { %v4894_v14 = vpop.f32.mrf.mxu2  ;;  %v4907_v53 = vadd.f32 %v4906_v5, %v4893_v8 }
 0x8ff   : > { %v4895_v49 = vadd.f32 %v4894_v14, %v4881_v7 }
 0x905   : > { %v4908_v45 = vpop.f32.mrf.mxu3 }
 0x906   : > { %v4920_v39 = vpop.f32.mrf.mxu0  ;;  %v4909_v11 = vadd.f32 %v4908_v45, %v4895_v49 }
 0x907   : > { %v4921_v41 = vadd.f32 %v4920_v39, %v4907_v53 }
 0x90a   : > { %v4934_v51 = vpop.f32.mrf.mxu1 }
 0x90b   : > { %v4935_v24 = vadd.f32 %v4934_v51, %v4921_v41 }
 0x90e   : > { %v4922_v27 = vpop.f32.mrf.mxu0 }
 0x90f   : > { %v4923_v63 = vadd.f32 %v4922_v27, %v4909_v11 }
 0x912   : > { %v4936_v46 = vpop.f32.mrf.mxu1 }
 0x913   : > { %v4937_v15 = vadd.f32 %v4936_v46, %v4923_v63 }
 0x916   : > { %v4976_v42 = vpop.f32.mrf.mxu0 }
 0x917   : > { %v4977_v17 = vadd.f32 %v4976_v42, %v4212_v18 }
 0x91a   : > { %v4990_v12 = vpop.f32.mrf.mxu1 }
 0x91b   : > { %v4991_v32 = vadd.f32 %v4990_v12, %v4977_v17 }
 0x91e   : > { %v4978_v43 = vpop.f32.mrf.mxu0 }
 0x91f   : > { %v4979_v38 = vadd.f32 %v4978_v43, %v4212_v18 }
 0x922   : > { %v4992_v4 = vpop.f32.mrf.mxu1 }
 0x923   : > { %v4993_v0 = vadd.f32 %v4992_v4, %v4979_v38 }
 0x92a   : > { %v4948_v19 = vpop.f32.mrf.mxu2 }
 0x92b   : > { %v4949_v22 = vadd.f32 %v4948_v19, %v4935_v24 }
 0x92f   : > { %v4962_v56 = vpop.f32.mrf.mxu3 }
 0x930   : > { %v4963_v44 = vadd.f32 %v4962_v56, %v4949_v22  ;;  %v5032_v58 = vpop.f32.mrf.mxu0 }
 0x932   : > { %v5079_v47 = vadd.f32 %v4963_v44, %v9041_v54  ;;  %v4950_v21 = vpop.f32.mrf.mxu2 }
 0x933   : > { %v4951_v1 = vadd.f32 %v4950_v21, %v4937_v15 }
 0x934   : > { %5083 = vst [vmem:[#allocation2 + $0x10] sm:$0xff] %v5079_v47 }
 0x936   : > { %v5046_v57 = vpop.f32.mrf.mxu1 }
 0x937   : > { %v4964_v9 = vpop.f32.mrf.mxu3 }
 0x938   : > { %v4965_v36 = vadd.f32 %v4964_v9, %v4951_v1  ;;  %v5034_v37 = vpop.f32.mrf.mxu0 }
 0x93a   : > { %v5081_v26 = vadd.f32 %v4965_v36, %v9047_v30  ;;  %v5004_v60 = vpop.f32.mrf.mxu2 }
 0x93b   : > { %v5005_v54 = vadd.f32 %v5004_v60, %v4991_v32 }
 0x93c   : > { %5085 = vst [vmem:[#allocation2 + $0x18] sm:$0xff] %v5081_v26 }
 0x93e   : > { %v5048_v35 = vpop.f32.mrf.mxu1 }
 0x93f   : > { %v5018_v25 = vpop.f32.mrf.mxu3 }
 0x940   : > { %v5019_v28 = vadd.f32 %v5018_v25, %v5005_v54 }
 0x942   : > { %v5006_v20 = vpop.f32.mrf.mxu2  ;;  %v5033_v3 = vadd.f32 %v5032_v58, %v5019_v28 }
 0x943   : > { %v5007_v30 = vadd.f32 %v5006_v20, %v4993_v0 }
 0x944   : > { %v5047_v40 = vadd.f32 %v5046_v57, %v5033_v3 }
 0x947   : > { %v5020_v59 = vpop.f32.mrf.mxu3 }
 0x948   : > { %v5021_v23 = vadd.f32 %v5020_v59, %v5007_v30 }
 0x94a   : > { %v5035_v52 = vadd.f32 %v5034_v37, %v5021_v23 }
 0x94c   : > { %v5049_v5 = vadd.f32 %v5048_v35, %v5035_v52 }
 0x954   : > { %v5060_v6 = vpop.f32.mrf.mxu2 }
 0x955   : > { %v5061_v62 = vadd.f32 %v5060_v6, %v5047_v40 }
 0x95b   : > { %v5074_v16 = vpop.f32.mrf.mxu3 }
 0x95c   : > { %v5075_v34 = vadd.f32 %v5074_v16, %v5061_v62  ;;  %v5062_v31 = vpop.f32.mrf.mxu2 }
 0x95d   : > { %v5063_v55 = vadd.f32 %v5062_v31, %v5049_v5 }
 0x95e   : > { %v5080_v50 = vadd.f32 %v5075_v34, %v9043_v61 }
 0x960   : > { %5084 = vst [vmem:[#allocation2] sm:$0xff] %v5080_v50 }
 0x963   : > { %v5076_v13 = vpop.f32.mrf.mxu3 }
 0x964   : > { %v5077_v10 = vadd.f32 %v5076_v13, %v5063_v55  ;;  %5089 = sbr.rel (%p5428_p9) target bundleno = 2413 (0x96d), region = 128 }
 0x966   : > { %v5082_v14 = vadd.f32 %v5077_v10, %v9049_v33 }
 0x968   : > { %5086 = vst [vmem:[#allocation2 + $0x8] sm:$0xff] %v5082_v14 }
 0x969   : > { %5090 = vst [vmem:[%s10400_s24] sm:$0xff] %v5079_v47 }
 0x96a   : > { %5091 = vst [vmem:[%s10401_s15 + $0x8] sm:$0xff] %v5080_v50 }
 0x96b   : > { %5092 = vst [vmem:[%s10401_s15 + $0x10] sm:$0xff] %v5081_v26 }
 0x96c   : > { %5093 = vst [vmem:[%s10401_s15 + $0x18] sm:$0xff] %v5082_v14 }
 0x96d PF: > { %s10402_s27 = sld [smem:[#allocation25_spill]] }
 0x973   : > { %p7030_p5 = scmp.ne.s32.totalorder %s10402_s27, 1 }
 0x974   : > { %s10403_s21 = sld [smem:[#allocation39_spill]] (!%p7030_p5) }
 0x975   : > { %5097 = sbr.rel (%p7030_p5) target bundleno = 2706 (0xa92), region = 132  ;;  %s10404_s19 = sld [smem:[#allocation41_spill]] (!%p7030_p5) }
 0x97a   : > { %v5098_v61 = vadd.f32 %v5080_v50, %v5079_v47  ;;  %v5101_v33 = vadd.f32 %v5082_v14, %v5081_v26  ;;  %v5148_v9 = vld [vmem:[#allocation16] sm:$0x3]  ;;  %v5158_v12 = vld [vmem:[%s10403_s21] sm:$0x3] }
 0x97b   : > { %v5150_v43 = vperm.slane %v5148_v9, 0  ;;  %v5151_v25 = vperm.slane %v5148_v9, 1  ;;  %v5160_v4 = vperm.slane %v5158_v12, 0  ;;  %v5161_v20 = vperm.slane %v5158_v12, 1 }
 0x97c   : > { %5099 = vadd.xlane.f32.xlu0 %v5098_v61 }
 0x984   : > { %5102 = vadd.xlane.f32.xlu0 %v5101_v33 }
 0x9ef   : > { %v5100_v39 = vpop.xlane.xlu0 %5099 }
 0x9f0   : > { %v5104_v48 = vmul.f32 %v5100_v39, %v8483_v2 }
 0x9f2   : > { %v5106_v8 = vsub.f32 %v5079_v47, %v5104_v48  ;;  %v5107_v45 = vsub.f32 %v5080_v50, %v5104_v48 }
 0x9f4   : > { %v5110_v51 = vmul.f32 %v5106_v8, %v5106_v8  ;;  %v5111_v53 = vmul.f32 %v5107_v45, %v5107_v45 }
 0x9f6   : > { %v5114_v29 = vadd.f32 %v5111_v53, %v5110_v51 }
 0x9f7   : > { %v5103_v41 = vpop.xlane.xlu0 %5102 }
 0x9f8   : > { %v5105_v19 = vmul.f32 %v5103_v41, %v8483_v2  ;;  %5115 = vadd.xlane.f32.xlu1 %v5114_v29 }
 0x9fa   : > { %v5108_v7 = vsub.f32 %v5081_v26, %v5105_v19  ;;  %v5109_v24 = vsub.f32 %v5082_v14, %v5105_v19 }
 0x9fc   : > { %v5112_v27 = vmul.f32 %v5108_v7, %v5108_v7  ;;  %v5113_v49 = vmul.f32 %v5109_v24, %v5109_v24 }
 0x9fe   : > { %v5117_v22 = vadd.f32 %v5113_v49, %v5112_v27 }
 0xa00   : > { %5118 = vadd.xlane.f32.xlu1 %v5117_v22 }
 0xa6b   : > { %v5116_v56 = vpop.xlane.xlu1 %5115 }
 0xa6c   : > { %v5120_v11 = vmul.f32 %v5116_v56, %v8483_v2 }
 0xa6e   : > { %v5122_v44 = vadd.f32 1e-05, %v5120_v11 }
 0xa70   : > { %7691 = vrsqrt.f32 %v5122_v44  ;;  %vm5130_vm2 = vweird.f32 %v5122_v44 }
 0xa73   : > { %v5119_v46 = vpop.xlane.xlu1 %5118 }
 0xa74   : > { %v5121_v63 = vmul.f32 %v5119_v46, %v8483_v2 }
 0xa76   : > { %v7692_v47 = vpop.eup %7691  ;;  %v5123_v21 = vadd.f32 1e-05, %v5121_v63 }
 0xa77   : > { %v5125_v15 = vmul.f32 %v7692_v47, %v5122_v44  ;;  %vm5131_vm1 = vweird.f32 %v7692_v47 }
 0xa78   : > { %7693 = vrsqrt.f32 %v5123_v21  ;;  %vm5132_vm3 = vmor %vm5130_vm2, %vm5131_vm1  ;;  %vm5140_vm5 = vweird.f32 %v5123_v21 }
 0xa79   : > { %v5126_v1 = vmul.f32 %v7692_v47, %v5125_v15 }
 0xa7b   : > { %v5127_v42 = vmul.f32 0.5, %v5126_v1 }
 0xa7d   : > { %v5128_v36 = vsub.f32 1.5, %v5127_v42 }
 0xa7e   : > { %v7694_v26 = vpop.eup %7693 }
 0xa7f   : > { %v5129_v60 = vmul.f32 %v7692_v47, %v5128_v36  ;;  %v5135_v18 = vmul.f32 %v7694_v26, %v5123_v21  ;;  %vm5141_vm4 = vweird.f32 %v7694_v26 }
 0xa80   : > { %vm5142_vm6 = vmor %vm5140_vm5, %vm5141_vm4 }
 0xa81   : > { %v5133_v2 = vsel %vm5132_vm3, %v7692_v47, %v5129_v60  ;;  %v5136_v17 = vmul.f32 %v7694_v26, %v5135_v18 }
 0xa82   : > { %v5144_v32 = vmul.f32 %v5133_v2, %v5106_v8  ;;  %v5145_v54 = vmul.f32 %v5133_v2, %v5107_v45 }
 0xa83   : > { %v5137_v28 = vmul.f32 0.5, %v5136_v17 }
 0xa84   : > { %v5154_v58 = vmul.f32 %v5150_v43, %v5144_v32  ;;  %v5155_v59 = vmul.f32 %v5151_v25, %v5145_v54 }
 0xa85   : > { %v5138_v38 = vsub.f32 1.5, %v5137_v28 }
 0xa86   : > { %v5164_v0 = vadd.f32 %v5160_v4, %v5154_v58  ;;  %v5165_v3 = vadd.f32 %v5161_v20, %v5155_v59 }
 0xa87   : > { %v5139_v57 = vmul.f32 %v7694_v26, %v5138_v38 }
 0xa88   : > { %5168 = vst [vmem:[%s10404_s19] sm:$0xff] %v5164_v0 }
 0xa89   : > { %5169 = vst [vmem:[%s10404_s19 + $0x8] sm:$0xff] %v5165_v3  ;;  %v5143_v6 = vsel %vm5142_vm6, %v7694_v26, %v5139_v57 }
 0xa8a   : > { %v5146_v30 = vmul.f32 %v5143_v6, %v5108_v7  ;;  %v5147_v23 = vmul.f32 %v5143_v6, %v5109_v24 }
 0xa8c   : > { %v5156_v40 = vmul.f32 %v5150_v43, %v5146_v30  ;;  %v5157_v62 = vmul.f32 %v5151_v25, %v5147_v23 }
 0xa8e   : > { %v5166_v37 = vadd.f32 %v5160_v4, %v5156_v40  ;;  %v5167_v16 = vadd.f32 %v5161_v20, %v5157_v62 }
 0xa90   : > { %5170 = vst [vmem:[%s10404_s19 + $0x10] sm:$0xff] %v5166_v37 }
 0xa91   : > { %5171 = vst [vmem:[%s10404_s19 + $0x18] sm:$0xff] %v5167_v16 }
 0xa92 PF: > { %s10405_s27 = sld [smem:[#allocation26_spill]] }
 0xa93   : > { %s10406_s24 = sld [smem:[#allocation23_spill]] }
 0xa94   : > { %s10407_s25 = sld [smem:[#allocation24_spill]] }
 0xa95   : > { %s10408_s26 = sld [smem:[#allocation27_spill]] }
 0xa98   : > { %p40_p8 = scmp.ge.s32.totalorder %s10405_s27, 4  }
 0xa9a   :  { %42 = sbr.rel (!%p40_p8) target bundleno = 25 (0x19), region = 241 }
 0xa9f   :  { %5189 = vsyncpa [#allocation4], 1 }
 0xaa0   :  { %5191 = vsyncpa [#allocation4 + $0x1], 1 }
 0xaa1   :  { %5192 = vsyncpa [#allocation6], 1 }
 0xaa2   :  { %5194 = vsyncpa [#allocation6 + $0x1], 1 }
 0xaa3   :  { %5195 = vsyncpa [#allocation9], 1 }
 0xaa4   :  { %5197 = vsyncpa [#allocation9 + $0x1], 1 }
 0xaa5   :  { %5198 = vsyncpa [#allocation12], 1 }
 0xaa6   :  { %5200 = vsyncpa [#allocation12 + $0x1], 1 }
 0xaa7   :  { %5201 = vsyncpa [#allocation15], 1 }
 0xaa8   :  { %5203 = vsyncpa [#allocation15 + $0x1], 1 }

</bundles_post_ra>
